<compile_context>
chip_gen: v7x
topology: tpu7x:2x2x1
jax: 0.10.0
libtpu: 0.0.40
codegen_flags: <defaults>
</compile_context>

<pallas_src>
import jax
import jax.numpy as jnp
import numpy as np
from jax import lax
from jax.experimental import pallas as pl
from jax.experimental.pallas import tpu as pltpu

K = 4          # kernel_size
STRIDE = 2
PADDING = 1
EPS = 1e-5

# MXU operand precision. float32 keeps parity with the f32 PyTorch module and
# passes the 1e-4 check below. On v6e/v7x set to jnp.bfloat16 for ~2x MXU
# throughput and half the operand DMA bytes (accumulation stays f32); expect
# ~1e-3 relative error, so loosen the test tolerance accordingly.
MATMUL_DTYPE = jnp.float32


def _fused_deconv_bn_relu_kernel(xp_ref, w_ref, g_ref, b_ref, o_ref, p_ref):
    """One batch element per grid step; fused BN+ReLU on the final step.

    xp_ref: (H+2, W+2, Cin)    compact input with 1-px halo pad
    w_ref : (9*Cin, 4*Cout)    polyphase weight (structural zeros for unused taps)
    g_ref : (1, Cout)          BN gamma
    b_ref : (1, Cout)          BN beta
    o_ref : (N, H*W, 4*Cout)   resident output block (same block every step)
    p_ref : (H*W, 9*Cin)       VMEM scratch: im2col patch matrix
    """
    n = pl.program_id(0)
    num_n = pl.num_programs(0)
    Hp, Wp, cin = xp_ref.shape
    H, W = Hp - 2, Wp - 2
    nb, hw, c4 = o_ref.shape
    cout = g_ref.shape[1]
    nph = c4 // cout            # = 4 output phases (oh % 2, ow % 2)

    # --- im2col over the 3x3 halo neighbourhood of the compact input.
    # Each (ph, pw) chunk is a shifted window; writing it into a lane slice of
    # the scratch builds the (H*W, 9*Cin) LHS once, feeding a single MXU
    # matmul instead of 16 narrow per-tap matmuls on a dilated slab.
    for ph in range(3):
        for pw in range(3):
            idx = ph * 3 + pw
            p_ref[:, idx * cin:(idx + 1) * cin] = (
                xp_ref[ph:ph + H, pw:pw + W, :].reshape(hw, cin))

    y = jnp.dot(p_ref[...], w_ref[...], preferred_element_type=jnp.float32)
    o_ref[n, :, :] = y          # stays resident in VMEM across the grid

    # --- last grid step: BatchNorm (batch stats, biased variance) + ReLU,
    # entirely in VMEM (no HBM round trip, no second kernel launch).
    @pl.when(n == num_n - 1)
    def _():
        yy = o_ref[...].reshape(nb * hw, c4)          # f32
        cnt = float(nb * hw * nph)
        # Per-channel statistics: the 4 phase column-groups of a channel are
        # just different output pixels, so they share mean/var.
        s1 = jnp.zeros((1, cout), jnp.float32)
        for p in range(nph):
            s1 = s1 + jnp.sum(yy[:, p * cout:(p + 1) * cout],
                              axis=0, keepdims=True)
        mean = s1 / cnt
        s2 = jnp.zeros((1, cout), jnp.float32)
        for p in range(nph):
            d = yy[:, p * cout:(p + 1) * cout] - mean
            s2 = s2 + jnp.sum(d * d, axis=0, keepdims=True)
        inv = lax.rsqrt(s2 / cnt + EPS)
        scale = inv * g_ref[...]                      # (1, Cout)
        shift = b_ref[...] - mean * scale             # (1, Cout)
        for p in range(nph):
            sl = slice(p * cout, (p + 1) * cout)
            o_ref[:, :, sl] = jnp.maximum(
                yy[:, sl] * scale + shift, 0.0).reshape(nb, hw, cout)


def _polyphase_weight(w_pt, dtype):
    """(Cin, Cout, 4, 4) ConvTranspose2d weight -> (9*Cin, 4*Cout).

    Row = (ph*3 + pw)*Cin + ci over the 3x3 halo patch; column =
    (rh*2 + rw)*Cout + co over the 4 output phases. Phase (rh, rw) at pixel
    (a, b) only reads patch positions ph in {rh, rh+1}, pw in {rw, rw+1},
    hitting kernel tap (kh, kw) = (3-rh-2*(ph-rh), 3-rw-2*(pw-rw)); all other
    entries are structural zeros.
    """
    cin, cout = w_pt.shape[0], w_pt.shape[1]
    zeros = jnp.zeros((cin, cout), w_pt.dtype)
    rows = []
    for ph in range(3):
        for pw in range(3):
            cols = []
            for rh in range(2):
                for rw in range(2):
                    dh, dw = ph - rh, pw - rw
                    if 0 <= dh <= 1 and 0 <= dw <= 1:
                        cols.append(w_pt[:, :, 3 - rh - 2 * dh, 3 - rw - 2 * dw])
                    else:
                        cols.append(zeros)
            rows.append(jnp.concatenate(cols, axis=1))   # (Cin, 4*Cout)
    return jnp.concatenate(rows, axis=0).astype(dtype)   # (9*Cin, 4*Cout)


@jax.jit
def conv_transpose_block(x_nchw, w_pt, bias, gamma, beta):
    """x_nchw: (N, Cin, H, W); w_pt: (Cin, Cout, K, K) (PyTorch layout)."""
    del bias   # exactly cancelled by train-mode BatchNorm's mean subtraction
    N, Cin, H, W = x_nchw.shape
    Cout = w_pt.shape[1]
    Ho = (H - 1) * STRIDE - 2 * PADDING + K           # = 2H
    Wo = (W - 1) * STRIDE - 2 * PADDING + K           # = 2W
    HW, C4 = H * W, 4 * Cout

    # Compact NHWC input with a 1-pixel halo -- NOT the 4.7x zero-dilated slab.
    x = jnp.transpose(x_nchw, (0, 2, 3, 1)).astype(MATMUL_DTYPE)
    xp = jnp.pad(x, ((0, 0), (1, 1), (1, 1), (0, 0)))
    Hp, Wp = H + 2, W + 2

    w_big = _polyphase_weight(w_pt, MATMUL_DTYPE)
    g2 = gamma.reshape(1, Cout).astype(jnp.float32)
    b2 = beta.reshape(1, Cout).astype(jnp.float32)

    # Single fused pallas_call. The batch axis must be "arbitrary" because the
    # resident output + BN statistics couple all grid steps (fusing the BN is
    # worth more than v7x megacore sharding at this size).
    # TODO(synk): if this layer is scaled up (large N/H/W/C), tile over output
    # rows, accumulate BN sums in a small scratch and set vmem_limit_bytes
    # instead of keeping the whole conv output resident in one VMEM block.
    y = pl.pallas_call(
        _fused_deconv_bn_relu_kernel,
        out_shape=jax.ShapeDtypeStruct((N, HW, C4), jnp.float32),
        grid=(N,),
        in_specs=[
            pl.BlockSpec((None, Hp, Wp, Cin), lambda n: (n, 0, 0, 0)),
            pl.BlockSpec((9 * Cin, C4), lambda n: (0, 0)),
            pl.BlockSpec((1, Cout), lambda n: (0, 0)),
            pl.BlockSpec((1, Cout), lambda n: (0, 0)),
        ],
        out_specs=pl.BlockSpec((N, HW, C4), lambda n: (0, 0, 0)),
        scratch_shapes=[pltpu.VMEM((HW, 9 * Cin), MATMUL_DTYPE)],
        compiler_params=pltpu.CompilerParams(
            dimension_semantics=("arbitrary",)),
    )(xp, w_big, g2, b2)

    # Pixel-shuffle the 4 phases and go back to NCHW in one XLA transpose:
    # y[n, a*W+b, (rh*2+rw)*Cout+c] -> out[n, c, 2a+rh, 2b+rw]
    out = y.reshape(N, H, W, 2, 2, Cout)
    out = jnp.transpose(out, (0, 5, 1, 3, 2, 4)).reshape(N, Cout, Ho, Wo)
    return out


def _reference(x_nchw, w_pt, bias, gamma, beta):
    """Pure-JAX reference matching PyTorch semantics (f32, with bias)."""
    x = jnp.transpose(x_nchw, (0, 2, 3, 1)).astype(jnp.float32)
    w_flip = jnp.transpose(w_pt[:, :, ::-1, ::-1], (2, 3, 0, 1)).astype(jnp.float32)
    p = K - 1 - PADDING
    y = lax.conv_general_dilated(
        x, w_flip, window_strides=(1, 1),
        padding=[(p, p), (p, p)], lhs_dilation=(STRIDE, STRIDE),
        dimension_numbers=("NHWC", "HWIO", "NHWC"))
    y = y + bias.reshape(1, 1, 1, -1)
    mean = jnp.mean(y, axis=(0, 1, 2), keepdims=True)
    var = jnp.mean((y - mean) ** 2, axis=(0, 1, 2), keepdims=True)
    out = jnp.maximum((y - mean) * lax.rsqrt(var + EPS)
                      * gamma.reshape(1, 1, 1, -1) + beta.reshape(1, 1, 1, -1), 0.0)
    return jnp.transpose(out, (0, 3, 1, 2))


if __name__ == "__main__":
    N, Cin, H, W = 2, 8, 16, 16
    Cout = 16

    key = jax.random.PRNGKey(0)
    kx, kw, kb = jax.random.split(key, 3)
    x = jax.random.normal(kx, (N, Cin, H, W), dtype=jnp.float32)
    # ConvTranspose2d weight layout: (in_channels, out_channels, K, K)
    bound = 1.0 / np.sqrt(Cin * K * K)
    w_pt = jax.random.uniform(kw, (Cin, Cout, K, K), jnp.float32, -bound, bound)
    bias = jax.random.uniform(kb, (Cout,), jnp.float32, -bound, bound)
    gamma = jnp.ones((Cout,), jnp.float32)    # PyTorch BatchNorm2d default init
    beta = jnp.zeros((Cout,), jnp.float32)

    out = conv_transpose_block(x, w_pt, bias, gamma, beta)
    out = jax.block_until_ready(out)

    ref = _reference(x, w_pt, bias, gamma, beta)
    assert out.shape == (N, Cout, 2 * H, 2 * W), out.shape
    tol = 1e-4 if MATMUL_DTYPE == jnp.float32 else 2e-2
    if not np.allclose(np.asarray(out), np.asarray(ref), rtol=tol, atol=tol):
        raise AssertionError("Pallas kernel does not match reference")
    print("KERNEL_OK")
</pallas_src>

<mosaic_0001>
module attributes {stable_mosaic.version = 11 : i64} {
  func.func @_fused_deconv_bn_relu_kernel(%arg0: i32, %arg1: memref<1x18x18x8xf32, #tpu.memory_space<vmem>>, %arg2: memref<72x64xf32, #tpu.memory_space<vmem>>, %arg3: memref<1x16xf32, #tpu.memory_space<vmem>>, %arg4: memref<1x16xf32, #tpu.memory_space<vmem>>, %arg5: memref<2x256x64xf32, #tpu.memory_space<vmem>>, %arg6: memref<256x72xf32, #tpu.memory_space<vmem>>) attributes {dimension_semantics = [#tpu.dimension_semantics<arbitrary>], iteration_bounds = array<i64: 2>, scalar_prefetch = 0 : i64, scratch_operands = 1 : i64, tpu.core_type = #tpu.core_type<tc>, window_params = [{transform_indices = @transform_0, window_bounds = array<i64: 1, 18, 18, 8>}, {pipeline_mode = #tpu.pipeline_mode<synchronous>, transform_indices = @transform_1, window_bounds = array<i64: 72, 64>}, {pipeline_mode = #tpu.pipeline_mode<synchronous>, transform_indices = @transform_2, window_bounds = array<i64: 1, 16>}, {pipeline_mode = #tpu.pipeline_mode<synchronous>, transform_indices = @transform_3, window_bounds = array<i64: 1, 16>}, {pipeline_mode = #tpu.pipeline_mode<synchronous>, transform_indices = @transform_4, window_bounds = array<i64: 2, 256, 64>}]} {
    %c0 = arith.constant 0 : index
    %c0_0 = arith.constant 0 : index
    %c0_1 = arith.constant 0 : index
    %c0_2 = arith.constant 0 : index
    %0 = vector.load %arg1[%c0, %c0_0, %c0_1, %c0_2] : memref<1x18x18x8xf32, #tpu.memory_space<vmem>>, vector<1x16x16x8xf32>
    %1 = vector.shape_cast %0 : vector<1x16x16x8xf32> to vector<16x16x8xf32>
    %2 = vector.shape_cast %1 : vector<16x16x8xf32> to vector<256x8xf32>
    %c0_3 = arith.constant 0 : index
    %c0_4 = arith.constant 0 : index
    %3 = vector.load %arg6[%c0_3, %c0_4] : memref<256x72xf32, #tpu.memory_space<vmem>>, vector<256x8xf32>
    tpu.vector_store %arg6[%c0_3, %c0_4], %2 {strides = array<i32>} : memref<256x72xf32, #tpu.memory_space<vmem>>, vector<256x8xf32>,
    %c0_5 = arith.constant 0 : index
    %c0_6 = arith.constant 0 : index
    %c1 = arith.constant 1 : index
    %c0_7 = arith.constant 0 : index
    %4 = vector.load %arg1[%c0_5, %c0_6, %c1, %c0_7] : memref<1x18x18x8xf32, #tpu.memory_space<vmem>>, vector<1x16x16x8xf32>
    %5 = vector.shape_cast %4 : vector<1x16x16x8xf32> to vector<16x16x8xf32>
    %6 = vector.shape_cast %5 : vector<16x16x8xf32> to vector<256x8xf32>
    %c0_8 = arith.constant 0 : index
    %c8 = arith.constant 8 : index
    %7 = vector.load %arg6[%c0_8, %c8] : memref<256x72xf32, #tpu.memory_space<vmem>>, vector<256x8xf32>
    tpu.vector_store %arg6[%c0_8, %c8], %6 {strides = array<i32>} : memref<256x72xf32, #tpu.memory_space<vmem>>, vector<256x8xf32>,
    %c0_9 = arith.constant 0 : index
    %c0_10 = arith.constant 0 : index
    %c2 = arith.constant 2 : index
    %c0_11 = arith.constant 0 : index
    %8 = vector.load %arg1[%c0_9, %c0_10, %c2, %c0_11] : memref<1x18x18x8xf32, #tpu.memory_space<vmem>>, vector<1x16x16x8xf32>
    %9 = vector.shape_cast %8 : vector<1x16x16x8xf32> to vector<16x16x8xf32>
    %10 = vector.shape_cast %9 : vector<16x16x8xf32> to vector<256x8xf32>
    %c0_12 = arith.constant 0 : index
    %c16 = arith.constant 16 : index
    %11 = vector.load %arg6[%c0_12, %c16] : memref<256x72xf32, #tpu.memory_space<vmem>>, vector<256x8xf32>
    tpu.vector_store %arg6[%c0_12, %c16], %10 {strides = array<i32>} : memref<256x72xf32, #tpu.memory_space<vmem>>, vector<256x8xf32>,
    %c0_13 = arith.constant 0 : index
    %c1_14 = arith.constant 1 : index
    %c0_15 = arith.constant 0 : index
    %c0_16 = arith.constant 0 : index
    %12 = vector.load %arg1[%c0_13, %c1_14, %c0_15, %c0_16] : memref<1x18x18x8xf32, #tpu.memory_space<vmem>>, vector<1x16x16x8xf32>
    %13 = vector.shape_cast %12 : vector<1x16x16x8xf32> to vector<16x16x8xf32>
    %14 = vector.shape_cast %13 : vector<16x16x8xf32> to vector<256x8xf32>
    %c0_17 = arith.constant 0 : index
    %c24 = arith.constant 24 : index
    %15 = vector.load %arg6[%c0_17, %c24] : memref<256x72xf32, #tpu.memory_space<vmem>>, vector<256x8xf32>
    tpu.vector_store %arg6[%c0_17, %c24], %14 {strides = array<i32>} : memref<256x72xf32, #tpu.memory_space<vmem>>, vector<256x8xf32>,
    %c0_18 = arith.constant 0 : index
    %c1_19 = arith.constant 1 : index
    %c1_20 = arith.constant 1 : index
    %c0_21 = arith.constant 0 : index
    %16 = vector.load %arg1[%c0_18, %c1_19, %c1_20, %c0_21] : memref<1x18x18x8xf32, #tpu.memory_space<vmem>>, vector<1x16x16x8xf32>
    %17 = vector.shape_cast %16 : vector<1x16x16x8xf32> to vector<16x16x8xf32>
    %18 = vector.shape_cast %17 : vector<16x16x8xf32> to vector<256x8xf32>
    %c0_22 = arith.constant 0 : index
    %c32 = arith.constant 32 : index
    %19 = vector.load %arg6[%c0_22, %c32] : memref<256x72xf32, #tpu.memory_space<vmem>>, vector<256x8xf32>
    tpu.vector_store %arg6[%c0_22, %c32], %18 {strides = array<i32>} : memref<256x72xf32, #tpu.memory_space<vmem>>, vector<256x8xf32>,
    %c0_23 = arith.constant 0 : index
    %c1_24 = arith.constant 1 : index
    %c2_25 = arith.constant 2 : index
    %c0_26 = arith.constant 0 : index
    %20 = vector.load %arg1[%c0_23, %c1_24, %c2_25, %c0_26] : memref<1x18x18x8xf32, #tpu.memory_space<vmem>>, vector<1x16x16x8xf32>
    %21 = vector.shape_cast %20 : vector<1x16x16x8xf32> to vector<16x16x8xf32>
    %22 = vector.shape_cast %21 : vector<16x16x8xf32> to vector<256x8xf32>
    %c0_27 = arith.constant 0 : index
    %c40 = arith.constant 40 : index
    %23 = vector.load %arg6[%c0_27, %c40] : memref<256x72xf32, #tpu.memory_space<vmem>>, vector<256x8xf32>
    tpu.vector_store %arg6[%c0_27, %c40], %22 {strides = array<i32>} : memref<256x72xf32, #tpu.memory_space<vmem>>, vector<256x8xf32>,
    %c0_28 = arith.constant 0 : index
    %c2_29 = arith.constant 2 : index
    %c0_30 = arith.constant 0 : index
    %c0_31 = arith.constant 0 : index
    %24 = vector.load %arg1[%c0_28, %c2_29, %c0_30, %c0_31] : memref<1x18x18x8xf32, #tpu.memory_space<vmem>>, vector<1x16x16x8xf32>
    %25 = vector.shape_cast %24 : vector<1x16x16x8xf32> to vector<16x16x8xf32>
    %26 = vector.shape_cast %25 : vector<16x16x8xf32> to vector<256x8xf32>
    %c0_32 = arith.constant 0 : index
    %c48 = arith.constant 48 : index
    %27 = vector.load %arg6[%c0_32, %c48] : memref<256x72xf32, #tpu.memory_space<vmem>>, vector<256x8xf32>
    tpu.vector_store %arg6[%c0_32, %c48], %26 {strides = array<i32>} : memref<256x72xf32, #tpu.memory_space<vmem>>, vector<256x8xf32>,
    %c0_33 = arith.constant 0 : index
    %c2_34 = arith.constant 2 : index
    %c1_35 = arith.constant 1 : index
    %c0_36 = arith.constant 0 : index
    %28 = vector.load %arg1[%c0_33, %c2_34, %c1_35, %c0_36] : memref<1x18x18x8xf32, #tpu.memory_space<vmem>>, vector<1x16x16x8xf32>
    %29 = vector.shape_cast %28 : vector<1x16x16x8xf32> to vector<16x16x8xf32>
    %30 = vector.shape_cast %29 : vector<16x16x8xf32> to vector<256x8xf32>
    %c0_37 = arith.constant 0 : index
    %c56 = arith.constant 56 : index
    %31 = vector.load %arg6[%c0_37, %c56] : memref<256x72xf32, #tpu.memory_space<vmem>>, vector<256x8xf32>
    tpu.vector_store %arg6[%c0_37, %c56], %30 {strides = array<i32>} : memref<256x72xf32, #tpu.memory_space<vmem>>, vector<256x8xf32>,
    %c0_38 = arith.constant 0 : index
    %c2_39 = arith.constant 2 : index
    %c2_40 = arith.constant 2 : index
    %c0_41 = arith.constant 0 : index
    %32 = vector.load %arg1[%c0_38, %c2_39, %c2_40, %c0_41] : memref<1x18x18x8xf32, #tpu.memory_space<vmem>>, vector<1x16x16x8xf32>
    %33 = vector.shape_cast %32 : vector<1x16x16x8xf32> to vector<16x16x8xf32>
    %34 = vector.shape_cast %33 : vector<16x16x8xf32> to vector<256x8xf32>
    %c0_42 = arith.constant 0 : index
    %c64 = arith.constant 64 : index
    %35 = vector.load %arg6[%c0_42, %c64] : memref<256x72xf32, #tpu.memory_space<vmem>>, vector<256x8xf32>
    tpu.vector_store %arg6[%c0_42, %c64], %34 {strides = array<i32>} : memref<256x72xf32, #tpu.memory_space<vmem>>, vector<256x8xf32>,
    %c0_43 = arith.constant 0 : index
    %c0_44 = arith.constant 0 : index
    %36 = vector.load %arg6[%c0_43, %c0_44] : memref<256x72xf32, #tpu.memory_space<vmem>>, vector<256x72xf32>
    %c0_45 = arith.constant 0 : index
    %c0_46 = arith.constant 0 : index
    %37 = vector.load %arg2[%c0_45, %c0_46] : memref<72x64xf32, #tpu.memory_space<vmem>>, vector<72x64xf32>
    %cst = arith.constant dense<0.000000e+00> : vector<256x64xf32>
    %38 = tpu.matmul %36, %37, %cst {dimension_numbers = #tpu.dot_dimension_numbers<[1], [0], [0], [1], [0, 0, 1, 1], [], []>} : vector<256x72xf32>, vector<72x64xf32>, vector<256x64xf32> -> vector<256x64xf32>
    %39 = arith.index_cast %arg0 : i32 to index
    %c0_47 = arith.constant 0 : index
    %c0_48 = arith.constant 0 : index
    %40 = vector.load %arg5[%39, %c0_47, %c0_48] : memref<2x256x64xf32, #tpu.memory_space<vmem>>, vector<1x256x64xf32>
    %41 = vector.shape_cast %40 : vector<1x256x64xf32> to vector<256x64xf32>
    %42 = vector.shape_cast %38 : vector<256x64xf32> to vector<1x256x64xf32>
    tpu.vector_store %arg5[%39, %c0_47, %c0_48], %42 {strides = array<i32>} : memref<2x256x64xf32, #tpu.memory_space<vmem>>, vector<1x256x64xf32>,
    %c1_i32 = arith.constant 1 : i32
    %43 = arith.cmpi eq, %arg0, %c1_i32 : i32
    %44 = arith.extui %43 : i1 to i32
    %c0_i32 = arith.constant 0 : i32
    %45 = arith.cmpi ne, %44, %c0_i32 : i32
    scf.if %45 {
      %c0_49 = arith.constant 0 : index
      %c0_50 = arith.constant 0 : index
      %c0_51 = arith.constant 0 : index
      %46 = vector.load %arg5[%c0_49, %c0_50, %c0_51] : memref<2x256x64xf32, #tpu.memory_space<vmem>>, vector<2x256x64xf32>
      %47 = vector.shape_cast %46 : vector<2x256x64xf32> to vector<512x64xf32>
      %cst_52 = arith.constant 0.000000e+00 : f32
      %48 = vector.broadcast %cst_52 : f32 to vector<1x16xf32>
      %49 = vector.extract_strided_slice %47 {offsets = [0, 0], sizes = [512, 16], strides = [1, 1]} : vector<512x64xf32> to vector<512x16xf32>
      %cst_53 = arith.constant dense<0.000000e+00> : vector<16xf32>
      %50 = vector.multi_reduction <add>, %49, %cst_53 [0] : vector<512x16xf32> to vector<16xf32>
      %51 = vector.shape_cast %50 : vector<16xf32> to vector<1x16xf32>
      %52 = arith.addf %48, %51 : vector<1x16xf32>
      %53 = vector.extract_strided_slice %47 {offsets = [0, 16], sizes = [512, 16], strides = [1, 1]} : vector<512x64xf32> to vector<512x16xf32>
      %cst_54 = arith.constant dense<0.000000e+00> : vector<16xf32>
      %54 = vector.multi_reduction <add>, %53, %cst_54 [0] : vector<512x16xf32> to vector<16xf32>
      %55 = vector.shape_cast %54 : vector<16xf32> to vector<1x16xf32>
      %56 = arith.addf %52, %55 : vector<1x16xf32>
      %57 = vector.extract_strided_slice %47 {offsets = [0, 32], sizes = [512, 16], strides = [1, 1]} : vector<512x64xf32> to vector<512x16xf32>
      %cst_55 = arith.constant dense<0.000000e+00> : vector<16xf32>
      %58 = vector.multi_reduction <add>, %57, %cst_55 [0] : vector<512x16xf32> to vector<16xf32>
      %59 = vector.shape_cast %58 : vector<16xf32> to vector<1x16xf32>
      %60 = arith.addf %56, %59 : vector<1x16xf32>
      %61 = vector.extract_strided_slice %47 {offsets = [0, 48], sizes = [512, 16], strides = [1, 1]} : vector<512x64xf32> to vector<512x16xf32>
      %cst_56 = arith.constant dense<0.000000e+00> : vector<16xf32>
      %62 = vector.multi_reduction <add>, %61, %cst_56 [0] : vector<512x16xf32> to vector<16xf32>
      %63 = vector.shape_cast %62 : vector<16xf32> to vector<1x16xf32>
      %64 = arith.addf %60, %63 : vector<1x16xf32>
      %cst_57 = arith.constant 2.048000e+03 : f32
      %65 = vector.broadcast %cst_57 : f32 to vector<1x16xf32>
      %66 = arith.divf %64, %65 : vector<1x16xf32>
      %cst_58 = arith.constant 0.000000e+00 : f32
      %67 = vector.broadcast %cst_58 : f32 to vector<1x16xf32>
      %68 = vector.extract_strided_slice %47 {offsets = [0, 0], sizes = [512, 16], strides = [1, 1]} : vector<512x64xf32> to vector<512x16xf32>
      %69 = vector.broadcast %66 : vector<1x16xf32> to vector<512x16xf32>
      %70 = arith.subf %68, %69 : vector<512x16xf32>
      %71 = arith.mulf %70, %70 : vector<512x16xf32>
      %cst_59 = arith.constant dense<0.000000e+00> : vector<16xf32>
      %72 = vector.multi_reduction <add>, %71, %cst_59 [0] : vector<512x16xf32> to vector<16xf32>
      %73 = vector.shape_cast %72 : vector<16xf32> to vector<1x16xf32>
      %74 = arith.addf %67, %73 : vector<1x16xf32>
      %75 = vector.extract_strided_slice %47 {offsets = [0, 16], sizes = [512, 16], strides = [1, 1]} : vector<512x64xf32> to vector<512x16xf32>
      %76 = vector.broadcast %66 : vector<1x16xf32> to vector<512x16xf32>
      %77 = arith.subf %75, %76 : vector<512x16xf32>
      %78 = arith.mulf %77, %77 : vector<512x16xf32>
      %cst_60 = arith.constant dense<0.000000e+00> : vector<16xf32>
      %79 = vector.multi_reduction <add>, %78, %cst_60 [0] : vector<512x16xf32> to vector<16xf32>
      %80 = vector.shape_cast %79 : vector<16xf32> to vector<1x16xf32>
      %81 = arith.addf %74, %80 : vector<1x16xf32>
      %82 = vector.extract_strided_slice %47 {offsets = [0, 32], sizes = [512, 16], strides = [1, 1]} : vector<512x64xf32> to vector<512x16xf32>
      %83 = vector.broadcast %66 : vector<1x16xf32> to vector<512x16xf32>
      %84 = arith.subf %82, %83 : vector<512x16xf32>
      %85 = arith.mulf %84, %84 : vector<512x16xf32>
      %cst_61 = arith.constant dense<0.000000e+00> : vector<16xf32>
      %86 = vector.multi_reduction <add>, %85, %cst_61 [0] : vector<512x16xf32> to vector<16xf32>
      %87 = vector.shape_cast %86 : vector<16xf32> to vector<1x16xf32>
      %88 = arith.addf %81, %87 : vector<1x16xf32>
      %89 = vector.extract_strided_slice %47 {offsets = [0, 48], sizes = [512, 16], strides = [1, 1]} : vector<512x64xf32> to vector<512x16xf32>
      %90 = vector.broadcast %66 : vector<1x16xf32> to vector<512x16xf32>
      %91 = arith.subf %89, %90 : vector<512x16xf32>
      %92 = arith.mulf %91, %91 : vector<512x16xf32>
      %cst_62 = arith.constant dense<0.000000e+00> : vector<16xf32>
      %93 = vector.multi_reduction <add>, %92, %cst_62 [0] : vector<512x16xf32> to vector<16xf32>
      %94 = vector.shape_cast %93 : vector<16xf32> to vector<1x16xf32>
      %95 = arith.addf %88, %94 : vector<1x16xf32>
      %cst_63 = arith.constant 2.048000e+03 : f32
      %96 = vector.broadcast %cst_63 : f32 to vector<1x16xf32>
      %97 = arith.divf %95, %96 : vector<1x16xf32>
      %cst_64 = arith.constant 9.99999974E-6 : f32
      %98 = vector.broadcast %cst_64 : f32 to vector<1x16xf32>
      %99 = arith.addf %97, %98 : vector<1x16xf32>
      %100 = math.rsqrt %99 : vector<1x16xf32>
      %c0_65 = arith.constant 0 : index
      %c0_66 = arith.constant 0 : index
      %101 = vector.load %arg3[%c0_65, %c0_66] : memref<1x16xf32, #tpu.memory_space<vmem>>, vector<1x16xf32>
      %102 = arith.mulf %100, %101 : vector<1x16xf32>
      %c0_67 = arith.constant 0 : index
      %c0_68 = arith.constant 0 : index
      %103 = vector.load %arg4[%c0_67, %c0_68] : memref<1x16xf32, #tpu.memory_space<vmem>>, vector<1x16xf32>
      %104 = arith.mulf %66, %102 : vector<1x16xf32>
      %105 = arith.subf %103, %104 : vector<1x16xf32>
      %106 = vector.extract_strided_slice %47 {offsets = [0, 0], sizes = [512, 16], strides = [1, 1]} : vector<512x64xf32> to vector<512x16xf32>
      %107 = vector.broadcast %102 : vector<1x16xf32> to vector<512x16xf32>
      %108 = arith.mulf %106, %107 : vector<512x16xf32>
      %109 = vector.broadcast %105 : vector<1x16xf32> to vector<512x16xf32>
      %110 = arith.addf %108, %109 : vector<512x16xf32>
      %cst_69 = arith.constant 0.000000e+00 : f32
      %111 = vector.broadcast %cst_69 : f32 to vector<512x16xf32>
      %112 = arith.maximumf %110, %111 : vector<512x16xf32>
      %113 = vector.shape_cast %112 : vector<512x16xf32> to vector<2x256x16xf32>
      %c0_70 = arith.constant 0 : index
      %c0_71 = arith.constant 0 : index
      %c0_72 = arith.constant 0 : index
      %114 = vector.load %arg5[%c0_70, %c0_71, %c0_72] : memref<2x256x64xf32, #tpu.memory_space<vmem>>, vector<2x256x16xf32>
      tpu.vector_store %arg5[%c0_70, %c0_71, %c0_72], %113 {strides = array<i32>} : memref<2x256x64xf32, #tpu.memory_space<vmem>>, vector<2x256x16xf32>,
      %115 = vector.extract_strided_slice %47 {offsets = [0, 16], sizes = [512, 16], strides = [1, 1]} : vector<512x64xf32> to vector<512x16xf32>
      %116 = vector.broadcast %102 : vector<1x16xf32> to vector<512x16xf32>
      %117 = arith.mulf %115, %116 : vector<512x16xf32>
      %118 = vector.broadcast %105 : vector<1x16xf32> to vector<512x16xf32>
      %119 = arith.addf %117, %118 : vector<512x16xf32>
      %cst_73 = arith.constant 0.000000e+00 : f32
      %120 = vector.broadcast %cst_73 : f32 to vector<512x16xf32>
      %121 = arith.maximumf %119, %120 : vector<512x16xf32>
      %122 = vector.shape_cast %121 : vector<512x16xf32> to vector<2x256x16xf32>
      %c0_74 = arith.constant 0 : index
      %c0_75 = arith.constant 0 : index
      %c16_76 = arith.constant 16 : index
      %123 = vector.load %arg5[%c0_74, %c0_75, %c16_76] : memref<2x256x64xf32, #tpu.memory_space<vmem>>, vector<2x256x16xf32>
      tpu.vector_store %arg5[%c0_74, %c0_75, %c16_76], %122 {strides = array<i32>} : memref<2x256x64xf32, #tpu.memory_space<vmem>>, vector<2x256x16xf32>,
      %124 = vector.extract_strided_slice %47 {offsets = [0, 32], sizes = [512, 16], strides = [1, 1]} : vector<512x64xf32> to vector<512x16xf32>
      %125 = vector.broadcast %102 : vector<1x16xf32> to vector<512x16xf32>
      %126 = arith.mulf %124, %125 : vector<512x16xf32>
      %127 = vector.broadcast %105 : vector<1x16xf32> to vector<512x16xf32>
      %128 = arith.addf %126, %127 : vector<512x16xf32>
      %cst_77 = arith.constant 0.000000e+00 : f32
      %129 = vector.broadcast %cst_77 : f32 to vector<512x16xf32>
      %130 = arith.maximumf %128, %129 : vector<512x16xf32>
      %131 = vector.shape_cast %130 : vector<512x16xf32> to vector<2x256x16xf32>
      %c0_78 = arith.constant 0 : index
      %c0_79 = arith.constant 0 : index
      %c32_80 = arith.constant 32 : index
      %132 = vector.load %arg5[%c0_78, %c0_79, %c32_80] : memref<2x256x64xf32, #tpu.memory_space<vmem>>, vector<2x256x16xf32>
      tpu.vector_store %arg5[%c0_78, %c0_79, %c32_80], %131 {strides = array<i32>} : memref<2x256x64xf32, #tpu.memory_space<vmem>>, vector<2x256x16xf32>,
      %133 = vector.extract_strided_slice %47 {offsets = [0, 48], sizes = [512, 16], strides = [1, 1]} : vector<512x64xf32> to vector<512x16xf32>
      %134 = vector.broadcast %102 : vector<1x16xf32> to vector<512x16xf32>
      %135 = arith.mulf %133, %134 : vector<512x16xf32>
      %136 = vector.broadcast %105 : vector<1x16xf32> to vector<512x16xf32>
      %137 = arith.addf %135, %136 : vector<512x16xf32>
      %cst_81 = arith.constant 0.000000e+00 : f32
      %138 = vector.broadcast %cst_81 : f32 to vector<512x16xf32>
      %139 = arith.maximumf %137, %138 : vector<512x16xf32>
      %140 = vector.shape_cast %139 : vector<512x16xf32> to vector<2x256x16xf32>
      %c0_82 = arith.constant 0 : index
      %c0_83 = arith.constant 0 : index
      %c48_84 = arith.constant 48 : index
      %141 = vector.load %arg5[%c0_82, %c0_83, %c48_84] : memref<2x256x64xf32, #tpu.memory_space<vmem>>, vector<2x256x16xf32>
      tpu.vector_store %arg5[%c0_82, %c0_83, %c48_84], %140 {strides = array<i32>} : memref<2x256x64xf32, #tpu.memory_space<vmem>>, vector<2x256x16xf32>,
    } else {
    }
    return
  }
  func.func @transform_0(%arg0: i32) -> (i32, i32, i32, i32) {
    %c0_i32 = arith.constant 0 : i32
    %c0_i32_0 = arith.constant 0 : i32
    %c0_i32_1 = arith.constant 0 : i32
    %c0_i32_2 = arith.constant 0 : i32
    return %arg0, %c0_i32, %c0_i32_0, %c0_i32_1 : i32, i32, i32, i32
  }
  func.func @transform_1(%arg0: i32) -> (i32, i32) {
    %c0_i32 = arith.constant 0 : i32
    %c0_i32_0 = arith.constant 0 : i32
    %c0_i32_1 = arith.constant 0 : i32
    return %c0_i32, %c0_i32_0 : i32, i32
  }
  func.func @transform_2(%arg0: i32) -> (i32, i32) {
    %c0_i32 = arith.constant 0 : i32
    %c0_i32_0 = arith.constant 0 : i32
    %c0_i32_1 = arith.constant 0 : i32
    return %c0_i32, %c0_i32_0 : i32, i32
  }
  func.func @transform_3(%arg0: i32) -> (i32, i32) {
    %c0_i32 = arith.constant 0 : i32
    %c0_i32_0 = arith.constant 0 : i32
    %c0_i32_1 = arith.constant 0 : i32
    return %c0_i32, %c0_i32_0 : i32, i32
  }
  func.func @transform_4(%arg0: i32) -> (i32, i32, i32) {
    %c0_i32 = arith.constant 0 : i32
    %c0_i32_0 = arith.constant 0 : i32
    %c0_i32_1 = arith.constant 0 : i32
    %c0_i32_2 = arith.constant 0 : i32
    return %c0_i32, %c0_i32_0, %c0_i32_1 : i32, i32, i32
  }
}

</mosaic_0001>

<bundles_post_ra>
// kernel: conv_transpose_block.1
= control target key start
LH: loop header
LB: loop body
LE: loop exit
PB: predicated region body
PF: predicated region fallthrough
CT: control target
= control target key end

     0   :  { %s5540_s15 = smov 0   ;;  %s12461_s0 = inlined_call_operand.vmem [shape: f32[2,18,18,8], index: 0, kind: input, shape index: {}]   ;;  %s12462_s1 = inlined_call_operand.vmem [shape: f32[72,64], index: 1, kind: input, shape index: {}]   ;;  %s12463_s2 = inlined_call_operand.vmem [shape: f32[1,16], index: 2, kind: input, shape index: {}]   ;;  %s12464_s3 = inlined_call_operand.vmem [shape: f32[1,16], index: 3, kind: input, shape index: {}]   ;;  %s12465_s4 = inlined_call_operand.vmem [shape: f32[2,256,64], index: 4, kind: output, shape index: {}]  }
   0x1 LB: > { %s5546_s16 = sadd.s32 4294967295, %s5499_s15   ;;  %p4982_p0 = scmp.ge.s32.totalorder %s5499_s15, 1  ;;  %s5499_s15 = sphi %s5540_s15, %s14_s15  }
   0x2   : > { %p157_p1 = scmp.lt.s32.totalorder %s5499_s15, 3 }
   0x4   : > { %p158_p2 = pnand %p4982_p0, %p157_p1 }
   0x6   : > { %161 = sbr.rel (%p158_p2) target bundleno = 1995 (0x7cb), region = 36 }
   0xd   : > { %p178_p3 = scmp.lt.s32.totalorder %s5546_s16, 1  ;;  %s5501_s22 = smov 8   ;;  %vm215_vm0 = vcmask 64512   ;;  %vm408_vm1 = vcmask 130112   ;;  %vm601_vm2 = vcmask 195712   ;;  %vm795_vm3 = vcmask 261312  }
   0xe   : > { %s5502_s23 = smov 16   ;;  %s5503_s24 = smov 24   ;;  %vm988_vm4 = vcmask 326912   ;;  %vm1181_vm5 = vcmask 392512   ;;  %vm1375_vm6 = vcmask 458112   ;;  %vm1568_vm7 = vcmask 523712  }
   0xf   : > { %s179_s17 = scalar_select %p178_p3, %s5546_s16, 1  ;;  %vm1761_vm8 = vcmask 589312   ;;  %vm1835_vm9 = vcmask 588800   ;;  %vm2159_vm10 = vcmask 523264  }
  0x10   : > { %s5504_s25 = smov 32   ;;  %s5505_s26 = smov 40  }
  0x11   : > { %s5345_s18 = smul.u32 432, %s179_s17  ;;  %s5506_s27 = smov 48  }
  0x12   : > { %s5507_s10 = smov 56   ;;  %p5209_p4 = scmp.ne.s32.totalorder %s5546_s16, 1 }
  0x13   : > { %s5555_s21 = scalar_lea.vmem %s12461_s0, %s5345_s18 }
  0x14   : > { %v5558_v0 = vld [vmem:[%s5555_s21 + $0x19] sm:$0xff]  ;;  %v248_v1 = vld [vmem:[%s5555_s21 + $0x1] sm:$0xff]  ;;  %v249_v3 = vld [vmem:[%s5555_s21 + $0x9] sm:$0xff] }
  0x15   : > { %316 = vrot.lane.b32.xlu1 %v5558_v0, %s5501_s22  ;;  %312 = vrot.lane.b32.xlu0 %v248_v1, %s5501_s22  ;;  %v5565_v2 = vld [vmem:[%s5555_s21 + $0x21] sm:$0xff]  ;;  %v5572_v4 = vld [vmem:[%s5555_s21 + $0x39] sm:$0xff] }
  0x16   : > { %v5575_v5 = vld [vmem:[%s5555_s21 + $0x31] sm:$0xff]  ;;  %v5585_v7 = vld [vmem:[%s5555_s21 + $0x49] sm:$0xff]  ;;  %v256_v9 = vld [vmem:[%s5555_s21 + $0x61] sm:$0xff] }
  0x17   : > { %v5582_v6 = vld [vmem:[%s5555_s21 + $0x51] sm:$0xff]  ;;  %v257_v8 = vld [vmem:[%s5555_s21 + $0x69] sm:$0xff]  ;;  %v259_v10 = vld [vmem:[%s5555_s21 + $0x81] sm:$0xff] }
  0x18   : > { %v258_v11 = vld [vmem:[%s5555_s21 + $0x79] sm:$0xff]  ;;  %v260_v15 = vld [vmem:[%s5555_s21 + $0x91] sm:$0xff]  ;;  %v184_v17 = vld [vmem:[%s5555_s21 + $0x8] sm:$0xff] }
  0x19   : > { %318 = vrot.lane.b32.xlu1 %v5565_v2, %s5501_s22  ;;  %314 = vrot.lane.b32.xlu0 %v249_v3, %s5501_s22  ;;  %v5600_v12 = vld [vmem:[%s5555_s21 + $0x18] sm:$0xff]  ;;  %v183_v13 = vld [vmem:[%s5555_s21] sm:$0xff]  ;;  %217 = vst.msk [vmem:[#allocation2 + $0x8] sm:$0xff] %vm215_vm0, %v184_v17 }
  0x1a   : > { %v261_v14 = vld [vmem:[%s5555_s21 + $0x99] sm:$0xff]  ;;  %218 = vst.msk [vmem:[#allocation2 + $0x10] sm:$0xff] %vm215_vm0, %v5600_v12  ;;  %216 = vst.msk [vmem:[#allocation2] sm:$0xff] %vm215_vm0, %v183_v13  ;;  %v263_v18 = vld [vmem:[%s5555_s21 + $0xb1] sm:$0xff] }
  0x1b   : > { %v5609_v16 = vld [vmem:[%s5555_s21 + $0x20] sm:$0xff]  ;;  %v5617_v19 = vld [vmem:[%s5555_s21 + $0x38] sm:$0xff]  ;;  %v5620_v20 = vld [vmem:[%s5555_s21 + $0x30] sm:$0xff] }
  0x1c   : > { %219 = vst.msk [vmem:[#allocation2 + $0x18] sm:$0xff] %vm215_vm0, %v5609_v16  ;;  %v262_v21 = vld [vmem:[%s5555_s21 + $0xa9] sm:$0xff]  ;;  %221 = vst.msk [vmem:[#allocation2 + $0x28] sm:$0xff] %vm215_vm0, %v5617_v19  ;;  %v5641_v25 = vld [vmem:[%s5555_s21 + $0x60] sm:$0xff] }
  0x1d   : > { %322 = vrot.lane.b32.xlu1 %v5572_v4, %s5501_s22  ;;  %320 = vrot.lane.b32.xlu0 %v5575_v5, %s5501_s22  ;;  %220 = vst.msk [vmem:[#allocation2 + $0x20] sm:$0xff] %vm215_vm0, %v5620_v20  ;;  %v5630_v22 = vld [vmem:[%s5555_s21 + $0x50] sm:$0xff]  ;;  %v5635_v23 = vld [vmem:[%s5555_s21 + $0x48] sm:$0xff]  ;;  %224 = vst.msk [vmem:[#allocation2 + $0x40] sm:$0xff] %vm215_vm0, %v5641_v25 }
  0x1e   : > { %223 = vst.msk [vmem:[#allocation2 + $0x38] sm:$0xff] %vm215_vm0, %v5630_v22  ;;  %v5638_v24 = vld [vmem:[%s5555_s21 + $0x68] sm:$0xff]  ;;  %222 = vst.msk [vmem:[#allocation2 + $0x30] sm:$0xff] %vm215_vm0, %v5635_v23  ;;  %v5650_v26 = vld [vmem:[%s5555_s21 + $0x80] sm:$0xff] }
  0x1f   : > { %225 = vst.msk [vmem:[#allocation2 + $0x48] sm:$0xff] %vm215_vm0, %v5638_v24  ;;  %v5653_v27 = vld [vmem:[%s5555_s21 + $0x78] sm:$0xff]  ;;  %v265_v29 = vld [vmem:[%s5555_s21 + $0xc9] sm:$0xff]  ;;  %v264_v30 = vld [vmem:[%s5555_s21 + $0xc1] sm:$0xff] }
  0x20   : > { %v5656_v28 = vld [vmem:[%s5555_s21 + $0x98] sm:$0xff]  ;;  %227 = vst.msk [vmem:[#allocation2 + $0x58] sm:$0xff] %vm215_vm0, %v5650_v26  ;;  %226 = vst.msk [vmem:[#allocation2 + $0x50] sm:$0xff] %vm215_vm0, %v5653_v27  ;;  %v5667_v31 = vld [vmem:[%s5555_s21 + $0x90] sm:$0xff] }
  0x21   : > { %326 = vrot.lane.b32.xlu1 %v5582_v6, %s5501_s22  ;;  %324 = vrot.lane.b32.xlu0 %v5585_v7, %s5501_s22  ;;  %229 = vst.msk [vmem:[#allocation2 + $0x68] sm:$0xff] %vm215_vm0, %v5656_v28  ;;  %v5670_v32 = vld [vmem:[%s5555_s21 + $0xb0] sm:$0xff]  ;;  %v5673_v33 = vld [vmem:[%s5555_s21 + $0xa8] sm:$0xff]  ;;  %228 = vst.msk [vmem:[#allocation2 + $0x60] sm:$0xff] %vm215_vm0, %v5667_v31 }
  0x22   : > { %231 = vst.msk [vmem:[#allocation2 + $0x78] sm:$0xff] %vm215_vm0, %v5670_v32  ;;  %230 = vst.msk [vmem:[#allocation2 + $0x70] sm:$0xff] %vm215_vm0, %v5673_v33  ;;  %v5684_v34 = vld [vmem:[%s5555_s21 + $0xc8] sm:$0xff]  ;;  %v5687_v35 = vld [vmem:[%s5555_s21 + $0xc0] sm:$0xff] }
  0x23   : > { %233 = vst.msk [vmem:[#allocation2 + $0x88] sm:$0xff] %vm215_vm0, %v5684_v34  ;;  %232 = vst.msk [vmem:[#allocation2 + $0x80] sm:$0xff] %vm215_vm0, %v5687_v35  ;;  %v5694_v36 = vld [vmem:[%s5555_s21 + $0xe0] sm:$0xff]  ;;  %v5697_v37 = vld [vmem:[%s5555_s21 + $0xd8] sm:$0xff] }
  0x24   : > { %v5700_v38 = vld [vmem:[%s5555_s21 + $0xf8] sm:$0xff]  ;;  %235 = vst.msk [vmem:[#allocation2 + $0x98] sm:$0xff] %vm215_vm0, %v5694_v36  ;;  %234 = vst.msk [vmem:[#allocation2 + $0x90] sm:$0xff] %vm215_vm0, %v5697_v37  ;;  %v5709_v39 = vld [vmem:[%s5555_s21 + $0xf0] sm:$0xff] }
  0x25   : > { %330 = vrot.lane.b32.xlu1 %v257_v8, %s5501_s22  ;;  %328 = vrot.lane.b32.xlu0 %v256_v9, %s5501_s22  ;;  %237 = vst.msk [vmem:[#allocation2 + $0xa8] sm:$0xff] %vm215_vm0, %v5700_v38  ;;  %v5712_v40 = vld [vmem:[%s5555_s21 + $0x110] sm:$0xff]  ;;  %v5715_v41 = vld [vmem:[%s5555_s21 + $0x108] sm:$0xff]  ;;  %236 = vst.msk [vmem:[#allocation2 + $0xa0] sm:$0xff] %vm215_vm0, %v5709_v39 }
  0x26   : > { %239 = vst.msk [vmem:[#allocation2 + $0xb8] sm:$0xff] %vm215_vm0, %v5712_v40  ;;  %238 = vst.msk [vmem:[#allocation2 + $0xb0] sm:$0xff] %vm215_vm0, %v5715_v41  ;;  %v5726_v42 = vld [vmem:[%s5555_s21 + $0xe1] sm:$0xff]  ;;  %v5729_v43 = vld [vmem:[%s5555_s21 + $0xd9] sm:$0xff] }
  0x27   : > { %v5732_v44 = vld [vmem:[%s5555_s21 + $0x128] sm:$0xff]  ;;  %v5735_v45 = vld [vmem:[%s5555_s21 + $0x120] sm:$0xff]  ;;  %v5749_v47 = vld [vmem:[%s5555_s21 + $0xf1] sm:$0xff] }
  0x28   : > { %241 = vst.msk [vmem:[#allocation2 + $0xc8] sm:$0xff] %vm215_vm0, %v5732_v44  ;;  %240 = vst.msk [vmem:[#allocation2 + $0xc0] sm:$0xff] %vm215_vm0, %v5735_v45  ;;  %v5746_v46 = vld [vmem:[%s5555_s21 + $0xf9] sm:$0xff]  ;;  %v5766_v50 = vld [vmem:[%s5555_s21 + $0x111] sm:$0xff] }
  0x29   : > { %334 = vrot.lane.b32.xlu1 %v259_v10, %s5501_s22  ;;  %332 = vrot.lane.b32.xlu0 %v258_v11, %s5501_s22  ;;  %v5752_v48 = vld [vmem:[%s5555_s21 + $0x140] sm:$0xff]  ;;  %v5755_v49 = vld [vmem:[%s5555_s21 + $0x138] sm:$0xff] }
  0x2a   : > { %243 = vst.msk [vmem:[#allocation2 + $0xd8] sm:$0xff] %vm215_vm0, %v5752_v48  ;;  %242 = vst.msk [vmem:[#allocation2 + $0xd0] sm:$0xff] %vm215_vm0, %v5755_v49  ;;  %v5769_v51 = vld [vmem:[%s5555_s21 + $0x109] sm:$0xff]  ;;  %v5772_v52 = vld [vmem:[%s5555_s21 + $0x158] sm:$0xff] }
  0x2b   : > { %v5775_v53 = vld [vmem:[%s5555_s21 + $0x150] sm:$0xff]  ;;  %245 = vst.msk [vmem:[#allocation2 + $0xe8] sm:$0xff] %vm215_vm0, %v5772_v52  ;;  %v5787_v55 = vld [vmem:[%s5555_s21 + $0x121] sm:$0xff]  ;;  %v274_v59 = vld [vmem:[%s5555_s21 + $0x139] sm:$0xff] }
  0x2c   : > { %244 = vst.msk [vmem:[#allocation2 + $0xe0] sm:$0xff] %vm215_vm0, %v5775_v53  ;;  %v273_v54 = vld [vmem:[%s5555_s21 + $0x129] sm:$0xff]  ;;  %12658 = vst [vmem:[#allocation3_spill] sm:$0xff] %v5787_v55  ;;  %v275_v58 = vld [vmem:[%s5555_s21 + $0x141] sm:$0xff] }
  0x2d   : > { %338 = vrot.lane.b32.xlu1 %v261_v14, %s5501_s22  ;;  %336 = vrot.lane.b32.xlu0 %v260_v15, %s5501_s22  ;;  %v5790_v56 = vld [vmem:[%s5555_s21 + $0x170] sm:$0xff]  ;;  %v5793_v57 = vld [vmem:[%s5555_s21 + $0x168] sm:$0xff] }
  0x2e   : > { %247 = vst.msk [vmem:[#allocation2 + $0xf8] sm:$0xff] %vm215_vm0, %v5790_v56  ;;  %246 = vst.msk [vmem:[#allocation2 + $0xf0] sm:$0xff] %vm215_vm0, %v5793_v57  ;;  %v277_v60 = vld [vmem:[%s5555_s21 + $0x159] sm:$0xff]  ;;  %v276_v61 = vld [vmem:[%s5555_s21 + $0x151] sm:$0xff] }
  0x2f   : > { %v279_v62 = vld [vmem:[%s5555_s21 + $0x171] sm:$0xff]  ;;  %v278_v63 = vld [vmem:[%s5555_s21 + $0x169] sm:$0xff]  ;;  %v5822_v9 = vld [vmem:[%s5555_s21 + $0x1a] sm:$0xff] }
  0x30   : > { %v442_v1 = vld [vmem:[%s5555_s21 + $0xa] sm:$0xff]  ;;  %v441_v3 = vld [vmem:[%s5555_s21 + $0x2] sm:$0xff]  ;;  %v5829_v10 = vld [vmem:[%s5555_s21 + $0x3a] sm:$0xff] }
  0x31   : > { %342 = vrot.lane.b32.xlu1 %v263_v18, %s5501_s22  ;;  %340 = vrot.lane.b32.xlu0 %v262_v21, %s5501_s22  ;;  %v5819_v8 = vld [vmem:[%s5555_s21 + $0x22] sm:$0xff]  ;;  %v5832_v11 = vld [vmem:[%s5555_s21 + $0x32] sm:$0xff] }
  0x32   : > { %v5839_v13 = vld [vmem:[%s5555_s21 + $0x52] sm:$0xff]  ;;  %v5842_v14 = vld [vmem:[%s5555_s21 + $0x4a] sm:$0xff]  ;;  %v5850_v17 = vld [vmem:[%s5555_s21 + $0x62] sm:$0xff] }
  0x33   : > { %v450_v15 = vld [vmem:[%s5555_s21 + $0x6a] sm:$0xff]  ;;  %12659 = vst [vmem:[#allocation4_spill] sm:$0xff] %v5850_v17  ;;  %v452_v18 = vld [vmem:[%s5555_s21 + $0x82] sm:$0xff]  ;;  %v451_v21 = vld [vmem:[%s5555_s21 + $0x7a] sm:$0xff] }
  0x35   : > { %346 = vrot.lane.b32.xlu1 %v265_v29, %s5501_s22  ;;  %344 = vrot.lane.b32.xlu0 %v264_v30, %s5501_s22  ;;  %v454_v29 = vld [vmem:[%s5555_s21 + $0x9a] sm:$0xff]  ;;  %v453_v30 = vld [vmem:[%s5555_s21 + $0x92] sm:$0xff] }
  0x39   : > { %350 = vrot.lane.b32.xlu1 %v5726_v42, %s5501_s22  ;;  %348 = vrot.lane.b32.xlu0 %v5729_v43, %s5501_s22 }
  0x3d   : > { %354 = vrot.lane.b32.xlu1 %v5746_v46, %s5501_s22  ;;  %352 = vrot.lane.b32.xlu0 %v5749_v47, %s5501_s22 }
  0x41   : > { %358 = vrot.lane.b32.xlu1 %v5766_v50, %s5501_s22  ;;  %356 = vrot.lane.b32.xlu0 %v5769_v51, %s5501_s22 }
  0x45   : > { %362 = vrot.lane.b32.xlu1 %v273_v54, %s5501_s22  ;;  %360 = vrot.lane.b32.xlu0 %v5787_v55, %s5501_s22  ;;  %v456_v54 = vld [vmem:[%s5555_s21 + $0xb2] sm:$0xff] }
  0x49   : > { %366 = vrot.lane.b32.xlu1 %v275_v58, %s5501_s22  ;;  %364 = vrot.lane.b32.xlu0 %v274_v59, %s5501_s22  ;;  %v455_v58 = vld [vmem:[%s5555_s21 + $0xaa] sm:$0xff] }
  0x4a   : > { %v458_v59 = vld [vmem:[%s5555_s21 + $0xca] sm:$0xff] }
  0x4d   : > { %370 = vrot.lane.b32.xlu1 %v277_v60, %s5501_s22  ;;  %368 = vrot.lane.b32.xlu0 %v276_v61, %s5501_s22  ;;  %v457_v60 = vld [vmem:[%s5555_s21 + $0xc2] sm:$0xff] }
  0x4e   : > { %v5872_v61 = vld [vmem:[%s5555_s21 + $0xe2] sm:$0xff] }
  0x51   : > { %374 = vrot.lane.b32.xlu1 %v279_v62, %s5501_s22  ;;  %372 = vrot.lane.b32.xlu0 %v278_v63, %s5501_s22  ;;  %v5875_v62 = vld [vmem:[%s5555_s21 + $0xda] sm:$0xff]  ;;  %s5508_s22 = smov 64  }
  0x52   : > { %v5882_v63 = vld [vmem:[%s5555_s21 + $0xfa] sm:$0xff] }
  0x55   : > { %507 = vrot.lane.b32.xlu1 %v442_v1, %s5502_s23  ;;  %505 = vrot.lane.b32.xlu0 %v441_v3, %s5502_s23  ;;  %v5885_v1 = vld [vmem:[%s5555_s21 + $0xf2] sm:$0xff] }
  0x56   : > { %v5892_v3 = vld [vmem:[%s5555_s21 + $0x112] sm:$0xff] }
  0x59   : > { %511 = vrot.lane.b32.xlu1 %v5819_v8, %s5502_s23  ;;  %509 = vrot.lane.b32.xlu0 %v5822_v9, %s5502_s23 }
  0x5d   : > { %515 = vrot.lane.b32.xlu1 %v5829_v10, %s5502_s23  ;;  %513 = vrot.lane.b32.xlu0 %v5832_v11, %s5502_s23 }
  0x61   : > { %519 = vrot.lane.b32.xlu1 %v5839_v13, %s5502_s23  ;;  %517 = vrot.lane.b32.xlu0 %v5842_v14, %s5502_s23 }
  0x65   : > { %523 = vrot.lane.b32.xlu1 %v450_v15, %s5502_s23  ;;  %521 = vrot.lane.b32.xlu0 %v5850_v17, %s5502_s23  ;;  %v5895_v15 = vld [vmem:[%s5555_s21 + $0x10a] sm:$0xff] }
  0x69   : > { %527 = vrot.lane.b32.xlu1 %v452_v18, %s5502_s23  ;;  %525 = vrot.lane.b32.xlu0 %v451_v21, %s5502_s23  ;;  %v5902_v18 = vld [vmem:[%s5555_s21 + $0x12a] sm:$0xff]  ;;  %v5905_v21 = vld [vmem:[%s5555_s21 + $0x122] sm:$0xff] }
  0x6a   : > { %12660 = vst [vmem:[#allocation5_spill] sm:$0xff] %v5902_v18  ;;  %12661 = vst [vmem:[#allocation6_spill] sm:$0xff] %v5905_v21 }
  0x6d   : > { %531 = vrot.lane.b32.xlu1 %v454_v29, %s5502_s23  ;;  %529 = vrot.lane.b32.xlu0 %v453_v30, %s5502_s23  ;;  %v468_v29 = vld [vmem:[%s5555_s21 + $0x142] sm:$0xff]  ;;  %v467_v30 = vld [vmem:[%s5555_s21 + $0x13a] sm:$0xff] }
  0x71   : > { %535 = vrot.lane.b32.xlu1 %v456_v54, %s5502_s23  ;;  %533 = vrot.lane.b32.xlu0 %v455_v58, %s5502_s23 }
  0x75   : > { %539 = vrot.lane.b32.xlu1 %v458_v59, %s5502_s23  ;;  %537 = vrot.lane.b32.xlu0 %v457_v60, %s5502_s23  ;;  %v470_v59 = vld [vmem:[%s5555_s21 + $0x15a] sm:$0xff]  ;;  %v469_v60 = vld [vmem:[%s5555_s21 + $0x152] sm:$0xff] }
  0x79   : > { %543 = vrot.lane.b32.xlu1 %v5872_v61, %s5502_s23  ;;  %541 = vrot.lane.b32.xlu0 %v5875_v62, %s5502_s23 }
  0x7d   : > { %547 = vrot.lane.b32.xlu1 %v5882_v63, %s5502_s23  ;;  %545 = vrot.lane.b32.xlu0 %v5885_v1, %s5502_s23 }
  0x81   : > { %551 = vrot.lane.b32.xlu1 %v5892_v3, %s5502_s23  ;;  %549 = vrot.lane.b32.xlu0 %v5895_v15, %s5502_s23 }
  0x85   : > { %555 = vrot.lane.b32.xlu1 %v5902_v18, %s5502_s23  ;;  %553 = vrot.lane.b32.xlu0 %v5905_v21, %s5502_s23  ;;  %v472_v21 = vld [vmem:[%s5555_s21 + $0x172] sm:$0xff] }
  0x87   : > { %v317_v54 = vpop.permute.xlu1 %316  ;;  %v313_v58 = vpop.permute.xlu0 %312 }
  0x88   : > { %411 = vst.msk [vmem:[#allocation2 + $0x10] sm:$0xff] %vm408_vm1, %v317_v54  ;;  %409 = vst.msk [vmem:[#allocation2] sm:$0xff] %vm408_vm1, %v313_v58  ;;  %v471_v54 = vld [vmem:[%s5555_s21 + $0x16a] sm:$0xff] }
  0x89   : > { %559 = vrot.lane.b32.xlu1 %v468_v29, %s5502_s23  ;;  %557 = vrot.lane.b32.xlu0 %v467_v30, %s5502_s23 }
  0x8b   : > { %v319_v18 = vpop.permute.xlu1 %318  ;;  %v315_v17 = vpop.permute.xlu0 %314 }
  0x8c   : > { %412 = vst.msk [vmem:[#allocation2 + $0x18] sm:$0xff] %vm408_vm1, %v319_v18  ;;  %410 = vst.msk [vmem:[#allocation2 + $0x8] sm:$0xff] %vm408_vm1, %v315_v17 }
  0x8d   : > { %563 = vrot.lane.b32.xlu1 %v470_v59, %s5502_s23  ;;  %561 = vrot.lane.b32.xlu0 %v469_v60, %s5502_s23 }
  0x8f   : > { %v323_v55 = vpop.permute.xlu1 %322  ;;  %v321_v58 = vpop.permute.xlu0 %320 }
  0x90   : > { %414 = vst.msk [vmem:[#allocation2 + $0x28] sm:$0xff] %vm408_vm1, %v323_v55  ;;  %413 = vst.msk [vmem:[#allocation2 + $0x20] sm:$0xff] %vm408_vm1, %v321_v58 }
  0x91   : > { %567 = vrot.lane.b32.xlu1 %v472_v21, %s5502_s23  ;;  %565 = vrot.lane.b32.xlu0 %v471_v54, %s5502_s23 }
  0x93   : > { %v327_v29 = vpop.permute.xlu1 %326  ;;  %v325_v18 = vpop.permute.xlu0 %324 }
  0x94   : > { %416 = vst.msk [vmem:[#allocation2 + $0x38] sm:$0xff] %vm408_vm1, %v327_v29  ;;  %415 = vst.msk [vmem:[#allocation2 + $0x30] sm:$0xff] %vm408_vm1, %v325_v18 }
  0x95   : > { %701 = vrot.lane.b32.xlu1 %v5609_v16, %s5503_s24  ;;  %699 = vrot.lane.b32.xlu0 %v5600_v12, %s5503_s24 }
  0x97   : > { %v331_v55 = vpop.permute.xlu1 %330  ;;  %v329_v17 = vpop.permute.xlu0 %328 }
  0x98   : > { %418 = vst.msk [vmem:[#allocation2 + $0x48] sm:$0xff] %vm408_vm1, %v331_v55  ;;  %417 = vst.msk [vmem:[#allocation2 + $0x40] sm:$0xff] %vm408_vm1, %v329_v17 }
  0x99   : > { %705 = vrot.lane.b32.xlu1 %v5617_v19, %s5503_s24  ;;  %703 = vrot.lane.b32.xlu0 %v5620_v20, %s5503_s24 }
  0x9b   : > { %v335_v21 = vpop.permute.xlu1 %334  ;;  %v333_v30 = vpop.permute.xlu0 %332 }
  0x9c   : > { %420 = vst.msk [vmem:[#allocation2 + $0x58] sm:$0xff] %vm408_vm1, %v335_v21  ;;  %419 = vst.msk [vmem:[#allocation2 + $0x50] sm:$0xff] %vm408_vm1, %v333_v30 }
  0x9d   : > { %709 = vrot.lane.b32.xlu1 %v5630_v22, %s5503_s24  ;;  %707 = vrot.lane.b32.xlu0 %v5635_v23, %s5503_s24 }
  0x9f   : > { %v339_v12 = vpop.permute.xlu1 %338  ;;  %v337_v16 = vpop.permute.xlu0 %336 }
  0xa0   : > { %422 = vst.msk [vmem:[#allocation2 + $0x68] sm:$0xff] %vm408_vm1, %v339_v12  ;;  %421 = vst.msk [vmem:[#allocation2 + $0x60] sm:$0xff] %vm408_vm1, %v337_v16 }
  0xa1   : > { %713 = vrot.lane.b32.xlu1 %v5638_v24, %s5503_s24  ;;  %711 = vrot.lane.b32.xlu0 %v5641_v25, %s5503_s24 }
  0xa3   : > { %v343_v59 = vpop.permute.xlu1 %342  ;;  %v341_v60 = vpop.permute.xlu0 %340 }
  0xa4   : > { %424 = vst.msk [vmem:[#allocation2 + $0x78] sm:$0xff] %vm408_vm1, %v343_v59  ;;  %423 = vst.msk [vmem:[#allocation2 + $0x70] sm:$0xff] %vm408_vm1, %v341_v60 }
  0xa5   : > { %717 = vrot.lane.b32.xlu1 %v5650_v26, %s5503_s24  ;;  %715 = vrot.lane.b32.xlu0 %v5653_v27, %s5503_s24 }
  0xa7   : > { %v347_v54 = vpop.permute.xlu1 %346  ;;  %v345_v58 = vpop.permute.xlu0 %344 }
  0xa8   : > { %426 = vst.msk [vmem:[#allocation2 + $0x88] sm:$0xff] %vm408_vm1, %v347_v54  ;;  %425 = vst.msk [vmem:[#allocation2 + $0x80] sm:$0xff] %vm408_vm1, %v345_v58  ;;  %v5015_v54 = vld [vmem:[%s5555_s21 + $0x188] sm:$0xff]  ;;  %v5014_v58 = vld [vmem:[%s5555_s21 + $0x180] sm:$0xff] }
  0xa9   : > { %721 = vrot.lane.b32.xlu1 %v5656_v28, %s5503_s24  ;;  %719 = vrot.lane.b32.xlu0 %v5667_v31, %s5503_s24 }
  0xab   : > { %v351_v29 = vpop.permute.xlu1 %350  ;;  %v349_v18 = vpop.permute.xlu0 %348 }
  0xac   : > { %428 = vst.msk [vmem:[#allocation2 + $0x98] sm:$0xff] %vm408_vm1, %v351_v29  ;;  %427 = vst.msk [vmem:[#allocation2 + $0x90] sm:$0xff] %vm408_vm1, %v349_v18 }
  0xad   : > { %725 = vrot.lane.b32.xlu1 %v5670_v32, %s5503_s24  ;;  %723 = vrot.lane.b32.xlu0 %v5673_v33, %s5503_s24 }
  0xaf   : > { %v355_v55 = vpop.permute.xlu1 %354  ;;  %v353_v17 = vpop.permute.xlu0 %352 }
  0xb0   : > { %430 = vst.msk [vmem:[#allocation2 + $0xa8] sm:$0xff] %vm408_vm1, %v355_v55  ;;  %429 = vst.msk [vmem:[#allocation2 + $0xa0] sm:$0xff] %vm408_vm1, %v353_v17 }
  0xb1   : > { %729 = vrot.lane.b32.xlu1 %v5684_v34, %s5503_s24  ;;  %727 = vrot.lane.b32.xlu0 %v5687_v35, %s5503_s24 }
  0xb3   : > { %v359_v28 = vpop.permute.xlu1 %358  ;;  %v357_v31 = vpop.permute.xlu0 %356 }
  0xb4   : > { %432 = vst.msk [vmem:[#allocation2 + $0xb8] sm:$0xff] %vm408_vm1, %v359_v28  ;;  %431 = vst.msk [vmem:[#allocation2 + $0xb0] sm:$0xff] %vm408_vm1, %v357_v31 }
  0xb5   : > { %733 = vrot.lane.b32.xlu1 %v5694_v36, %s5503_s24  ;;  %731 = vrot.lane.b32.xlu0 %v5697_v37, %s5503_s24 }
  0xb7   : > { %v363_v32 = vpop.permute.xlu1 %362  ;;  %v361_v33 = vpop.permute.xlu0 %360 }
  0xb8   : > { %434 = vst.msk [vmem:[#allocation2 + $0xc8] sm:$0xff] %vm408_vm1, %v363_v32  ;;  %433 = vst.msk [vmem:[#allocation2 + $0xc0] sm:$0xff] %vm408_vm1, %v361_v33 }
  0xb9   : > { %737 = vrot.lane.b32.xlu1 %v5700_v38, %s5503_s24  ;;  %735 = vrot.lane.b32.xlu0 %v5709_v39, %s5503_s24 }
  0xbb   : > { %v367_v34 = vpop.permute.xlu1 %366  ;;  %v365_v35 = vpop.permute.xlu0 %364 }
  0xbc   : > { %436 = vst.msk [vmem:[#allocation2 + $0xd8] sm:$0xff] %vm408_vm1, %v367_v34  ;;  %435 = vst.msk [vmem:[#allocation2 + $0xd0] sm:$0xff] %vm408_vm1, %v365_v35  ;;  %v1828_v35 = vld [vmem:[%s12462_s1 + $0x10] sm:$0xff] }
  0xbd   : > { %741 = vrot.lane.b32.xlu1 %v5712_v40, %s5503_s24  ;;  %739 = vrot.lane.b32.xlu0 %v5715_v41, %s5503_s24 }
  0xbf   : > { %v371_v36 = vpop.permute.xlu1 %370  ;;  %v369_v37 = vpop.permute.xlu0 %368 }
  0xc0   : > { %438 = vst.msk [vmem:[#allocation2 + $0xe8] sm:$0xff] %vm408_vm1, %v371_v36  ;;  %437 = vst.msk [vmem:[#allocation2 + $0xe0] sm:$0xff] %vm408_vm1, %v369_v37  ;;  %v1829_v36 = vld [vmem:[%s12462_s1 + $0x18] sm:$0xff] }
  0xc1   : > { %745 = vrot.lane.b32.xlu1 %v5732_v44, %s5503_s24  ;;  %743 = vrot.lane.b32.xlu0 %v5735_v45, %s5503_s24 }
  0xc3   : > { %v375_v21 = vpop.permute.xlu1 %374  ;;  %v373_v30 = vpop.permute.xlu0 %372 }
  0xc4   : > { %440 = vst.msk [vmem:[#allocation2 + $0xf8] sm:$0xff] %vm408_vm1, %v375_v21  ;;  %439 = vst.msk [vmem:[#allocation2 + $0xf0] sm:$0xff] %vm408_vm1, %v373_v30  ;;  %v1830_v21 = vld [vmem:[%s12462_s1 + $0x20] sm:$0xff]  ;;  %v1831_v30 = vld [vmem:[%s12462_s1 + $0x28] sm:$0xff] }
  0xc5   : > { %749 = vrot.lane.b32.xlu1 %v5752_v48, %s5503_s24  ;;  %747 = vrot.lane.b32.xlu0 %v5755_v49, %s5503_s24 }
  0xc7   : > { %v508_v12 = vpop.permute.xlu1 %507  ;;  %v506_v16 = vpop.permute.xlu0 %505 }
  0xc8   : > { %603 = vst.msk [vmem:[#allocation2 + $0x8] sm:$0xff] %vm601_vm2, %v508_v12  ;;  %602 = vst.msk [vmem:[#allocation2] sm:$0xff] %vm601_vm2, %v506_v16  ;;  %v5327_v12 = vpack.c.bf16 %v1831_v30, %v1830_v21  ;;  %v5054_v21 = vld [vmem:[%s5555_s21 + $0x62] sm:$0xff] }
  0xc9   : > { %753 = vrot.lane.b32.xlu1 %v5772_v52, %s5503_s24  ;;  %751 = vrot.lane.b32.xlu0 %v5775_v53, %s5503_s24 }
  0xcb   : > { %v512_v59 = vpop.permute.xlu1 %511  ;;  %v510_v60 = vpop.permute.xlu0 %509 }
  0xcc   : > { %605 = vst.msk [vmem:[#allocation2 + $0x18] sm:$0xff] %vm601_vm2, %v512_v59  ;;  %604 = vst.msk [vmem:[#allocation2 + $0x10] sm:$0xff] %vm601_vm2, %v510_v60  ;;  %v1832_v59 = vld [vmem:[%s12462_s1 + $0x30] sm:$0xff]  ;;  %v1833_v60 = vld [vmem:[%s12462_s1 + $0x38] sm:$0xff] }
  0xcd   : > { %757 = vrot.lane.b32.xlu1 %v5790_v56, %s5503_s24  ;;  %755 = vrot.lane.b32.xlu0 %v5793_v57, %s5503_s24 }
  0xcf   : > { %v516_v29 = vpop.permute.xlu1 %515  ;;  %v514_v18 = vpop.permute.xlu0 %513 }
  0xd0   : > { %607 = vst.msk [vmem:[#allocation2 + $0x28] sm:$0xff] %vm601_vm2, %v516_v29  ;;  %606 = vst.msk [vmem:[#allocation2 + $0x20] sm:$0xff] %vm601_vm2, %v514_v18 }
  0xd1   : > { %761 = vrot.lane.b32.xlu1 %v5015_v54, %s5503_s24  ;;  %759 = vrot.lane.b32.xlu0 %v5014_v58, %s5503_s24  ;;  %v1834_v58 = vld [vmem:[%s12462_s1 + $0x40] sm:$0xff] }
  0xd3   : > { %v520_v55 = vpop.permute.xlu1 %519  ;;  %v518_v17 = vpop.permute.xlu0 %517 }
  0xd4   : > { %609 = vst.msk [vmem:[#allocation2 + $0x38] sm:$0xff] %vm601_vm2, %v520_v55  ;;  %608 = vst.msk [vmem:[#allocation2 + $0x30] sm:$0xff] %vm601_vm2, %v518_v17 }
  0xd5   : > { %894 = vrot.lane.b32.xlu1 %v5565_v2, %s5504_s25  ;;  %892 = vrot.lane.b32.xlu0 %v5558_v0, %s5504_s25 }
  0xd7   : > { %v524_v56 = vpop.permute.xlu1 %523  ;;  %v522_v57 = vpop.permute.xlu0 %521 }
  0xd8   : > { %611 = vst.msk [vmem:[#allocation2 + $0x48] sm:$0xff] %vm601_vm2, %v524_v56  ;;  %610 = vst.msk [vmem:[#allocation2 + $0x40] sm:$0xff] %vm601_vm2, %v522_v57 }
  0xd9   : > { %898 = vrot.lane.b32.xlu1 %v5572_v4, %s5504_s25  ;;  %896 = vrot.lane.b32.xlu0 %v5575_v5, %s5504_s25 }
  0xdb   : > { %v528_v28 = vpop.permute.xlu1 %527  ;;  %v526_v31 = vpop.permute.xlu0 %525 }
  0xdc   : > { %613 = vst.msk [vmem:[#allocation2 + $0x58] sm:$0xff] %vm601_vm2, %v528_v28  ;;  %612 = vst.msk [vmem:[#allocation2 + $0x50] sm:$0xff] %vm601_vm2, %v526_v31 }
  0xdd   : > { %926 = vrot.lane.b32.xlu1 %v5726_v42, %s5504_s25  ;;  %924 = vrot.lane.b32.xlu0 %v5729_v43, %s5504_s25 }
  0xdf   : > { %v532_v0 = vpop.permute.xlu1 %531  ;;  %v530_v2 = vpop.permute.xlu0 %529 }
  0xe0   : > { %615 = vst.msk [vmem:[#allocation2 + $0x68] sm:$0xff] %vm601_vm2, %v532_v0  ;;  %614 = vst.msk [vmem:[#allocation2 + $0x60] sm:$0xff] %vm601_vm2, %v530_v2 }
  0xe1   : > { %1117 = vrot.lane.b32.xlu1 %v5875_v62, %s5505_s26  ;;  %1085 = vrot.lane.b32.xlu0 %v5822_v9, %s5505_s26 }
  0xe3   : > { %v536_v32 = vpop.permute.xlu1 %535  ;;  %v534_v33 = vpop.permute.xlu0 %533 }
  0xe4   : > { %617 = vst.msk [vmem:[#allocation2 + $0x78] sm:$0xff] %vm601_vm2, %v536_v32  ;;  %616 = vst.msk [vmem:[#allocation2 + $0x70] sm:$0xff] %vm601_vm2, %v534_v33 }
  0xe5   : > { %1119 = vrot.lane.b32.xlu1 %v5872_v61, %s5505_s26  ;;  %1087 = vrot.lane.b32.xlu0 %v5819_v8, %s5505_s26  ;;  %v1826_v61 = vld [vmem:[%s12462_s1] sm:$0xff]  ;;  %v1827_v8 = vld [vmem:[%s12462_s1 + $0x8] sm:$0xff] }
  0xe6   : > { %v5319_v34 = vpack.c.bf16 %v1827_v8, %v1826_v61  ;;  %v5117_v8 = vld [vmem:[%s5555_s21 + $0x69] sm:$0xff] }
  0xe7   : > { %v540_v42 = vpop.permute.xlu1 %539  ;;  %v538_v43 = vpop.permute.xlu0 %537 }
  0xe8   : > { %619 = vst.msk [vmem:[#allocation2 + $0x88] sm:$0xff] %vm601_vm2, %v540_v42  ;;  %618 = vst.msk [vmem:[#allocation2 + $0x80] sm:$0xff] %vm601_vm2, %v538_v43  ;;  %5320 = vmatprep.subr.bf16.mxu0 %v5319_v34  ;;  %5335 = vmatprep.subr.bf16.mxu1 %v5319_v34 }
  0xe9   : > { %1311 = vrot.lane.b32.xlu1 %v5709_v39, %s5506_s27  ;;  %1279 = vrot.lane.b32.xlu0 %v5620_v20, %s5506_s27 }
  0xea   : > { %5322 = vmatpush3.bf16.msra.mxu0 %v5319_v34  ;;  %5340 = vmatpush3.bf16.msra.mxu1 %v5319_v34 }
  0xeb   : > { %v544_v9 = vpop.permute.xlu1 %543  ;;  %v542_v62 = vpop.permute.xlu0 %541 }
  0xec   : > { %621 = vst.msk [vmem:[#allocation2 + $0x98] sm:$0xff] %vm601_vm2, %v544_v9  ;;  %620 = vst.msk [vmem:[#allocation2 + $0x90] sm:$0xff] %vm601_vm2, %v542_v62  ;;  %v5038_v62 = vld [vmem:[%s5555_s21 + $0x121] sm:$0xff] }
  0xed   : > { %1313 = vrot.lane.b32.xlu1 %v5700_v38, %s5506_s27  ;;  %1281 = vrot.lane.b32.xlu0 %v5617_v19, %s5506_s27  ;;  %v5323_v38 = vpack.c.bf16 %v1829_v36, %v1828_v35  ;;  %v12663_v36 = vld [vmem:[#allocation6_spill] sm:$0xff] }
  0xef   : > { %v548_v20 = vpop.permute.xlu1 %547  ;;  %v546_v39 = vpop.permute.xlu0 %545  ;;  %5324 = vmatprep.subr.bf16.mxu0 %v5323_v38  ;;  %5336 = vmatprep.subr.bf16.mxu1 %v5323_v38 }
  0xf0   : > { %623 = vst.msk [vmem:[#allocation2 + $0xa8] sm:$0xff] %vm601_vm2, %v548_v20  ;;  %622 = vst.msk [vmem:[#allocation2 + $0xa0] sm:$0xff] %vm601_vm2, %v546_v39  ;;  %5326 = vmatpush3.bf16.msra.mxu0 %v5323_v38  ;;  %5341 = vmatpush3.bf16.msra.mxu1 %v5323_v38  ;;  %v12664_v38 = vld [vmem:[#allocation4_spill] sm:$0xff] }
  0xf1   : > { %1504 = vrot.lane.b32.xlu1 %v5749_v47, %s5507_s10  ;;  %1472 = vrot.lane.b32.xlu0 %v5575_v5, %s5507_s10 }
  0xf2   : > { %5328 = vmatprep.subr.bf16.mxu0 %v5327_v12  ;;  %5337 = vmatprep.subr.bf16.mxu1 %v5327_v12 }
  0xf3   : > { %v552_v19 = vpop.permute.xlu1 %551  ;;  %v550_v37 = vpop.permute.xlu0 %549 }
  0xf4   : > { %625 = vst.msk [vmem:[#allocation2 + $0xb8] sm:$0xff] %vm601_vm2, %v552_v19  ;;  %624 = vst.msk [vmem:[#allocation2 + $0xb0] sm:$0xff] %vm601_vm2, %v550_v37  ;;  %5330 = vmatpush3.bf16.msra.mxu0 %v5327_v12  ;;  %5342 = vmatpush3.bf16.msra.mxu1 %v5327_v12 }
  0xf5   : > { %1474 = vrot.lane.b32.xlu1 %v5572_v4, %s5507_s10  ;;  %928 = vrot.lane.b32.xlu0 %v5749_v47, %s5504_s25  ;;  %v5331_v4 = vpack.c.bf16 %v1833_v60, %v1832_v59  ;;  %v12665_v60 = vld [vmem:[#allocation5_spill] sm:$0xff] }
  0xf7   : > { %v556_v5 = vpop.permute.xlu1 %555  ;;  %v554_v16 = vpop.permute.xlu0 %553  ;;  %5332 = vmatprep.subr.bf16.mxu0 %v5331_v4  ;;  %5338 = vmatprep.subr.bf16.mxu1 %v5331_v4 }
  0xf8   : > { %627 = vst.msk [vmem:[#allocation2 + $0xc8] sm:$0xff] %vm601_vm2, %v556_v5  ;;  %626 = vst.msk [vmem:[#allocation2 + $0xc0] sm:$0xff] %vm601_vm2, %v554_v16  ;;  %5334 = vmatpush3.bf16.msra.mxu0 %v5331_v4  ;;  %5343 = vmatpush3.bf16.msra.mxu1 %v5331_v4  ;;  %v5149_v5 = vld [vmem:[%s5555_s21 + $0x6a] sm:$0xff] }
  0xf9   : > { %1665 = vrot.lane.b32.xlu1 %v5832_v11, %s5508_s22  ;;  %1506 = vrot.lane.b32.xlu0 %v5746_v46, %s5507_s10 }
  0xfa   : > { %5269 = vmatprep.subr.mxu0 %v1834_v58  ;;  %5339 = vmatprep.subr.mxu1 %v1834_v58 }
  0xfb   : > { %v560_v47 = vpop.permute.xlu1 %559  ;;  %v558_v54 = vpop.permute.xlu0 %557 }
  0xfc   : > { %629 = vst.msk [vmem:[#allocation2 + $0xd8] sm:$0xff] %vm601_vm2, %v560_v47  ;;  %628 = vst.msk [vmem:[#allocation2 + $0xd0] sm:$0xff] %vm601_vm2, %v558_v54  ;;  %5270 = vmatpush3.msra.mxu0 %v1834_v58  ;;  %5344 = vmatpush3.msra.mxu1 %v1834_v58 }
  0xfd   : > { %930 = vrot.lane.b32.xlu1 %v5746_v46, %s5504_s25  ;;  %1697 = vrot.lane.b32.xlu0 %v5885_v1, %s5508_s22 }
  0xff   : > { %v564_v29 = vpop.permute.xlu1 %563  ;;  %v562_v18 = vpop.permute.xlu0 %561 }
 0x100   : > { %631 = vst.msk [vmem:[#allocation2 + $0xe8] sm:$0xff] %vm601_vm2, %v564_v29  ;;  %630 = vst.msk [vmem:[#allocation2 + $0xe0] sm:$0xff] %vm601_vm2, %v562_v18 }
 0x101   : > { %1121 = vrot.lane.b32.xlu1 %v5885_v1, %s5505_s26  ;;  %1089 = vrot.lane.b32.xlu0 %v5832_v11, %s5505_s26 }
 0x103   : > { %v568_v46 = vpop.permute.xlu1 %567  ;;  %v566_v55 = vpop.permute.xlu0 %565 }
 0x104   : > { %633 = vst.msk [vmem:[#allocation2 + $0xf8] sm:$0xff] %vm601_vm2, %v568_v46  ;;  %632 = vst.msk [vmem:[#allocation2 + $0xf0] sm:$0xff] %vm601_vm2, %v566_v55  ;;  %v5134_v46 = vld [vmem:[%s5555_s21 + $0x139] sm:$0xff] }
 0x105   : > { %1699 = vrot.lane.b32.xlu1 %v5882_v63, %s5508_s22  ;;  %1667 = vrot.lane.b32.xlu0 %v5829_v10, %s5508_s22 }
 0x107   : > { %v702_v17 = vpop.permute.xlu1 %701  ;;  %v700_v56 = vpop.permute.xlu0 %699 }
 0x108   : > { %797 = vst.msk [vmem:[#allocation2 + $0x8] sm:$0xff] %vm795_vm3, %v702_v17  ;;  %796 = vst.msk [vmem:[#allocation2] sm:$0xff] %vm795_vm3, %v700_v56  ;;  %v5119_v56 = vld [vmem:[%s5555_s21 + $0x81] sm:$0xff] }
 0x109   : > { %1123 = vrot.lane.b32.xlu1 %v5882_v63, %s5505_s26  ;;  %1091 = vrot.lane.b32.xlu0 %v5829_v10, %s5505_s26 }
 0x10b   : > { %v706_v11 = vpop.permute.xlu1 %705  ;;  %v704_v1 = vpop.permute.xlu0 %703 }
 0x10c   : > { %799 = vst.msk [vmem:[#allocation2 + $0x18] sm:$0xff] %vm795_vm3, %v706_v11  ;;  %798 = vst.msk [vmem:[#allocation2 + $0x10] sm:$0xff] %vm795_vm3, %v704_v1 }
 0x10d   : > { %1315 = vrot.lane.b32.xlu1 %v5715_v41, %s5506_s27  ;;  %1283 = vrot.lane.b32.xlu0 %v5635_v23, %s5506_s27 }
 0x10f   : > { %v710_v57 = vpop.permute.xlu1 %709  ;;  %v708_v28 = vpop.permute.xlu0 %707 }
 0x110   : > { %801 = vst.msk [vmem:[#allocation2 + $0x28] sm:$0xff] %vm795_vm3, %v710_v57  ;;  %800 = vst.msk [vmem:[#allocation2 + $0x20] sm:$0xff] %vm795_vm3, %v708_v28  ;;  %v5166_v57 = vld [vmem:[%s5555_s21 + $0x13a] sm:$0xff] }
 0x111   : > { %1317 = vrot.lane.b32.xlu1 %v5712_v40, %s5506_s27  ;;  %1285 = vrot.lane.b32.xlu0 %v5630_v22, %s5506_s27  ;;  %v5150_v28 = vld [vmem:[%s5555_s21 + $0x7a] sm:$0xff] }
 0x113   : > { %v714_v10 = vpop.permute.xlu1 %713  ;;  %v712_v63 = vpop.permute.xlu0 %711 }
 0x114   : > { %803 = vst.msk [vmem:[#allocation2 + $0x38] sm:$0xff] %vm795_vm3, %v714_v10  ;;  %802 = vst.msk [vmem:[#allocation2 + $0x30] sm:$0xff] %vm795_vm3, %v712_v63 }
 0x115   : > { %1508 = vrot.lane.b32.xlu1 %v5769_v51, %s5507_s10  ;;  %1476 = vrot.lane.b32.xlu0 %v5585_v7, %s5507_s10 }
 0x117   : > { %v718_v23 = vpop.permute.xlu1 %717  ;;  %v716_v41 = vpop.permute.xlu0 %715 }
 0x118   : > { %805 = vst.msk [vmem:[#allocation2 + $0x48] sm:$0xff] %vm795_vm3, %v718_v23  ;;  %804 = vst.msk [vmem:[#allocation2 + $0x40] sm:$0xff] %vm795_vm3, %v716_v41 }
 0x119   : > { %932 = vrot.lane.b32.xlu1 %v5769_v51, %s5504_s25  ;;  %900 = vrot.lane.b32.xlu0 %v5585_v7, %s5504_s25 }
 0x11b   : > { %v722_v22 = vpop.permute.xlu1 %721  ;;  %v720_v40 = vpop.permute.xlu0 %719 }
 0x11c   : > { %807 = vst.msk [vmem:[#allocation2 + $0x58] sm:$0xff] %vm795_vm3, %v722_v22  ;;  %806 = vst.msk [vmem:[#allocation2 + $0x50] sm:$0xff] %vm795_vm3, %v720_v40 }
 0x11d   : > { %1510 = vrot.lane.b32.xlu1 %v5766_v50, %s5507_s10  ;;  %1478 = vrot.lane.b32.xlu0 %v5582_v6, %s5507_s10 }
 0x11f   : > { %v726_v31 = vpop.permute.xlu1 %725  ;;  %v724_v0 = vpop.permute.xlu0 %723 }
 0x120   : > { %809 = vst.msk [vmem:[#allocation2 + $0x68] sm:$0xff] %vm795_vm3, %v726_v31  ;;  %808 = vst.msk [vmem:[#allocation2 + $0x60] sm:$0xff] %vm795_vm3, %v724_v0 }
 0x121   : > { %1701 = vrot.lane.b32.xlu1 %v5895_v15, %s5508_s22  ;;  %1669 = vrot.lane.b32.xlu0 %v5842_v14, %s5508_s22 }
 0x123   : > { %v730_v7 = vpop.permute.xlu1 %729  ;;  %v728_v51 = vpop.permute.xlu0 %727 }
 0x124   : > { %811 = vst.msk [vmem:[#allocation2 + $0x78] sm:$0xff] %vm795_vm3, %v730_v7  ;;  %810 = vst.msk [vmem:[#allocation2 + $0x70] sm:$0xff] %vm795_vm3, %v728_v51  ;;  %v5167_v7 = vld [vmem:[%s5555_s21 + $0x142] sm:$0xff] }
 0x125   : > { %934 = vrot.lane.b32.xlu1 %v5766_v50, %s5504_s25  ;;  %902 = vrot.lane.b32.xlu0 %v5582_v6, %s5504_s25  ;;  %v5151_v51 = vld [vmem:[%s5555_s21 + $0x82] sm:$0xff] }
 0x127   : > { %v734_v2 = vpop.permute.xlu1 %733  ;;  %v732_v32 = vpop.permute.xlu0 %731 }
 0x128   : > { %813 = vst.msk [vmem:[#allocation2 + $0x88] sm:$0xff] %vm795_vm3, %v734_v2  ;;  %812 = vst.msk [vmem:[#allocation2 + $0x80] sm:$0xff] %vm795_vm3, %v732_v32 }
 0x129   : > { %1125 = vrot.lane.b32.xlu1 %v5895_v15, %s5505_s26  ;;  %1093 = vrot.lane.b32.xlu0 %v5842_v14, %s5505_s26 }
 0x12b   : > { %v738_v33 = vpop.permute.xlu1 %737  ;;  %v736_v42 = vpop.permute.xlu0 %735 }
 0x12c   : > { %815 = vst.msk [vmem:[#allocation2 + $0x98] sm:$0xff] %vm795_vm3, %v738_v33  ;;  %814 = vst.msk [vmem:[#allocation2 + $0x90] sm:$0xff] %vm795_vm3, %v736_v42 }
 0x12d   : > { %1703 = vrot.lane.b32.xlu1 %v5892_v3, %s5508_s22  ;;  %1671 = vrot.lane.b32.xlu0 %v5839_v13, %s5508_s22 }
 0x12f   : > { %v742_v6 = vpop.permute.xlu1 %741  ;;  %v740_v50 = vpop.permute.xlu0 %739 }
 0x130   : > { %817 = vst.msk [vmem:[#allocation2 + $0xa8] sm:$0xff] %vm795_vm3, %v742_v6  ;;  %816 = vst.msk [vmem:[#allocation2 + $0xa0] sm:$0xff] %vm795_vm3, %v740_v50 }
 0x131   : > { %1127 = vrot.lane.b32.xlu1 %v5892_v3, %s5505_s26  ;;  %1095 = vrot.lane.b32.xlu0 %v5839_v13, %s5505_s26  ;;  %v5116_v13 = vld [vmem:[%s5555_s21 + $0x61] sm:$0xff] }
 0x133   : > { %v746_v14 = vpop.permute.xlu1 %745  ;;  %v744_v15 = vpop.permute.xlu0 %743 }
 0x134   : > { %819 = vst.msk [vmem:[#allocation2 + $0xb8] sm:$0xff] %vm795_vm3, %v746_v14  ;;  %818 = vst.msk [vmem:[#allocation2 + $0xb0] sm:$0xff] %vm795_vm3, %v744_v15  ;;  %v5088_v14 = vld [vmem:[%s5555_s21 + $0x90] sm:$0xff] }
 0x135   : > { %1319 = vrot.lane.b32.xlu1 %v5735_v45, %s5506_s27  ;;  %1287 = vrot.lane.b32.xlu0 %v5641_v25, %s5506_s27  ;;  %v12662_v25 = vld [vmem:[#allocation3_spill] sm:$0xff] }
 0x137   : > { %v750_v43 = vpop.permute.xlu1 %749  ;;  %v748_v9 = vpop.permute.xlu0 %747 }
 0x138   : > { %821 = vst.msk [vmem:[#allocation2 + $0xc8] sm:$0xff] %vm795_vm3, %v750_v43  ;;  %820 = vst.msk [vmem:[#allocation2 + $0xc0] sm:$0xff] %vm795_vm3, %v748_v9  ;;  %v5089_v9 = vld [vmem:[%s5555_s21 + $0x98] sm:$0xff] }
 0x139   : > { %1321 = vrot.lane.b32.xlu1 %v5732_v44, %s5506_s27  ;;  %1289 = vrot.lane.b32.xlu0 %v5638_v24, %s5506_s27  ;;  %v5133_v24 = vld [vmem:[%s5555_s21 + $0x129] sm:$0xff] }
 0x13b   : > { %v754_v3 = vpop.permute.xlu1 %753  ;;  %v752_v45 = vpop.permute.xlu0 %751 }
 0x13c   : > { %823 = vst.msk [vmem:[#allocation2 + $0xd8] sm:$0xff] %vm795_vm3, %v754_v3  ;;  %822 = vst.msk [vmem:[#allocation2 + $0xd0] sm:$0xff] %vm795_vm3, %v752_v45  ;;  %v5136_v45 = vld [vmem:[%s5555_s21 + $0x151] sm:$0xff] }
 0x13d   : > { %1512 = vrot.lane.b32.xlu1 %v12662_v25, %s5507_s10  ;;  %1480 = vrot.lane.b32.xlu0 %v5116_v13, %s5507_s10  ;;  %v5120_v25 = vld [vmem:[%s5555_s21 + $0x91] sm:$0xff] }
 0x13f   : > { %v758_v61 = vpop.permute.xlu1 %757  ;;  %v756_v44 = vpop.permute.xlu0 %755 }
 0x140   : > { %825 = vst.msk [vmem:[#allocation2 + $0xe8] sm:$0xff] %vm795_vm3, %v758_v61  ;;  %824 = vst.msk [vmem:[#allocation2 + $0xe0] sm:$0xff] %vm795_vm3, %v756_v44  ;;  %v5137_v44 = vld [vmem:[%s5555_s21 + $0x159] sm:$0xff] }
 0x141   : > { %936 = vrot.lane.b32.xlu1 %v5038_v62, %s5504_s25  ;;  %904 = vrot.lane.b32.xlu0 %v5116_v13, %s5504_s25 }
 0x143   : > { %v762_v34 = vpop.permute.xlu1 %761  ;;  %v760_v20 = vpop.permute.xlu0 %759 }
 0x144   : > { %827 = vst.msk [vmem:[#allocation2 + $0xf8] sm:$0xff] %vm795_vm3, %v762_v34  ;;  %826 = vst.msk [vmem:[#allocation2 + $0xf0] sm:$0xff] %vm795_vm3, %v760_v20  ;;  %v5168_v20 = vld [vmem:[%s5555_s21 + $0x152] sm:$0xff] }
 0x145   : > { %1514 = vrot.lane.b32.xlu1 %v5133_v24, %s5507_s10  ;;  %1482 = vrot.lane.b32.xlu0 %v5117_v8, %s5507_s10 }
 0x147   : > { %v895_v39 = vpop.permute.xlu1 %894  ;;  %v893_v35 = vpop.permute.xlu0 %892 }
 0x148   : > { %990 = vst.msk [vmem:[#allocation2 + $0x8] sm:$0xff] %vm988_vm4, %v895_v39  ;;  %989 = vst.msk [vmem:[#allocation2] sm:$0xff] %vm988_vm4, %v893_v35  ;;  %v5152_v39 = vld [vmem:[%s5555_s21 + $0x92] sm:$0xff] }
 0x149   : > { %1705 = vrot.lane.b32.xlu1 %v12663_v36, %s5508_s22  ;;  %1673 = vrot.lane.b32.xlu0 %v12664_v38, %s5508_s22 }
 0x14b   : > { %v899_v19 = vpop.permute.xlu1 %898  ;;  %v897_v37 = vpop.permute.xlu0 %896 }
 0x14c   : > { %992 = vst.msk [vmem:[#allocation2 + $0x18] sm:$0xff] %vm988_vm4, %v899_v19  ;;  %991 = vst.msk [vmem:[#allocation2 + $0x10] sm:$0xff] %vm988_vm4, %v897_v37 }
 0x14d   : > { %938 = vrot.lane.b32.xlu1 %v5133_v24, %s5504_s25  ;;  %906 = vrot.lane.b32.xlu0 %v5117_v8, %s5504_s25  ;;  %v5121_v24 = vld [vmem:[%s5555_s21 + $0x99] sm:$0xff] }
 0x14f   : > { %v927_v30 = vpop.permute.xlu1 %926  ;;  %v925_v12 = vpop.permute.xlu0 %924 }
 0x150   : > { %1006 = vst.msk [vmem:[#allocation2 + $0x88] sm:$0xff] %vm988_vm4, %v927_v30  ;;  %1005 = vst.msk [vmem:[#allocation2 + $0x80] sm:$0xff] %vm988_vm4, %v925_v12 }
 0x151   : > { %1129 = vrot.lane.b32.xlu1 %v12663_v36, %s5505_s26  ;;  %1097 = vrot.lane.b32.xlu0 %v5054_v21, %s5505_s26 }
 0x153   : > { %v1118_v16 = vpop.permute.xlu1 %1117  ;;  %v1086_v59 = vpop.permute.xlu0 %1085 }
 0x154   : > { %1198 = vst.msk [vmem:[#allocation2 + $0x80] sm:$0xff] %vm1181_vm5, %v1118_v16  ;;  %1182 = vst.msk [vmem:[#allocation2] sm:$0xff] %vm1181_vm5, %v1086_v59  ;;  %v5153_v16 = vld [vmem:[%s5555_s21 + $0x9a] sm:$0xff] }
 0x155   : > { %1707 = vrot.lane.b32.xlu1 %v12665_v60, %s5508_s22  ;;  %1675 = vrot.lane.b32.xlu0 %v5149_v5, %s5508_s22 }
 0x157   : > { %v1120_v4 = vpop.permute.xlu1 %1119  ;;  %v1088_v47 = vpop.permute.xlu0 %1087 }
 0x158   : > { %1199 = vst.msk [vmem:[#allocation2 + $0x88] sm:$0xff] %vm1181_vm5, %v1120_v4  ;;  %1183 = vst.msk [vmem:[#allocation2 + $0x8] sm:$0xff] %vm1181_vm5, %v1088_v47 }
 0x159   : > { %1131 = vrot.lane.b32.xlu1 %v12665_v60, %s5505_s26  ;;  %1099 = vrot.lane.b32.xlu0 %v5149_v5, %s5505_s26  ;;  %v5169_v5 = vld [vmem:[%s5555_s21 + $0x15a] sm:$0xff] }
 0x15b   : > { %v1312_v54 = vpop.permute.xlu1 %1311  ;;  %v1280_v58 = vpop.permute.xlu0 %1279 }
 0x15c   : > { %1392 = vst.msk [vmem:[#allocation2 + $0x80] sm:$0xff] %vm1375_vm6, %v1312_v54  ;;  %1376 = vst.msk [vmem:[#allocation2] sm:$0xff] %vm1375_vm6, %v1280_v58 }
 0x15d   : > { %1323 = vrot.lane.b32.xlu1 %v5755_v49, %s5506_s27  ;;  %1291 = vrot.lane.b32.xlu0 %v5653_v27, %s5506_s27  ;;  %v5118_v49 = vld [vmem:[%s5555_s21 + $0x79] sm:$0xff] }
 0x15f   : > { %v1314_v29 = vpop.permute.xlu1 %1313  ;;  %v1282_v18 = vpop.permute.xlu0 %1281 }
 0x160   : > { %1393 = vst.msk [vmem:[#allocation2 + $0x88] sm:$0xff] %vm1375_vm6, %v1314_v29  ;;  %1377 = vst.msk [vmem:[#allocation2 + $0x8] sm:$0xff] %vm1375_vm6, %v1282_v18  ;;  %v5106_v29 = vld [vmem:[%s5555_s21 + $0x168] sm:$0xff] }
 0x161   : > { %1325 = vrot.lane.b32.xlu1 %v5752_v48, %s5506_s27  ;;  %1293 = vrot.lane.b32.xlu0 %v5650_v26, %s5506_s27  ;;  %v5135_v26 = vld [vmem:[%s5555_s21 + $0x141] sm:$0xff] }
 0x162   : > { %v5090_v18 = vld [vmem:[%s5555_s21 + $0xa8] sm:$0xff] }
 0x163   : > { %v1505_v55 = vpop.permute.xlu1 %1504  ;;  %v1473_v17 = vpop.permute.xlu0 %1472 }
 0x164   : > { %1585 = vst.msk [vmem:[#allocation2 + $0x80] sm:$0xff] %vm1568_vm7, %v1505_v55  ;;  %1569 = vst.msk [vmem:[#allocation2] sm:$0xff] %vm1568_vm7, %v1473_v17  ;;  %v5107_v55 = vld [vmem:[%s5555_s21 + $0x170] sm:$0xff] }
 0x165   : > { %1516 = vrot.lane.b32.xlu1 %v5134_v46, %s5507_s10  ;;  %1484 = vrot.lane.b32.xlu0 %v5118_v49, %s5507_s10  ;;  %v5091_v17 = vld [vmem:[%s5555_s21 + $0xb0] sm:$0xff] }
 0x167   : > { %v1475_v27 = vpop.permute.xlu1 %1474  ;;  %v929_v48 = vpop.permute.xlu0 %928 }
 0x168   : > { %1570 = vst.msk [vmem:[#allocation2 + $0x8] sm:$0xff] %vm1568_vm7, %v1475_v27 }
 0x169   : > { %1007 = vst.msk [vmem:[#allocation2 + $0x90] sm:$0xff] %vm988_vm4, %v929_v48  ;;  %940 = vrot.lane.b32.xlu1 %v5134_v46, %s5504_s25  ;;  %908 = vrot.lane.b32.xlu0 %v5118_v49, %s5504_s25 }
 0x16b   : > { %v1666_v11 = vpop.permute.xlu1 %1665  ;;  %v1507_v1 = vpop.permute.xlu0 %1506 }
 0x16c   : > { %1762 = vst.msk [vmem:[#allocation2] sm:$0xff] %vm1761_vm8, %v1666_v11 }
 0x16d   : > { %1586 = vst.msk [vmem:[#allocation2 + $0x88] sm:$0xff] %vm1568_vm7, %v1507_v1  ;;  %1518 = vrot.lane.b32.xlu1 %v5135_v26, %s5507_s10  ;;  %1486 = vrot.lane.b32.xlu0 %v5119_v56, %s5507_s10 }
 0x16f   : > { %v931_v10 = vpop.permute.xlu1 %930  ;;  %v1698_v63 = vpop.permute.xlu0 %1697 }
 0x170   : > { %1008 = vst.msk [vmem:[#allocation2 + $0x98] sm:$0xff] %vm988_vm4, %v931_v10  ;;  %v5139_v10 = vld [vmem:[%s5555_s21 + $0x171] sm:$0xff] }
 0x171   : > { %1778 = vst.msk [vmem:[#allocation2 + $0x80] sm:$0xff] %vm1761_vm8, %v1698_v63  ;;  %1709 = vrot.lane.b32.xlu1 %v5166_v57, %s5508_s22  ;;  %1677 = vrot.lane.b32.xlu0 %v5150_v28, %s5508_s22  ;;  %v5123_v63 = vld [vmem:[%s5555_s21 + $0xb1] sm:$0xff] }
 0x173   : > { %v1122_v23 = vpop.permute.xlu1 %1121  ;;  %v1090_v41 = vpop.permute.xlu0 %1089  ;;  %v1794_v22 = vld [vmem:[#allocation2] sm:$0xff] }
 0x174   : > { %1200 = vst.msk [vmem:[#allocation2 + $0x90] sm:$0xff] %vm1181_vm5, %v1122_v23  ;;  %1184 = vst.msk [vmem:[#allocation2 + $0x10] sm:$0xff] %vm1181_vm5, %v1090_v41  ;;  %5271 = vmatprep.mubr.msk.f32.mxu0 %vm1835_vm9, %v1794_v22  ;;  %v5170_v22 = vld [vmem:[%s5555_s21 + $0x16a] sm:$0xff] }
 0x175   : > { %942 = vrot.lane.b32.xlu1 %v5135_v26, %s5504_s25  ;;  %910 = vrot.lane.b32.xlu0 %v5119_v56, %s5504_s25  ;;  %v5138_v26 = vld [vmem:[%s5555_s21 + $0x169] sm:$0xff] }
 0x176   : > { %v5122_v56 = vld [vmem:[%s5555_s21 + $0xa9] sm:$0xff] }
 0x177   : > { %v1700_v40 = vpop.permute.xlu1 %1699  ;;  %v1668_v31 = vpop.permute.xlu0 %1667 }
 0x178   : > { %v1810_v0 = vld [vmem:[#allocation2 + $0x80] sm:$0xff]  ;;  %1779 = vst.msk [vmem:[#allocation2 + $0x88] sm:$0xff] %vm1761_vm8, %v1700_v40  ;;  %1763 = vst.msk [vmem:[#allocation2 + $0x8] sm:$0xff] %vm1761_vm8, %v1668_v31  ;;  %v5154_v40 = vld [vmem:[%s5555_s21 + $0xaa] sm:$0xff] }
 0x179   : > { %5295 = vmatprep.mubr.msk.f32.mxu1 %vm1835_vm9, %v1810_v0  ;;  %1133 = vrot.lane.b32.xlu1 %v5166_v57, %s5505_s26 }
 0x17a   : > { %1101 = vrot.lane.b32.xlu0 %v5150_v28, %s5505_s26 }
 0x17b   : > { %v1124_v2 = vpop.permute.xlu1 %1123  ;;  %v1092_v32 = vpop.permute.xlu0 %1091 }
 0x17c   : > { %1201 = vst.msk [vmem:[#allocation2 + $0x98] sm:$0xff] %vm1181_vm5, %v1124_v2  ;;  %1185 = vst.msk [vmem:[#allocation2 + $0x18] sm:$0xff] %vm1181_vm5, %v1092_v32 }
 0x17d   : > { %1711 = vrot.lane.b32.xlu1 %v5167_v7, %s5508_s22 }
 0x17e   : > { %1679 = vrot.lane.b32.xlu0 %v5151_v51, %s5508_s22 }
 0x17f   : > { %v1316_v33 = vpop.permute.xlu1 %1315  ;;  %v1284_v42 = vpop.permute.xlu0 %1283  ;;  %v1795_v6 = vld [vmem:[#allocation2 + $0x8] sm:$0xff] }
 0x180   : > { %v1811_v50 = vld [vmem:[#allocation2 + $0x88] sm:$0xff]  ;;  %1394 = vst.msk [vmem:[#allocation2 + $0x90] sm:$0xff] %vm1375_vm6, %v1316_v33  ;;  %1378 = vst.msk [vmem:[#allocation2 + $0x10] sm:$0xff] %vm1375_vm6, %v1284_v42  ;;  %5272 = vmatmul.mubr.msk.f32.vlgmr.msra.gmra.mrb[0].mxu0 %vm1835_vm9, %v1795_v6  ;;  %v5171_v6 = vld [vmem:[%s5555_s21 + $0x172] sm:$0xff] }
 0x181   : > { %5296 = vmatmul.mubr.msk.f32.vlgmr.msra.gmra.mrb[0].mxu1 %vm1835_vm9, %v1811_v50  ;;  %1135 = vrot.lane.b32.xlu1 %v5167_v7, %s5505_s26  ;;  %v5155_v50 = vld [vmem:[%s5555_s21 + $0xb2] sm:$0xff] }
 0x182   : > { %1103 = vrot.lane.b32.xlu0 %v5151_v51, %s5505_s26 }
 0x183   : > { %v1318_v15 = vpop.permute.xlu1 %1317  ;;  %v1286_v43 = vpop.permute.xlu0 %1285 }
 0x184   : > { %1395 = vst.msk [vmem:[#allocation2 + $0x98] sm:$0xff] %vm1375_vm6, %v1318_v15  ;;  %1379 = vst.msk [vmem:[#allocation2 + $0x18] sm:$0xff] %vm1375_vm6, %v1286_v43 }
 0x185   : > { %1327 = vrot.lane.b32.xlu1 %v5775_v53, %s5506_s27 }
 0x186   : > { %1295 = vrot.lane.b32.xlu0 %v5088_v14, %s5506_s27 }
 0x187   : > { %v1509_v13 = vpop.permute.xlu1 %1508  ;;  %v1477_v3 = vpop.permute.xlu0 %1476 }
 0x188   : > { %1587 = vst.msk [vmem:[#allocation2 + $0x90] sm:$0xff] %vm1568_vm7, %v1509_v13  ;;  %1571 = vst.msk [vmem:[#allocation2 + $0x10] sm:$0xff] %vm1568_vm7, %v1477_v3 }
 0x189   : > { %1329 = vrot.lane.b32.xlu1 %v5772_v52, %s5506_s27 }
 0x18a   : > { %1297 = vrot.lane.b32.xlu0 %v5089_v9, %s5506_s27 }
 0x18b   : > { %v933_v62 = vpop.permute.xlu1 %932  ;;  %v901_v53 = vpop.permute.xlu0 %900 }
 0x18c   : > { %1009 = vst.msk [vmem:[#allocation2 + $0xa0] sm:$0xff] %vm988_vm4, %v933_v62  ;;  %993 = vst.msk [vmem:[#allocation2 + $0x20] sm:$0xff] %vm988_vm4, %v901_v53 }
 0x18d   : > { %1520 = vrot.lane.b32.xlu1 %v5136_v45, %s5507_s10 }
 0x18e   : > { %1488 = vrot.lane.b32.xlu0 %v5120_v25, %s5507_s10 }
 0x18f   : > { %v1511_v61 = vpop.permute.xlu1 %1510  ;;  %v1479_v52 = vpop.permute.xlu0 %1478 }
 0x190   : > { %1588 = vst.msk [vmem:[#allocation2 + $0x98] sm:$0xff] %vm1568_vm7, %v1511_v61  ;;  %1572 = vst.msk [vmem:[#allocation2 + $0x18] sm:$0xff] %vm1568_vm7, %v1479_v52  ;;  %v5109_v61 = vld [vmem:[%s5555_s21 + $0x188] sm:$0xff] }
 0x191   : > { %944 = vrot.lane.b32.xlu1 %v5136_v45, %s5504_s25  ;;  %v5108_v45 = vld [vmem:[%s5555_s21 + $0x180] sm:$0xff]  ;;  %v5093_v52 = vld [vmem:[%s5555_s21 + $0xc8] sm:$0xff] }
 0x192   : > { %912 = vrot.lane.b32.xlu0 %v5120_v25, %s5504_s25  ;;  %v5092_v25 = vld [vmem:[%s5555_s21 + $0xc0] sm:$0xff] }
 0x193   : > { %v1702_v8 = vpop.permute.xlu1 %1701  ;;  %v1670_v34 = vpop.permute.xlu0 %1669 }
 0x194   : > { %1780 = vst.msk [vmem:[#allocation2 + $0x90] sm:$0xff] %vm1761_vm8, %v1702_v8  ;;  %1764 = vst.msk [vmem:[#allocation2 + $0x10] sm:$0xff] %vm1761_vm8, %v1670_v34  ;;  %v5140_v8 = vld [vmem:[%s5555_s21 + $0x181] sm:$0xff] }
 0x195   : > { %1522 = vrot.lane.b32.xlu1 %v5137_v44, %s5507_s10  ;;  %v5124_v34 = vld [vmem:[%s5555_s21 + $0xc1] sm:$0xff] }
 0x196   : > { %1490 = vrot.lane.b32.xlu0 %v5121_v24, %s5507_s10 }
 0x197   : > { %v935_v35 = vpop.permute.xlu1 %934  ;;  %v903_v36 = vpop.permute.xlu0 %902 }
 0x198   : > { %1010 = vst.msk [vmem:[#allocation2 + $0xa8] sm:$0xff] %vm988_vm4, %v935_v35  ;;  %994 = vst.msk [vmem:[#allocation2 + $0x28] sm:$0xff] %vm988_vm4, %v903_v36 }
 0x199   : > { %1713 = vrot.lane.b32.xlu1 %v5168_v20, %s5508_s22 }
 0x19a   : > { %1681 = vrot.lane.b32.xlu0 %v5152_v39, %s5508_s22 }
 0x19b   : > { %v1126_v38 = vpop.permute.xlu1 %1125  ;;  %v1094_v19 = vpop.permute.xlu0 %1093  ;;  %v1796_v37 = vld [vmem:[#allocation2 + $0x10] sm:$0xff] }
 0x19c   : > { %v1812_v21 = vld [vmem:[#allocation2 + $0x90] sm:$0xff]  ;;  %1202 = vst.msk [vmem:[#allocation2 + $0xa0] sm:$0xff] %vm1181_vm5, %v1126_v38  ;;  %1186 = vst.msk [vmem:[#allocation2 + $0x20] sm:$0xff] %vm1181_vm5, %v1094_v19  ;;  %5274 = vmatprep.mubr.msk.f32.mxu0 %vm1835_vm9, %v1796_v37 }
 0x19d   : > { %5298 = vmatprep.mubr.msk.f32.mxu1 %vm1835_vm9, %v1812_v21  ;;  %946 = vrot.lane.b32.xlu1 %v5137_v44, %s5504_s25  ;;  %v5141_v38 = vld [vmem:[%s5555_s21 + $0x189] sm:$0xff] }
 0x19e   : > { %914 = vrot.lane.b32.xlu0 %v5121_v24, %s5504_s25  ;;  %v5125_v19 = vld [vmem:[%s5555_s21 + $0xc9] sm:$0xff] }
 0x19f   : > { %v1704_v30 = vpop.permute.xlu1 %1703  ;;  %v1672_v12 = vpop.permute.xlu0 %1671 }
 0x1a0   : > { %1781 = vst.msk [vmem:[#allocation2 + $0x98] sm:$0xff] %vm1761_vm8, %v1704_v30  ;;  %1765 = vst.msk [vmem:[#allocation2 + $0x18] sm:$0xff] %vm1761_vm8, %v1672_v12  ;;  %v5172_v30 = vld [vmem:[%s5555_s21 + $0x182] sm:$0xff] }
 0x1a1   : > { %1137 = vrot.lane.b32.xlu1 %v5168_v20, %s5505_s26  ;;  %v5156_v12 = vld [vmem:[%s5555_s21 + $0xc2] sm:$0xff] }
 0x1a2   : > { %1105 = vrot.lane.b32.xlu0 %v5152_v39, %s5505_s26 }
 0x1a3   : > { %v1128_v59 = vpop.permute.xlu1 %1127  ;;  %v1096_v60 = vpop.permute.xlu0 %1095 }
 0x1a4   : > { %1203 = vst.msk [vmem:[#allocation2 + $0xa8] sm:$0xff] %vm1181_vm5, %v1128_v59  ;;  %1187 = vst.msk [vmem:[#allocation2 + $0x28] sm:$0xff] %vm1181_vm5, %v1096_v60 }
 0x1a5   : > { %1715 = vrot.lane.b32.xlu1 %v5169_v5, %s5508_s22 }
 0x1a6   : > { %1683 = vrot.lane.b32.xlu0 %v5153_v16, %s5508_s22 }
 0x1a7   : > { %v1320_v4 = vpop.permute.xlu1 %1319  ;;  %v1288_v47 = vpop.permute.xlu0 %1287  ;;  %v1797_v54 = vld [vmem:[#allocation2 + $0x18] sm:$0xff] }
 0x1a8   : > { %v1813_v58 = vld [vmem:[#allocation2 + $0x98] sm:$0xff]  ;;  %1396 = vst.msk [vmem:[#allocation2 + $0xa0] sm:$0xff] %vm1375_vm6, %v1320_v4  ;;  %1380 = vst.msk [vmem:[#allocation2 + $0x20] sm:$0xff] %vm1375_vm6, %v1288_v47  ;;  %5275 = vmatmul.mubr.msk.f32.gmra.mrb[2].mxu0 %vm1835_vm9, %v1797_v54 }
 0x1a9   : > { %5299 = vmatmul.mubr.msk.f32.gmra.mrb[2].mxu1 %vm1835_vm9, %v1813_v58  ;;  %1139 = vrot.lane.b32.xlu1 %v5169_v5, %s5505_s26 }
 0x1aa   : > { %1107 = vrot.lane.b32.xlu0 %v5153_v16, %s5505_s26 }
 0x1ab   : > { %v1322_v46 = vpop.permute.xlu1 %1321  ;;  %v1290_v49 = vpop.permute.xlu0 %1289 }
 0x1ac   : > { %1397 = vst.msk [vmem:[#allocation2 + $0xa8] sm:$0xff] %vm1375_vm6, %v1322_v46  ;;  %1381 = vst.msk [vmem:[#allocation2 + $0x28] sm:$0xff] %vm1375_vm6, %v1290_v49 }
 0x1ad   : > { %1331 = vrot.lane.b32.xlu1 %v5106_v29, %s5506_s27  ;;  %v5173_v29 = vld [vmem:[%s5555_s21 + $0x18a] sm:$0xff] }
 0x1ae   : > { %1299 = vrot.lane.b32.xlu0 %v5090_v18, %s5506_s27  ;;  %v5157_v18 = vld [vmem:[%s5555_s21 + $0xca] sm:$0xff] }
 0x1af   : > { %v1513_v27 = vpop.permute.xlu1 %1512  ;;  %v1481_v48 = vpop.permute.xlu0 %1480 }
 0x1b0   : > { %1589 = vst.msk [vmem:[#allocation2 + $0xa0] sm:$0xff] %vm1568_vm7, %v1513_v27  ;;  %1573 = vst.msk [vmem:[#allocation2 + $0x20] sm:$0xff] %vm1568_vm7, %v1481_v48 }
 0x1b1   : > { %1333 = vrot.lane.b32.xlu1 %v5107_v55, %s5506_s27 }
 0x1b2   : > { %1301 = vrot.lane.b32.xlu0 %v5091_v17, %s5506_s27 }
 0x1b3   : > { %v937_v11 = vpop.permute.xlu1 %936  ;;  %v905_v1 = vpop.permute.xlu0 %904 }
 0x1b4   : > { %1011 = vst.msk [vmem:[#allocation2 + $0xb0] sm:$0xff] %vm988_vm4, %v937_v11  ;;  %995 = vst.msk [vmem:[#allocation2 + $0x30] sm:$0xff] %vm988_vm4, %v905_v1 }
 0x1b5   : > { %1524 = vrot.lane.b32.xlu1 %v5138_v26, %s5507_s10 }
 0x1b6   : > { %1492 = vrot.lane.b32.xlu0 %v5122_v56, %s5507_s10 }
 0x1b7   : > { %v1515_v57 = vpop.permute.xlu1 %1514  ;;  %v1483_v28 = vpop.permute.xlu0 %1482 }
 0x1b8   : > { %1590 = vst.msk [vmem:[#allocation2 + $0xa8] sm:$0xff] %vm1568_vm7, %v1515_v57  ;;  %1574 = vst.msk [vmem:[#allocation2 + $0x28] sm:$0xff] %vm1568_vm7, %v1483_v28  ;;  %v5111_v57 = vld [vmem:[%s5555_s21 + $0x1a0] sm:$0xff] }
 0x1b9   : > { %948 = vrot.lane.b32.xlu1 %v5138_v26, %s5504_s25  ;;  %v5110_v26 = vld [vmem:[%s5555_s21 + $0x198] sm:$0xff]  ;;  %v5095_v28 = vld [vmem:[%s5555_s21 + $0xe0] sm:$0xff] }
 0x1ba   : > { %916 = vrot.lane.b32.xlu0 %v5122_v56, %s5504_s25  ;;  %v5094_v56 = vld [vmem:[%s5555_s21 + $0xd8] sm:$0xff] }
 0x1bb   : > { %v1706_v23 = vpop.permute.xlu1 %1705  ;;  %v1674_v41 = vpop.permute.xlu0 %1673 }
 0x1bc   : > { %1782 = vst.msk [vmem:[#allocation2 + $0xa0] sm:$0xff] %vm1761_vm8, %v1706_v23  ;;  %1766 = vst.msk [vmem:[#allocation2 + $0x20] sm:$0xff] %vm1761_vm8, %v1674_v41  ;;  %v5142_v23 = vld [vmem:[%s5555_s21 + $0x199] sm:$0xff] }
 0x1bd   : > { %1526 = vrot.lane.b32.xlu1 %v5139_v10, %s5507_s10  ;;  %v5126_v41 = vld [vmem:[%s5555_s21 + $0xd9] sm:$0xff] }
 0x1be   : > { %1494 = vrot.lane.b32.xlu0 %v5123_v63, %s5507_s10 }
 0x1bf   : > { %v939_v31 = vpop.permute.xlu1 %938  ;;  %v907_v0 = vpop.permute.xlu0 %906 }
 0x1c0   : > { %1012 = vst.msk [vmem:[#allocation2 + $0xb8] sm:$0xff] %vm988_vm4, %v939_v31  ;;  %996 = vst.msk [vmem:[#allocation2 + $0x38] sm:$0xff] %vm988_vm4, %v907_v0  ;;  %v5143_v31 = vld [vmem:[%s5555_s21 + $0x1a1] sm:$0xff] }
 0x1c1   : > { %1717 = vrot.lane.b32.xlu1 %v5170_v22, %s5508_s22  ;;  %v5127_v0 = vld [vmem:[%s5555_s21 + $0xe1] sm:$0xff] }
 0x1c2   : > { %1685 = vrot.lane.b32.xlu0 %v5154_v40, %s5508_s22 }
 0x1c3   : > { %v1130_v7 = vpop.permute.xlu1 %1129  ;;  %v1098_v51 = vpop.permute.xlu0 %1097  ;;  %v1798_v2 = vld [vmem:[#allocation2 + $0x20] sm:$0xff] }
 0x1c4   : > { %v1814_v32 = vld [vmem:[#allocation2 + $0xa0] sm:$0xff]  ;;  %1204 = vst.msk [vmem:[#allocation2 + $0xb0] sm:$0xff] %vm1181_vm5, %v1130_v7  ;;  %1188 = vst.msk [vmem:[#allocation2 + $0x30] sm:$0xff] %vm1181_vm5, %v1098_v51  ;;  %5277 = vmatprep.mubr.msk.f32.mxu0 %vm1835_vm9, %v1798_v2 }
 0x1c5   : > { %5301 = vmatprep.mubr.msk.f32.mxu1 %vm1835_vm9, %v1814_v32  ;;  %950 = vrot.lane.b32.xlu1 %v5139_v10, %s5504_s25  ;;  %v5174_v2 = vld [vmem:[%s5555_s21 + $0x19a] sm:$0xff] }
 0x1c6   : > { %918 = vrot.lane.b32.xlu0 %v5123_v63, %s5504_s25  ;;  %v5158_v32 = vld [vmem:[%s5555_s21 + $0xda] sm:$0xff] }
 0x1c7   : > { %v1708_v33 = vpop.permute.xlu1 %1707  ;;  %v1676_v42 = vpop.permute.xlu0 %1675 }
 0x1c8   : > { %1783 = vst.msk [vmem:[#allocation2 + $0xa8] sm:$0xff] %vm1761_vm8, %v1708_v33  ;;  %1767 = vst.msk [vmem:[#allocation2 + $0x28] sm:$0xff] %vm1761_vm8, %v1676_v42 }
 0x1c9   : > { %1141 = vrot.lane.b32.xlu1 %v5170_v22, %s5505_s26 }
 0x1ca   : > { %1109 = vrot.lane.b32.xlu0 %v5154_v40, %s5505_s26 }
 0x1cb   : > { %v1132_v14 = vpop.permute.xlu1 %1131  ;;  %v1100_v15 = vpop.permute.xlu0 %1099 }
 0x1cc   : > { %1205 = vst.msk [vmem:[#allocation2 + $0xb8] sm:$0xff] %vm1181_vm5, %v1132_v14  ;;  %1189 = vst.msk [vmem:[#allocation2 + $0x38] sm:$0xff] %vm1181_vm5, %v1100_v15 }
 0x1cd   : > { %1719 = vrot.lane.b32.xlu1 %v5171_v6, %s5508_s22 }
 0x1ce   : > { %1687 = vrot.lane.b32.xlu0 %v5155_v50, %s5508_s22 }
 0x1cf   : > { %v1324_v43 = vpop.permute.xlu1 %1323  ;;  %v1292_v9 = vpop.permute.xlu0 %1291  ;;  %v1799_v13 = vld [vmem:[#allocation2 + $0x28] sm:$0xff] }
 0x1d0   : > { %v1815_v3 = vld [vmem:[#allocation2 + $0xa8] sm:$0xff]  ;;  %1398 = vst.msk [vmem:[#allocation2 + $0xb0] sm:$0xff] %vm1375_vm6, %v1324_v43  ;;  %1382 = vst.msk [vmem:[#allocation2 + $0x30] sm:$0xff] %vm1375_vm6, %v1292_v9  ;;  %5278 = vmatmul.mubr.msk.f32.gmra.mrb[4].mxu0 %vm1835_vm9, %v1799_v13 }
 0x1d1   : > { %5302 = vmatmul.mubr.msk.f32.gmra.mrb[4].mxu1 %vm1835_vm9, %v1815_v3  ;;  %1143 = vrot.lane.b32.xlu1 %v5171_v6, %s5505_s26  ;;  %v5175_v6 = vld [vmem:[%s5555_s21 + $0x1a2] sm:$0xff] }
 0x1d2   : > { %1111 = vrot.lane.b32.xlu0 %v5155_v50, %s5505_s26  ;;  %v5159_v50 = vld [vmem:[%s5555_s21 + $0xe2] sm:$0xff]  ;;  %s5208_s21 = sshll.u32 %s5546_s16, 8 }
 0x1d3   : > { %v1326_v62 = vpop.permute.xlu1 %1325  ;;  %v1294_v53 = vpop.permute.xlu0 %1293 }
 0x1d4   : > { %1399 = vst.msk [vmem:[#allocation2 + $0xb8] sm:$0xff] %vm1375_vm6, %v1326_v62  ;;  %1383 = vst.msk [vmem:[#allocation2 + $0x38] sm:$0xff] %vm1375_vm6, %v1294_v53 }
 0x1d5   : > { %1335 = vrot.lane.b32.xlu1 %v5108_v45, %s5506_s27 }
 0x1d6   : > { %1303 = vrot.lane.b32.xlu0 %v5092_v25, %s5506_s27 }
 0x1d7   : > { %v1517_v44 = vpop.permute.xlu1 %1516  ;;  %v1485_v24 = vpop.permute.xlu0 %1484 }
 0x1d8   : > { %1591 = vst.msk [vmem:[#allocation2 + $0xb0] sm:$0xff] %vm1568_vm7, %v1517_v44  ;;  %1575 = vst.msk [vmem:[#allocation2 + $0x30] sm:$0xff] %vm1568_vm7, %v1485_v24 }
 0x1d9   : > { %1337 = vrot.lane.b32.xlu1 %v5109_v61, %s5506_s27 }
 0x1da   : > { %1305 = vrot.lane.b32.xlu0 %v5093_v52, %s5506_s27 }
 0x1db   : > { %v941_v20 = vpop.permute.xlu1 %940  ;;  %v909_v39 = vpop.permute.xlu0 %908 }
 0x1dc   : > { %1013 = vst.msk [vmem:[#allocation2 + $0xc0] sm:$0xff] %vm988_vm4, %v941_v20  ;;  %997 = vst.msk [vmem:[#allocation2 + $0x40] sm:$0xff] %vm988_vm4, %v909_v39 }
 0x1dd   : > { %1528 = vrot.lane.b32.xlu1 %v5140_v8, %s5507_s10 }
 0x1de   : > { %1496 = vrot.lane.b32.xlu0 %v5124_v34, %s5507_s10 }
 0x1df   : > { %v1519_v35 = vpop.permute.xlu1 %1518  ;;  %v1487_v36 = vpop.permute.xlu0 %1486 }
 0x1e0   : > { %1592 = vst.msk [vmem:[#allocation2 + $0xb8] sm:$0xff] %vm1568_vm7, %v1519_v35  ;;  %1576 = vst.msk [vmem:[#allocation2 + $0x38] sm:$0xff] %vm1568_vm7, %v1487_v36 }
 0x1e1   : > { %952 = vrot.lane.b32.xlu1 %v5140_v8, %s5504_s25 }
 0x1e2   : > { %920 = vrot.lane.b32.xlu0 %v5124_v34, %s5504_s25 }
 0x1e3   : > { %v1710_v37 = vpop.permute.xlu1 %1709  ;;  %v1678_v21 = vpop.permute.xlu0 %1677 }
 0x1e4   : > { %1784 = vst.msk [vmem:[#allocation2 + $0xb0] sm:$0xff] %vm1761_vm8, %v1710_v37  ;;  %1768 = vst.msk [vmem:[#allocation2 + $0x30] sm:$0xff] %vm1761_vm8, %v1678_v21 }
 0x1e5   : > { %1530 = vrot.lane.b32.xlu1 %v5141_v38, %s5507_s10 }
 0x1e6   : > { %1498 = vrot.lane.b32.xlu0 %v5125_v19, %s5507_s10 }
 0x1e7   : > { %v943_v5 = vpop.permute.xlu1 %942  ;;  %v911_v16 = vpop.permute.xlu0 %910 }
 0x1e8   : > { %1014 = vst.msk [vmem:[#allocation2 + $0xc8] sm:$0xff] %vm988_vm4, %v943_v5  ;;  %998 = vst.msk [vmem:[#allocation2 + $0x48] sm:$0xff] %vm988_vm4, %v911_v16 }
 0x1e9   : > { %1721 = vrot.lane.b32.xlu1 %v5172_v30, %s5508_s22 }
 0x1ea   : > { %1689 = vrot.lane.b32.xlu0 %v5156_v12, %s5508_s22 }
 0x1eb   : > { %v1134_v59 = vpop.permute.xlu1 %1133  ;;  %v1800_v4 = vld [vmem:[#allocation2 + $0x30] sm:$0xff] }
 0x1ec   : > { %v1102_v60 = vpop.permute.xlu0 %1101  ;;  %v1816_v47 = vld [vmem:[#allocation2 + $0xb0] sm:$0xff]  ;;  %1206 = vst.msk [vmem:[#allocation2 + $0xc0] sm:$0xff] %vm1181_vm5, %v1134_v59  ;;  %5280 = vmatprep.mubr.msk.f32.mxu0 %vm1835_vm9, %v1800_v4 }
 0x1ed   : > { %1190 = vst.msk [vmem:[#allocation2 + $0x40] sm:$0xff] %vm1181_vm5, %v1102_v60  ;;  %5304 = vmatprep.mubr.msk.f32.mxu1 %vm1835_vm9, %v1816_v47  ;;  %954 = vrot.lane.b32.xlu1 %v5141_v38, %s5504_s25 }
 0x1ee   : > { %922 = vrot.lane.b32.xlu0 %v5125_v19, %s5504_s25 }
 0x1ef   : > { %v1712_v54 = vpop.permute.xlu1 %1711 }
 0x1f0   : > { %v1680_v58 = vpop.permute.xlu0 %1679  ;;  %1785 = vst.msk [vmem:[#allocation2 + $0xb8] sm:$0xff] %vm1761_vm8, %v1712_v54 }
 0x1f1   : > { %1769 = vst.msk [vmem:[#allocation2 + $0x38] sm:$0xff] %vm1761_vm8, %v1680_v58  ;;  %1145 = vrot.lane.b32.xlu1 %v5172_v30, %s5505_s26 }
 0x1f2   : > { %1113 = vrot.lane.b32.xlu0 %v5156_v12, %s5505_s26 }
 0x1f3   : > { %v1136_v46 = vpop.permute.xlu1 %1135 }
 0x1f4   : > { %v1104_v49 = vpop.permute.xlu0 %1103  ;;  %1207 = vst.msk [vmem:[#allocation2 + $0xc8] sm:$0xff] %vm1181_vm5, %v1136_v46 }
 0x1f5   : > { %1191 = vst.msk [vmem:[#allocation2 + $0x48] sm:$0xff] %vm1181_vm5, %v1104_v49  ;;  %1723 = vrot.lane.b32.xlu1 %v5173_v29, %s5508_s22 }
 0x1f6   : > { %1691 = vrot.lane.b32.xlu0 %v5157_v18, %s5508_s22 }
 0x1f7   : > { %v1328_v55 = vpop.permute.xlu1 %1327  ;;  %v1817_v48 = vld [vmem:[#allocation2 + $0xb8] sm:$0xff] }
 0x1f8   : > { %v1296_v17 = vpop.permute.xlu0 %1295  ;;  %v1801_v27 = vld [vmem:[#allocation2 + $0x38] sm:$0xff]  ;;  %1400 = vst.msk [vmem:[#allocation2 + $0xc0] sm:$0xff] %vm1375_vm6, %v1328_v55  ;;  %5305 = vmatmul.mubr.msk.f32.gmra.mrb[6].mxu1 %vm1835_vm9, %v1817_v48 }
 0x1f9   : > { %1384 = vst.msk [vmem:[#allocation2 + $0x40] sm:$0xff] %vm1375_vm6, %v1296_v17  ;;  %5281 = vmatmul.mubr.msk.f32.gmra.mrb[6].mxu0 %vm1835_vm9, %v1801_v27  ;;  %1147 = vrot.lane.b32.xlu1 %v5173_v29, %s5505_s26 }
 0x1fa   : > { %1115 = vrot.lane.b32.xlu0 %v5157_v18, %s5505_s26 }
 0x1fb   : > { %v1330_v11 = vpop.permute.xlu1 %1329 }
 0x1fc   : > { %v1298_v1 = vpop.permute.xlu0 %1297  ;;  %1401 = vst.msk [vmem:[#allocation2 + $0xc8] sm:$0xff] %vm1375_vm6, %v1330_v11 }
 0x1fd   : > { %1385 = vst.msk [vmem:[#allocation2 + $0x48] sm:$0xff] %vm1375_vm6, %v1298_v1  ;;  %1339 = vrot.lane.b32.xlu1 %v5110_v26, %s5506_s27 }
 0x1fe   : > { %1307 = vrot.lane.b32.xlu0 %v5094_v56, %s5506_s27 }
 0x1ff   : > { %v1521_v10 = vpop.permute.xlu1 %1520 }
 0x200   : > { %v1489_v63 = vpop.permute.xlu0 %1488  ;;  %1593 = vst.msk [vmem:[#allocation2 + $0xc0] sm:$0xff] %vm1568_vm7, %v1521_v10 }
 0x201   : > { %1577 = vst.msk [vmem:[#allocation2 + $0x40] sm:$0xff] %vm1568_vm7, %v1489_v63  ;;  %1341 = vrot.lane.b32.xlu1 %v5111_v57, %s5506_s27 }
 0x202   : > { %1309 = vrot.lane.b32.xlu0 %v5095_v28, %s5506_s27  ;;  %s6556_s27 = scalar_lea.vmem %s12465_s4, %s5208_s21 }
 0x203   : > { %v945_v22 = vpop.permute.xlu1 %944 }
 0x204   : > { %v913_v40 = vpop.permute.xlu0 %912  ;;  %1015 = vst.msk [vmem:[#allocation2 + $0xd0] sm:$0xff] %vm988_vm4, %v945_v22 }
 0x205   : > { %999 = vst.msk [vmem:[#allocation2 + $0x50] sm:$0xff] %vm988_vm4, %v913_v40  ;;  %1532 = vrot.lane.b32.xlu1 %v5142_v23, %s5507_s10 }
 0x206   : > { %1500 = vrot.lane.b32.xlu0 %v5126_v41, %s5507_s10 }
 0x207   : > { %v1523_v7 = vpop.permute.xlu1 %1522 }
 0x208   : > { %v1491_v51 = vpop.permute.xlu0 %1490  ;;  %1594 = vst.msk [vmem:[#allocation2 + $0xc8] sm:$0xff] %vm1568_vm7, %v1523_v7 }
 0x209   : > { %1578 = vst.msk [vmem:[#allocation2 + $0x48] sm:$0xff] %vm1568_vm7, %v1491_v51  ;;  %1534 = vrot.lane.b32.xlu1 %v5143_v31, %s5507_s10 }
 0x20a   : > { %1502 = vrot.lane.b32.xlu0 %v5127_v0, %s5507_s10 }
 0x20b   : > { %v1714_v33 = vpop.permute.xlu1 %1713 }
 0x20c   : > { %v1682_v42 = vpop.permute.xlu0 %1681  ;;  %1786 = vst.msk [vmem:[#allocation2 + $0xc0] sm:$0xff] %vm1761_vm8, %v1714_v33 }
 0x20d   : > { %1770 = vst.msk [vmem:[#allocation2 + $0x40] sm:$0xff] %vm1761_vm8, %v1682_v42  ;;  %1725 = vrot.lane.b32.xlu1 %v5174_v2, %s5508_s22 }
 0x20e   : > { %1693 = vrot.lane.b32.xlu0 %v5158_v32, %s5508_s22 }
 0x20f   : > { %v947_v14 = vpop.permute.xlu1 %946 }
 0x210   : > { %v915_v15 = vpop.permute.xlu0 %914  ;;  %1016 = vst.msk [vmem:[#allocation2 + $0xd8] sm:$0xff] %vm988_vm4, %v947_v14 }
 0x211   : > { %1000 = vst.msk [vmem:[#allocation2 + $0x58] sm:$0xff] %vm988_vm4, %v915_v15  ;;  %1727 = vrot.lane.b32.xlu1 %v5175_v6, %s5508_s22 }
 0x212   : > { %1695 = vrot.lane.b32.xlu0 %v5159_v50, %s5508_s22 }
 0x213   : > { %v1138_v43 = vpop.permute.xlu1 %1137  ;;  %v1818_v3 = vld [vmem:[#allocation2 + $0xc0] sm:$0xff] }
 0x214   : > { %v1106_v9 = vpop.permute.xlu0 %1105  ;;  %v1802_v13 = vld [vmem:[#allocation2 + $0x40] sm:$0xff]  ;;  %1208 = vst.msk [vmem:[#allocation2 + $0xd0] sm:$0xff] %vm1181_vm5, %v1138_v43  ;;  %5307 = vmatprep.mubr.msk.f32.mxu1 %vm1835_vm9, %v1818_v3 }
 0x215   : > { %1192 = vst.msk [vmem:[#allocation2 + $0x50] sm:$0xff] %vm1181_vm5, %v1106_v9  ;;  %5283 = vmatprep.mubr.msk.f32.mxu0 %vm1835_vm9, %v1802_v13 }
 0x217   : > { %v1716_v45 = vpop.permute.xlu1 %1715 }
 0x218   : > { %v1684_v25 = vpop.permute.xlu0 %1683  ;;  %1787 = vst.msk [vmem:[#allocation2 + $0xc8] sm:$0xff] %vm1761_vm8, %v1716_v45 }
 0x219   : > { %1771 = vst.msk [vmem:[#allocation2 + $0x48] sm:$0xff] %vm1761_vm8, %v1684_v25 }
 0x21b   : > { %v1140_v62 = vpop.permute.xlu1 %1139 }
 0x21c   : > { %v1108_v53 = vpop.permute.xlu0 %1107  ;;  %1209 = vst.msk [vmem:[#allocation2 + $0xd8] sm:$0xff] %vm1181_vm5, %v1140_v62 }
 0x21d   : > { %1193 = vst.msk [vmem:[#allocation2 + $0x58] sm:$0xff] %vm1181_vm5, %v1108_v53 }
 0x21f   : > { %v1332_v61 = vpop.permute.xlu1 %1331  ;;  %v1819_v24 = vld [vmem:[#allocation2 + $0xc8] sm:$0xff] }
 0x220   : > { %v1300_v52 = vpop.permute.xlu0 %1299  ;;  %v1803_v44 = vld [vmem:[#allocation2 + $0x48] sm:$0xff]  ;;  %1402 = vst.msk [vmem:[#allocation2 + $0xd0] sm:$0xff] %vm1375_vm6, %v1332_v61  ;;  %5308 = vmatmul.mubr.msk.f32.gmra.mrb[8].mxu1 %vm1835_vm9, %v1819_v24 }
 0x221   : > { %1386 = vst.msk [vmem:[#allocation2 + $0x50] sm:$0xff] %vm1375_vm6, %v1300_v52  ;;  %5284 = vmatmul.mubr.msk.f32.gmra.mrb[8].mxu0 %vm1835_vm9, %v1803_v44 }
 0x223   : > { %v1334_v8 = vpop.permute.xlu1 %1333 }
 0x224   : > { %v1302_v34 = vpop.permute.xlu0 %1301  ;;  %1403 = vst.msk [vmem:[#allocation2 + $0xd8] sm:$0xff] %vm1375_vm6, %v1334_v8 }
 0x225   : > { %1387 = vst.msk [vmem:[#allocation2 + $0x58] sm:$0xff] %vm1375_vm6, %v1302_v34 }
 0x227   : > { %v1525_v20 = vpop.permute.xlu1 %1524 }
 0x228   : > { %v1493_v39 = vpop.permute.xlu0 %1492  ;;  %1595 = vst.msk [vmem:[#allocation2 + $0xd0] sm:$0xff] %vm1568_vm7, %v1525_v20 }
 0x229   : > { %1579 = vst.msk [vmem:[#allocation2 + $0x50] sm:$0xff] %vm1568_vm7, %v1493_v39 }
 0x22b   : > { %v949_v35 = vpop.permute.xlu1 %948 }
 0x22c   : > { %v917_v36 = vpop.permute.xlu0 %916  ;;  %1017 = vst.msk [vmem:[#allocation2 + $0xe0] sm:$0xff] %vm988_vm4, %v949_v35 }
 0x22d   : > { %1001 = vst.msk [vmem:[#allocation2 + $0x60] sm:$0xff] %vm988_vm4, %v917_v36 }
 0x22f   : > { %v1527_v38 = vpop.permute.xlu1 %1526 }
 0x230   : > { %v1495_v19 = vpop.permute.xlu0 %1494  ;;  %1596 = vst.msk [vmem:[#allocation2 + $0xd8] sm:$0xff] %vm1568_vm7, %v1527_v38 }
 0x231   : > { %1580 = vst.msk [vmem:[#allocation2 + $0x58] sm:$0xff] %vm1568_vm7, %v1495_v19 }
 0x233   : > { %v1718_v37 = vpop.permute.xlu1 %1717 }
 0x234   : > { %v1686_v21 = vpop.permute.xlu0 %1685  ;;  %1788 = vst.msk [vmem:[#allocation2 + $0xd0] sm:$0xff] %vm1761_vm8, %v1718_v37 }
 0x235   : > { %1772 = vst.msk [vmem:[#allocation2 + $0x50] sm:$0xff] %vm1761_vm8, %v1686_v21 }
 0x237   : > { %v951_v30 = vpop.permute.xlu1 %950 }
 0x238   : > { %v919_v12 = vpop.permute.xlu0 %918  ;;  %1018 = vst.msk [vmem:[#allocation2 + $0xe8] sm:$0xff] %vm988_vm4, %v951_v30 }
 0x239   : > { %1002 = vst.msk [vmem:[#allocation2 + $0x68] sm:$0xff] %vm988_vm4, %v919_v12 }
 0x23b   : > { %v1142_v5 = vpop.permute.xlu1 %1141  ;;  %v1820_v60 = vld [vmem:[#allocation2 + $0xd0] sm:$0xff] }
 0x23c   : > { %v1110_v16 = vpop.permute.xlu0 %1109  ;;  %v1804_v59 = vld [vmem:[#allocation2 + $0x50] sm:$0xff]  ;;  %1210 = vst.msk [vmem:[#allocation2 + $0xe0] sm:$0xff] %vm1181_vm5, %v1142_v5  ;;  %5310 = vmatprep.mubr.msk.f32.mxu1 %vm1835_vm9, %v1820_v60 }
 0x23d   : > { %1194 = vst.msk [vmem:[#allocation2 + $0x60] sm:$0xff] %vm1181_vm5, %v1110_v16  ;;  %5286 = vmatprep.mubr.msk.f32.mxu0 %vm1835_vm9, %v1804_v59 }
 0x23f   : > { %v1720_v4 = vpop.permute.xlu1 %1719 }
 0x240   : > { %v1688_v47 = vpop.permute.xlu0 %1687  ;;  %1789 = vst.msk [vmem:[#allocation2 + $0xd8] sm:$0xff] %vm1761_vm8, %v1720_v4 }
 0x241   : > { %1773 = vst.msk [vmem:[#allocation2 + $0x58] sm:$0xff] %vm1761_vm8, %v1688_v47 }
 0x243   : > { %v1144_v54 = vpop.permute.xlu1 %1143 }
 0x244   : > { %v1112_v58 = vpop.permute.xlu0 %1111  ;;  %1211 = vst.msk [vmem:[#allocation2 + $0xe8] sm:$0xff] %vm1181_vm5, %v1144_v54 }
 0x245   : > { %1195 = vst.msk [vmem:[#allocation2 + $0x68] sm:$0xff] %vm1181_vm5, %v1112_v58 }
 0x247   : > { %v1336_v29 = vpop.permute.xlu1 %1335  ;;  %v1821_v49 = vld [vmem:[#allocation2 + $0xd8] sm:$0xff] }
 0x248   : > { %v1304_v18 = vpop.permute.xlu0 %1303  ;;  %v1805_v46 = vld [vmem:[#allocation2 + $0x58] sm:$0xff]  ;;  %1404 = vst.msk [vmem:[#allocation2 + $0xe0] sm:$0xff] %vm1375_vm6, %v1336_v29  ;;  %5311 = vmatmul.mubr.msk.f32.gmra.mrb[10].mxu1 %vm1835_vm9, %v1821_v49 }
 0x249   : > { %1388 = vst.msk [vmem:[#allocation2 + $0x60] sm:$0xff] %vm1375_vm6, %v1304_v18  ;;  %5287 = vmatmul.mubr.msk.f32.gmra.mrb[10].mxu0 %vm1835_vm9, %v1805_v46 }
 0x24b   : > { %v1338_v55 = vpop.permute.xlu1 %1337 }
 0x24c   : > { %v1306_v17 = vpop.permute.xlu0 %1305  ;;  %1405 = vst.msk [vmem:[#allocation2 + $0xe8] sm:$0xff] %vm1375_vm6, %v1338_v55 }
 0x24d   : > { %1389 = vst.msk [vmem:[#allocation2 + $0x68] sm:$0xff] %vm1375_vm6, %v1306_v17 }
 0x24f   : > { %v1529_v27 = vpop.permute.xlu1 %1528 }
 0x250   : > { %v1497_v48 = vpop.permute.xlu0 %1496  ;;  %1597 = vst.msk [vmem:[#allocation2 + $0xe0] sm:$0xff] %vm1568_vm7, %v1529_v27 }
 0x251   : > { %1581 = vst.msk [vmem:[#allocation2 + $0x60] sm:$0xff] %vm1568_vm7, %v1497_v48 }
 0x253   : > { %v953_v26 = vpop.permute.xlu1 %952  ;;  %v5273_v11 = vpop.f32.mrb[0].mxu0 }
 0x254   : > { %v921_v56 = vpop.permute.xlu0 %920  ;;  %1019 = vst.msk [vmem:[#allocation2 + $0xf0] sm:$0xff] %vm988_vm4, %v953_v26  ;;  %v5297_v1 = vpop.f32.mrb[0].mxu1 }
 0x255   : > { %1003 = vst.msk [vmem:[#allocation2 + $0x70] sm:$0xff] %vm988_vm4, %v921_v56  ;;  %v1998_v57 = vpop.f32.mrb[1].mxu0  ;;  %v2078_v28 = vpop.f32.mrb[1].mxu1 }
 0x256   : > { %2161 = vst.msk [vmem:[%s6556_s27 + $0x8] sm:$0xff] %vm2159_vm10, %v5273_v11  ;;  %2177 = vst.msk [vmem:[%s6556_s27 + $0x88] sm:$0xff] %vm2159_vm10, %v5297_v1 }
 0x257   : > { %2160 = vst.msk [vmem:[%s6556_s27] sm:$0xff] %vm2159_vm10, %v1998_v57  ;;  %2176 = vst.msk [vmem:[%s6556_s27 + $0x80] sm:$0xff] %vm2159_vm10, %v2078_v28  ;;  %v1531_v10 = vpop.permute.xlu1 %1530 }
 0x258   : > { %v1499_v63 = vpop.permute.xlu0 %1498  ;;  %1598 = vst.msk [vmem:[#allocation2 + $0xe8] sm:$0xff] %vm1568_vm7, %v1531_v10 }
 0x259   : > { %1582 = vst.msk [vmem:[#allocation2 + $0x68] sm:$0xff] %vm1568_vm7, %v1499_v63 }
 0x25b   : > { %v1722_v23 = vpop.permute.xlu1 %1721 }
 0x25c   : > { %v1690_v41 = vpop.permute.xlu0 %1689  ;;  %1790 = vst.msk [vmem:[#allocation2 + $0xe0] sm:$0xff] %vm1761_vm8, %v1722_v23 }
 0x25d   : > { %1774 = vst.msk [vmem:[#allocation2 + $0x60] sm:$0xff] %vm1761_vm8, %v1690_v41 }
 0x25f   : > { %v955_v22 = vpop.permute.xlu1 %954 }
 0x260   : > { %v923_v40 = vpop.permute.xlu0 %922  ;;  %1020 = vst.msk [vmem:[#allocation2 + $0xf8] sm:$0xff] %vm988_vm4, %v955_v22 }
 0x261   : > { %1004 = vst.msk [vmem:[#allocation2 + $0x78] sm:$0xff] %vm988_vm4, %v923_v40 }
 0x263   : > { %v1146_v31 = vpop.permute.xlu1 %1145  ;;  %v1822_v51 = vld [vmem:[#allocation2 + $0xe0] sm:$0xff] }
 0x264   : > { %v1114_v0 = vpop.permute.xlu0 %1113  ;;  %v1806_v7 = vld [vmem:[#allocation2 + $0x60] sm:$0xff]  ;;  %1212 = vst.msk [vmem:[#allocation2 + $0xf0] sm:$0xff] %vm1181_vm5, %v1146_v31  ;;  %5313 = vmatprep.mubr.msk.f32.mxu1 %vm1835_vm9, %v1822_v51 }
 0x265   : > { %1196 = vst.msk [vmem:[#allocation2 + $0x70] sm:$0xff] %vm1181_vm5, %v1114_v0  ;;  %5289 = vmatprep.mubr.msk.f32.mxu0 %vm1835_vm9, %v1806_v7 }
 0x267   : > { %v1724_v2 = vpop.permute.xlu1 %1723 }
 0x268   : > { %v1692_v32 = vpop.permute.xlu0 %1691  ;;  %1791 = vst.msk [vmem:[#allocation2 + $0xe8] sm:$0xff] %vm1761_vm8, %v1724_v2 }
 0x269   : > { %1775 = vst.msk [vmem:[#allocation2 + $0x68] sm:$0xff] %vm1761_vm8, %v1692_v32 }
 0x26b   : > { %v1148_v33 = vpop.permute.xlu1 %1147 }
 0x26c   : > { %v1116_v42 = vpop.permute.xlu0 %1115  ;;  %1213 = vst.msk [vmem:[#allocation2 + $0xf8] sm:$0xff] %vm1181_vm5, %v1148_v33 }
 0x26d   : > { %1197 = vst.msk [vmem:[#allocation2 + $0x78] sm:$0xff] %vm1181_vm5, %v1116_v42 }
 0x26f   : > { %v1340_v6 = vpop.permute.xlu1 %1339  ;;  %v1823_v15 = vld [vmem:[#allocation2 + $0xe8] sm:$0xff] }
 0x270   : > { %v1308_v50 = vpop.permute.xlu0 %1307  ;;  %v1807_v14 = vld [vmem:[#allocation2 + $0x68] sm:$0xff]  ;;  %1406 = vst.msk [vmem:[#allocation2 + $0xf0] sm:$0xff] %vm1375_vm6, %v1340_v6  ;;  %5314 = vmatmul.mubr.msk.f32.gmra.mrb[12].mxu1 %vm1835_vm9, %v1823_v15 }
 0x271   : > { %1390 = vst.msk [vmem:[#allocation2 + $0x70] sm:$0xff] %vm1375_vm6, %v1308_v50  ;;  %5290 = vmatmul.mubr.msk.f32.gmra.mrb[12].mxu0 %vm1835_vm9, %v1807_v14 }
 0x273   : > { %v1342_v43 = vpop.permute.xlu1 %1341 }
 0x274   : > { %v1310_v9 = vpop.permute.xlu0 %1309  ;;  %1407 = vst.msk [vmem:[#allocation2 + $0xf8] sm:$0xff] %vm1375_vm6, %v1342_v43 }
 0x275   : > { %1391 = vst.msk [vmem:[#allocation2 + $0x78] sm:$0xff] %vm1375_vm6, %v1310_v9 }
 0x277   : > { %v1533_v13 = vpop.permute.xlu1 %1532 }
 0x278   : > { %v1501_v3 = vpop.permute.xlu0 %1500  ;;  %1599 = vst.msk [vmem:[#allocation2 + $0xf0] sm:$0xff] %vm1568_vm7, %v1533_v13 }
 0x279   : > { %1583 = vst.msk [vmem:[#allocation2 + $0x70] sm:$0xff] %vm1568_vm7, %v1501_v3 }
 0x27b   : > { %v1535_v45 = vpop.permute.xlu1 %1534  ;;  %v5276_v62 = vpop.f32.mrb[2].mxu0 }
 0x27c   : > { %v1503_v25 = vpop.permute.xlu0 %1502  ;;  %1600 = vst.msk [vmem:[#allocation2 + $0xf8] sm:$0xff] %vm1568_vm7, %v1535_v45  ;;  %v5300_v53 = vpop.f32.mrb[2].mxu1 }
 0x27d   : > { %1584 = vst.msk [vmem:[#allocation2 + $0x78] sm:$0xff] %vm1568_vm7, %v1503_v25  ;;  %v2008_v61 = vpop.f32.mrb[3].mxu0  ;;  %v2088_v52 = vpop.f32.mrb[3].mxu1 }
 0x27e   : > { %2163 = vst.msk [vmem:[%s6556_s27 + $0x18] sm:$0xff] %vm2159_vm10, %v5276_v62  ;;  %2179 = vst.msk [vmem:[%s6556_s27 + $0x98] sm:$0xff] %vm2159_vm10, %v5300_v53 }
 0x27f   : > { %2162 = vst.msk [vmem:[%s6556_s27 + $0x10] sm:$0xff] %vm2159_vm10, %v2008_v61  ;;  %2178 = vst.msk [vmem:[%s6556_s27 + $0x90] sm:$0xff] %vm2159_vm10, %v2088_v52  ;;  %v1726_v44 = vpop.permute.xlu1 %1725 }
 0x280   : > { %v1694_v24 = vpop.permute.xlu0 %1693  ;;  %1792 = vst.msk [vmem:[#allocation2 + $0xf0] sm:$0xff] %vm1761_vm8, %v1726_v44 }
 0x281   : > { %1776 = vst.msk [vmem:[#allocation2 + $0x70] sm:$0xff] %vm1761_vm8, %v1694_v24 }
 0x283   : > { %v1728_v8 = vpop.permute.xlu1 %1727 }
 0x284   : > { %v1696_v34 = vpop.permute.xlu0 %1695  ;;  %1793 = vst.msk [vmem:[#allocation2 + $0xf8] sm:$0xff] %vm1761_vm8, %v1728_v8 }
 0x285   : > { %1777 = vst.msk [vmem:[#allocation2 + $0x78] sm:$0xff] %vm1761_vm8, %v1696_v34 }
 0x287   : > { %v1824_v39 = vld [vmem:[#allocation2 + $0xf0] sm:$0xff] }
 0x288   : > { %v1808_v20 = vld [vmem:[#allocation2 + $0x70] sm:$0xff]  ;;  %5316 = vmatprep.mubr.msk.f32.mxu1 %vm1835_vm9, %v1824_v39 }
 0x289   : > { %5292 = vmatprep.mubr.msk.f32.mxu0 %vm1835_vm9, %v1808_v20 }
 0x28b   : > { %v1825_v36 = vld [vmem:[#allocation2 + $0xf8] sm:$0xff] }
 0x28c   : > { %v1809_v35 = vld [vmem:[#allocation2 + $0x78] sm:$0xff]  ;;  %5317 = vmatmul.mubr.msk.f32.gmra.mrb[14].mxu1 %vm1835_vm9, %v1825_v36 }
 0x28d   : > { %5293 = vmatmul.mubr.msk.f32.gmra.mrb[14].mxu0 %vm1835_vm9, %v1809_v35 }
 0x2a3   : > { %v5279_v38 = vpop.f32.mrb[4].mxu0 }
 0x2a4   : > { %v5303_v19 = vpop.f32.mrb[4].mxu1  ;;  %2165 = vst.msk [vmem:[%s6556_s27 + $0x28] sm:$0xff] %vm2159_vm10, %v5279_v38  ;;  %v2018_v37 = vpop.f32.mrb[5].mxu0 }
 0x2a5   : > { %2181 = vst.msk [vmem:[%s6556_s27 + $0xa8] sm:$0xff] %vm2159_vm10, %v5303_v19  ;;  %v2098_v21 = vpop.f32.mrb[5].mxu1  ;;  %2164 = vst.msk [vmem:[%s6556_s27 + $0x20] sm:$0xff] %vm2159_vm10, %v2018_v37 }
 0x2a6   : > { %2180 = vst.msk [vmem:[%s6556_s27 + $0xa0] sm:$0xff] %vm2159_vm10, %v2098_v21 }
 0x2cb   : > { %v5306_v12 = vpop.f32.mrb[6].mxu1 }
 0x2cc   : > { %v5282_v30 = vpop.f32.mrb[6].mxu0  ;;  %2183 = vst.msk [vmem:[%s6556_s27 + $0xb8] sm:$0xff] %vm2159_vm10, %v5306_v12  ;;  %v2108_v16 = vpop.f32.mrb[7].mxu1 }
 0x2cd   : > { %2167 = vst.msk [vmem:[%s6556_s27 + $0x38] sm:$0xff] %vm2159_vm10, %v5282_v30  ;;  %v2028_v5 = vpop.f32.mrb[7].mxu0  ;;  %2182 = vst.msk [vmem:[%s6556_s27 + $0xb0] sm:$0xff] %vm2159_vm10, %v2108_v16 }
 0x2ce   : > { %2166 = vst.msk [vmem:[%s6556_s27 + $0x30] sm:$0xff] %vm2159_vm10, %v2028_v5 }
 0x2f3   : > { %v5309_v60 = vpop.f32.mrb[8].mxu1 }
 0x2f4   : > { %v5285_v59 = vpop.f32.mrb[8].mxu0  ;;  %2185 = vst.msk [vmem:[%s6556_s27 + $0xc8] sm:$0xff] %vm2159_vm10, %v5309_v60  ;;  %v2118_v47 = vpop.f32.mrb[9].mxu1 }
 0x2f5   : > { %2169 = vst.msk [vmem:[%s6556_s27 + $0x48] sm:$0xff] %vm2159_vm10, %v5285_v59  ;;  %v2038_v4 = vpop.f32.mrb[9].mxu0  ;;  %2184 = vst.msk [vmem:[%s6556_s27 + $0xc0] sm:$0xff] %vm2159_vm10, %v2118_v47 }
 0x2f6   : > { %2168 = vst.msk [vmem:[%s6556_s27 + $0x40] sm:$0xff] %vm2159_vm10, %v2038_v4 }
 0x31b   : > { %v5312_v58 = vpop.f32.mrb[10].mxu1 }
 0x31c   : > { %v5288_v54 = vpop.f32.mrb[10].mxu0  ;;  %2187 = vst.msk [vmem:[%s6556_s27 + $0xd8] sm:$0xff] %vm2159_vm10, %v5312_v58  ;;  %v2128_v18 = vpop.f32.mrb[11].mxu1 }
 0x31d   : > { %2171 = vst.msk [vmem:[%s6556_s27 + $0x58] sm:$0xff] %vm2159_vm10, %v5288_v54  ;;  %v2048_v29 = vpop.f32.mrb[11].mxu0  ;;  %2186 = vst.msk [vmem:[%s6556_s27 + $0xd0] sm:$0xff] %vm2159_vm10, %v2128_v18 }
 0x31e   : > { %2170 = vst.msk [vmem:[%s6556_s27 + $0x50] sm:$0xff] %vm2159_vm10, %v2048_v29 }
 0x343   : > { %v5315_v49 = vpop.f32.mrb[12].mxu1 }
 0x344   : > { %v5291_v46 = vpop.f32.mrb[12].mxu0  ;;  %2189 = vst.msk [vmem:[%s6556_s27 + $0xe8] sm:$0xff] %vm2159_vm10, %v5315_v49  ;;  %v2138_v17 = vpop.f32.mrb[13].mxu1 }
 0x345   : > { %2173 = vst.msk [vmem:[%s6556_s27 + $0x68] sm:$0xff] %vm2159_vm10, %v5291_v46  ;;  %v2058_v55 = vpop.f32.mrb[13].mxu0  ;;  %2188 = vst.msk [vmem:[%s6556_s27 + $0xe0] sm:$0xff] %vm2159_vm10, %v2138_v17 }
 0x346   : > { %2172 = vst.msk [vmem:[%s6556_s27 + $0x60] sm:$0xff] %vm2159_vm10, %v2058_v55 }
 0x35c   : > { %2195 = sbr.rel (%p5209_p4) target bundleno = 1995 (0x7cb), region = 40 }
 0x35f   : > { %v5318_v48 = vpop.f32.mrb[14].mxu1 }
 0x360   : > { %v5294_v27 = vpop.f32.mrb[14].mxu0  ;;  %2191 = vst.msk [vmem:[%s6556_s27 + $0xf8] sm:$0xff] %vm2159_vm10, %v5318_v48  ;;  %v2148_v56 = vpop.f32.mrb[15].mxu1 }
 0x361   : > { %2175 = vst.msk [vmem:[%s6556_s27 + $0x78] sm:$0xff] %vm2159_vm10, %v5294_v27  ;;  %v2068_v26 = vpop.f32.mrb[15].mxu0  ;;  %2190 = vst.msk [vmem:[%s6556_s27 + $0xf0] sm:$0xff] %vm2159_vm10, %v2148_v56 }
 0x362   : > { %2174 = vst.msk [vmem:[%s6556_s27 + $0x70] sm:$0xff] %vm2159_vm10, %v2068_v26 }
 0x363   : > { %vm2395_vm11 = vcmask 261248   ;;  %vm2534_vm12 = vcmask 392448   ;;  %vm2673_vm13 = vcmask 523648   ;;  %vm2260_vm14 = vcmask 130048   ;;  %s5509_s5 = smov 112   ;;  %s5510_s6 = smov 96  }
 0x364   : > { %s5511_s7 = smov 80   ;;  %s5512_s8 = smov 32  }
 0x365   : > { %s5513_s9 = smov 16   ;;  %s5514_s16 = smov 48  }
 0x369   : > { %v6660_v11 = vld [vmem:[%s12465_s4] sm:$0xff]  ;;  %v6665_v1 = vld [vmem:[%s12465_s4 + $0x8] sm:$0xff]  ;;  %v6670_v57 = vld [vmem:[%s12465_s4 + $0x10] sm:$0xff] }
 0x36a   : > { %v6675_v28 = vld [vmem:[%s12465_s4 + $0x18] sm:$0xff]  ;;  %v2396_v10 = vsel %vm2395_vm11, %v6660_v11, 0.0  ;;  %v2397_v63 = vsel %vm2395_vm11, %v6665_v1, 0.0  ;;  %v2399_v23 = vsel %vm2395_vm11, %v6670_v57, 0.0  ;;  %v6686_v41 = vld [vmem:[%s12465_s4 + $0x20] sm:$0xff]  ;;  %v6693_v31 = vld [vmem:[%s12465_s4 + $0x28] sm:$0xff] }
 0x36b   : > { %v2398_v22 = vadd.f32 %v2397_v63, %v2396_v10  ;;  %v2401_v40 = vsel %vm2395_vm11, %v6675_v28, 0.0  ;;  %v2403_v7 = vsel %vm2395_vm11, %v6686_v41, 0.0  ;;  %v6700_v51 = vld [vmem:[%s12465_s4 + $0x30] sm:$0xff]  ;;  %v2405_v32 = vsel %vm2395_vm11, %v6693_v31, 0.0  ;;  %v6707_v33 = vld [vmem:[%s12465_s4 + $0x38] sm:$0xff]  ;;  %v6714_v50 = vld [vmem:[%s12465_s4 + $0x40] sm:$0xff] }
 0x36c   : > { %v2407_v6 = vsel %vm2395_vm11, %v6700_v51, 0.0  ;;  %v2409_v15 = vsel %vm2395_vm11, %v6707_v33, 0.0  ;;  %v6721_v43 = vld [vmem:[%s12465_s4 + $0x48] sm:$0xff]  ;;  %v2411_v13 = vsel %vm2395_vm11, %v6714_v50, 0.0  ;;  %v6728_v3 = vld [vmem:[%s12465_s4 + $0x50] sm:$0xff]  ;;  %v6735_v62 = vld [vmem:[%s12465_s4 + $0x58] sm:$0xff] }
 0x36d   : > { %v2400_v0 = vadd.f32 %v2399_v23, %v2398_v22  ;;  %v2413_v25 = vsel %vm2395_vm11, %v6721_v43, 0.0  ;;  %v2415_v61 = vsel %vm2395_vm11, %v6728_v3, 0.0  ;;  %v6742_v52 = vld [vmem:[%s12465_s4 + $0x60] sm:$0xff]  ;;  %v2417_v24 = vsel %vm2395_vm11, %v6735_v62, 0.0  ;;  %v6749_v8 = vld [vmem:[%s12465_s4 + $0x68] sm:$0xff]  ;;  %v6758_v35 = vld [vmem:[%s12465_s4 + $0x70] sm:$0xff] }
 0x36e   : > { %v2419_v20 = vsel %vm2395_vm11, %v6742_v52, 0.0  ;;  %v2535_v39 = vsel %vm2534_vm12, %v6660_v11, 0.0  ;;  %v2536_v38 = vsel %vm2534_vm12, %v6665_v1, 0.0  ;;  %v2538_v19 = vsel %vm2534_vm12, %v6670_v57, 0.0  ;;  %v6769_v30 = vld [vmem:[%s12465_s4 + $0x78] sm:$0xff]  ;;  %v6778_v60 = vld [vmem:[%s12465_s4 + $0x80] sm:$0xff] }
 0x36f   : > { %v2402_v2 = vadd.f32 %v2401_v40, %v2400_v0  ;;  %v2421_v37 = vsel %vm2395_vm11, %v6749_v8, 0.0  ;;  %v2537_v21 = vadd.f32 %v2536_v38, %v2535_v39  ;;  %v2540_v5 = vsel %vm2534_vm12, %v6675_v28, 0.0  ;;  %v6787_v29 = vld [vmem:[%s12465_s4 + $0x88] sm:$0xff]  ;;  %v6796_v17 = vld [vmem:[%s12465_s4 + $0x90] sm:$0xff]  ;;  %v6805_v10 = vld [vmem:[%s12465_s4 + $0x98] sm:$0xff] }
 0x370   : > { %v2423_v16 = vsel %vm2395_vm11, %v6758_v35, 0.0  ;;  %v2542_v47 = vsel %vm2534_vm12, %v6686_v41, 0.0  ;;  %v2425_v54 = vsel %vm2395_vm11, %v6769_v30, 0.0  ;;  %v2544_v46 = vsel %vm2534_vm12, %v6693_v31, 0.0  ;;  %v6814_v0 = vld [vmem:[%s12465_s4 + $0xa0] sm:$0xff] }
 0x371   : > { %v2404_v42 = vadd.f32 %v2403_v7, %v2402_v2  ;;  %v2539_v59 = vadd.f32 %v2538_v19, %v2537_v21  ;;  %v2427_v49 = vsel %vm2395_vm11, %v6778_v60, 0.0  ;;  %v2546_v48 = vsel %vm2534_vm12, %v6700_v51, 0.0  ;;  %v6850_v38 = vld [vmem:[%s12465_s4 + $0xc0] sm:$0xff] }
 0x372   : > { %v2429_v26 = vsel %vm2395_vm11, %v6787_v29, 0.0  ;;  %v2548_v23 = vsel %vm2534_vm12, %v6707_v33, 0.0  ;;  %v2431_v22 = vsel %vm2395_vm11, %v6796_v17, 0.0  ;;  %v2550_v2 = vsel %vm2534_vm12, %v6714_v50, 0.0 }
 0x373   : > { %v2406_v14 = vadd.f32 %v2405_v32, %v2404_v42  ;;  %v2541_v58 = vadd.f32 %v2540_v5, %v2539_v59  ;;  %v2433_v32 = vsel %vm2395_vm11, %v6805_v10, 0.0  ;;  %v2674_v5 = vsel %vm2673_vm13, %v6660_v11, 0.0  ;;  %v6863_v59 = vld [vmem:[%s12465_s4 + $0xc8] sm:$0xff] }
 0x375   : > { %v2408_v9 = vadd.f32 %v2407_v6, %v2406_v14  ;;  %v2543_v55 = vadd.f32 %v2542_v47, %v2541_v58  ;;  %v6823_v6 = vld [vmem:[%s12465_s4 + $0xa8] sm:$0xff]  ;;  %v2560_v47 = vsel %vm2534_vm12, %v6749_v8, 0.0  ;;  %v2677_v58 = vsel %vm2673_vm13, %v6670_v57, 0.0 }
 0x377   : > { %v2410_v45 = vadd.f32 %v2409_v15, %v2408_v9  ;;  %v2545_v56 = vadd.f32 %v2544_v46, %v2543_v55  ;;  %v2552_v15 = vsel %vm2534_vm12, %v6721_v43, 0.0  ;;  %v2435_v9 = vsel %vm2395_vm11, %v6814_v0, 0.0  ;;  %v6876_v55 = vld [vmem:[%s12465_s4 + $0xd0] sm:$0xff] }
 0x379   : > { %v2412_v53 = vadd.f32 %v2411_v13, %v2410_v45  ;;  %v2547_v40 = vadd.f32 %v2546_v48, %v2545_v56  ;;  %v6832_v45 = vld [vmem:[%s12465_s4 + $0xb0] sm:$0xff]  ;;  %v2562_v48 = vsel %vm2534_vm12, %v6758_v35, 0.0  ;;  %v2445_v56 = vsel %vm2395_vm11, %v6863_v59, 0.0 }
 0x37a   : > { %v2439_v39 = vsel %vm2395_vm11, %v6832_v45, 0.0 }
 0x37b   : > { %v2414_v44 = vadd.f32 %v2413_v25, %v2412_v53  ;;  %v2549_v42 = vadd.f32 %v2548_v23, %v2547_v40  ;;  %v2554_v53 = vsel %vm2534_vm12, %v6728_v3, 0.0  ;;  %v2681_v23 = vsel %vm2673_vm13, %v6686_v41, 0.0 }
 0x37d   : > { %v2416_v34 = vadd.f32 %v2415_v61, %v2414_v44  ;;  %v2551_v13 = vadd.f32 %v2550_v2, %v2549_v42  ;;  %v2437_v61 = vsel %vm2395_vm11, %v6823_v6, 0.0 }
 0x37f   : > { %v2418_v36 = vadd.f32 %v2417_v24, %v2416_v34  ;;  %v2553_v44 = vadd.f32 %v2552_v15, %v2551_v13  ;;  %v6841_v24 = vld [vmem:[%s12465_s4 + $0xb8] sm:$0xff]  ;;  %v6898_v15 = vld [vmem:[%s12465_s4 + $0xe0] sm:$0xff]  ;;  %v2566_v13 = vsel %vm2534_vm12, %v6778_v60, 0.0 }
 0x380   : > { %v2441_v21 = vsel %vm2395_vm11, %v6841_v24, 0.0 }
 0x381   : > { %v2420_v12 = vadd.f32 %v2419_v20, %v2418_v36  ;;  %v2556_v20 = vsel %vm2534_vm12, %v6735_v62, 0.0  ;;  %v2555_v36 = vadd.f32 %v2554_v53, %v2553_v44  ;;  %v2685_v44 = vsel %vm2673_vm13, %v6700_v51, 0.0 }
 0x383   : > { %v2422_v4 = vadd.f32 %v2421_v37, %v2420_v12  ;;  %v2558_v37 = vsel %vm2534_vm12, %v6742_v52, 0.0  ;;  %v2557_v12 = vadd.f32 %v2556_v20, %v2555_v36 }
 0x385   : > { %v2424_v18 = vadd.f32 %v2423_v16, %v2422_v4  ;;  %v2675_v16 = vsel %vm2673_vm13, %v6665_v1, 0.0  ;;  %v2559_v46 = vadd.f32 %v2558_v37, %v2557_v12  ;;  %v6920_v12 = vld [vmem:[%s12465_s4 + $0xf0] sm:$0xff] }
 0x387   : > { %v2426_v27 = vadd.f32 %v2425_v54, %v2424_v18  ;;  %v2676_v54 = vadd.f32 %v2675_v16, %v2674_v5  ;;  %v2443_v18 = vsel %vm2395_vm11, %v6850_v38, 0.0  ;;  %v2570_v16 = vsel %vm2534_vm12, %v6796_v17, 0.0 }
 0x389   : > { %v2428_v63 = vadd.f32 %v2427_v49, %v2426_v27  ;;  %v2679_v49 = vsel %vm2673_vm13, %v6675_v28, 0.0 }
 0x38b   : > { %v2430_v7 = vadd.f32 %v2429_v26, %v2428_v63  ;;  %v2678_v26 = vadd.f32 %v2677_v58, %v2676_v54  ;;  %v2561_v63 = vadd.f32 %v2560_v47, %v2559_v46  ;;  %v2689_v58 = vsel %vm2673_vm13, %v6714_v50, 0.0 }
 0x38d   : > { %v2432_v14 = vadd.f32 %v2431_v22, %v2430_v7  ;;  %v6887_v22 = vld [vmem:[%s12465_s4 + $0xd8] sm:$0xff]  ;;  %v2564_v7 = vsel %vm2534_vm12, %v6769_v30, 0.0  ;;  %v2680_v2 = vadd.f32 %v2679_v49, %v2678_v26  ;;  %v2563_v42 = vadd.f32 %v2562_v48, %v2561_v63  ;;  %v6942_v63 = vld [vmem:[%s12465_s4 + $0x100] sm:$0xff] }
 0x38e   : > { %v2449_v53 = vsel %vm2395_vm11, %v6887_v22, 0.0  ;;  %v2572_v49 = vsel %vm2534_vm12, %v6805_v10, 0.0  ;;  %v2455_v48 = vsel %vm2395_vm11, %v6920_v12, 0.0 }
 0x38f   : > { %v2434_v25 = vadd.f32 %v2433_v32, %v2432_v14  ;;  %v2447_v32 = vsel %vm2395_vm11, %v6876_v55, 0.0  ;;  %v2683_v14 = vsel %vm2673_vm13, %v6693_v31, 0.0 }
 0x391   : > { %v2436_v34 = vadd.f32 %v2435_v9, %v2434_v25  ;;  %v2682_v25 = vadd.f32 %v2681_v23, %v2680_v2 }
 0x393   : > { %v2438_v19 = vadd.f32 %v2437_v61, %v2436_v34  ;;  %v2565_v61 = vadd.f32 %v2564_v7, %v2563_v42  ;;  %v6909_v34 = vld [vmem:[%s12465_s4 + $0xe8] sm:$0xff]  ;;  %v2684_v36 = vadd.f32 %v2683_v14, %v2682_v25  ;;  %v2693_v42 = vsel %vm2673_vm13, %v6728_v3, 0.0 }
 0x394   : > { %v2453_v47 = vsel %vm2395_vm11, %v6909_v34, 0.0  ;;  %v6953_v14 = vld [vmem:[%s12465_s4 + $0x108] sm:$0xff] }
 0x395   : > { %v2440_v4 = vadd.f32 %v2439_v39, %v2438_v19  ;;  %v2568_v39 = vsel %vm2534_vm12, %v6787_v29, 0.0  ;;  %v2451_v19 = vsel %vm2395_vm11, %v6898_v15, 0.0  ;;  %v2567_v37 = vadd.f32 %v2566_v13, %v2565_v61 }
 0x396   : > { %v2576_v13 = vsel %vm2534_vm12, %v6823_v6, 0.0 }
 0x397   : > { %v2442_v27 = vadd.f32 %v2441_v21, %v2440_v4  ;;  %v2687_v21 = vsel %vm2673_vm13, %v6707_v33, 0.0  ;;  %v2686_v4 = vadd.f32 %v2685_v44, %v2684_v36  ;;  %v2569_v54 = vadd.f32 %v2568_v39, %v2567_v37 }
 0x398   : > { %v2695_v44 = vsel %vm2673_vm13, %v6735_v62, 0.0  ;;  %v2578_v36 = vsel %vm2534_vm12, %v6832_v45, 0.0  ;;  %v2461_v37 = vsel %vm2395_vm11, %v6953_v14, 0.0 }
 0x399   : > { %v2444_v40 = vadd.f32 %v2443_v18, %v2442_v27  ;;  %v6931_v18 = vld [vmem:[%s12465_s4 + $0xf8] sm:$0xff]  ;;  %v2688_v27 = vadd.f32 %v2687_v21, %v2686_v4  ;;  %v2571_v26 = vadd.f32 %v2570_v16, %v2569_v54  ;;  %v6980_v4 = vld [vmem:[%s12465_s4 + $0x120] sm:$0xff]  ;;  %v2580_v54 = vsel %vm2534_vm12, %v6841_v24, 0.0 }
 0x39a   : > { %v2457_v2 = vsel %vm2395_vm11, %v6931_v18, 0.0  ;;  %v6975_v16 = vld [vmem:[%s12465_s4 + $0x118] sm:$0xff] }
 0x39b   : > { %v2446_v9 = vadd.f32 %v2445_v56, %v2444_v40  ;;  %v2691_v56 = vsel %vm2673_vm13, %v6721_v43, 0.0  ;;  %v2574_v40 = vsel %vm2534_vm12, %v6814_v0, 0.0  ;;  %v2690_v7 = vadd.f32 %v2689_v58, %v2688_v27 }
 0x39d   : > { %v2448_v20 = vadd.f32 %v2447_v32, %v2446_v9  ;;  %v2573_v32 = vadd.f32 %v2572_v49, %v2571_v26  ;;  %v2692_v25 = vadd.f32 %v2691_v56, %v2690_v7  ;;  %v2582_v56 = vsel %vm2534_vm12, %v6850_v38, 0.0 }
 0x39e   : > { %v2467_v7 = vsel %vm2395_vm11, %v6980_v4, 0.0 }
 0x39f   : > { %v2450_v5 = vadd.f32 %v2449_v53, %v2448_v20  ;;  %v2459_v53 = vsel %vm2395_vm11, %v6942_v63, 0.0  ;;  %v2575_v61 = vadd.f32 %v2574_v40, %v2573_v32  ;;  %v6964_v20 = vld [vmem:[%s12465_s4 + $0x110] sm:$0xff]  ;;  %v2465_v40 = vsel %vm2395_vm11, %v6975_v16, 0.0 }
 0x3a0   : > { %v2463_v49 = vsel %vm2395_vm11, %v6964_v20, 0.0  ;;  %v2701_v32 = vsel %vm2673_vm13, %v6758_v35, 0.0 }
 0x3a1   : > { %v2452_v46 = vadd.f32 %v2451_v19, %v2450_v5  ;;  %v2694_v19 = vadd.f32 %v2693_v42, %v2692_v25  ;;  %v2577_v21 = vadd.f32 %v2576_v13, %v2575_v61  ;;  %v2697_v5 = vsel %vm2673_vm13, %v6742_v52, 0.0 }
 0x3a2   : > { %v2584_v13 = vsel %vm2534_vm12, %v6863_v59, 0.0  ;;  %v2586_v61 = vsel %vm2534_vm12, %v6876_v55, 0.0 }
 0x3a3   : > { %v2454_v23 = vadd.f32 %v2453_v47, %v2452_v46  ;;  %v2696_v58 = vadd.f32 %v2695_v44, %v2694_v19  ;;  %v6987_v46 = vld [vmem:[%s12465_s4 + $0x128] sm:$0xff]  ;;  %v2579_v27 = vadd.f32 %v2578_v36, %v2577_v21  ;;  %v2703_v44 = vsel %vm2673_vm13, %v6769_v30, 0.0 }
 0x3a4   : > { %v2262_v21 = vsel %vm2260_vm14, %v6665_v1, 0.0  ;;  %v2266_v1 = vsel %vm2260_vm14, %v6675_v28, 0.0  ;;  %v2268_v28 = vsel %vm2260_vm14, %v6686_v41, 0.0  ;;  %v2270_v41 = vsel %vm2260_vm14, %v6693_v31, 0.0 }
 0x3a5   : > { %v2456_v9 = vadd.f32 %v2455_v48, %v2454_v23  ;;  %v2699_v48 = vsel %vm2673_vm13, %v6749_v8, 0.0  ;;  %v2698_v23 = vadd.f32 %v2697_v5, %v2696_v58  ;;  %v2264_v58 = vsel %vm2260_vm14, %v6670_v57, 0.0 }
 0x3a6   : > { %v2707_v57 = vsel %vm2673_vm13, %v6787_v29, 0.0  ;;  %v2272_v31 = vsel %vm2260_vm14, %v6700_v51, 0.0  ;;  %v2274_v51 = vsel %vm2260_vm14, %v6707_v33, 0.0  ;;  %v2276_v33 = vsel %vm2260_vm14, %v6714_v50, 0.0 }
 0x3a7   : > { %v2458_v39 = vadd.f32 %v2457_v2, %v2456_v9  ;;  %v2581_v2 = vadd.f32 %v2580_v54, %v2579_v27  ;;  %v2469_v9 = vsel %vm2395_vm11, %v6987_v46, 0.0  ;;  %v2700_v25 = vadd.f32 %v2699_v48, %v2698_v23 }
 0x3a8   : > { %v2278_v50 = vsel %vm2260_vm14, %v6721_v43, 0.0  ;;  %v2280_v43 = vsel %vm2260_vm14, %v6728_v3, 0.0  ;;  %v2282_v3 = vsel %vm2260_vm14, %v6735_v62, 0.0  ;;  %v2284_v62 = vsel %vm2260_vm14, %v6742_v52, 0.0 }
 0x3a9   : > { %v2460_v47 = vadd.f32 %v2459_v53, %v2458_v39  ;;  %v2583_v53 = vadd.f32 %v2582_v56, %v2581_v2  ;;  %v7012_v39 = vld [vmem:[%s12465_s4 + $0x130] sm:$0xff]  ;;  %v2702_v19 = vadd.f32 %v2701_v32, %v2700_v25  ;;  %v2590_v2 = vsel %vm2534_vm12, %v6898_v15, 0.0 }
 0x3aa   : > { %v2709_v25 = vsel %vm2673_vm13, %v6796_v17, 0.0  ;;  %v2286_v52 = vsel %vm2260_vm14, %v6749_v8, 0.0  ;;  %v2288_v8 = vsel %vm2260_vm14, %v6758_v35, 0.0  ;;  %v2290_v35 = vsel %vm2260_vm14, %v6769_v30, 0.0 }
 0x3ab   : > { %v2462_v26 = vadd.f32 %v2461_v37, %v2460_v47  ;;  %v2261_v37 = vsel %vm2260_vm14, %v6660_v11, 0.0  ;;  %v2585_v5 = vadd.f32 %v2584_v13, %v2583_v53  ;;  %v2705_v47 = vsel %vm2673_vm13, %v6778_v60, 0.0 }
 0x3ac   : > { %v2263_v54 = vadd.f32 %v2262_v21, %v2261_v37  ;;  %v2588_v11 = vsel %vm2534_vm12, %v6887_v22, 0.0  ;;  %v2704_v48 = vadd.f32 %v2703_v44, %v2702_v19  ;;  %v2592_v44 = vsel %vm2534_vm12, %v6909_v34, 0.0 }
 0x3ad   : > { %v2464_v42 = vadd.f32 %v2463_v49, %v2462_v26  ;;  %v7025_v49 = vld [vmem:[%s12465_s4 + $0x138] sm:$0xff]  ;;  %v2471_v26 = vsel %vm2395_vm11, %v7012_v39, 0.0  ;;  %v2587_v56 = vadd.f32 %v2586_v61, %v2585_v5  ;;  %v7051_v61 = vld [vmem:[%s12465_s4 + $0x148] sm:$0xff]  ;;  %v2711_v21 = vsel %vm2673_vm13, %v6805_v10, 0.0 }
 0x3ae   : > { %v2265_v23 = vadd.f32 %v2264_v58, %v2263_v54  ;;  %v2706_v32 = vadd.f32 %v2705_v47, %v2704_v48  ;;  %v7064_v47 = vld [vmem:[%s12465_s4 + $0x150] sm:$0xff]  ;;  %v2594_v58 = vsel %vm2534_vm12, %v6920_v12, 0.0  ;;  %v2292_v30 = vsel %vm2260_vm14, %v6778_v60, 0.0 }
 0x3af   : > { %v2466_v36 = vadd.f32 %v2465_v40, %v2464_v42  ;;  %v7038_v40 = vld [vmem:[%s12465_s4 + $0x140] sm:$0xff]  ;;  %v2473_v42 = vsel %vm2395_vm11, %v7025_v49, 0.0  ;;  %v2589_v13 = vadd.f32 %v2588_v11, %v2587_v56  ;;  %v2477_v11 = vsel %vm2395_vm11, %v7051_v61, 0.0  ;;  %v7077_v56 = vld [vmem:[%s12465_s4 + $0x158] sm:$0xff] }
 0x3b0   : > { %v2267_v53 = vadd.f32 %v2266_v1, %v2265_v23  ;;  %v2475_v19 = vsel %vm2395_vm11, %v7038_v40, 0.0  ;;  %v2713_v1 = vsel %vm2673_vm13, %v6814_v0, 0.0  ;;  %v2596_v23 = vsel %vm2534_vm12, %v6931_v18, 0.0 }
 0x3b1   : > { %v2468_v27 = vadd.f32 %v2467_v7, %v2466_v36  ;;  %v2708_v36 = vadd.f32 %v2707_v57, %v2706_v32  ;;  %v2591_v37 = vadd.f32 %v2590_v2, %v2589_v13  ;;  %v2479_v2 = vsel %vm2395_vm11, %v7064_v47, 0.0  ;;  %v7090_v13 = vld [vmem:[%s12465_s4 + $0x160] sm:$0xff] }
 0x3b2   : > { %v2269_v5 = vadd.f32 %v2268_v28, %v2267_v53  ;;  %v2715_v28 = vsel %vm2673_vm13, %v6823_v6, 0.0  ;;  %v2598_v53 = vsel %vm2534_vm12, %v6942_v63, 0.0  ;;  %v2294_v60 = vsel %vm2260_vm14, %v6787_v29, 0.0 }
 0x3b3   : > { %v2470_v7 = vadd.f32 %v2469_v9, %v2468_v27  ;;  %v2710_v27 = vadd.f32 %v2709_v25, %v2708_v36  ;;  %v2593_v48 = vadd.f32 %v2592_v44, %v2591_v37  ;;  %v2481_v44 = vsel %vm2395_vm11, %v7077_v56, 0.0  ;;  %v7103_v37 = vld [vmem:[%s12465_s4 + $0x168] sm:$0xff] }
 0x3b4   : > { %v2296_v29 = vsel %vm2260_vm14, %v6796_v17, 0.0  ;;  %v2298_v17 = vsel %vm2260_vm14, %v6805_v10, 0.0  ;;  %v2300_v10 = vsel %vm2260_vm14, %v6814_v0, 0.0  ;;  %v2302_v0 = vsel %vm2260_vm14, %v6823_v6, 0.0 }
 0x3b5   : > { %v2472_v9 = vadd.f32 %v2471_v26, %v2470_v7  ;;  %v2271_v26 = vadd.f32 %v2270_v41, %v2269_v5  ;;  %v2712_v7 = vadd.f32 %v2711_v21, %v2710_v27  ;;  %v2595_v32 = vadd.f32 %v2594_v58, %v2593_v48  ;;  %v7116_v48 = vld [vmem:[%s12465_s4 + $0x170] sm:$0xff] }
 0x3b6   : > { %v2717_v41 = vsel %vm2673_vm13, %v6832_v45, 0.0  ;;  %v2600_v5 = vsel %vm2534_vm12, %v6953_v14, 0.0  ;;  %v2483_v58 = vsel %vm2395_vm11, %v7090_v13, 0.0  ;;  %v2304_v6 = vsel %vm2260_vm14, %v6832_v45, 0.0 }
 0x3b7   : > { %v2474_v54 = vadd.f32 %v2473_v42, %v2472_v9  ;;  %v2273_v42 = vadd.f32 %v2272_v31, %v2271_v26  ;;  %v2714_v9 = vadd.f32 %v2713_v1, %v2712_v7  ;;  %v2597_v36 = vadd.f32 %v2596_v23, %v2595_v32  ;;  %v7129_v32 = vld [vmem:[%s12465_s4 + $0x178] sm:$0xff] }
 0x3b8   : > { %v2719_v31 = vsel %vm2673_vm13, %v6841_v24, 0.0  ;;  %v2602_v26 = vsel %vm2534_vm12, %v6964_v20, 0.0  ;;  %v2485_v23 = vsel %vm2395_vm11, %v7103_v37, 0.0  ;;  %v2306_v45 = vsel %vm2260_vm14, %v6841_v24, 0.0 }
 0x3b9   : > { %v2476_v57 = vadd.f32 %v2475_v19, %v2474_v54  ;;  %v2275_v19 = vadd.f32 %v2274_v51, %v2273_v42  ;;  %v2716_v54 = vadd.f32 %v2715_v28, %v2714_v9  ;;  %v2599_v27 = vadd.f32 %v2598_v53, %v2597_v36  ;;  %v7142_v36 = vld [vmem:[%s12465_s4 + $0x180] sm:$0xff] }
 0x3ba   : > { %v2721_v51 = vsel %vm2673_vm13, %v6850_v38, 0.0  ;;  %v2604_v42 = vsel %vm2534_vm12, %v6975_v16, 0.0  ;;  %v2487_v53 = vsel %vm2395_vm11, %v7116_v48, 0.0  ;;  %v2308_v24 = vsel %vm2260_vm14, %v6850_v38, 0.0 }
 0x3bb   : > { %v2478_v25 = vadd.f32 %v2477_v11, %v2476_v57  ;;  %v2277_v11 = vadd.f32 %v2276_v33, %v2275_v19  ;;  %v2718_v57 = vadd.f32 %v2717_v41, %v2716_v54  ;;  %v2601_v7 = vadd.f32 %v2600_v5, %v2599_v27  ;;  %v7155_v27 = vld [vmem:[%s12465_s4 + $0x188] sm:$0xff] }
 0x3bc   : > { %v2723_v33 = vsel %vm2673_vm13, %v6863_v59, 0.0  ;;  %v2606_v19 = vsel %vm2534_vm12, %v6980_v4, 0.0  ;;  %v2489_v5 = vsel %vm2395_vm11, %v7129_v32, 0.0  ;;  %v2310_v38 = vsel %vm2260_vm14, %v6863_v59, 0.0 }
 0x3bd   : > { %v2480_v21 = vadd.f32 %v2479_v2, %v2478_v25  ;;  %v2279_v2 = vadd.f32 %v2278_v50, %v2277_v11  ;;  %v2720_v25 = vadd.f32 %v2719_v31, %v2718_v57  ;;  %v2603_v9 = vadd.f32 %v2602_v26, %v2601_v7  ;;  %v7168_v7 = vld [vmem:[%s12465_s4 + $0x190] sm:$0xff] }
 0x3be   : > { %v2725_v50 = vsel %vm2673_vm13, %v6876_v55, 0.0  ;;  %v2608_v11 = vsel %vm2534_vm12, %v6987_v46, 0.0  ;;  %v2491_v26 = vsel %vm2395_vm11, %v7142_v36, 0.0  ;;  %v2312_v59 = vsel %vm2260_vm14, %v6876_v55, 0.0 }
 0x3bf   : > { %v2482_v1 = vadd.f32 %v2481_v44, %v2480_v21  ;;  %v2281_v44 = vadd.f32 %v2280_v43, %v2279_v2  ;;  %v2722_v21 = vadd.f32 %v2721_v51, %v2720_v25  ;;  %v2605_v54 = vadd.f32 %v2604_v42, %v2603_v9  ;;  %v7181_v9 = vld [vmem:[%s12465_s4 + $0x198] sm:$0xff] }
 0x3c0   : > { %v2727_v43 = vsel %vm2673_vm13, %v6887_v22, 0.0  ;;  %v2610_v2 = vsel %vm2534_vm12, %v7012_v39, 0.0  ;;  %v2493_v42 = vsel %vm2395_vm11, %v7155_v27, 0.0  ;;  %v2314_v55 = vsel %vm2260_vm14, %v6887_v22, 0.0 }
 0x3c1   : > { %v2484_v28 = vadd.f32 %v2483_v58, %v2482_v1  ;;  %v2283_v58 = vadd.f32 %v2282_v3, %v2281_v44  ;;  %v2724_v1 = vadd.f32 %v2723_v33, %v2722_v21  ;;  %v2607_v57 = vadd.f32 %v2606_v19, %v2605_v54  ;;  %v7194_v54 = vld [vmem:[%s12465_s4 + $0x1a0] sm:$0xff] }
 0x3c2   : > { %v2729_v3 = vsel %vm2673_vm13, %v6898_v15, 0.0  ;;  %v2612_v44 = vsel %vm2534_vm12, %v7025_v49, 0.0  ;;  %v2495_v19 = vsel %vm2395_vm11, %v7168_v7, 0.0 }
 0x3c3   : > { %v2486_v41 = vadd.f32 %v2485_v23, %v2484_v28  ;;  %v2285_v23 = vadd.f32 %v2284_v62, %v2283_v58  ;;  %v2726_v28 = vadd.f32 %v2725_v50, %v2724_v1  ;;  %v2609_v25 = vadd.f32 %v2608_v11, %v2607_v57  ;;  %v7207_v57 = vld [vmem:[%s12465_s4 + $0x1a8] sm:$0xff] }
 0x3c4   : > { %v2731_v62 = vsel %vm2673_vm13, %v6909_v34, 0.0  ;;  %v2614_v58 = vsel %vm2534_vm12, %v7038_v40, 0.0  ;;  %v2497_v11 = vsel %vm2395_vm11, %v7181_v9, 0.0 }
 0x3c5   : > { %v2488_v31 = vadd.f32 %v2487_v53, %v2486_v41  ;;  %v2287_v53 = vadd.f32 %v2286_v52, %v2285_v23  ;;  %v2728_v41 = vadd.f32 %v2727_v43, %v2726_v28  ;;  %v2611_v21 = vadd.f32 %v2610_v2, %v2609_v25  ;;  %v7220_v25 = vld [vmem:[%s12465_s4 + $0x1b0] sm:$0xff] }
 0x3c6   : > { %v2733_v52 = vsel %vm2673_vm13, %v6920_v12, 0.0  ;;  %v2616_v23 = vsel %vm2534_vm12, %v7051_v61, 0.0  ;;  %v2499_v2 = vsel %vm2395_vm11, %v7194_v54, 0.0 }
 0x3c7   : > { %v2490_v51 = vadd.f32 %v2489_v5, %v2488_v31  ;;  %v2289_v5 = vadd.f32 %v2288_v8, %v2287_v53  ;;  %v2730_v31 = vadd.f32 %v2729_v3, %v2728_v41  ;;  %v2613_v1 = vadd.f32 %v2612_v44, %v2611_v21  ;;  %v7233_v21 = vld [vmem:[%s12465_s4 + $0x1b8] sm:$0xff] }
 0x3c8   : > { %v2735_v8 = vsel %vm2673_vm13, %v6931_v18, 0.0  ;;  %v2618_v53 = vsel %vm2534_vm12, %v7064_v47, 0.0  ;;  %v2501_v44 = vsel %vm2395_vm11, %v7207_v57, 0.0 }
 0x3c9   : > { %v2492_v33 = vadd.f32 %v2491_v26, %v2490_v51  ;;  %v2291_v26 = vadd.f32 %v2290_v35, %v2289_v5  ;;  %v2732_v51 = vadd.f32 %v2731_v62, %v2730_v31  ;;  %v2615_v28 = vadd.f32 %v2614_v58, %v2613_v1  ;;  %v7246_v1 = vld [vmem:[%s12465_s4 + $0x1c0] sm:$0xff] }
 0x3ca   : > { %v2737_v35 = vsel %vm2673_vm13, %v6942_v63, 0.0  ;;  %v2620_v5 = vsel %vm2534_vm12, %v7077_v56, 0.0  ;;  %v2503_v58 = vsel %vm2395_vm11, %v7220_v25, 0.0 }
 0x3cb   : > { %v2494_v50 = vadd.f32 %v2493_v42, %v2492_v33  ;;  %v2293_v42 = vadd.f32 %v2292_v30, %v2291_v26  ;;  %v2734_v33 = vadd.f32 %v2733_v52, %v2732_v51  ;;  %v2617_v41 = vadd.f32 %v2616_v23, %v2615_v28  ;;  %v7259_v28 = vld [vmem:[%s12465_s4 + $0x1c8] sm:$0xff] }
 0x3cc   : > { %v2739_v30 = vsel %vm2673_vm13, %v6953_v14, 0.0  ;;  %v2622_v26 = vsel %vm2534_vm12, %v7090_v13, 0.0  ;;  %v2505_v23 = vsel %vm2395_vm11, %v7233_v21, 0.0 }
 0x3cd   : > { %v2496_v43 = vadd.f32 %v2495_v19, %v2494_v50  ;;  %v2295_v19 = vadd.f32 %v2294_v60, %v2293_v42  ;;  %v2736_v50 = vadd.f32 %v2735_v8, %v2734_v33  ;;  %v2619_v31 = vadd.f32 %v2618_v53, %v2617_v41  ;;  %v7272_v41 = vld [vmem:[%s12465_s4 + $0x1d0] sm:$0xff] }
 0x3ce   : > { %v2741_v60 = vsel %vm2673_vm13, %v6964_v20, 0.0  ;;  %v2624_v42 = vsel %vm2534_vm12, %v7103_v37, 0.0  ;;  %v2507_v53 = vsel %vm2395_vm11, %v7246_v1, 0.0 }
 0x3cf   : > { %v2498_v3 = vadd.f32 %v2497_v11, %v2496_v43  ;;  %v2297_v11 = vadd.f32 %v2296_v29, %v2295_v19  ;;  %v2738_v43 = vadd.f32 %v2737_v35, %v2736_v50  ;;  %v2621_v51 = vadd.f32 %v2620_v5, %v2619_v31  ;;  %v7285_v31 = vld [vmem:[%s12465_s4 + $0x1d8] sm:$0xff] }
 0x3d0   : > { %v2743_v29 = vsel %vm2673_vm13, %v6975_v16, 0.0  ;;  %v2626_v19 = vsel %vm2534_vm12, %v7116_v48, 0.0  ;;  %v2509_v5 = vsel %vm2395_vm11, %v7259_v28, 0.0 }
 0x3d1   : > { %v2500_v62 = vadd.f32 %v2499_v2, %v2498_v3  ;;  %v2299_v2 = vadd.f32 %v2298_v17, %v2297_v11  ;;  %v2740_v3 = vadd.f32 %v2739_v30, %v2738_v43  ;;  %v2623_v33 = vadd.f32 %v2622_v26, %v2621_v51  ;;  %v7298_v51 = vld [vmem:[%s12465_s4 + $0x1e0] sm:$0xff] }
 0x3d2   : > { %v2745_v17 = vsel %vm2673_vm13, %v6980_v4, 0.0  ;;  %v2628_v11 = vsel %vm2534_vm12, %v7129_v32, 0.0  ;;  %v2511_v26 = vsel %vm2395_vm11, %v7272_v41, 0.0 }
 0x3d3   : > { %v2502_v52 = vadd.f32 %v2501_v44, %v2500_v62  ;;  %v2301_v44 = vadd.f32 %v2300_v10, %v2299_v2  ;;  %v2742_v62 = vadd.f32 %v2741_v60, %v2740_v3  ;;  %v2625_v50 = vadd.f32 %v2624_v42, %v2623_v33  ;;  %v7311_v33 = vld [vmem:[%s12465_s4 + $0x1e8] sm:$0xff] }
 0x3d4   : > { %v2747_v10 = vsel %vm2673_vm13, %v6987_v46, 0.0  ;;  %v2630_v2 = vsel %vm2534_vm12, %v7142_v36, 0.0  ;;  %v2513_v42 = vsel %vm2395_vm11, %v7285_v31, 0.0 }
 0x3d5   : > { %v2504_v8 = vadd.f32 %v2503_v58, %v2502_v52  ;;  %v2303_v58 = vadd.f32 %v2302_v0, %v2301_v44  ;;  %v2744_v52 = vadd.f32 %v2743_v29, %v2742_v62  ;;  %v2627_v43 = vadd.f32 %v2626_v19, %v2625_v50  ;;  %v7324_v50 = vld [vmem:[%s12465_s4 + $0x1f0] sm:$0xff] }
 0x3d6   : > { %v2749_v0 = vsel %vm2673_vm13, %v7012_v39, 0.0  ;;  %v2632_v44 = vsel %vm2534_vm12, %v7155_v27, 0.0  ;;  %v2515_v19 = vsel %vm2395_vm11, %v7298_v51, 0.0 }
 0x3d7   : > { %v2506_v35 = vadd.f32 %v2505_v23, %v2504_v8  ;;  %v2305_v23 = vadd.f32 %v2304_v6, %v2303_v58  ;;  %v2746_v8 = vadd.f32 %v2745_v17, %v2744_v52  ;;  %v2629_v3 = vadd.f32 %v2628_v11, %v2627_v43  ;;  %v7337_v43 = vld [vmem:[%s12465_s4 + $0x1f8] sm:$0xff] }
 0x3d8   : > { %v2751_v6 = vsel %vm2673_vm13, %v7025_v49, 0.0  ;;  %v2634_v58 = vsel %vm2534_vm12, %v7168_v7, 0.0  ;;  %v2517_v11 = vsel %vm2395_vm11, %v7311_v33, 0.0 }
 0x3d9   : > { %v2508_v30 = vadd.f32 %v2507_v53, %v2506_v35  ;;  %v2307_v53 = vadd.f32 %v2306_v45, %v2305_v23  ;;  %v2748_v35 = vadd.f32 %v2747_v10, %v2746_v8  ;;  %v2631_v62 = vadd.f32 %v2630_v2, %v2629_v3 }
 0x3da   : > { %v2753_v45 = vsel %vm2673_vm13, %v7038_v40, 0.0  ;;  %v2636_v23 = vsel %vm2534_vm12, %v7181_v9, 0.0  ;;  %v2519_v2 = vsel %vm2395_vm11, %v7324_v50, 0.0 }
 0x3db   : > { %v2510_v60 = vadd.f32 %v2509_v5, %v2508_v30  ;;  %v2309_v5 = vadd.f32 %v2308_v24, %v2307_v53  ;;  %v2750_v30 = vadd.f32 %v2749_v0, %v2748_v35  ;;  %v2633_v52 = vadd.f32 %v2632_v44, %v2631_v62 }
 0x3dc   : > { %v2755_v24 = vsel %vm2673_vm13, %v7051_v61, 0.0  ;;  %v2638_v0 = vsel %vm2534_vm12, %v7194_v54, 0.0  ;;  %v2521_v44 = vsel %vm2395_vm11, %v7337_v43, 0.0  ;;  %v2757_v35 = vsel %vm2673_vm13, %v7064_v47, 0.0 }
 0x3dd   : > { %v2512_v29 = vadd.f32 %v2511_v26, %v2510_v60  ;;  %v2311_v26 = vadd.f32 %v2310_v38, %v2309_v5  ;;  %v2752_v60 = vadd.f32 %v2751_v6, %v2750_v30  ;;  %v2635_v8 = vadd.f32 %v2634_v58, %v2633_v52 }
 0x3de   : > { %v2640_v62 = vsel %vm2534_vm12, %v7207_v57, 0.0  ;;  %v2318_v5 = vsel %vm2260_vm14, %v6909_v34, 0.0 }
 0x3df   : > { %v2514_v17 = vadd.f32 %v2513_v42, %v2512_v29  ;;  %v2313_v42 = vadd.f32 %v2312_v59, %v2311_v26  ;;  %v2754_v53 = vadd.f32 %v2753_v45, %v2752_v60  ;;  %v2316_v29 = vsel %vm2260_vm14, %v6898_v15, 0.0 }
 0x3e0   : > { %v2637_v22 = vadd.f32 %v2636_v23, %v2635_v8  ;;  %v2759_v15 = vsel %vm2673_vm13, %v7077_v56, 0.0  ;;  %v2642_v59 = vsel %vm2534_vm12, %v7220_v25, 0.0  ;;  %v2761_v45 = vsel %vm2673_vm13, %v7090_v13, 0.0 }
 0x3e1   : > { %v2516_v10 = vadd.f32 %v2515_v19, %v2514_v17  ;;  %v2315_v38 = vadd.f32 %v2314_v55, %v2313_v42  ;;  %v2756_v6 = vadd.f32 %v2755_v24, %v2754_v53  ;;  %v2644_v23 = vsel %vm2534_vm12, %v7233_v21, 0.0 }
 0x3e2   : > { %v2639_v17 = vadd.f32 %v2638_v0, %v2637_v22  ;;  %v2320_v60 = vsel %vm2260_vm14, %v6920_v12, 0.0  ;;  %v2646_v24 = vsel %vm2534_vm12, %v7246_v1, 0.0  ;;  %v2765_v0 = vsel %vm2673_vm13, %v7116_v48, 0.0 }
 0x3e3   : > { %v2518_v3 = vadd.f32 %v2517_v11, %v2516_v10  ;;  %v2317_v58 = vadd.f32 %v2316_v29, %v2315_v38  ;;  %v2758_v11 = vadd.f32 %v2757_v35, %v2756_v6  ;;  %v2322_v12 = vsel %vm2260_vm14, %v6931_v18, 0.0 }
 0x3e4   : > { %v2641_v52 = vadd.f32 %v2640_v62, %v2639_v17  ;;  %v2767_v38 = vsel %vm2673_vm13, %v7129_v32, 0.0  ;;  %v2650_v62 = vsel %vm2534_vm12, %v7272_v41, 0.0  ;;  %v2769_v17 = vsel %vm2673_vm13, %v7142_v36, 0.0 }
 0x3e5   : > { %v2520_v19 = vadd.f32 %v2519_v2, %v2518_v3  ;;  %v2319_v26 = vadd.f32 %v2318_v5, %v2317_v58  ;;  %v2760_v34 = vadd.f32 %v2759_v15, %v2758_v11  ;;  %v2763_v2 = vsel %vm2673_vm13, %v7103_v37, 0.0 }
 0x3e6   : > { %v2643_v55 = vadd.f32 %v2642_v59, %v2641_v52  ;;  %v2324_v18 = vsel %vm2260_vm14, %v6942_v63, 0.0  ;;  %v2771_v52 = vsel %vm2673_vm13, %v7155_v27, 0.0  ;;  %v2656_v63 = vsel %vm2534_vm12, %v7311_v33, 0.0 }
 0x3e7   : > { %v2522_v30 = vadd.f32 %v2521_v44, %v2520_v19  ;;  %v2762_v42 = vadd.f32 %v2761_v45, %v2760_v34  ;;  %v2321_v53 = vadd.f32 %v2320_v60, %v2319_v26  ;;  %v2648_v44 = vsel %vm2534_vm12, %v7259_v28, 0.0 }
 0x3e8   : > { %v2645_v3 = vadd.f32 %v2644_v23, %v2643_v55  ;;  %v2654_v26 = vsel %vm2534_vm12, %v7298_v51, 0.0  ;;  %v2773_v34 = vsel %vm2673_vm13, %v7168_v7, 0.0 }
 0x3e9   : > { %v2523_v10 = vrot.slane %v2522_v30, 4  ;;  %v2764_v22 = vadd.f32 %v2763_v2, %v2762_v42  ;;  %v2323_v15 = vadd.f32 %v2322_v12, %v2321_v53  ;;  %v2326_v2 = vsel %vm2260_vm14, %v6953_v14, 0.0 }
 0x3ea   : > { %v2647_v35 = vadd.f32 %v2646_v24, %v2645_v3  ;;  %v2775_v24 = vsel %vm2673_vm13, %v7181_v9, 0.0  ;;  %v2658_v42 = vsel %vm2534_vm12, %v7324_v50, 0.0  ;;  %v2777_v53 = vsel %vm2673_vm13, %v7194_v54, 0.0 }
 0x3eb   : > { %v2524_v8 = vadd.f32 %v2523_v10, %v2522_v30  ;;  %v2766_v6 = vadd.f32 %v2765_v0, %v2764_v22  ;;  %v2652_v30 = vsel %vm2534_vm12, %v7285_v31, 0.0  ;;  %v2325_v60 = vadd.f32 %v2324_v18, %v2323_v15 }
 0x3ec   : > { %v2649_v5 = vadd.f32 %v2648_v44, %v2647_v35  ;;  %v2660_v44 = vsel %vm2534_vm12, %v7337_v43, 0.0  ;;  %v2328_v14 = vsel %vm2260_vm14, %v6964_v20, 0.0  ;;  %v2779_v35 = vsel %vm2673_vm13, %v7207_v57, 0.0 }
 0x3ed   : > { %v2525_v29 = vrot.slane %v2524_v8, 2  ;;  %v2768_v59 = vadd.f32 %v2767_v38, %v2766_v6 }
 0x3ee   : > { %v2651_v11 = vadd.f32 %v2650_v62, %v2649_v5  ;;  %v2781_v62 = vsel %vm2673_vm13, %v7220_v25, 0.0 }
 0x3ef   : > { %v2526_v19 = vadd.f32 %v2525_v29, %v2524_v8  ;;  %v2770_v10 = vadd.f32 %v2769_v17, %v2768_v59  ;;  %v2327_v29 = vadd.f32 %v2326_v2, %v2325_v60  ;;  %v2330_v17 = vsel %vm2260_vm14, %v6975_v16, 0.0 }
 0x3f0   : > { %v2653_v23 = vadd.f32 %v2652_v30, %v2651_v11  ;;  %v2785_v59 = vsel %vm2673_vm13, %v7246_v1, 0.0  ;;  %v2791_v2 = vsel %vm2673_vm13, %v7285_v31, 0.0 }
 0x3f1   : > { %v2527_v58 = vrot.slane %v2526_v19, 1  ;;  %v2772_v55 = vadd.f32 %v2771_v52, %v2770_v10  ;;  %v2329_v6 = vadd.f32 %v2328_v14, %v2327_v29  ;;  %v2332_v52 = vsel %vm2260_vm14, %v6980_v4, 0.0 }
 0x3f2   : > { %v2655_v8 = vadd.f32 %v2654_v26, %v2653_v23  ;;  %v2787_v26 = vsel %vm2673_vm13, %v7259_v28, 0.0  ;;  %v2789_v23 = vsel %vm2673_vm13, %v7272_v41, 0.0  ;;  %v2797_v29 = vsel %vm2673_vm13, %v7324_v50, 0.0 }
 0x3f3   : > { %v2528_v45 = vadd.f32 %v2527_v58, %v2526_v19  ;;  %v2774_v3 = vadd.f32 %v2773_v34, %v2772_v55  ;;  %v2783_v58 = vsel %vm2673_vm13, %v7233_v21, 0.0  ;;  %v2331_v18 = vadd.f32 %v2330_v17, %v2329_v6 }
 0x3f4   : > { %v2657_v0 = vadd.f32 %v2656_v63, %v2655_v8  ;;  %v2334_v63 = vsel %vm2260_vm14, %v6987_v46, 0.0  ;;  %v2795_v46 = vsel %vm2673_vm13, %v7311_v33, 0.0  ;;  %v2338_v14 = vsel %vm2260_vm14, %v7025_v49, 0.0 }
 0x3f5   : > { %2530 = vrot.lane.b32.xlu0 %v2528_v45, %s5509_s5  ;;  %v2776_v22 = vadd.f32 %v2775_v24, %v2774_v3  ;;  %v2333_v34 = vadd.f32 %v2332_v52, %v2331_v18  ;;  %v2793_v24 = vsel %vm2673_vm13, %v7298_v51, 0.0  ;;  %v2342_v17 = vsel %vm2260_vm14, %v7051_v61, 0.0 }
 0x3f6   : > { %v2659_v12 = vadd.f32 %v2658_v42, %v2657_v0  ;;  %v2336_v0 = vsel %vm2260_vm14, %v7012_v39, 0.0  ;;  %v2344_v49 = vsel %vm2260_vm14, %v7064_v47, 0.0  ;;  %v2348_v52 = vsel %vm2260_vm14, %v7090_v13, 0.0 }
 0x3f7   : > { %v2778_v38 = vadd.f32 %v2777_v53, %v2776_v22  ;;  %v2335_v42 = vadd.f32 %v2334_v63, %v2333_v34  ;;  %v2352_v47 = vsel %vm2260_vm14, %v7116_v48, 0.0  ;;  %v2358_v13 = vsel %vm2260_vm14, %v7155_v27, 0.0 }
 0x3f8   : > { %v2661_v19 = vadd.f32 %v2660_v44, %v2659_v12  ;;  %v2799_v12 = vsel %vm2673_vm13, %v7337_v43, 0.0  ;;  %v2362_v48 = vsel %vm2260_vm14, %v7181_v9, 0.0  ;;  %v2368_v27 = vsel %vm2260_vm14, %v7220_v25, 0.0 }
 0x3f9   : > { %v2780_v5 = vadd.f32 %v2779_v35, %v2778_v38  ;;  %v2337_v44 = vadd.f32 %v2336_v0, %v2335_v42  ;;  %v2372_v9 = vsel %vm2260_vm14, %v7246_v1, 0.0  ;;  %v2378_v25 = vsel %vm2260_vm14, %v7285_v31, 0.0 }
 0x3fa   : > { %v2662_v15 = vrot.slane %v2661_v19, 4 }
 0x3fb   : > { %v2782_v30 = vadd.f32 %v2781_v62, %v2780_v5  ;;  %v2339_v39 = vadd.f32 %v2338_v14, %v2337_v44 }
 0x3fc   : > { %v2663_v20 = vadd.f32 %v2662_v15, %v2661_v19  ;;  %v2340_v19 = vsel %vm2260_vm14, %v7038_v40, 0.0 }
 0x3fd   : > { %v2784_v11 = vadd.f32 %v2783_v58, %v2782_v30  ;;  %v2341_v6 = vadd.f32 %v2340_v19, %v2339_v39 }
 0x3fe   : > { %v2664_v45 = vrot.slane %v2663_v20, 2 }
 0x3ff   : > { %v2786_v10 = vadd.f32 %v2785_v59, %v2784_v11  ;;  %v2343_v58 = vadd.f32 %v2342_v17, %v2341_v6  ;;  %v2346_v11 = vsel %vm2260_vm14, %v7077_v56, 0.0 }
 0x400   : > { %v2665_v16 = vadd.f32 %v2664_v45, %v2663_v20  ;;  %v2350_v45 = vsel %vm2260_vm14, %v7103_v37, 0.0  ;;  %v2360_v37 = vsel %vm2260_vm14, %v7168_v7, 0.0  ;;  %v2370_v7 = vsel %vm2260_vm14, %v7233_v21, 0.0 }
 0x401   : > { %v2788_v60 = vadd.f32 %v2787_v26, %v2786_v10  ;;  %v2345_v59 = vadd.f32 %v2344_v49, %v2343_v58  ;;  %v2380_v21 = vsel %vm2260_vm14, %v7298_v51, 0.0 }
 0x402   : > { %v2666_v55 = vrot.slane %v2665_v16, 1 }
 0x403   : > { %v2790_v8 = vadd.f32 %v2789_v23, %v2788_v60  ;;  %v2347_v40 = vadd.f32 %v2346_v11, %v2345_v59  ;;  %v2356_v23 = vsel %vm2260_vm14, %v7142_v36, 0.0  ;;  %v2366_v36 = vsel %vm2260_vm14, %v7207_v57, 0.0 }
 0x404   : > { %v2667_v4 = vadd.f32 %v2666_v55, %v2665_v16  ;;  %v2354_v16 = vsel %vm2260_vm14, %v7129_v32, 0.0  ;;  %v2364_v32 = vsel %vm2260_vm14, %v7194_v54, 0.0  ;;  %v2374_v54 = vsel %vm2260_vm14, %v7259_v28, 0.0 }
 0x405   : > { %v2792_v3 = vadd.f32 %v2791_v2, %v2790_v8  ;;  %v2349_v61 = vadd.f32 %v2348_v52, %v2347_v40  ;;  %v2376_v57 = vsel %vm2260_vm14, %v7272_v41, 0.0 }
 0x406   : > { %2669 = vrot.lane.b32.xlu0 %v2667_v4, %s5510_s6 }
 0x407   : > { %v2794_v53 = vadd.f32 %v2793_v24, %v2792_v3  ;;  %v2351_v26 = vadd.f32 %v2350_v45, %v2349_v61  ;;  %v7509_v61 = vld [vmem:[%s12465_s4] sm:$0xff] }
 0x408   : > { %12669 = vst [vmem:[#allocation10_spill] sm:$0xff] %v7509_v61 }
 0x409   : > { %v2796_v22 = vadd.f32 %v2795_v46, %v2794_v53  ;;  %v2353_v10 = vadd.f32 %v2352_v47, %v2351_v26  ;;  %v7516_v26 = vld [vmem:[%s12465_s4 + $0x8] sm:$0xff] }
 0x40a   : > { %12670 = vst [vmem:[#allocation11_spill] sm:$0xff] %v7516_v26 }
 0x40b   : > { %v2798_v35 = vadd.f32 %v2797_v29, %v2796_v22  ;;  %v2355_v56 = vadd.f32 %v2354_v16, %v2353_v10  ;;  %v2382_v29 = vsel %vm2260_vm14, %v7311_v33, 0.0  ;;  %v2384_v22 = vsel %vm2260_vm14, %v7324_v50, 0.0 }
 0x40d   : > { %v2800_v38 = vadd.f32 %v2799_v12, %v2798_v35  ;;  %v2357_v34 = vadd.f32 %v2356_v23, %v2355_v56  ;;  %v2386_v12 = vsel %vm2260_vm14, %v7337_v43, 0.0  ;;  %v7523_v56 = vld [vmem:[%s12465_s4 + $0x10] sm:$0xff] }
 0x40e   : > { %12671 = vst [vmem:[#allocation12_spill] sm:$0xff] %v7523_v56 }
 0x40f   : > { %v2801_v62 = vrot.slane %v2800_v38, 4  ;;  %v2359_v60 = vadd.f32 %v2358_v13, %v2357_v34 }
 0x411   : > { %v2802_v5 = vadd.f32 %v2801_v62, %v2800_v38  ;;  %v2361_v63 = vadd.f32 %v2360_v37, %v2359_v60  ;;  %v7532_v60 = vld [vmem:[%s12465_s4 + $0x18] sm:$0xff] }
 0x412   : > { %12672 = vst [vmem:[#allocation13_spill] sm:$0xff] %v7532_v60 }
 0x413   : > { %v2803_v15 = vrot.slane %v2802_v5, 2  ;;  %v2363_v55 = vadd.f32 %v2362_v48, %v2361_v63 }
 0x415   : > { %v2804_v30 = vadd.f32 %v2803_v15, %v2802_v5  ;;  %v2365_v2 = vadd.f32 %v2364_v32, %v2363_v55  ;;  %v2814_v15 = vlaneseq  ;;  %v7539_v55 = vld [vmem:[%s12465_s4 + $0x20] sm:$0xff] }
 0x416   : > { %12673 = vst [vmem:[#allocation14_spill] sm:$0xff] %v7539_v55 }
 0x417   : > { %v2805_v20 = vrot.slane %v2804_v30, 1  ;;  %v2367_v8 = vadd.f32 %v2366_v36, %v2365_v2 }
 0x419   : > { %v2806_v18 = vadd.f32 %v2805_v20, %v2804_v30  ;;  %v2369_v4 = vadd.f32 %v2368_v27, %v2367_v8  ;;  %v2815_v20 = vshrl.u32 %v2814_v15, 7  ;;  %v7547_v27 = vld [vmem:[%s12465_s4 + $0x28] sm:$0xff] }
 0x41a   : > { %12674 = vst [vmem:[#allocation15_spill] sm:$0xff] %v7547_v27 }
 0x41b   : > { %2808 = vrot.lane.b32.xlu1 %v2806_v18, %s5511_s7  ;;  %v2371_v24 = vadd.f32 %v2370_v7, %v2369_v4  ;;  %v7492_v11 = vsub.s32 0, %v2815_v20 }
 0x41d   : > { %v2373_v42 = vadd.f32 %v2372_v9, %v2371_v24  ;;  %12666 = vst [vmem:[#allocation7_spill] sm:$0xff] %v7492_v11 }
 0x41f   : > { %v2375_v3 = vadd.f32 %v2374_v54, %v2373_v42  ;;  %v7555_v42 = vld [vmem:[%s12465_s4 + $0x30] sm:$0xff] }
 0x421   : > { %v2377_v0 = vadd.f32 %v2376_v57, %v2375_v3 }
 0x423   : > { %v2379_v46 = vadd.f32 %v2378_v25, %v2377_v0  ;;  %v7563_v25 = vld [vmem:[%s12465_s4 + $0x38] sm:$0xff] }
 0x425   : > { %v2381_v53 = vadd.f32 %v2380_v21, %v2379_v46 }
 0x427   : > { %v2383_v44 = vadd.f32 %v2382_v29, %v2381_v53 }
 0x429   : > { %v2385_v14 = vadd.f32 %v2384_v22, %v2383_v44  ;;  %v7571_v44 = vld [vmem:[%s12465_s4 + $0x40] sm:$0xff] }
 0x42b   : > { %v2387_v35 = vadd.f32 %v2386_v12, %v2385_v14 }
 0x42d   : > { %v2388_v39 = vrot.slane %v2387_v35, 4 }
 0x42f   : > { %v2389_v38 = vadd.f32 %v2388_v39, %v2387_v35  ;;  %v7579_v39 = vld [vmem:[%s12465_s4 + $0x48] sm:$0xff] }
 0x431   : > { %v2390_v19 = vrot.slane %v2389_v38, 2 }
 0x433   : > { %v2391_v62 = vadd.f32 %v2390_v19, %v2389_v38 }
 0x435   : > { %v2392_v6 = vrot.slane %v2391_v62, 1 }
 0x437   : > { %v2393_v17 = vadd.f32 %v2392_v6, %v2391_v62 }
 0x467   : > { %v2531_v5 = vpop.permute.xlu0 %2530 }
 0x468   : > { %v2533_v30 = vadd.f32 %v2531_v5, %v2393_v17  ;;  %v7587_v5 = vld [vmem:[%s12465_s4 + $0x50] sm:$0xff] }
 0x478   : > { %v2670_v58 = vpop.permute.xlu0 %2669 }
 0x479   : > { %v2672_v49 = vadd.f32 %v2670_v58, %v2533_v30 }
 0x48d   : > { %v2809_v59 = vpop.permute.xlu1 %2808 }
 0x48e   : > { %v2811_v18 = vadd.f32 %v2809_v59, %v2672_v49  ;;  %v7595_v49 = vld [vmem:[%s12465_s4 + $0x58] sm:$0xff] }
 0x490   : > { %v7494_v40 = vmul.f32 0.00048828125, %v2811_v18 }
 0x492   : > { %12667 = vst [vmem:[#allocation8_spill] sm:$0xff] %v7494_v40  ;;  %v7498_v52 = vrot.slane %v7494_v40, %v7492_v11  ;;  %v7863_v11 = vld [vmem:[%s12465_s4 + $0x110] sm:$0xff] }
 0x493   : > { %12694 = vst [vmem:[#allocation35_spill] sm:$0xff] %v7863_v11 }
 0x494   : > { %12668 = vst [vmem:[#allocation9_spill] sm:$0xff] %v7498_v52  ;;  %3350 = vrot.lane.b32.xlu0 %v7498_v52, %s5512_s8  ;;  %3081 = vrot.lane.b32.xlu1 %v7498_v52, %s5513_s9  ;;  %v2818_v45 = vsub.f32 %v7509_v61, %v7498_v52  ;;  %v2819_v47 = vsub.f32 %v7516_v26, %v7498_v52 }
 0x495   : > { %v2820_v23 = vsub.f32 %v7523_v56, %v7498_v52  ;;  %v2821_v37 = vsub.f32 %v7532_v60, %v7498_v52  ;;  %v2822_v32 = vsub.f32 %v7539_v55, %v7498_v52  ;;  %v2823_v4 = vsub.f32 %v7547_v27, %v7498_v52 }
 0x496   : > { %v2882_v10 = vmul.f32 %v2818_v45, %v2818_v45  ;;  %v2883_v16 = vmul.f32 %v2819_v47, %v2819_v47  ;;  %v2824_v54 = vsub.f32 %v7555_v42, %v7498_v52  ;;  %v2825_v46 = vsub.f32 %v7563_v25, %v7498_v52 }
 0x497   : > { %v2884_v63 = vmul.f32 %v2820_v23, %v2820_v23  ;;  %v2885_v2 = vmul.f32 %v2821_v37, %v2821_v37  ;;  %v2886_v7 = vmul.f32 %v2822_v32, %v2822_v32  ;;  %v2887_v3 = vmul.f32 %v2823_v4, %v2823_v4  ;;  %v7619_v32 = vld [vmem:[%s12465_s4 + $0x68] sm:$0xff] }
 0x498   : > { %3619 = vrot.lane.b32.xlu1 %v7498_v52, %s5514_s16  ;;  %v2946_v34 = vsel %vm2260_vm14, %v2882_v10, 0.0  ;;  %v2947_v13 = vsel %vm2260_vm14, %v2883_v16, 0.0  ;;  %v2888_v21 = vmul.f32 %v2824_v54, %v2824_v54  ;;  %v2826_v22 = vsub.f32 %v7571_v44, %v7498_v52  ;;  %v7605_v10 = vld [vmem:[%s12465_s4 + $0x60] sm:$0xff] }
 0x499   : > { %v2948_v48 = vadd.f32 %v2947_v13, %v2946_v34  ;;  %v2949_v36 = vsel %vm2260_vm14, %v2884_v63, 0.0  ;;  %v2951_v24 = vsel %vm2260_vm14, %v2885_v2, 0.0  ;;  %v2953_v57 = vsel %vm2260_vm14, %v2886_v7, 0.0 }
 0x49a   : > { %v2955_v53 = vsel %vm2260_vm14, %v2887_v3, 0.0  ;;  %v2889_v14 = vmul.f32 %v2825_v46, %v2825_v46  ;;  %v2957_v12 = vsel %vm2260_vm14, %v2888_v21, 0.0  ;;  %v2827_v38 = vsub.f32 %v7579_v39, %v7498_v52 }
 0x49b   : > { %v2950_v8 = vadd.f32 %v2949_v36, %v2948_v48  ;;  %v2890_v19 = vmul.f32 %v2826_v22, %v2826_v22  ;;  %v2828_v17 = vsub.f32 %v7587_v5, %v7498_v52  ;;  %v2829_v20 = vsub.f32 %v7595_v49, %v7498_v52 }
 0x49c   : > { %v2959_v62 = vsel %vm2260_vm14, %v2889_v14, 0.0  ;;  %v2891_v15 = vmul.f32 %v2827_v38, %v2827_v38  ;;  %v2830_v16 = vsub.f32 %v7605_v10, %v7498_v52  ;;  %v2831_v2 = vsub.f32 %v7619_v32, %v7498_v52 }
 0x49d   : > { %v2952_v9 = vadd.f32 %v2951_v24, %v2950_v8  ;;  %v2961_v58 = vsel %vm2260_vm14, %v2890_v19, 0.0  ;;  %v2892_v59 = vmul.f32 %v2828_v17, %v2828_v17  ;;  %v2893_v13 = vmul.f32 %v2829_v20, %v2829_v20  ;;  %v7646_v17 = vld [vmem:[%s12465_s4 + $0x78] sm:$0xff] }
 0x49e   : > { %v2963_v18 = vsel %vm2260_vm14, %v2891_v15, 0.0  ;;  %v2894_v36 = vmul.f32 %v2830_v16, %v2830_v16  ;;  %v2895_v46 = vmul.f32 %v2831_v2, %v2831_v2  ;;  %v2833_v15 = vsub.f32 %v7646_v17, %v7498_v52 }
 0x49f   : > { %v2954_v0 = vadd.f32 %v2953_v57, %v2952_v9  ;;  %v2965_v37 = vsel %vm2260_vm14, %v2892_v59, 0.0  ;;  %v2967_v24 = vsel %vm2260_vm14, %v2893_v13, 0.0  ;;  %v7631_v57 = vld [vmem:[%s12465_s4 + $0x70] sm:$0xff] }
 0x4a0   : > { %v2969_v21 = vsel %vm2260_vm14, %v2894_v36, 0.0  ;;  %v2897_v2 = vmul.f32 %v2833_v15, %v2833_v15 }
 0x4a1   : > { %v2956_v29 = vadd.f32 %v2955_v53, %v2954_v0  ;;  %v2832_v0 = vsub.f32 %v7631_v57, %v7498_v52 }
 0x4a3   : > { %v2958_v35 = vadd.f32 %v2957_v12, %v2956_v29 }
 0x4a5   : > { %v2960_v6 = vadd.f32 %v2959_v62, %v2958_v35 }
 0x4a7   : > { %v2962_v30 = vadd.f32 %v2961_v58, %v2960_v6  ;;  %v2896_v58 = vmul.f32 %v2832_v0, %v2832_v0 }
 0x4a9   : > { %v2964_v47 = vadd.f32 %v2963_v18, %v2962_v30  ;;  %v2971_v18 = vsel %vm2260_vm14, %v2895_v46, 0.0 }
 0x4ab   : > { %v2966_v63 = vadd.f32 %v2965_v37, %v2964_v47 }
 0x4ad   : > { %v2968_v9 = vadd.f32 %v2967_v24, %v2966_v63  ;;  %v7660_v63 = vld [vmem:[%s12465_s4 + $0x80] sm:$0xff] }
 0x4af   : > { %v2970_v35 = vadd.f32 %v2969_v21, %v2968_v9  ;;  %v7674_v21 = vld [vmem:[%s12465_s4 + $0x88] sm:$0xff] }
 0x4b1   : > { %v2972_v16 = vadd.f32 %v2971_v18, %v2970_v35  ;;  %v2975_v35 = vsel %vm2260_vm14, %v2897_v2, 0.0 }
 0x506   : > { %v7600_v45 = vpop.permute.xlu0 %3350 }
 0x507   : > { %v3353_v23 = vsub.f32 %v7509_v61, %v7600_v45  ;;  %v3354_v34 = vsub.f32 %v7516_v26, %v7600_v45  ;;  %v3355_v48 = vsub.f32 %v7523_v56, %v7600_v45  ;;  %v3356_v8 = vsub.f32 %v7532_v60, %v7600_v45 }
 0x508   : > { %v3357_v54 = vsub.f32 %v7539_v55, %v7600_v45  ;;  %v3358_v53 = vsub.f32 %v7547_v27, %v7600_v45  ;;  %v3359_v38 = vsub.f32 %v7555_v42, %v7600_v45  ;;  %v3360_v30 = vsub.f32 %v7563_v25, %v7600_v45 }
 0x509   : > { %v3417_v4 = vmul.f32 %v3353_v23, %v3353_v23  ;;  %v3418_v7 = vmul.f32 %v3354_v34, %v3354_v34  ;;  %v3419_v3 = vmul.f32 %v3355_v48, %v3355_v48  ;;  %v3420_v29 = vmul.f32 %v3356_v8, %v3356_v8 }
 0x50a   : > { %v3421_v19 = vmul.f32 %v3357_v54, %v3357_v54  ;;  %v3422_v20 = vmul.f32 %v3358_v53, %v3358_v53  ;;  %v3361_v23 = vsub.f32 %v7571_v44, %v7600_v45  ;;  %v3423_v34 = vmul.f32 %v3359_v38, %v3359_v38 }
 0x50b   : > { %v3481_v22 = vsel %vm2534_vm12, %v3417_v4, 0.0  ;;  %v3482_v14 = vsel %vm2534_vm12, %v3418_v7, 0.0  ;;  %v3484_v62 = vsel %vm2534_vm12, %v3419_v3, 0.0  ;;  %v3486_v59 = vsel %vm2534_vm12, %v3420_v29, 0.0 }
 0x50c   : > { %v3483_v12 = vadd.f32 %v3482_v14, %v3481_v22  ;;  %v3488_v13 = vsel %vm2534_vm12, %v3421_v19, 0.0  ;;  %v2834_v48 = vsub.f32 %v7660_v63, %v7498_v52  ;;  %v3362_v36 = vsub.f32 %v7579_v39, %v7600_v45 }
 0x50d   : > { %v3424_v8 = vmul.f32 %v3360_v30, %v3360_v30  ;;  %v3490_v4 = vsel %vm2534_vm12, %v3422_v20, 0.0  ;;  %v2973_v7 = vsel %vm2260_vm14, %v2896_v58, 0.0  ;;  %v3363_v54 = vsub.f32 %v7587_v5, %v7600_v45  ;;  %v7688_v30 = vld [vmem:[%s12465_s4 + $0x90] sm:$0xff] }
 0x50e   : > { %v3485_v6 = vadd.f32 %v3484_v62, %v3483_v12  ;;  %v2974_v9 = vadd.f32 %v2973_v7, %v2972_v16  ;;  %v3425_v3 = vmul.f32 %v3361_v23, %v3361_v23  ;;  %v3492_v0 = vsel %vm2534_vm12, %v3423_v34, 0.0 }
 0x50f   : > { %v2835_v53 = vsub.f32 %v7674_v21, %v7498_v52  ;;  %v2898_v29 = vmul.f32 %v2834_v48, %v2834_v48  ;;  %v3364_v22 = vsub.f32 %v7595_v49, %v7600_v45  ;;  %v3426_v14 = vmul.f32 %v3362_v36, %v3362_v36 }
 0x510   : > { %v3487_v47 = vadd.f32 %v3486_v59, %v3485_v6  ;;  %v3494_v12 = vsel %vm2534_vm12, %v3424_v8, 0.0  ;;  %v2976_v19 = vadd.f32 %v2975_v35, %v2974_v9  ;;  %v3365_v62 = vsub.f32 %v7605_v10, %v7600_v45  ;;  %v7702_v8 = vld [vmem:[%s12465_s4 + $0x98] sm:$0xff] }
 0x511   : > { %v3427_v6 = vmul.f32 %v3363_v54, %v3363_v54  ;;  %v3496_v15 = vsel %vm2534_vm12, %v3425_v3, 0.0  ;;  %v2836_v20 = vsub.f32 %v7688_v30, %v7498_v52  ;;  %v2899_v59 = vmul.f32 %v2835_v53, %v2835_v53  ;;  %12675 = vst [vmem:[#allocation16_spill] sm:$0xff] %v7702_v8 }
 0x512   : > { %v3489_v37 = vadd.f32 %v3488_v13, %v3487_v47  ;;  %v3366_v18 = vsub.f32 %v7619_v32, %v7600_v45  ;;  %v3428_v47 = vmul.f32 %v3364_v22, %v3364_v22  ;;  %v3498_v16 = vsel %vm2534_vm12, %v3426_v14, 0.0 }
 0x513   : > { %v2977_v23 = vsel %vm2260_vm14, %v2898_v29, 0.0  ;;  %v3429_v48 = vmul.f32 %v3365_v62, %v3365_v62  ;;  %v3500_v2 = vsel %vm2534_vm12, %v3427_v6, 0.0  ;;  %v2900_v7 = vmul.f32 %v2836_v20, %v2836_v20 }
 0x514   : > { %v3491_v24 = vadd.f32 %v3490_v4, %v3489_v37  ;;  %v2978_v13 = vadd.f32 %v2977_v23, %v2976_v19  ;;  %v3367_v37 = vsub.f32 %v7631_v57, %v7600_v45  ;;  %v2837_v4 = vsub.f32 %v7702_v8, %v7498_v52  ;;  %v7730_v23 = vld [vmem:[%s12465_s4 + $0xa8] sm:$0xff] }
 0x515   : > { %v3430_v9 = vmul.f32 %v3366_v18, %v3366_v18  ;;  %v3502_v54 = vsel %vm2534_vm12, %v3428_v47, 0.0  ;;  %v2979_v3 = vsel %vm2260_vm14, %v2899_v59, 0.0  ;;  %v3369_v53 = vsub.f32 %v7660_v63, %v7600_v45  ;;  %12677 = vst [vmem:[#allocation18_spill] sm:$0xff] %v7730_v23 }
 0x516   : > { %v3493_v46 = vadd.f32 %v3492_v0, %v3491_v24  ;;  %v3368_v24 = vsub.f32 %v7646_v17, %v7600_v45  ;;  %v3431_v29 = vmul.f32 %v3367_v37, %v3367_v37  ;;  %v3504_v22 = vsel %vm2534_vm12, %v3429_v48, 0.0 }
 0x517   : > { %v3370_v19 = vsub.f32 %v7674_v21, %v7600_v45  ;;  %v3506_v6 = vsel %vm2534_vm12, %v3430_v9, 0.0  ;;  %v3371_v59 = vsub.f32 %v7688_v30, %v7600_v45  ;;  %v3433_v18 = vmul.f32 %v3369_v53, %v3369_v53 }
 0x518   : > { %v3495_v38 = vadd.f32 %v3494_v12, %v3493_v46  ;;  %v2980_v46 = vadd.f32 %v2979_v3, %v2978_v13  ;;  %v7716_v12 = vld [vmem:[%s12465_s4 + $0xa0] sm:$0xff]  ;;  %v3432_v62 = vmul.f32 %v3368_v24, %v3368_v24  ;;  %v3508_v47 = vsel %vm2534_vm12, %v3431_v29, 0.0 }
 0x519   : > { %12676 = vst [vmem:[#allocation17_spill] sm:$0xff] %v7716_v12  ;;  %v2838_v35 = vsub.f32 %v7716_v12, %v7498_v52  ;;  %v3372_v37 = vsub.f32 %v7702_v8, %v7600_v45  ;;  %v3434_v48 = vmul.f32 %v3370_v19, %v3370_v19  ;;  %v3373_v24 = vsub.f32 %v7716_v12, %v7600_v45  ;;  %v7755_v19 = vld [vmem:[%s12465_s4 + $0xb8] sm:$0xff] }
 0x51a   : > { %v3497_v58 = vadd.f32 %v3496_v15, %v3495_v38  ;;  %v2901_v38 = vmul.f32 %v2837_v4, %v2837_v4  ;;  %v2981_v15 = vsel %vm2260_vm14, %v2900_v7, 0.0  ;;  %v3435_v9 = vmul.f32 %v3371_v59, %v3371_v59  ;;  %12679 = vst [vmem:[#allocation20_spill] sm:$0xff] %v7755_v19 }
 0x51b   : > { %v2982_v20 = vadd.f32 %v2981_v15, %v2980_v46  ;;  %v2902_v13 = vmul.f32 %v2838_v35, %v2838_v35  ;;  %v3374_v46 = vsub.f32 %v7730_v23, %v7600_v45  ;;  %v3436_v53 = vmul.f32 %v3372_v37, %v3372_v37  ;;  %v7748_v35 = vld [vmem:[%s12465_s4 + $0xb0] sm:$0xff] }
 0x51c   : > { %v3499_v34 = vadd.f32 %v3498_v16, %v3497_v58  ;;  %v3514_v29 = vsel %vm2534_vm12, %v3434_v48, 0.0  ;;  %12678 = vst [vmem:[#allocation19_spill] sm:$0xff] %v7748_v35  ;;  %v3375_v15 = vsub.f32 %v7748_v35, %v7600_v45 }
 0x51e   : > { %v3501_v36 = vadd.f32 %v3500_v2, %v3499_v34  ;;  %v2839_v34 = vsub.f32 %v7730_v23, %v7498_v52  ;;  %v3510_v2 = vsel %vm2534_vm12, %v3432_v62, 0.0  ;;  %v2841_v62 = vsub.f32 %v7755_v19, %v7498_v52 }
 0x520   : > { %v3503_v0 = vadd.f32 %v3502_v54, %v3501_v36  ;;  %v2983_v36 = vsel %vm2260_vm14, %v2901_v38, 0.0  ;;  %v3512_v54 = vsel %vm2534_vm12, %v3433_v18, 0.0  ;;  %v2840_v38 = vsub.f32 %v7748_v35, %v7498_v52  ;;  %v7765_v18 = vld [vmem:[%s12465_s4 + $0xc0] sm:$0xff]  ;;  %v8028_v35 = vld [vmem:[%s12465_s4 + $0x198] sm:$0xff] }
 0x521   : > { %v2984_v7 = vadd.f32 %v2983_v36, %v2982_v20  ;;  %v3516_v20 = vsel %vm2534_vm12, %v3435_v9, 0.0  ;;  %12680 = vst [vmem:[#allocation21_spill] sm:$0xff] %v7765_v18  ;;  %v7777_v36 = vmul.f32 %v2841_v62, %v2841_v62  ;;  %v7817_v62 = vld [vmem:[%s12465_s4 + $0xe8] sm:$0xff]  ;;  %12711 = vst [vmem:[#allocation52_spill] sm:$0xff] %v8028_v35 }
 0x522   : > { %v3505_v14 = vadd.f32 %v3504_v22, %v3503_v0  ;;  %v2903_v0 = vmul.f32 %v2839_v34, %v2839_v34  ;;  %v2985_v22 = vsel %vm2260_vm14, %v2902_v13, 0.0  ;;  %v3438_v34 = vmul.f32 %v3374_v46, %v3374_v46  ;;  %12689 = vst [vmem:[#allocation30_spill] sm:$0xff] %v7817_v62 }
 0x523   : > { %v3518_v13 = vsel %vm2534_vm12, %v3436_v53, 0.0  ;;  %12683 = vst [vmem:[#allocation24_spill] sm:$0xff] %v7777_v36  ;;  %v7801_v53 = vld [vmem:[%s12465_s4 + $0xd8] sm:$0xff]  ;;  %v7867_v36 = vsub.f32 %v7863_v11, %v7600_v45 }
 0x524   : > { %v3507_v58 = vadd.f32 %v3506_v6, %v3505_v14  ;;  %v2986_v6 = vadd.f32 %v2985_v22, %v2984_v7  ;;  %v2987_v37 = vsel %vm2260_vm14, %v2903_v0, 0.0  ;;  %v3377_v7 = vsub.f32 %v7765_v18, %v7600_v45  ;;  %v7794_v0 = vld [vmem:[%s12465_s4 + $0xd0] sm:$0xff]  ;;  %12687 = vst [vmem:[#allocation28_spill] sm:$0xff] %v7801_v53  ;;  %v7808_v22 = vld [vmem:[%s12465_s4 + $0xe0] sm:$0xff] }
 0x525   : > { %12686 = vst [vmem:[#allocation27_spill] sm:$0xff] %v7794_v0  ;;  %v3379_v46 = vsub.f32 %v7794_v0, %v7600_v45  ;;  %12688 = vst [vmem:[#allocation29_spill] sm:$0xff] %v7808_v22 }
 0x526   : > { %v3509_v16 = vadd.f32 %v3508_v47, %v3507_v58  ;;  %v3437_v58 = vmul.f32 %v3373_v24, %v3373_v24  ;;  %v7769_v47 = vsub.f32 %v7765_v18, %v7498_v52  ;;  %v7786_v24 = vld [vmem:[%s12465_s4 + $0xc8] sm:$0xff]  ;;  %v7998_v18 = vld [vmem:[%s12465_s4 + $0x180] sm:$0xff] }
 0x527   : > { %12685 = vst [vmem:[#allocation26_spill] sm:$0xff] %v7786_v24  ;;  %v3378_v9 = vsub.f32 %v7786_v24, %v7600_v45  ;;  %12708 = vst [vmem:[#allocation49_spill] sm:$0xff] %v7998_v18 }
 0x528   : > { %v3511_v4 = vadd.f32 %v3510_v2, %v3509_v16  ;;  %12681 = vst [vmem:[#allocation22_spill] sm:$0xff] %v7769_v47  ;;  %v3376_v16 = vsub.f32 %v7755_v19, %v7600_v45  ;;  %v7775_v2 = vmul.f32 %v2840_v38, %v2840_v38  ;;  %v7872_v47 = vld [vmem:[%s12465_s4 + $0x118] sm:$0xff]  ;;  %v8017_v19 = vld [vmem:[%s12465_s4 + $0x190] sm:$0xff] }
 0x529   : > { %12695 = vst [vmem:[#allocation36_spill] sm:$0xff] %v7872_v47  ;;  %v7876_v52 = vsub.f32 %v7872_v47, %v7600_v45  ;;  %12710 = vst [vmem:[#allocation51_spill] sm:$0xff] %v8017_v19 }
 0x52a   : > { %v3513_v3 = vadd.f32 %v3512_v54, %v3511_v4  ;;  %12682 = vst [vmem:[#allocation23_spill] sm:$0xff] %v7775_v2  ;;  %v7779_v4 = vadd.f32 %v2987_v37, %v2986_v6  ;;  %v3439_v54 = vmul.f32 %v3375_v15, %v3375_v15  ;;  %v7821_v6 = vsub.f32 %v7817_v62, %v7600_v45  ;;  %v7826_v15 = vld [vmem:[%s12465_s4 + $0xf0] sm:$0xff]  ;;  %v7884_v2 = vld [vmem:[%s12465_s4 + $0x120] sm:$0xff] }
 0x52b   : > { %12690 = vst [vmem:[#allocation31_spill] sm:$0xff] %v7826_v15  ;;  %12696 = vst [vmem:[#allocation37_spill] sm:$0xff] %v7884_v2  ;;  %v7888_v11 = vsub.f32 %v7884_v2, %v7600_v45  ;;  %v7939_v62 = vld [vmem:[%s12465_s4 + $0x150] sm:$0xff] }
 0x52c   : > { %v3515_v14 = vadd.f32 %v3514_v29, %v3513_v3  ;;  %12684 = vst [vmem:[#allocation25_spill] sm:$0xff] %v7779_v4  ;;  %v3520_v3 = vsel %vm2534_vm12, %v3437_v58, 0.0  ;;  %v3380_v29 = vsub.f32 %v7801_v53, %v7600_v45  ;;  %v7830_v58 = vsub.f32 %v7826_v15, %v7600_v45  ;;  %12702 = vst [vmem:[#allocation43_spill] sm:$0xff] %v7939_v62 }
 0x52d   : > { %v3441_v4 = vmul.f32 %v3377_v7, %v3377_v7 }
 0x52e   : > { %v3517_v59 = vadd.f32 %v3516_v20, %v3515_v14  ;;  %v7812_v14 = vsub.f32 %v7808_v22, %v7600_v45  ;;  %v3440_v20 = vmul.f32 %v3376_v16, %v3376_v16  ;;  %v7854_v16 = vld [vmem:[%s12465_s4 + $0x108] sm:$0xff]  ;;  %v7957_v22 = vld [vmem:[%s12465_s4 + $0x160] sm:$0xff] }
 0x52f   : > { %12693 = vst [vmem:[#allocation34_spill] sm:$0xff] %v7854_v16  ;;  %12704 = vst [vmem:[#allocation45_spill] sm:$0xff] %v7957_v22  ;;  %v7961_v53 = vsub.f32 %v7957_v22, %v7600_v45  ;;  %v3528_v0 = vsel %vm2534_vm12, %v3441_v4, 0.0 }
 0x530   : > { %v3519_v48 = vadd.f32 %v3518_v13, %v3517_v59  ;;  %v3522_v59 = vsel %vm2534_vm12, %v3438_v34, 0.0  ;;  %v7836_v13 = vld [vmem:[%s12465_s4 + $0xf8] sm:$0xff]  ;;  %v7858_v34 = vsub.f32 %v7854_v16, %v7600_v45  ;;  %v7893_v16 = vld [vmem:[%s12465_s4 + $0x128] sm:$0xff]  ;;  %v3445_v23 = vmul.f32 %v7812_v14, %v7812_v14 }
 0x531   : > { %12691 = vst [vmem:[#allocation32_spill] sm:$0xff] %v7836_v13  ;;  %v7840_v37 = vsub.f32 %v7836_v13, %v7600_v45  ;;  %12697 = vst [vmem:[#allocation38_spill] sm:$0xff] %v7893_v16  ;;  %v7897_v7 = vsub.f32 %v7893_v16, %v7600_v45  ;;  %v7920_v16 = vld [vmem:[%s12465_s4 + $0x140] sm:$0xff]  ;;  %v8051_v14 = vld [vmem:[%s12465_s4 + $0x1a8] sm:$0xff] }
 0x532   : > { %v3521_v38 = vadd.f32 %v3520_v3, %v3519_v48  ;;  %v7845_v48 = vld [vmem:[%s12465_s4 + $0x100] sm:$0xff]  ;;  %12700 = vst [vmem:[#allocation41_spill] sm:$0xff] %v7920_v16  ;;  %v7924_v15 = vsub.f32 %v7920_v16, %v7600_v45  ;;  %v7943_v16 = vsub.f32 %v7939_v62, %v7600_v45  ;;  %v3443_v62 = vmul.f32 %v3379_v46, %v3379_v46 }
 0x533   : > { %12692 = vst [vmem:[#allocation33_spill] sm:$0xff] %v7845_v48  ;;  %v7849_v3 = vsub.f32 %v7845_v48, %v7600_v45  ;;  %v7911_v48 = vld [vmem:[%s12465_s4 + $0x138] sm:$0xff]  ;;  %12715 = vst [vmem:[#allocation56_spill] sm:$0xff] %v8051_v14 }
 0x534   : > { %v3523_v40 = vadd.f32 %v3522_v59, %v3521_v38  ;;  %v3524_v38 = vsel %vm2534_vm12, %v3439_v54, 0.0  ;;  %v7879_v59 = vpop.permute.xlu1 %3081  ;;  %v7902_v54 = vld [vmem:[%s12465_s4 + $0x130] sm:$0xff]  ;;  %12699 = vst [vmem:[#allocation40_spill] sm:$0xff] %v7911_v48  ;;  %v7915_v13 = vsub.f32 %v7911_v48, %v7600_v45  ;;  %v3532_v12 = vsel %vm2534_vm12, %v3443_v62, 0.0 }
 0x535   : > { %12698 = vst [vmem:[#allocation39_spill] sm:$0xff] %v7902_v54  ;;  %v7906_v47 = vsub.f32 %v7902_v54, %v7600_v45  ;;  %v3442_v54 = vmul.f32 %v3378_v9, %v3378_v9  ;;  %v7948_v9 = vld [vmem:[%s12465_s4 + $0x158] sm:$0xff]  ;;  %v3084_v24 = vsub.f32 %v7509_v61, %v7879_v59  ;;  %v3085_v22 = vsub.f32 %v7516_v26, %v7879_v59  ;;  %v8008_v26 = vld [vmem:[%s12465_s4 + $0x188] sm:$0xff]  ;;  %v8060_v62 = vld [vmem:[%s12465_s4 + $0x1b0] sm:$0xff] }
 0x536   : > { %v3525_v2 = vadd.f32 %v3524_v38, %v3523_v40  ;;  %v3526_v40 = vsel %vm2534_vm12, %v3440_v20, 0.0  ;;  %v7930_v38 = vld [vmem:[%s12465_s4 + $0x148] sm:$0xff]  ;;  %12703 = vst [vmem:[#allocation44_spill] sm:$0xff] %v7948_v9  ;;  %v7952_v20 = vsub.f32 %v7948_v9, %v7600_v45  ;;  %v7989_v61 = vld [vmem:[%s12465_s4 + $0x178] sm:$0xff]  ;;  %12709 = vst [vmem:[#allocation50_spill] sm:$0xff] %v8008_v26 }
 0x537   : > { %12701 = vst [vmem:[#allocation42_spill] sm:$0xff] %v7930_v38  ;;  %v7934_v48 = vsub.f32 %v7930_v38, %v7600_v45  ;;  %v7969_v9 = vld [vmem:[%s12465_s4 + $0x168] sm:$0xff]  ;;  %12707 = vst [vmem:[#allocation48_spill] sm:$0xff] %v7989_v61  ;;  %v3149_v8 = vmul.f32 %v3085_v22, %v3085_v22  ;;  %v3446_v22 = vmul.f32 %v7821_v6, %v7821_v6 }
 0x538   : > { %v3527_v38 = vadd.f32 %v3526_v40, %v3525_v2  ;;  %12705 = vst [vmem:[#allocation46_spill] sm:$0xff] %v7969_v9  ;;  %v7973_v2 = vsub.f32 %v7969_v9, %v7600_v45  ;;  %v7978_v40 = vld [vmem:[%s12465_s4 + $0x170] sm:$0xff]  ;;  %v7993_v9 = vsub.f32 %v7989_v61, %v7600_v45  ;;  %v8012_v61 = vsub.f32 %v8008_v26, %v7600_v45 }
 0x539   : > { %12706 = vst [vmem:[#allocation47_spill] sm:$0xff] %v7978_v40  ;;  %v7982_v4 = vsub.f32 %v7978_v40, %v7600_v45  ;;  %v3530_v40 = vsel %vm2534_vm12, %v3442_v54, 0.0  ;;  %v3086_v54 = vsub.f32 %v7523_v56, %v7879_v59  ;;  %v8032_v26 = vsub.f32 %v8028_v35, %v7600_v45  ;;  %12717 = vst [vmem:[#allocation58_spill] sm:$0xff] %v8060_v62 }
 0x53a   : > { %v3529_v46 = vadd.f32 %v3528_v0, %v3527_v38  ;;  %v8002_v0 = vsub.f32 %v7998_v18, %v7600_v45  ;;  %v3444_v38 = vmul.f32 %v3380_v29, %v3380_v29  ;;  %v8021_v18 = vsub.f32 %v8017_v19, %v7600_v45 }
 0x53b   : > { %12712 = vst [vmem:[#allocation53_spill] sm:$0xff] %v8032_v26  ;;  %v3148_v19 = vmul.f32 %v3084_v24, %v3084_v24  ;;  %v3087_v35 = vsub.f32 %v7532_v60, %v7879_v59  ;;  %v8055_v24 = vsub.f32 %v8051_v14, %v7600_v45  ;;  %v3447_v6 = vmul.f32 %v7830_v58, %v7830_v58 }
 0x53c   : > { %v3531_v29 = vadd.f32 %v3530_v40, %v3529_v46  ;;  %v8040_v40 = vld [vmem:[%s12465_s4 + $0x1a0] sm:$0xff]  ;;  %v3538_v58 = vsel %vm2534_vm12, %v3446_v22, 0.0 }
 0x53d   : > { %12713 = vst [vmem:[#allocation54_spill] sm:$0xff] %v8040_v40  ;;  %v8044_v46 = vsub.f32 %v8040_v40, %v7600_v45  ;;  %12716 = vst [vmem:[#allocation57_spill] sm:$0xff] %v8055_v24  ;;  %v8072_v40 = vld [vmem:[%s12465_s4 + $0x1b8] sm:$0xff]  ;;  %v3088_v24 = vsub.f32 %v7539_v55, %v7879_v59 }
 0x53e   : > { %v3533_v56 = vadd.f32 %v3532_v12, %v3531_v29  ;;  %v8064_v12 = vsub.f32 %v8060_v62, %v7600_v45  ;;  %v3534_v29 = vsel %vm2534_vm12, %v3444_v38, 0.0  ;;  %12719 = vst [vmem:[#allocation60_spill] sm:$0xff] %v8072_v40  ;;  %v8076_v14 = vsub.f32 %v8072_v40, %v7600_v45 }
 0x53f   : > { %12714 = vst [vmem:[#allocation55_spill] sm:$0xff] %v8044_v46  ;;  %v3150_v62 = vmul.f32 %v3086_v54, %v3086_v54  ;;  %v3536_v38 = vsel %vm2534_vm12, %v3445_v23, 0.0  ;;  %v3212_v46 = vsel %vm2395_vm11, %v3148_v19, 0.0  ;;  %v3089_v40 = vsub.f32 %v7547_v27, %v7879_v59 }
 0x540   : > { %12718 = vst [vmem:[#allocation59_spill] sm:$0xff] %v8064_v12  ;;  %v3535_v60 = vadd.f32 %v3534_v29, %v3533_v56  ;;  %v8082_v12 = vsub.f32 %v7246_v1, %v7600_v45  ;;  %v3151_v56 = vmul.f32 %v3087_v35, %v3087_v35  ;;  %v3213_v29 = vsel %vm2395_vm11, %v3149_v8, 0.0 }
 0x541   : > { %v8093_v54 = vsub.f32 %v7259_v28, %v7600_v45  ;;  %v3448_v1 = vmul.f32 %v7840_v37, %v7840_v37  ;;  %v3214_v55 = vadd.f32 %v3213_v29, %v3212_v46  ;;  %v3152_v19 = vmul.f32 %v3088_v24, %v3088_v24 }
 0x542   : > { %v3537_v26 = vadd.f32 %v3536_v38, %v3535_v60  ;;  %v3090_v60 = vsub.f32 %v7555_v42, %v7879_v59  ;;  %v3215_v38 = vsel %vm2395_vm11, %v3150_v62, 0.0  ;;  %v8103_v8 = vsub.f32 %v7272_v41, %v7600_v45 }
 0x543   : > { %v3449_v28 = vmul.f32 %v7849_v3, %v7849_v3  ;;  %v3540_v35 = vsel %vm2534_vm12, %v3447_v6, 0.0  ;;  %v3216_v37 = vadd.f32 %v3215_v38, %v3214_v55  ;;  %v3153_v46 = vmul.f32 %v3089_v40, %v3089_v40 }
 0x544   : > { %v3539_v23 = vadd.f32 %v3538_v58, %v3537_v26  ;;  %v3091_v26 = vsub.f32 %v7563_v25, %v7879_v59  ;;  %v3217_v22 = vsel %vm2395_vm11, %v3151_v56, 0.0  ;;  %v8113_v24 = vsub.f32 %v7285_v31, %v7600_v45 }
 0x545   : > { %v3450_v41 = vmul.f32 %v7858_v34, %v7858_v34  ;;  %v3542_v62 = vsel %vm2534_vm12, %v3448_v1, 0.0  ;;  %v3218_v3 = vadd.f32 %v3217_v22, %v3216_v37  ;;  %v3092_v55 = vsub.f32 %v7571_v44, %v7879_v59 }
 0x546   : > { %v3541_v27 = vadd.f32 %v3540_v35, %v3539_v23  ;;  %v3154_v6 = vmul.f32 %v3090_v60, %v3090_v60  ;;  %v3219_v58 = vsel %vm2395_vm11, %v3152_v19, 0.0  ;;  %v8123_v40 = vsub.f32 %v7298_v51, %v7600_v45 }
 0x547   : > { %v3451_v31 = vmul.f32 %v7867_v36, %v7867_v36  ;;  %v3544_v56 = vsel %vm2534_vm12, %v3449_v28, 0.0  ;;  %v3220_v34 = vadd.f32 %v3219_v58, %v3218_v3  ;;  %v3155_v1 = vmul.f32 %v3091_v26, %v3091_v26 }
 0x548   : > { %v3543_v29 = vadd.f32 %v3542_v62, %v3541_v27  ;;  %v3093_v27 = vsub.f32 %v7579_v39, %v7879_v59  ;;  %v3221_v38 = vsel %vm2395_vm11, %v3153_v46, 0.0  ;;  %v8133_v60 = vsub.f32 %v7311_v33, %v7600_v45 }
 0x549   : > { %v3452_v51 = vmul.f32 %v7876_v52, %v7876_v52  ;;  %v3546_v19 = vsel %vm2534_vm12, %v3450_v41, 0.0  ;;  %v3222_v36 = vadd.f32 %v3221_v38, %v3220_v34  ;;  %v3094_v28 = vsub.f32 %v7587_v5, %v7879_v59 }
 0x54a   : > { %v3545_v23 = vadd.f32 %v3544_v56, %v3543_v29  ;;  %v3156_v37 = vmul.f32 %v3092_v55, %v3092_v55  ;;  %v3223_v22 = vsel %vm2395_vm11, %v3154_v6, 0.0  ;;  %v8143_v26 = vsub.f32 %v7324_v50, %v7600_v45 }
 0x54b   : > { %v3453_v33 = vmul.f32 %v7888_v11, %v7888_v11  ;;  %v3548_v46 = vsel %vm2534_vm12, %v3451_v31, 0.0  ;;  %v3224_v52 = vadd.f32 %v3223_v22, %v3222_v36  ;;  %v3095_v41 = vsub.f32 %v7595_v49, %v7879_v59 }
 0x54c   : > { %v3547_v35 = vadd.f32 %v3546_v19, %v3545_v23  ;;  %v3157_v3 = vmul.f32 %v3093_v27, %v3093_v27  ;;  %v3225_v29 = vsel %vm2395_vm11, %v3155_v1, 0.0  ;;  %v8153_v55 = vsub.f32 %v7337_v43, %v7600_v45 }
 0x54d   : > { %v3454_v50 = vmul.f32 %v7897_v7, %v7897_v7  ;;  %v3550_v6 = vsel %vm2534_vm12, %v3452_v51, 0.0  ;;  %v3226_v11 = vadd.f32 %v3225_v29, %v3224_v52  ;;  %v3096_v31 = vsub.f32 %v7605_v10, %v7879_v59 }
 0x54e   : > { %v3549_v62 = vadd.f32 %v3548_v46, %v3547_v35  ;;  %v3158_v56 = vmul.f32 %v3094_v28, %v3094_v28  ;;  %v3227_v49 = vsel %vm2395_vm11, %v3156_v37, 0.0  ;;  %v3455_v34 = vmul.f32 %v7906_v47, %v7906_v47 }
 0x54f   : > { %v3456_v43 = vmul.f32 %v7915_v13, %v7915_v13  ;;  %v3552_v45 = vsel %vm2534_vm12, %v3453_v33, 0.0  ;;  %v3228_v23 = vadd.f32 %v3227_v49, %v3226_v11  ;;  %v3097_v27 = vsub.f32 %v7619_v32, %v7879_v59 }
 0x550   : > { %v3551_v58 = vadd.f32 %v3550_v6, %v3549_v62  ;;  %v3159_v1 = vmul.f32 %v3095_v41, %v3095_v41  ;;  %v3229_v38 = vsel %vm2395_vm11, %v3157_v3, 0.0  ;;  %v3457_v10 = vmul.f32 %v7924_v15, %v7924_v15 }
 0x551   : > { %v3458_v51 = vmul.f32 %v7934_v48, %v7934_v48  ;;  %v3554_v47 = vsel %vm2534_vm12, %v3454_v50, 0.0  ;;  %v3230_v19 = vadd.f32 %v3229_v38, %v3228_v23  ;;  %v3098_v36 = vsub.f32 %v7631_v57, %v7879_v59 }
 0x552   : > { %v3553_v7 = vadd.f32 %v3552_v45, %v3551_v58  ;;  %v3160_v35 = vmul.f32 %v3096_v31, %v3096_v31  ;;  %v3231_v28 = vsel %vm2395_vm11, %v3158_v56, 0.0  ;;  %v3459_v32 = vmul.f32 %v7943_v16, %v7943_v16 }
 0x553   : > { %v3460_v37 = vmul.f32 %v7952_v20, %v7952_v20  ;;  %v3556_v15 = vsel %vm2534_vm12, %v3455_v34, 0.0  ;;  %v3232_v22 = vadd.f32 %v3231_v28, %v3230_v19  ;;  %v3099_v33 = vsub.f32 %v7646_v17, %v7879_v59  ;;  %v12723_v28 = vld [vmem:[#allocation57_spill] sm:$0xff] }
 0x554   : > { %v3555_v13 = vadd.f32 %v3554_v47, %v3553_v7  ;;  %v3161_v46 = vmul.f32 %v3097_v27, %v3097_v27  ;;  %v3233_v52 = vsel %vm2395_vm11, %v3159_v1, 0.0  ;;  %v3461_v57 = vmul.f32 %v7961_v53, %v7961_v53  ;;  %v12720_v1 = vld [vmem:[#allocation53_spill] sm:$0xff] }
 0x555   : > { %v3462_v62 = vmul.f32 %v7973_v2, %v7973_v2  ;;  %v3558_v16 = vsel %vm2534_vm12, %v3456_v43, 0.0  ;;  %v3234_v41 = vadd.f32 %v3233_v52, %v3232_v22  ;;  %v3100_v3 = vsub.f32 %v7660_v63, %v7879_v59 }
 0x556   : > { %v3557_v48 = vadd.f32 %v3556_v15, %v3555_v13  ;;  %v3162_v29 = vmul.f32 %v3098_v36, %v3098_v36  ;;  %v3235_v50 = vsel %vm2395_vm11, %v3160_v35, 0.0  ;;  %v3463_v17 = vmul.f32 %v7982_v4, %v7982_v4  ;;  %v12722_v36 = vld [vmem:[#allocation55_spill] sm:$0xff] }
 0x557   : > { %v3464_v6 = vmul.f32 %v7993_v9, %v7993_v9  ;;  %v3560_v53 = vsel %vm2534_vm12, %v3457_v10, 0.0  ;;  %v3236_v11 = vadd.f32 %v3235_v50, %v3234_v41  ;;  %v3101_v58 = vsub.f32 %v7674_v21, %v7879_v59 }
 0x558   : > { %v3559_v20 = vadd.f32 %v3558_v16, %v3557_v48  ;;  %v3163_v31 = vmul.f32 %v3099_v33, %v3099_v33  ;;  %v3237_v56 = vsel %vm2395_vm11, %v3161_v46, 0.0  ;;  %v3465_v49 = vmul.f32 %v8002_v0, %v8002_v0  ;;  %v12725_v16 = vld [vmem:[#allocation59_spill] sm:$0xff] }
 0x559   : > { %v8205_v34 = vmul.f32 %v8012_v61, %v8012_v61  ;;  %v3562_v4 = vsel %vm2534_vm12, %v3458_v51, 0.0  ;;  %v3238_v9 = vadd.f32 %v3237_v56, %v3236_v11  ;;  %v3102_v45 = vsub.f32 %v7688_v30, %v7879_v59  ;;  %v12721_v51 = vld [vmem:[#allocation16_spill] sm:$0xff] }
 0x55a   : > { %v3561_v2 = vadd.f32 %v3560_v53, %v3559_v20  ;;  %v3164_v23 = vmul.f32 %v3100_v3, %v3100_v3  ;;  %v3239_v7 = vsel %vm2395_vm11, %v3162_v29, 0.0  ;;  %v3467_v27 = vmul.f32 %v8021_v18, %v8021_v18 }
 0x55b   : > { %v3468_v0 = vmul.f32 %v12720_v1, %v12720_v1  ;;  %v3564_v38 = vsel %vm2534_vm12, %v3459_v32, 0.0  ;;  %v3240_v61 = vadd.f32 %v3239_v7, %v3238_v9  ;;  %v3103_v47 = vsub.f32 %v12721_v51, %v7879_v59  ;;  %v12724_v32 = vld [vmem:[#allocation17_spill] sm:$0xff] }
 0x55c   : > { %v3563_v43 = vadd.f32 %v3562_v4, %v3561_v2  ;;  %v3165_v19 = vmul.f32 %v3101_v58, %v3101_v58  ;;  %v3241_v13 = vsel %vm2395_vm11, %v3163_v31, 0.0  ;;  %v3469_v35 = vmul.f32 %v12722_v36, %v12722_v36 }
 0x55d   : > { %v3470_v15 = vmul.f32 %v12723_v28, %v12723_v28  ;;  %v3566_v18 = vsel %vm2534_vm12, %v3460_v37, 0.0  ;;  %v3242_v22 = vadd.f32 %v3241_v13, %v3240_v61  ;;  %v3104_v33 = vsub.f32 %v12724_v32, %v7879_v59  ;;  %v12726_v37 = vld [vmem:[#allocation18_spill] sm:$0xff] }
 0x55e   : > { %v3565_v10 = vadd.f32 %v3564_v38, %v3563_v43  ;;  %v3166_v46 = vmul.f32 %v3102_v45, %v3102_v45  ;;  %v3243_v52 = vsel %vm2395_vm11, %v3164_v23, 0.0  ;;  %v3471_v41 = vmul.f32 %v12725_v16, %v12725_v16 }
 0x55f   : > { %v3472_v20 = vmul.f32 %v8076_v14, %v8076_v14  ;;  %v3568_v3 = vsel %vm2534_vm12, %v3461_v57, 0.0  ;;  %v3244_v29 = vadd.f32 %v3243_v52, %v3242_v22  ;;  %v3105_v53 = vsub.f32 %v12726_v37, %v7879_v59  ;;  %v12727_v57 = vld [vmem:[#allocation19_spill] sm:$0xff] }
 0x560   : > { %v3567_v48 = vadd.f32 %v3566_v18, %v3565_v10  ;;  %v3167_v11 = vmul.f32 %v3103_v47, %v3103_v47  ;;  %v3245_v2 = vsel %vm2395_vm11, %v3165_v19, 0.0  ;;  %v3473_v58 = vmul.f32 %v8082_v12, %v8082_v12 }
 0x561   : > { %v3474_v31 = vmul.f32 %v8093_v54, %v8093_v54  ;;  %v3570_v56 = vsel %vm2534_vm12, %v3462_v62, 0.0  ;;  %v3246_v4 = vadd.f32 %v3245_v2, %v3244_v29  ;;  %v3106_v9 = vsub.f32 %v12727_v57, %v7879_v59  ;;  %v12728_v62 = vld [vmem:[#allocation20_spill] sm:$0xff] }
 0x562   : > { %v3569_v50 = vadd.f32 %v3568_v3, %v3567_v48  ;;  %v3168_v43 = vmul.f32 %v3104_v33, %v3104_v33  ;;  %v3247_v45 = vsel %vm2395_vm11, %v3166_v46, 0.0  ;;  %v3475_v23 = vmul.f32 %v8103_v8, %v8103_v8 }
 0x563   : > { %v3476_v7 = vmul.f32 %v8113_v24, %v8113_v24  ;;  %v3572_v12 = vsel %vm2534_vm12, %v3463_v17, 0.0  ;;  %v3248_v1 = vadd.f32 %v3247_v45, %v3246_v4  ;;  %v3107_v38 = vsub.f32 %v12728_v62, %v7879_v59  ;;  %v12729_v17 = vld [vmem:[#allocation21_spill] sm:$0xff] }
 0x564   : > { %v3571_v14 = vadd.f32 %v3570_v56, %v3569_v50  ;;  %v3169_v61 = vmul.f32 %v3105_v53, %v3105_v53  ;;  %v3249_v10 = vsel %vm2395_vm11, %v3167_v11, 0.0  ;;  %v3477_v47 = vmul.f32 %v8123_v40, %v8123_v40 }
 0x565   : > { %v3478_v19 = vmul.f32 %v8133_v60, %v8133_v60  ;;  %v3574_v8 = vsel %vm2534_vm12, %v3464_v6, 0.0  ;;  %v3250_v13 = vadd.f32 %v3249_v10, %v3248_v1  ;;  %v3108_v36 = vsub.f32 %v12729_v17, %v7879_v59  ;;  %v12730_v6 = vld [vmem:[#allocation26_spill] sm:$0xff] }
 0x566   : > { %v3573_v54 = vadd.f32 %v3572_v12, %v3571_v14  ;;  %v3170_v28 = vmul.f32 %v3106_v9, %v3106_v9  ;;  %v3251_v18 = vsel %vm2395_vm11, %v3168_v43, 0.0  ;;  %v3479_v22 = vmul.f32 %v8143_v26, %v8143_v26 }
 0x567   : > { %v3480_v48 = vmul.f32 %v8153_v55, %v8153_v55  ;;  %v3576_v40 = vsel %vm2534_vm12, %v3465_v49, 0.0  ;;  %v3252_v33 = vadd.f32 %v3251_v18, %v3250_v13  ;;  %v3109_v46 = vsub.f32 %v12730_v6, %v7879_v59  ;;  %v12731_v55 = vld [vmem:[#allocation27_spill] sm:$0xff] }
 0x568   : > { %v3575_v24 = vadd.f32 %v3574_v8, %v3573_v54  ;;  %v3171_v52 = vmul.f32 %v3107_v38, %v3107_v38  ;;  %v3253_v16 = vsel %vm2395_vm11, %v3169_v61, 0.0  ;;  %v3578_v3 = vsel %vm2534_vm12, %v8205_v34, 0.0 }
 0x569   : > { %v3580_v29 = vsel %vm2534_vm12, %v3467_v27, 0.0  ;;  %v3582_v26 = vsel %vm2534_vm12, %v3468_v0, 0.0  ;;  %v3254_v50 = vadd.f32 %v3253_v16, %v3252_v33  ;;  %v3110_v49 = vsub.f32 %v12731_v55, %v7879_v59  ;;  %v12732_v27 = vld [vmem:[#allocation28_spill] sm:$0xff] }
 0x56a   : > { %v3577_v60 = vadd.f32 %v3576_v40, %v3575_v24  ;;  %v3172_v11 = vmul.f32 %v3108_v36, %v3108_v36  ;;  %v3255_v2 = vsel %vm2395_vm11, %v3170_v28, 0.0  ;;  %v3584_v56 = vsel %vm2534_vm12, %v3469_v35, 0.0 }
 0x56b   : > { %v3586_v4 = vsel %vm2534_vm12, %v3470_v15, 0.0  ;;  %v3588_v14 = vsel %vm2534_vm12, %v3471_v41, 0.0  ;;  %v3256_v9 = vadd.f32 %v3255_v2, %v3254_v50  ;;  %v3111_v43 = vsub.f32 %v12732_v27, %v7879_v59  ;;  %v12733_v15 = vld [vmem:[#allocation29_spill] sm:$0xff] }
 0x56c   : > { %v3579_v53 = vadd.f32 %v3578_v3, %v3577_v60  ;;  %v3173_v0 = vmul.f32 %v3109_v46, %v3109_v46  ;;  %v3257_v45 = vsel %vm2395_vm11, %v3171_v52, 0.0  ;;  %v3590_v12 = vsel %vm2534_vm12, %v3472_v20, 0.0  ;;  %v12735_v60 = vld [vmem:[#allocation31_spill] sm:$0xff]  ;;  %v12736_v3 = vld [vmem:[#allocation32_spill] sm:$0xff] }
 0x56d   : > { %v3592_v1 = vsel %vm2534_vm12, %v3473_v58, 0.0  ;;  %v3594_v54 = vsel %vm2534_vm12, %v3474_v31, 0.0  ;;  %v3258_v38 = vadd.f32 %v3257_v45, %v3256_v9  ;;  %v3112_v61 = vsub.f32 %v12733_v15, %v7879_v59  ;;  %v12734_v58 = vld [vmem:[#allocation30_spill] sm:$0xff]  ;;  %v12740_v9 = vld [vmem:[#allocation36_spill] sm:$0xff] }
 0x56e   : > { %v3581_v34 = vadd.f32 %v3580_v29, %v3579_v53  ;;  %v3174_v41 = vmul.f32 %v3110_v49, %v3110_v49  ;;  %v3259_v10 = vsel %vm2395_vm11, %v3172_v11, 0.0  ;;  %v3596_v8 = vsel %vm2534_vm12, %v3475_v23, 0.0  ;;  %v12739_v11 = vld [vmem:[#allocation35_spill] sm:$0xff]  ;;  %v12742_v45 = vld [vmem:[#allocation38_spill] sm:$0xff] }
 0x56f   : > { %v3598_v13 = vsel %vm2534_vm12, %v3476_v7, 0.0  ;;  %v8289_v24 = vsel %vm2534_vm12, %v3477_v47, 0.0  ;;  %v3260_v20 = vadd.f32 %v3259_v10, %v3258_v38  ;;  %v3113_v31 = vsub.f32 %v12734_v58, %v7879_v59 }
 0x570   : > { %v3583_v35 = vadd.f32 %v3582_v26, %v3581_v34  ;;  %v3175_v28 = vmul.f32 %v3111_v43, %v3111_v43  ;;  %v3261_v18 = vsel %vm2395_vm11, %v3173_v0, 0.0  ;;  %v8295_v40 = vsel %vm2534_vm12, %v3478_v19, 0.0  ;;  %v12737_v19 = vld [vmem:[#allocation33_spill] sm:$0xff] }
 0x571   : > { %v8298_v33 = vsel %vm2534_vm12, %v3479_v22, 0.0  ;;  %v8301_v23 = vsel %vm2534_vm12, %v3480_v48, 0.0  ;;  %v3262_v7 = vadd.f32 %v3261_v18, %v3260_v20  ;;  %v3114_v46 = vsub.f32 %v12735_v60, %v7879_v59  ;;  %v12738_v22 = vld [vmem:[#allocation34_spill] sm:$0xff]  ;;  %v8312_v48 = vpop.permute.xlu1 %3619  ;;  %v12741_v43 = vld [vmem:[#allocation37_spill] sm:$0xff] }
 0x572   : > { %v3585_v36 = vadd.f32 %v3584_v56, %v3583_v35  ;;  %v3176_v52 = vmul.f32 %v3112_v61, %v3112_v61  ;;  %v3263_v16 = vsel %vm2395_vm11, %v3174_v41, 0.0  ;;  %v3115_v29 = vsub.f32 %v12736_v3, %v7879_v59  ;;  %v12743_v41 = vld [vmem:[#allocation39_spill] sm:$0xff] }
 0x573   : > { %v3116_v26 = vsub.f32 %v12737_v19, %v7879_v59  ;;  %v3117_v50 = vsub.f32 %v12738_v22, %v7879_v59  ;;  %v3264_v53 = vadd.f32 %v3263_v16, %v3262_v7  ;;  %v3118_v2 = vsub.f32 %v12739_v11, %v7879_v59  ;;  %v12746_v7 = vld [vmem:[#allocation10_spill] sm:$0xff]  ;;  %v12749_v22 = vld [vmem:[#allocation43_spill] sm:$0xff] }
 0x574   : > { %v3587_v47 = vadd.f32 %v3586_v4, %v3585_v36  ;;  %v3177_v56 = vmul.f32 %v3113_v31, %v3113_v31  ;;  %v3265_v4 = vsel %vm2395_vm11, %v3175_v28, 0.0  ;;  %v3119_v34 = vsub.f32 %v12740_v9, %v7879_v59  ;;  %v12744_v36 = vld [vmem:[#allocation40_spill] sm:$0xff]  ;;  %v12745_v31 = vld [vmem:[#allocation41_spill] sm:$0xff] }
 0x575   : > { %v3120_v0 = vsub.f32 %v12741_v43, %v7879_v59  ;;  %v3121_v38 = vsub.f32 %v12742_v45, %v7879_v59  ;;  %v3266_v35 = vadd.f32 %v3265_v4, %v3264_v53  ;;  %v3178_v10 = vmul.f32 %v3114_v46, %v3114_v46  ;;  %v12747_v46 = vld [vmem:[#allocation11_spill] sm:$0xff]  ;;  %v12751_v9 = vld [vmem:[#allocation12_spill] sm:$0xff]  ;;  %v12752_v45 = vld [vmem:[#allocation45_spill] sm:$0xff] }
 0x576   : > { %v3589_v49 = vadd.f32 %v3588_v14, %v3587_v47  ;;  %v3122_v14 = vsub.f32 %v12743_v41, %v7879_v59  ;;  %v3267_v20 = vsel %vm2395_vm11, %v3176_v52, 0.0  ;;  %v8328_v58 = vsub.f32 %v12744_v36, %v7879_v59  ;;  %v12748_v52 = vld [vmem:[#allocation42_spill] sm:$0xff] }
 0x577   : > { %v8332_v28 = vsub.f32 %v12745_v31, %v7879_v59  ;;  %v3268_v18 = vadd.f32 %v3267_v20, %v3266_v35  ;;  %v3622_v47 = vsub.f32 %v12746_v7, %v8312_v48  ;;  %v3269_v16 = vsel %vm2395_vm11, %v3177_v56, 0.0  ;;  %v12753_v7 = vld [vmem:[#allocation13_spill] sm:$0xff] }
 0x578   : > { %v3591_v61 = vadd.f32 %v3590_v12, %v3589_v49  ;;  %v3179_v12 = vmul.f32 %v3115_v29, %v3115_v29  ;;  %v3623_v3 = vsub.f32 %v12747_v46, %v8312_v48  ;;  %v8341_v19 = vsub.f32 %v12748_v52, %v7879_v59  ;;  %v12750_v49 = vld [vmem:[#allocation44_spill] sm:$0xff] }
 0x579   : > { %v8345_v53 = vsub.f32 %v12749_v22, %v7879_v59  ;;  %v8349_v11 = vsub.f32 %v12750_v49, %v7879_v59  ;;  %v3270_v4 = vadd.f32 %v3269_v16, %v3268_v18  ;;  %v3180_v29 = vmul.f32 %v3116_v26, %v3116_v26  ;;  %v12754_v26 = vld [vmem:[#allocation46_spill] sm:$0xff] }
 0x57a   : > { %v3593_v60 = vadd.f32 %v3592_v1, %v3591_v61  ;;  %v3271_v56 = vsel %vm2395_vm11, %v3178_v10, 0.0  ;;  %v3624_v43 = vsub.f32 %v12751_v9, %v8312_v48  ;;  %v8356_v35 = vsub.f32 %v12752_v45, %v7879_v59  ;;  %v12757_v9 = vld [vmem:[#allocation15_spill] sm:$0xff] }
 0x57b   : > { %v3181_v61 = vmul.f32 %v3117_v50, %v3117_v50  ;;  %v3272_v41 = vadd.f32 %v3271_v56, %v3270_v4  ;;  %v3686_v20 = vmul.f32 %v3622_v47, %v3622_v47  ;;  %v3273_v31 = vsel %vm2395_vm11, %v3179_v12, 0.0 }
 0x57c   : > { %v3595_v1 = vadd.f32 %v3594_v54, %v3593_v60  ;;  %v3625_v18 = vsub.f32 %v12753_v7, %v8312_v48  ;;  %v3687_v54 = vmul.f32 %v3623_v3, %v3623_v3  ;;  %v8363_v10 = vsub.f32 %v12754_v26, %v7879_v59  ;;  %v12755_v60 = vld [vmem:[#allocation47_spill] sm:$0xff] }
 0x57d   : > { %v8367_v16 = vsub.f32 %v12755_v60, %v7879_v59  ;;  %v3182_v46 = vmul.f32 %v3118_v2, %v3118_v2  ;;  %v3274_v52 = vadd.f32 %v3273_v31, %v3272_v41  ;;  %v3275_v47 = vsel %vm2395_vm11, %v3180_v29, 0.0 }
 0x57e   : > { %v3597_v36 = vadd.f32 %v3596_v8, %v3595_v1  ;;  %v12756_v8 = vld [vmem:[#allocation14_spill] sm:$0xff]  ;;  %v3688_v22 = vmul.f32 %v3624_v43, %v3624_v43  ;;  %v3183_v49 = vmul.f32 %v3119_v34, %v3119_v34  ;;  %v3277_v3 = vsel %vm2395_vm11, %v3181_v61, 0.0 }
 0x57f   : > { %v3626_v12 = vsub.f32 %v12756_v8, %v8312_v48  ;;  %v3276_v4 = vadd.f32 %v3275_v47, %v3274_v52  ;;  %v3750_v1 = vsel %vm2673_vm13, %v3686_v20, 0.0  ;;  %v3627_v45 = vsub.f32 %v12757_v9, %v8312_v48 }
 0x580   : > { %v3599_v50 = vadd.f32 %v3598_v13, %v3597_v36  ;;  %v3689_v2 = vmul.f32 %v3625_v18, %v3625_v18  ;;  %v3751_v13 = vsel %vm2673_vm13, %v3687_v54, 0.0  ;;  %v3184_v41 = vmul.f32 %v3120_v0, %v3120_v0 }
 0x581   : > { %v3278_v29 = vadd.f32 %v3277_v3, %v3276_v4  ;;  %v3279_v36 = vsel %vm2395_vm11, %v3182_v46, 0.0  ;;  %v3752_v31 = vadd.f32 %v3751_v13, %v3750_v1  ;;  %v3628_v43 = vsub.f32 %v7555_v42, %v8312_v48 }
 0x582   : > { %v3601_v56 = vadd.f32 %v8289_v24, %v3599_v50  ;;  %v3690_v61 = vmul.f32 %v3626_v12, %v3626_v12  ;;  %v3753_v20 = vsel %vm2673_vm13, %v3688_v22, 0.0  ;;  %v3185_v24 = vmul.f32 %v3121_v38, %v3121_v38 }
 0x583   : > { %v3280_v7 = vadd.f32 %v3279_v36, %v3278_v29  ;;  %v3281_v26 = vsel %vm2395_vm11, %v3183_v49, 0.0  ;;  %v3754_v18 = vadd.f32 %v3753_v20, %v3752_v31  ;;  %v3629_v0 = vsub.f32 %v7563_v25, %v8312_v48 }
 0x584   : > { %v3603_v34 = vadd.f32 %v8295_v40, %v3601_v56  ;;  %v3691_v60 = vmul.f32 %v3627_v45, %v3627_v45  ;;  %v3755_v46 = vsel %vm2673_vm13, %v3689_v2, 0.0  ;;  %v3186_v40 = vmul.f32 %v3122_v14, %v3122_v14 }
 0x585   : > { %v3282_v52 = vadd.f32 %v3281_v26, %v3280_v7  ;;  %v3283_v42 = vsel %vm2395_vm11, %v3184_v41, 0.0  ;;  %v3756_v50 = vadd.f32 %v3755_v46, %v3754_v18  ;;  %v3630_v38 = vsub.f32 %v7571_v44, %v8312_v48  ;;  %v5427_v26 = vld [vmem:[%s12465_s4 + $0x60] sm:$0xff] }
 0x586   : > { %v3605_v54 = vadd.f32 %v8298_v33, %v3603_v34  ;;  %v3692_v8 = vmul.f32 %v3628_v43, %v3628_v43  ;;  %v3757_v12 = vsel %vm2673_vm13, %v3690_v61, 0.0  ;;  %v3187_v33 = vmul.f32 %v8328_v58, %v8328_v58 }
 0x587   : > { %v3284_v25 = vadd.f32 %v3283_v42, %v3282_v52  ;;  %v3285_v22 = vsel %vm2395_vm11, %v3185_v24, 0.0  ;;  %v3758_v49 = vadd.f32 %v3757_v12, %v3756_v50  ;;  %v3631_v4 = vsub.f32 %v7579_v39, %v8312_v48  ;;  %v5428_v42 = vld [vmem:[%s12465_s4 + $0x68] sm:$0xff] }
 0x588   : > { %v3607_v47 = vadd.f32 %v8301_v23, %v3605_v54  ;;  %v3693_v3 = vmul.f32 %v3629_v0, %v3629_v0  ;;  %v3759_v23 = vsel %vm2673_vm13, %v3691_v60, 0.0  ;;  %v3188_v44 = vmul.f32 %v8332_v28, %v8332_v28  ;;  %v5426_v28 = vld [vmem:[%s12465_s4 + $0x58] sm:$0xff] }
 0x589   : > { %v3286_v1 = vadd.f32 %v3285_v22, %v3284_v25  ;;  %v3287_v56 = vsel %vm2395_vm11, %v3186_v40, 0.0  ;;  %v3760_v9 = vadd.f32 %v3759_v23, %v3758_v49  ;;  %v3632_v58 = vsub.f32 %v7587_v5, %v8312_v48  ;;  %v8435_v22 = vld [vmem:[%s12465_s4 + $0x70] sm:$0xff] }
 0x58a   : > { %v3608_v14 = vrot.slane %v3607_v47, 4  ;;  %v3694_v2 = vmul.f32 %v3630_v38, %v3630_v38  ;;  %v3761_v13 = vsel %vm2673_vm13, %v3692_v8, 0.0  ;;  %v3189_v39 = vmul.f32 %v8341_v19, %v8341_v19  ;;  %12758 = vst [vmem:[#allocation53_spill] sm:$0xff] %v8435_v22 }
 0x58b   : > { %v3288_v41 = vadd.f32 %v3287_v56, %v3286_v1  ;;  %v3289_v29 = vsel %vm2395_vm11, %v3187_v33, 0.0  ;;  %v3762_v36 = vadd.f32 %v3761_v13, %v3760_v9  ;;  %v3633_v34 = vsub.f32 %v5426_v28, %v8312_v48  ;;  %v8449_v9 = vld [vmem:[%s12465_s4 + $0x78] sm:$0xff]  ;;  %v12761_v13 = vld [vmem:[#allocation49_spill] sm:$0xff] }
 0x58c   : > { %v3609_v45 = vadd.f32 %v3608_v14, %v3607_v47  ;;  %v3695_v43 = vmul.f32 %v3631_v4, %v3631_v4  ;;  %v3763_v5 = vsel %vm2673_vm13, %v3693_v3, 0.0  ;;  %v3190_v61 = vmul.f32 %v8345_v53, %v8345_v53  ;;  %v12759_v3 = vld [vmem:[#allocation48_spill] sm:$0xff]  ;;  %12760 = vst [vmem:[#allocation16_spill] sm:$0xff] %v8449_v9 }
 0x58d   : > { %v3290_v20 = vadd.f32 %v3289_v29, %v3288_v41  ;;  %v3291_v19 = vsel %vm2395_vm11, %v3188_v44, 0.0  ;;  %v3764_v24 = vadd.f32 %v3763_v5, %v3762_v36  ;;  %v3634_v18 = vsub.f32 %v5427_v26, %v8312_v48 }
 0x58e   : > { %v3610_v31 = vrot.slane %v3609_v45, 2  ;;  %v3696_v54 = vmul.f32 %v3632_v58, %v3632_v58  ;;  %v3765_v0 = vsel %vm2673_vm13, %v3694_v2, 0.0  ;;  %v3191_v60 = vmul.f32 %v8349_v11, %v8349_v11 }
 0x58f   : > { %v3292_v46 = vadd.f32 %v3291_v19, %v3290_v20  ;;  %v3293_v53 = vsel %vm2395_vm11, %v3189_v39, 0.0  ;;  %v3766_v40 = vadd.f32 %v3765_v0, %v3764_v24  ;;  %v3635_v50 = vsub.f32 %v5428_v42, %v8312_v48  ;;  %v12764_v42 = vld [vmem:[#allocation52_spill] sm:$0xff] }
 0x590   : > { %v3611_v7 = vadd.f32 %v3610_v31, %v3609_v45  ;;  %v3697_v47 = vmul.f32 %v3633_v34, %v3633_v34  ;;  %v3767_v38 = vsel %vm2673_vm13, %v3695_v43, 0.0  ;;  %v3192_v8 = vmul.f32 %v8356_v35, %v8356_v35  ;;  %v12762_v43 = vld [vmem:[#allocation50_spill] sm:$0xff] }
 0x591   : > { %v3294_v12 = vadd.f32 %v3293_v53, %v3292_v46  ;;  %v3295_v11 = vsel %vm2395_vm11, %v3190_v61, 0.0  ;;  %v3768_v33 = vadd.f32 %v3767_v38, %v3766_v40  ;;  %v3636_v49 = vsub.f32 %v8435_v22, %v8312_v48 }
 0x592   : > { %v3612_v52 = vrot.slane %v3611_v7, 1  ;;  %v3698_v14 = vmul.f32 %v3634_v18, %v3634_v18  ;;  %v3769_v4 = vsel %vm2673_vm13, %v3696_v54, 0.0  ;;  %v3131_v23 = vsub.f32 %v12759_v3, %v7879_v59  ;;  %v12763_v18 = vld [vmem:[#allocation51_spill] sm:$0xff] }
 0x593   : > { %v3193_v35 = vmul.f32 %v8363_v10, %v8363_v10  ;;  %v3296_v44 = vadd.f32 %v3295_v11, %v3294_v12  ;;  %v3770_v1 = vadd.f32 %v3769_v4, %v3768_v33  ;;  %v3297_v56 = vsel %vm2395_vm11, %v3191_v60, 0.0 }
 0x594   : > { %v3613_v25 = vadd.f32 %v3612_v52, %v3611_v7  ;;  %v3637_v45 = vsub.f32 %v8449_v9, %v8312_v48  ;;  %v3699_v58 = vmul.f32 %v3635_v50, %v3635_v50  ;;  %v3771_v2 = vsel %vm2673_vm13, %v3697_v47, 0.0 }
 0x595   : > { %v3132_v10 = vsub.f32 %v12761_v13, %v7879_v59  ;;  %v3194_v39 = vmul.f32 %v8367_v16, %v8367_v16  ;;  %v3298_v41 = vadd.f32 %v3297_v56, %v3296_v44  ;;  %v3772_v29 = vadd.f32 %v3771_v2, %v3770_v1  ;;  %v12766_v1 = vld [vmem:[#allocation56_spill] sm:$0xff] }
 0x596   : > { %3615 = vrot.lane.b32.xlu1 %v3613_v25, %s5510_s6  ;;  %v3299_v36 = vsel %vm2395_vm11, %v3192_v8, 0.0  ;;  %v3638_v31 = vsub.f32 %v7660_v63, %v8312_v48  ;;  %v3700_v28 = vmul.f32 %v3636_v49, %v3636_v49  ;;  %v3773_v34 = vsel %vm2673_vm13, %v3698_v14, 0.0  ;;  %v12765_v25 = vld [vmem:[#allocation54_spill] sm:$0xff] }
 0x597   : > { %v3133_v5 = vsub.f32 %v12762_v43, %v7879_v59  ;;  %v3195_v61 = vmul.f32 %v3131_v23, %v3131_v23  ;;  %v3300_v20 = vadd.f32 %v3299_v36, %v3298_v41  ;;  %v3774_v19 = vadd.f32 %v3773_v34, %v3772_v29  ;;  %v12767_v41 = vld [vmem:[#allocation58_spill] sm:$0xff] }
 0x598   : > { %v3301_v24 = vsel %vm2395_vm11, %v3193_v35, 0.0  ;;  %v3639_v16 = vsub.f32 %v7674_v21, %v8312_v48  ;;  %v3701_v7 = vmul.f32 %v3637_v45, %v3637_v45  ;;  %v3775_v26 = vsel %vm2673_vm13, %v3699_v58, 0.0 }
 0x599   : > { %v3134_v63 = vsub.f32 %v12763_v18, %v7879_v59  ;;  %v3196_v54 = vmul.f32 %v3132_v10, %v3132_v10  ;;  %v3302_v0 = vadd.f32 %v3301_v24, %v3300_v20  ;;  %v3776_v60 = vadd.f32 %v3775_v26, %v3774_v19 }
 0x59a   : > { %v3303_v46 = vsel %vm2395_vm11, %v3194_v39, 0.0  ;;  %v3640_v53 = vsub.f32 %v7688_v30, %v8312_v48  ;;  %v3702_v40 = vmul.f32 %v3638_v31, %v3638_v31  ;;  %v3777_v52 = vsel %vm2673_vm13, %v3700_v28, 0.0 }
 0x59b   : > { %v3135_v21 = vsub.f32 %v12764_v42, %v7879_v59  ;;  %v3197_v50 = vmul.f32 %v3133_v5, %v3133_v5  ;;  %v3304_v47 = vadd.f32 %v3303_v46, %v3302_v0  ;;  %v3778_v38 = vadd.f32 %v3777_v52, %v3776_v60  ;;  %v8518_v52 = vld [vmem:[%s12465_s4 + $0x1c8] sm:$0xff] }
 0x59c   : > { %v3305_v8 = vsel %vm2395_vm11, %v3195_v61, 0.0  ;;  %v3641_v12 = vsub.f32 %v12721_v51, %v8312_v48  ;;  %v3703_v11 = vmul.f32 %v3639_v16, %v3639_v16  ;;  %v3779_v33 = vsel %vm2673_vm13, %v3701_v7, 0.0  ;;  %v12768_v61 = vld [vmem:[#allocation60_spill] sm:$0xff]  ;;  %12770 = vst [vmem:[#allocation57_spill] sm:$0xff] %v8518_v52 }
 0x59d   : > { %v3136_v30 = vsub.f32 %v12765_v25, %v7879_v59  ;;  %v3198_v49 = vmul.f32 %v3134_v63, %v3134_v63  ;;  %v3306_v14 = vadd.f32 %v3305_v8, %v3304_v47  ;;  %v3780_v4 = vadd.f32 %v3779_v33, %v3778_v38 }
 0x59e   : > { %v3307_v3 = vsel %vm2395_vm11, %v3196_v54, 0.0  ;;  %v3642_v23 = vsub.f32 %v12724_v32, %v8312_v48  ;;  %v3704_v35 = vmul.f32 %v3640_v53, %v3640_v53  ;;  %v3781_v44 = vsel %vm2673_vm13, %v3702_v40, 0.0 }
 0x59f   : > { %v3137_v51 = vsub.f32 %v12766_v1, %v7879_v59  ;;  %v3199_v56 = vmul.f32 %v3135_v21, %v3135_v21  ;;  %v3308_v45 = vadd.f32 %v3307_v3, %v3306_v14  ;;  %v3782_v58 = vadd.f32 %v3781_v44, %v3780_v4 }
 0x5a0   : > { %v3309_v2 = vsel %vm2395_vm11, %v3197_v50, 0.0  ;;  %v3643_v13 = vsub.f32 %v12726_v37, %v8312_v48  ;;  %v3705_v10 = vmul.f32 %v3641_v12, %v3641_v12  ;;  %v3783_v39 = vsel %vm2673_vm13, %v3703_v11, 0.0  ;;  %v8529_v11 = vld [vmem:[%s12465_s4 + $0x1d0] sm:$0xff] }
 0x5a1   : > { %v3138_v32 = vsub.f32 %v12767_v41, %v7879_v59  ;;  %v3200_v29 = vmul.f32 %v3136_v30, %v3136_v30  ;;  %v3310_v36 = vadd.f32 %v3309_v2, %v3308_v45  ;;  %v3784_v31 = vadd.f32 %v3783_v39, %v3782_v58  ;;  %12771 = vst [vmem:[#allocation17_spill] sm:$0xff] %v8529_v11  ;;  %v8551_v2 = vld [vmem:[%s12465_s4 + $0x1e0] sm:$0xff] }
 0x5a2   : > { %v3311_v28 = vsel %vm2395_vm11, %v3198_v49, 0.0  ;;  %v3644_v34 = vsub.f32 %v12727_v57, %v8312_v48  ;;  %v3706_v43 = vmul.f32 %v3642_v23, %v3642_v23  ;;  %v3785_v5 = vsel %vm2673_vm13, %v3704_v35, 0.0  ;;  %v8507_v57 = vld [vmem:[%s12465_s4 + $0x1c0] sm:$0xff]  ;;  %v8540_v23 = vld [vmem:[%s12465_s4 + $0x1d8] sm:$0xff]  ;;  %12773 = vst [vmem:[#allocation18_spill] sm:$0xff] %v8551_v2 }
 0x5a3   : > { %v3139_v37 = vsub.f32 %v12768_v61, %v7879_v59  ;;  %v3201_v20 = vmul.f32 %v3137_v51, %v3137_v51  ;;  %v3312_v19 = vadd.f32 %v3311_v28, %v3310_v36  ;;  %v3786_v24 = vadd.f32 %v3785_v5, %v3784_v31  ;;  %12769 = vst [vmem:[#allocation55_spill] sm:$0xff] %v8507_v57  ;;  %v8562_v31 = vld [vmem:[%s12465_s4 + $0x1e8] sm:$0xff] }
 0x5a4   : > { %v3313_v16 = vsel %vm2395_vm11, %v3199_v56, 0.0  ;;  %v3645_v7 = vsub.f32 %v12728_v62, %v8312_v48  ;;  %v3707_v26 = vmul.f32 %v3643_v13, %v3643_v13  ;;  %v3787_v18 = vsel %vm2673_vm13, %v3705_v10, 0.0  ;;  %12772 = vst [vmem:[#allocation59_spill] sm:$0xff] %v8540_v23  ;;  %12774 = vst [vmem:[#allocation19_spill] sm:$0xff] %v8562_v31 }
 0x5a5   : > { %v3140_v63 = vsub.f32 %v8507_v57, %v7879_v59  ;;  %v3202_v54 = vmul.f32 %v3138_v32, %v3138_v32  ;;  %v3314_v0 = vadd.f32 %v3313_v16, %v3312_v19  ;;  %v3788_v60 = vadd.f32 %v3787_v18, %v3786_v24  ;;  %v8578_v24 = vld [vmem:[%s12465_s4 + $0x1f0] sm:$0xff] }
 0x5a6   : > { %v3315_v46 = vsel %vm2395_vm11, %v3200_v29, 0.0  ;;  %v3646_v53 = vsub.f32 %v12729_v17, %v8312_v48  ;;  %v3708_v62 = vmul.f32 %v3644_v34, %v3644_v34  ;;  %v3789_v40 = vsel %vm2673_vm13, %v3706_v43, 0.0  ;;  %12776 = vst [vmem:[#allocation21_spill] sm:$0xff] %v8578_v24 }
 0x5a7   : > { %v3141_v42 = vsub.f32 %v8518_v52, %v7879_v59  ;;  %v3203_v21 = vmul.f32 %v3139_v37, %v3139_v37  ;;  %v3316_v50 = vadd.f32 %v3315_v46, %v3314_v0  ;;  %v3790_v47 = vadd.f32 %v3789_v40, %v3788_v60 }
 0x5a8   : > { %v3317_v38 = vsel %vm2395_vm11, %v3201_v20, 0.0  ;;  %v3647_v8 = vsub.f32 %v12730_v6, %v8312_v48  ;;  %v3709_v17 = vmul.f32 %v3645_v7, %v3645_v7  ;;  %v3791_v12 = vsel %vm2673_vm13, %v3707_v26, 0.0 }
 0x5a9   : > { %v3142_v33 = vsub.f32 %v8529_v11, %v7879_v59  ;;  %v3204_v25 = vmul.f32 %v3140_v63, %v3140_v63  ;;  %v3318_v30 = vadd.f32 %v3317_v38, %v3316_v50  ;;  %v3792_v49 = vadd.f32 %v3791_v12, %v3790_v47  ;;  %v8602_v47 = vld [vmem:[%s12465_s4 + $0xf8] sm:$0xff] }
 0x5aa   : > { %v3319_v14 = vsel %vm2395_vm11, %v3202_v54, 0.0  ;;  %v3648_v4 = vsub.f32 %v12731_v55, %v8312_v48  ;;  %v3710_v6 = vmul.f32 %v3646_v53, %v3646_v53  ;;  %v3793_v3 = vsel %vm2673_vm13, %v3708_v62, 0.0  ;;  %v8586_v54 = vld [vmem:[%s12465_s4 + $0xf0] sm:$0xff]  ;;  %v8594_v53 = vld [vmem:[%s12465_s4 + $0x1f8] sm:$0xff]  ;;  %12779 = vst [vmem:[#allocation28_spill] sm:$0xff] %v8602_v47 }
 0x5ab   : > { %v3143_v35 = vsub.f32 %v8540_v23, %v7879_v59  ;;  %v3205_v44 = vmul.f32 %v3141_v42, %v3141_v42  ;;  %v3320_v1 = vadd.f32 %v3319_v14, %v3318_v30  ;;  %v3794_v51 = vadd.f32 %v3793_v3, %v3792_v49  ;;  %12777 = vst [vmem:[#allocation26_spill] sm:$0xff] %v8586_v54  ;;  %v8613_v14 = vld [vmem:[%s12465_s4 + $0x100] sm:$0xff] }
 0x5ac   : > { %v3321_v56 = vsel %vm2395_vm11, %v3203_v21, 0.0  ;;  %v3649_v45 = vsub.f32 %v12732_v27, %v8312_v48  ;;  %v3711_v55 = vmul.f32 %v3647_v8, %v3647_v8  ;;  %v3795_v58 = vsel %vm2673_vm13, %v3709_v17, 0.0  ;;  %12778 = vst [vmem:[#allocation27_spill] sm:$0xff] %v8594_v53  ;;  %12781 = vst [vmem:[#allocation29_spill] sm:$0xff] %v8613_v14 }
 0x5ad   : > { %v3144_v13 = vsub.f32 %v8551_v2, %v7879_v59  ;;  %v3206_v10 = vmul.f32 %v3142_v33, %v3142_v33  ;;  %v3322_v39 = vadd.f32 %v3321_v56, %v3320_v1  ;;  %v3796_v41 = vadd.f32 %v3795_v58, %v3794_v51  ;;  %v12782_v51 = vld [vmem:[#allocation25_spill] sm:$0xff] }
 0x5ae   : > { %v3323_v32 = vsel %vm2395_vm11, %v3204_v25, 0.0  ;;  %v3650_v29 = vsub.f32 %v12733_v15, %v8312_v48  ;;  %v3712_v27 = vmul.f32 %v3648_v4, %v3648_v4  ;;  %v3797_v36 = vsel %vm2673_vm13, %v3710_v6, 0.0  ;;  %v8570_v15 = vld [vmem:[%s12465_s4 + $0xe8] sm:$0xff] }
 0x5af   : > { %v3145_v28 = vsub.f32 %v8562_v31, %v7879_v59  ;;  %v3207_v34 = vmul.f32 %v3143_v35, %v3143_v35  ;;  %v3324_v43 = vadd.f32 %v3323_v32, %v3322_v39  ;;  %v3798_v5 = vadd.f32 %v3797_v36, %v3796_v41  ;;  %12775 = vst [vmem:[#allocation20_spill] sm:$0xff] %v8570_v15  ;;  %v8631_v32 = vld [vmem:[%s12465_s4 + $0xc8] sm:$0xff]  ;;  %v12786_v36 = vld [vmem:[#allocation22_spill] sm:$0xff] }
 0x5b0   : > { %v3325_v61 = vsel %vm2395_vm11, %v3205_v44, 0.0  ;;  %v3651_v37 = vsub.f32 %v8570_v15, %v8312_v48  ;;  %v3713_v20 = vmul.f32 %v3649_v45, %v3649_v45  ;;  %v3799_v19 = vsel %vm2673_vm13, %v3711_v55, 0.0  ;;  %v8623_v55 = vld [vmem:[%s12465_s4 + $0x108] sm:$0xff]  ;;  %12784 = vst [vmem:[#allocation31_spill] sm:$0xff] %v8631_v32 }
 0x5b1   : > { %v3146_v16 = vsub.f32 %v8578_v24, %v7879_v59  ;;  %v3208_v7 = vmul.f32 %v3144_v13, %v3144_v13  ;;  %v3326_v26 = vadd.f32 %v3325_v61, %v3324_v43  ;;  %v3800_v18 = vadd.f32 %v3799_v19, %v3798_v5  ;;  %12783 = vst [vmem:[#allocation30_spill] sm:$0xff] %v8623_v55  ;;  %v8641_v43 = vld [vmem:[%s12465_s4 + $0x110] sm:$0xff] }
 0x5b2   : > { %v3327_v63 = vsel %vm2395_vm11, %v3206_v10, 0.0  ;;  %v3652_v0 = vsub.f32 %v8586_v54, %v8312_v48  ;;  %v3714_v60 = vmul.f32 %v3650_v29, %v3650_v29  ;;  %v3801_v46 = vsel %vm2673_vm13, %v3712_v27, 0.0  ;;  %v12785_v29 = vld [vmem:[#allocation9_spill] sm:$0xff]  ;;  %12787 = vst [vmem:[#allocation32_spill] sm:$0xff] %v8641_v43 }
 0x5b3   : > { %v3147_v62 = vsub.f32 %v8594_v53, %v7879_v59  ;;  %v3209_v40 = vmul.f32 %v3145_v28, %v3145_v28  ;;  %v3328_v42 = vadd.f32 %v3327_v63, %v3326_v26  ;;  %v3802_v21 = vadd.f32 %v3801_v46, %v3800_v18  ;;  %v12780_v59 = vld [vmem:[#allocation23_spill] sm:$0xff]  ;;  %v8652_v18 = vld [vmem:[%s12465_s4 + $0x118] sm:$0xff] }
 0x5b4   : > { %v3329_v50 = vsel %vm2395_vm11, %v3207_v34, 0.0  ;;  %v3653_v38 = vsub.f32 %v8602_v47, %v8312_v48  ;;  %v3715_v8 = vmul.f32 %v3651_v37, %v3651_v37  ;;  %v3803_v17 = vsel %vm2673_vm13, %v3713_v20, 0.0  ;;  %12789 = vst [vmem:[#allocation33_spill] sm:$0xff] %v8652_v18 }
 0x5b5   : > { %v3210_v12 = vmul.f32 %v3146_v16, %v3146_v16  ;;  %v3330_v33 = vadd.f32 %v3329_v50, %v3328_v42  ;;  %v3804_v25 = vadd.f32 %v3803_v17, %v3802_v21  ;;  %v2989_v30 = vsel %vm2260_vm14, %v12780_v59, 0.0  ;;  %v8660_v42 = vld [vmem:[%s12465_s4 + $0x120] sm:$0xff] }
 0x5b6   : > { %v3331_v49 = vsel %vm2395_vm11, %v3208_v7, 0.0  ;;  %v3654_v4 = vsub.f32 %v8613_v14, %v8312_v48  ;;  %v3716_v6 = vmul.f32 %v3652_v0, %v3652_v0  ;;  %v3805_v3 = vsel %vm2673_vm13, %v3714_v60, 0.0  ;;  %v12788_v7 = vld [vmem:[#allocation24_spill] sm:$0xff]  ;;  %12790 = vst [vmem:[#allocation34_spill] sm:$0xff] %v8660_v42 }
 0x5b7   : > { %v3211_v35 = vmul.f32 %v3147_v62, %v3147_v62  ;;  %v3332_v44 = vadd.f32 %v3331_v49, %v3330_v33  ;;  %v3806_v1 = vadd.f32 %v3805_v3, %v3804_v25  ;;  %v2990_v56 = vadd.f32 %v2989_v30, %v12782_v51  ;;  %v8676_v30 = vld [vmem:[%s12465_s4 + $0x128] sm:$0xff] }
 0x5b8   : > { %v3333_v45 = vsel %vm2395_vm11, %v3209_v40, 0.0  ;;  %v3655_v58 = vsub.f32 %v8623_v55, %v8312_v48  ;;  %v3717_v13 = vmul.f32 %v3653_v38, %v3653_v38  ;;  %v3807_v10 = vsel %vm2673_vm13, %v3715_v8, 0.0  ;;  %v8668_v8 = vld [vmem:[%s12465_s4 + $0xd0] sm:$0xff]  ;;  %12792 = vst [vmem:[#allocation36_spill] sm:$0xff] %v8676_v30 }
 0x5b9   : > { %v3334_v39 = vadd.f32 %v3333_v45, %v3332_v44  ;;  %v3808_v41 = vadd.f32 %v3807_v10, %v3806_v1  ;;  %v2843_v27 = vsub.f32 %v8631_v32, %v12785_v29  ;;  %v2906_v28 = vmul.f32 %v12786_v36, %v12786_v36  ;;  %12791 = vst [vmem:[#allocation35_spill] sm:$0xff] %v8668_v8  ;;  %v8684_v1 = vld [vmem:[%s12465_s4 + $0x130] sm:$0xff]  ;;  %v8700_v36 = vld [vmem:[%s12465_s4 + $0x138] sm:$0xff] }
 0x5ba   : > { %v3335_v34 = vsel %vm2395_vm11, %v3210_v12, 0.0  ;;  %v3656_v5 = vsub.f32 %v8641_v43, %v8312_v48  ;;  %v3718_v61 = vmul.f32 %v3654_v4, %v3654_v4  ;;  %v3809_v37 = vsel %vm2673_vm13, %v3716_v6, 0.0  ;;  %12793 = vst [vmem:[#allocation37_spill] sm:$0xff] %v8684_v1  ;;  %12795 = vst [vmem:[#allocation39_spill] sm:$0xff] %v8700_v36 }
 0x5bb   : > { %v3336_v20 = vadd.f32 %v3335_v34, %v3334_v39  ;;  %v3337_v19 = vsel %vm2395_vm11, %v3211_v35, 0.0  ;;  %v3810_v16 = vadd.f32 %v3809_v37, %v3808_v41  ;;  %v2991_v26 = vsel %vm2260_vm14, %v12788_v7, 0.0 }
 0x5bc   : > { %v3657_v63 = vsub.f32 %v8652_v18, %v8312_v48  ;;  %v3719_v0 = vmul.f32 %v3655_v58, %v3655_v58  ;;  %v3811_v60 = vsel %vm2673_vm13, %v3717_v13, 0.0  ;;  %v2992_v46 = vadd.f32 %v2991_v26, %v2990_v56  ;;  %v8692_v58 = vld [vmem:[%s12465_s4 + $0xd8] sm:$0xff] }
 0x5bd   : > { %v3338_v62 = vadd.f32 %v3337_v19, %v3336_v20  ;;  %v3812_v40 = vadd.f32 %v3811_v60, %v3810_v16  ;;  %v3658_v21 = vsub.f32 %v8660_v42, %v8312_v48  ;;  %v3720_v50 = vmul.f32 %v3656_v5, %v3656_v5  ;;  %12794 = vst [vmem:[#allocation38_spill] sm:$0xff] %v8692_v58  ;;  %v8708_v19 = vld [vmem:[%s12465_s4 + $0x140] sm:$0xff] }
 0x5be   : > { %v3813_v38 = vsel %vm2673_vm13, %v3718_v61, 0.0  ;;  %v2844_v17 = vsub.f32 %v8668_v8, %v12785_v29  ;;  %v2907_v25 = vmul.f32 %v2843_v27, %v2843_v27  ;;  %v2993_v59 = vsel %vm2260_vm14, %v2906_v28, 0.0  ;;  %12796 = vst [vmem:[#allocation40_spill] sm:$0xff] %v8708_v19 }
 0x5bf   : > { %v3339_v12 = vrot.slane %v3338_v62, 4  ;;  %v3814_v33 = vadd.f32 %v3813_v38, %v3812_v40  ;;  %v3659_v49 = vsub.f32 %v8676_v30, %v8312_v48  ;;  %v3721_v4 = vmul.f32 %v3657_v63, %v3657_v63  ;;  %v8716_v63 = vld [vmem:[%s12465_s4 + $0xe0] sm:$0xff] }
 0x5c0   : > { %v3815_v6 = vsel %vm2673_vm13, %v3719_v0, 0.0  ;;  %v2994_v3 = vadd.f32 %v2993_v59, %v2992_v46  ;;  %v3660_v51 = vsub.f32 %v8684_v1, %v8312_v48  ;;  %v3722_v56 = vmul.f32 %v3658_v21, %v3658_v21  ;;  %12797 = vst [vmem:[#allocation41_spill] sm:$0xff] %v8716_v63  ;;  %v8724_v21 = vld [vmem:[%s12465_s4 + $0x148] sm:$0xff]  ;;  %v8732_v59 = vld [vmem:[%s12465_s4 + $0x150] sm:$0xff] }
 0x5c1   : > { %v3340_v35 = vadd.f32 %v3339_v12, %v3338_v62  ;;  %v3816_v44 = vadd.f32 %v3815_v6, %v3814_v33  ;;  %v3817_v45 = vsel %vm2673_vm13, %v3720_v50, 0.0  ;;  %v2845_v13 = vsub.f32 %v8692_v58, %v12785_v29  ;;  %12798 = vst [vmem:[#allocation10_spill] sm:$0xff] %v8724_v21  ;;  %12799 = vst [vmem:[#allocation11_spill] sm:$0xff] %v8732_v59 }
 0x5c2   : > { %v2908_v41 = vmul.f32 %v2844_v17, %v2844_v17  ;;  %v2995_v27 = vsel %vm2260_vm14, %v2907_v25, 0.0  ;;  %v3661_v28 = vsub.f32 %v8700_v36, %v8312_v48  ;;  %v3723_v34 = vmul.f32 %v3659_v49, %v3659_v49 }
 0x5c3   : > { %v3341_v10 = vrot.slane %v3340_v35, 2  ;;  %v3818_v39 = vadd.f32 %v3817_v45, %v3816_v44  ;;  %v3819_v5 = vsel %vm2673_vm13, %v3721_v4, 0.0  ;;  %v2996_v61 = vadd.f32 %v2995_v27, %v2994_v3  ;;  %v8752_v27 = vld [vmem:[%s12465_s4 + $0x160] sm:$0xff] }
 0x5c4   : > { %v3662_v16 = vsub.f32 %v8708_v19, %v8312_v48  ;;  %v3724_v7 = vmul.f32 %v3660_v51, %v3660_v51  ;;  %v3821_v26 = vsel %vm2673_vm13, %v3722_v56, 0.0  ;;  %v2846_v0 = vsub.f32 %v8716_v63, %v12785_v29  ;;  %v8744_v56 = vld [vmem:[%s12465_s4 + $0x158] sm:$0xff]  ;;  %12801 = vst [vmem:[#allocation43_spill] sm:$0xff] %v8752_v27 }
 0x5c5   : > { %v3342_v37 = vadd.f32 %v3341_v10, %v3340_v35  ;;  %v3820_v20 = vadd.f32 %v3819_v5, %v3818_v39  ;;  %v2909_v62 = vmul.f32 %v2845_v13, %v2845_v13  ;;  %v2997_v40 = vsel %vm2260_vm14, %v2908_v41, 0.0  ;;  %12800 = vst [vmem:[#allocation42_spill] sm:$0xff] %v8744_v56 }
 0x5c6   : > { %v3663_v50 = vsub.f32 %v8724_v21, %v8312_v48  ;;  %v3725_v38 = vmul.f32 %v3661_v28, %v3661_v28  ;;  %v3823_v17 = vsel %vm2673_vm13, %v3723_v34, 0.0  ;;  %v2998_v12 = vadd.f32 %v2997_v40, %v2996_v61  ;;  %v8771_v40 = vld [vmem:[%s12465_s4 + $0x170] sm:$0xff] }
 0x5c7   : > { %v3343_v60 = vrot.slane %v3342_v37, 1  ;;  %v3822_v46 = vadd.f32 %v3821_v26, %v3820_v20  ;;  %v3664_v49 = vsub.f32 %v8732_v59, %v8312_v48  ;;  %v3726_v4 = vmul.f32 %v3662_v16, %v3662_v16  ;;  %12803 = vst [vmem:[#allocation12_spill] sm:$0xff] %v8771_v40 }
 0x5c8   : > { %v3825_v6 = vsel %vm2673_vm13, %v3724_v7, 0.0  ;;  %v2847_v35 = vsub.f32 %v8570_v15, %v12785_v29  ;;  %v2910_v44 = vmul.f32 %v2846_v0, %v2846_v0  ;;  %v2999_v51 = vsel %vm2260_vm14, %v2909_v62, 0.0  ;;  %v8763_v7 = vld [vmem:[%s12465_s4 + $0x168] sm:$0xff] }
 0x5c9   : > { %v3344_v33 = vadd.f32 %v3343_v60, %v3342_v37  ;;  %v3824_v25 = vadd.f32 %v3823_v17, %v3822_v46  ;;  %v3665_v45 = vsub.f32 %v8744_v56, %v8312_v48  ;;  %v3727_v13 = vmul.f32 %v3663_v50, %v3663_v50  ;;  %12802 = vst [vmem:[#allocation44_spill] sm:$0xff] %v8763_v7 }
 0x5ca   : > { %v3827_v10 = vsel %vm2673_vm13, %v3725_v38, 0.0  ;;  %v3000_v39 = vadd.f32 %v2999_v51, %v2998_v12  ;;  %v3666_v28 = vsub.f32 %v8752_v27, %v8312_v48  ;;  %v3728_v34 = vmul.f32 %v3664_v49, %v3664_v49 }
 0x5cb   : > { %3346 = vrot.lane.b32.xlu0 %v3344_v33, %s5509_s5  ;;  %v3826_v3 = vadd.f32 %v3825_v6, %v3824_v25  ;;  %v3829_v5 = vsel %vm2673_vm13, %v3726_v4, 0.0  ;;  %v2848_v37 = vsub.f32 %v8586_v54, %v12785_v29  ;;  %v2911_v20 = vmul.f32 %v2847_v35, %v2847_v35  ;;  %v8782_v4 = vld [vmem:[%s12465_s4 + $0x178] sm:$0xff] }
 0x5cc   : > { %v3001_v16 = vsel %vm2260_vm14, %v2910_v44, 0.0  ;;  %v3667_v26 = vsub.f32 %v8763_v7, %v8312_v48  ;;  %v3729_v0 = vmul.f32 %v3665_v45, %v3665_v45  ;;  %v3831_v60 = vsel %vm2673_vm13, %v3727_v13, 0.0  ;;  %12804 = vst [vmem:[#allocation45_spill] sm:$0xff] %v8782_v4  ;;  %v8790_v45 = vld [vmem:[%s12465_s4 + $0x180] sm:$0xff] }
 0x5cd   : > { %v3828_v41 = vadd.f32 %v3827_v10, %v3826_v3  ;;  %v3002_v46 = vadd.f32 %v3001_v16, %v3000_v39  ;;  %v3668_v50 = vsub.f32 %v8771_v40, %v8312_v48  ;;  %v3730_v38 = vmul.f32 %v3666_v28, %v3666_v28  ;;  %12805 = vst [vmem:[#allocation13_spill] sm:$0xff] %v8790_v45 }
 0x5ce   : > { %v3833_v17 = vsel %vm2673_vm13, %v3728_v34, 0.0  ;;  %v2849_v33 = vsub.f32 %v8602_v47, %v12785_v29  ;;  %v2912_v25 = vmul.f32 %v2848_v37, %v2848_v37  ;;  %v3003_v49 = vsel %vm2260_vm14, %v2911_v20, 0.0 }
 0x5cf   : > { %v3830_v61 = vadd.f32 %v3829_v5, %v3828_v41  ;;  %v3669_v6 = vsub.f32 %v8782_v4, %v8312_v48  ;;  %v3731_v3 = vmul.f32 %v3667_v26, %v3667_v26  ;;  %v3835_v35 = vsel %vm2673_vm13, %v3729_v0, 0.0 }
 0x5d0   : > { %v3004_v44 = vadd.f32 %v3003_v49, %v3002_v46  ;;  %v3670_v13 = vsub.f32 %v8790_v45, %v8312_v48  ;;  %v3732_v10 = vmul.f32 %v3668_v50, %v3668_v50  ;;  %v3837_v39 = vsel %vm2673_vm13, %v3730_v38, 0.0 }
 0x5d1   : > { %v3832_v62 = vadd.f32 %v3831_v60, %v3830_v61  ;;  %v2850_v28 = vsub.f32 %v8613_v14, %v12785_v29  ;;  %v2913_v34 = vmul.f32 %v2849_v33, %v2849_v33  ;;  %v3005_v5 = vsel %vm2260_vm14, %v2912_v25, 0.0  ;;  %v8801_v61 = vld [vmem:[%s12465_s4 + $0x188] sm:$0xff]  ;;  %v8809_v60 = vld [vmem:[%s12465_s4 + $0x190] sm:$0xff]  ;;  %v8820_v25 = vld [vmem:[%s12465_s4 + $0x198] sm:$0xff] }
 0x5d2   : > { %12806 = vst [vmem:[#allocation46_spill] sm:$0xff] %v8801_v61  ;;  %v3671_v37 = vsub.f32 %v8801_v61, %v8312_v48  ;;  %v3733_v20 = vmul.f32 %v3669_v6, %v3669_v6  ;;  %v3839_v16 = vsel %vm2673_vm13, %v3731_v3, 0.0  ;;  %v3006_v26 = vadd.f32 %v3005_v5, %v3004_v44  ;;  %12807 = vst [vmem:[#allocation47_spill] sm:$0xff] %v8809_v60 }
 0x5d3   : > { %v3834_v12 = vadd.f32 %v3833_v17, %v3832_v62  ;;  %v3672_v46 = vsub.f32 %v8809_v60, %v8312_v48  ;;  %v3734_v62 = vmul.f32 %v3670_v13, %v3670_v13  ;;  %v3841_v50 = vsel %vm2673_vm13, %v3732_v10, 0.0  ;;  %12808 = vst [vmem:[#allocation14_spill] sm:$0xff] %v8820_v25 }
 0x5d4   : > { %v2851_v17 = vsub.f32 %v8623_v55, %v12785_v29  ;;  %v3007_v33 = vsel %vm2260_vm14, %v2913_v34, 0.0  ;;  %v3673_v49 = vsub.f32 %v8820_v25, %v8312_v48  ;;  %v3735_v6 = vmul.f32 %v3671_v37, %v3671_v37  ;;  %v8839_v37 = vld [vmem:[%s12465_s4 + $0x1a8] sm:$0xff] }
 0x5d5   : > { %v3836_v51 = vadd.f32 %v3835_v35, %v3834_v12  ;;  %v2914_v12 = vmul.f32 %v2850_v28, %v2850_v28  ;;  %v3843_v3 = vsel %vm2673_vm13, %v3733_v20, 0.0  ;;  %v3008_v35 = vadd.f32 %v3007_v33, %v3006_v26  ;;  %12810 = vst [vmem:[#allocation48_spill] sm:$0xff] %v8839_v37 }
 0x5d6   : > { %v3736_v10 = vmul.f32 %v3672_v46, %v3672_v46  ;;  %v2852_v28 = vsub.f32 %v8641_v43, %v12785_v29  ;;  %v2915_v34 = vmul.f32 %v2851_v17, %v2851_v17  ;;  %v3675_v20 = vsub.f32 %v8839_v37, %v8312_v48 }
 0x5d7   : > { %v3838_v41 = vadd.f32 %v3837_v39, %v3836_v51  ;;  %v8828_v51 = vld [vmem:[%s12465_s4 + $0x1a0] sm:$0xff]  ;;  %v3845_v39 = vsel %vm2673_vm13, %v3734_v62, 0.0  ;;  %v3009_v5 = vsel %vm2260_vm14, %v2914_v12, 0.0  ;;  %v3847_v26 = vsel %vm2673_vm13, %v3735_v6, 0.0  ;;  %v8847_v62 = vld [vmem:[%s12465_s4 + $0x1b0] sm:$0xff] }
 0x5d8   : > { %12809 = vst [vmem:[#allocation15_spill] sm:$0xff] %v8828_v51  ;;  %v3674_v13 = vsub.f32 %v8828_v51, %v8312_v48  ;;  %12811 = vst [vmem:[#allocation49_spill] sm:$0xff] %v8847_v62  ;;  %v3849_v17 = vsel %vm2673_vm13, %v3736_v10, 0.0  ;;  %v2853_v33 = vsub.f32 %v8652_v18, %v12785_v29  ;;  %v3011_v6 = vsel %vm2260_vm14, %v2915_v34, 0.0 }
 0x5d9   : > { %v3840_v0 = vadd.f32 %v3839_v16, %v3838_v41  ;;  %v3737_v16 = vmul.f32 %v3673_v49, %v3673_v49  ;;  %v2916_v49 = vmul.f32 %v2852_v28, %v2852_v28 }
 0x5db   : > { %v3842_v38 = vadd.f32 %v3841_v50, %v3840_v0  ;;  %v3010_v0 = vadd.f32 %v3009_v5, %v3008_v35  ;;  %v3676_v50 = vsub.f32 %v8847_v62, %v8312_v48 }
 0x5dd   : > { %v3844_v44 = vadd.f32 %v3843_v3, %v3842_v38  ;;  %v3738_v38 = vmul.f32 %v3674_v13, %v3674_v13  ;;  %v8858_v3 = vld [vmem:[%s12465_s4 + $0x1b8] sm:$0xff]  ;;  %v3851_v13 = vsel %vm2673_vm13, %v3737_v16, 0.0  ;;  %v3740_v5 = vmul.f32 %v3676_v50, %v3676_v50 }
 0x5de   : > { %12812 = vst [vmem:[#allocation50_spill] sm:$0xff] %v8858_v3  ;;  %v3677_v35 = vsub.f32 %v8858_v3, %v8312_v48  ;;  %v3680_v50 = vsub.f32 %v8529_v11, %v8312_v48 }
 0x5df   : > { %v3846_v41 = vadd.f32 %v3845_v39, %v3844_v44  ;;  %v3739_v44 = vmul.f32 %v3675_v20, %v3675_v20  ;;  %v3012_v39 = vadd.f32 %v3011_v6, %v3010_v0  ;;  %v3853_v28 = vsel %vm2673_vm13, %v3738_v38, 0.0 }
 0x5e0   : > { %v3679_v20 = vsub.f32 %v8518_v52, %v8312_v48  ;;  %v3741_v18 = vmul.f32 %v3677_v35, %v3677_v35  ;;  %v3857_v38 = vsel %vm2673_vm13, %v3740_v5, 0.0  ;;  %v3681_v35 = vsub.f32 %v8540_v23, %v8312_v48 }
 0x5e1   : > { %v3848_v46 = vadd.f32 %v3847_v26, %v3846_v41  ;;  %v3678_v41 = vsub.f32 %v8507_v57, %v8312_v48  ;;  %v2854_v26 = vsub.f32 %v8660_v42, %v12785_v29  ;;  %v3855_v16 = vsel %vm2673_vm13, %v3739_v44, 0.0 }
 0x5e2   : > { %v3859_v44 = vsel %vm2673_vm13, %v3741_v18, 0.0 }
 0x5e3   : > { %v3850_v12 = vadd.f32 %v3849_v17, %v3848_v46  ;;  %v2917_v46 = vmul.f32 %v2853_v33, %v2853_v33  ;;  %v3013_v17 = vsel %vm2260_vm14, %v2916_v49, 0.0  ;;  %v3742_v6 = vmul.f32 %v3678_v41, %v3678_v41 }
 0x5e4   : > { %v3014_v0 = vadd.f32 %v3013_v17, %v3012_v39  ;;  %v2855_v33 = vsub.f32 %v8676_v30, %v12785_v29  ;;  %v3682_v41 = vsub.f32 %v8551_v2, %v8312_v48  ;;  %v3744_v17 = vmul.f32 %v3680_v50, %v3680_v50 }
 0x5e5   : > { %v3852_v10 = vadd.f32 %v3851_v13, %v3850_v12  ;;  %v3015_v49 = vsel %vm2260_vm14, %v2917_v46, 0.0  ;;  %v3861_v5 = vsel %vm2673_vm13, %v3742_v6, 0.0  ;;  %v3684_v50 = vsub.f32 %v8578_v24, %v8312_v48 }
 0x5e6   : > { %v3016_v39 = vadd.f32 %v3015_v49, %v3014_v0  ;;  %v3746_v49 = vmul.f32 %v3682_v41, %v3682_v41  ;;  %v3865_v6 = vsel %vm2673_vm13, %v3744_v17, 0.0  ;;  %v2858_v17 = vsub.f32 %v8708_v19, %v12785_v29 }
 0x5e7   : > { %v3854_v34 = vadd.f32 %v3853_v28, %v3852_v10  ;;  %v2918_v10 = vmul.f32 %v2854_v26, %v2854_v26  ;;  %v3743_v28 = vmul.f32 %v3679_v20, %v3679_v20  ;;  %v2856_v26 = vsub.f32 %v8684_v1, %v12785_v29 }
 0x5e8   : > { %v3683_v20 = vsub.f32 %v8562_v31, %v8312_v48  ;;  %v3869_v41 = vsel %vm2673_vm13, %v3746_v49, 0.0 }
 0x5e9   : > { %v3856_v12 = vadd.f32 %v3855_v16, %v3854_v34  ;;  %v3017_v46 = vsel %vm2260_vm14, %v2918_v10, 0.0  ;;  %v3863_v18 = vsel %vm2673_vm13, %v3743_v28, 0.0 }
 0x5ea   : > { %v3018_v0 = vadd.f32 %v3017_v46, %v3016_v39  ;;  %v3748_v46 = vmul.f32 %v3684_v50, %v3684_v50  ;;  %v2922_v50 = vmul.f32 %v2858_v17, %v2858_v17 }
 0x5eb   : > { %v3858_v13 = vadd.f32 %v3857_v38, %v3856_v12  ;;  %v2919_v12 = vmul.f32 %v2855_v33, %v2855_v33  ;;  %v3745_v38 = vmul.f32 %v3681_v35, %v3681_v35  ;;  %v2857_v33 = vsub.f32 %v8700_v36, %v12785_v29 }
 0x5ec   : > { %v3685_v35 = vsub.f32 %v8594_v53, %v8312_v48 }
 0x5ed   : > { %v3860_v34 = vadd.f32 %v3859_v44, %v3858_v13  ;;  %v3019_v10 = vsel %vm2260_vm14, %v2919_v12, 0.0  ;;  %v3867_v28 = vsel %vm2673_vm13, %v3745_v38, 0.0 }
 0x5ee   : > { %v3020_v39 = vadd.f32 %v3019_v10, %v3018_v0  ;;  %v2859_v0 = vsub.f32 %v8724_v21, %v12785_v29 }
 0x5ef   : > { %v3862_v16 = vadd.f32 %v3861_v5, %v3860_v34  ;;  %v2920_v34 = vmul.f32 %v2856_v26, %v2856_v26  ;;  %v3747_v5 = vmul.f32 %v3683_v20, %v3683_v20  ;;  %v3873_v20 = vsel %vm2673_vm13, %v3748_v46, 0.0 }
 0x5f1   : > { %v3864_v13 = vadd.f32 %v3863_v18, %v3862_v16  ;;  %v3021_v26 = vsel %vm2260_vm14, %v2920_v34, 0.0  ;;  %v3871_v12 = vsel %vm2673_vm13, %v3747_v5, 0.0  ;;  %v2860_v34 = vsub.f32 %v8732_v59, %v12785_v29 }
 0x5f2   : > { %v3022_v36 = vadd.f32 %v3021_v26, %v3020_v39  ;;  %v3025_v5 = vsel %vm2260_vm14, %v2922_v50, 0.0 }
 0x5f3   : > { %v3866_v44 = vadd.f32 %v3865_v6, %v3864_v13  ;;  %v2921_v13 = vmul.f32 %v2857_v33, %v2857_v33  ;;  %v3749_v6 = vmul.f32 %v3685_v35, %v3685_v35  ;;  %v2923_v35 = vmul.f32 %v2859_v0, %v2859_v0 }
 0x5f4   : > { %v2863_v0 = vsub.f32 %v8763_v7, %v12785_v29 }
 0x5f5   : > { %v3868_v16 = vadd.f32 %v3867_v28, %v3866_v44  ;;  %v3023_v49 = vsel %vm2260_vm14, %v2921_v13, 0.0  ;;  %v3875_v44 = vsel %vm2673_vm13, %v3749_v6, 0.0  ;;  %v3027_v17 = vsel %vm2260_vm14, %v2923_v35, 0.0 }
 0x5f6   : > { %v3024_v10 = vadd.f32 %v3023_v49, %v3022_v36  ;;  %v2862_v6 = vsub.f32 %v8752_v27, %v12785_v29  ;;  %v2865_v35 = vsub.f32 %v8782_v4, %v12785_v29 }
 0x5f7   : > { %v3870_v18 = vadd.f32 %v3869_v41, %v3868_v16  ;;  %v2861_v41 = vsub.f32 %v8744_v56, %v12785_v29 }
 0x5f8   : > { %v3026_v39 = vadd.f32 %v3025_v5, %v3024_v10  ;;  %v2926_v50 = vmul.f32 %v2862_v6, %v2862_v6  ;;  %v2864_v10 = vsub.f32 %v8771_v40, %v12785_v29 }
 0x5f9   : > { %v3872_v48 = vadd.f32 %v3871_v12, %v3870_v18  ;;  %v2924_v18 = vmul.f32 %v2860_v34, %v2860_v34  ;;  %v2925_v12 = vmul.f32 %v2861_v41, %v2861_v41  ;;  %v2929_v41 = vmul.f32 %v2865_v35, %v2865_v35 }
 0x5fa   : > { %v3028_v13 = vadd.f32 %v3027_v17, %v3026_v39  ;;  %v2928_v5 = vmul.f32 %v2864_v10, %v2864_v10  ;;  %v2870_v10 = vsub.f32 %v8828_v51, %v12785_v29  ;;  %v2871_v35 = vsub.f32 %v8839_v37, %v12785_v29 }
 0x5fb   : > { %v3874_v38 = vadd.f32 %v3873_v20, %v3872_v48  ;;  %v3029_v48 = vsel %vm2260_vm14, %v2924_v18, 0.0  ;;  %v3031_v49 = vsel %vm2260_vm14, %v2925_v12, 0.0  ;;  %v2868_v12 = vsub.f32 %v8809_v60, %v12785_v29 }
 0x5fc   : > { %v3030_v20 = vadd.f32 %v3029_v48, %v3028_v13  ;;  %v3037_v18 = vsel %vm2260_vm14, %v2928_v5, 0.0  ;;  %v2867_v13 = vsub.f32 %v8801_v61, %v12785_v29  ;;  %v2934_v5 = vmul.f32 %v2870_v10, %v2870_v10 }
 0x5fd   : > { %v3876_v33 = vadd.f32 %v3875_v44, %v3874_v38  ;;  %v2876_v10 = vsub.f32 %v8529_v11, %v12785_v29 }
 0x5fe   : > { %v3032_v44 = vadd.f32 %v3031_v49, %v3030_v20  ;;  %v2931_v48 = vmul.f32 %v2867_v13, %v2867_v13  ;;  %v2873_v13 = vsub.f32 %v8858_v3, %v12785_v29 }
 0x5ff   : > { %v3877_v28 = vrot.slane %v3876_v33, 4 }
 0x600   : > { %v3043_v49 = vsel %vm2260_vm14, %v2931_v48, 0.0  ;;  %v2937_v48 = vmul.f32 %v2873_v13, %v2873_v13  ;;  %v2879_v13 = vsub.f32 %v8562_v31, %v12785_v29 }
 0x601   : > { %v3878_v16 = vadd.f32 %v3877_v28, %v3876_v33  ;;  %v2927_v33 = vmul.f32 %v2863_v0, %v2863_v0  ;;  %v3033_v28 = vsel %vm2260_vm14, %v2926_v50, 0.0  ;;  %v2869_v0 = vsub.f32 %v8820_v25, %v12785_v29 }
 0x602   : > { %v3034_v34 = vadd.f32 %v3033_v28, %v3032_v44  ;;  %v2932_v50 = vmul.f32 %v2868_v12, %v2868_v12  ;;  %v2874_v12 = vsub.f32 %v8507_v57, %v12785_v29 }
 0x603   : > { %v3879_v46 = vrot.slane %v3878_v16, 2  ;;  %v3035_v39 = vsel %vm2260_vm14, %v2927_v33, 0.0  ;;  %v2933_v33 = vmul.f32 %v2869_v0, %v2869_v0  ;;  %v2875_v0 = vsub.f32 %v8518_v52, %v12785_v29 }
 0x604   : > { %v3045_v28 = vsel %vm2260_vm14, %v2932_v50, 0.0  ;;  %v2938_v50 = vmul.f32 %v2874_v12, %v2874_v12  ;;  %v2880_v12 = vsub.f32 %v8578_v24, %v12785_v29 }
 0x605   : > { %v3880_v26 = vadd.f32 %v3879_v46, %v3878_v16  ;;  %v3036_v16 = vadd.f32 %v3035_v39, %v3034_v34  ;;  %v2866_v46 = vsub.f32 %v8790_v45, %v12785_v29  ;;  %v3047_v39 = vsel %vm2260_vm14, %v2933_v33, 0.0 }
 0x606   : > { %v2939_v33 = vmul.f32 %v2875_v0, %v2875_v0  ;;  %v2881_v0 = vsub.f32 %v8594_v53, %v12785_v29 }
 0x607   : > { %v3881_v36 = vrot.slane %v3880_v26, 1  ;;  %v3038_v17 = vadd.f32 %v3037_v18, %v3036_v16  ;;  %v3049_v18 = vsel %vm2260_vm14, %v2934_v5, 0.0  ;;  %v2940_v5 = vmul.f32 %v2876_v10, %v2876_v10 }
 0x608   : > { %v2945_v10 = vmul.f32 %v2881_v0, %v2881_v0 }
 0x609   : > { %v3882_v38 = vadd.f32 %v3881_v36, %v3880_v26  ;;  %v2930_v26 = vmul.f32 %v2866_v46, %v2866_v46  ;;  %v3039_v36 = vsel %vm2260_vm14, %v2929_v41, 0.0  ;;  %v2872_v46 = vsub.f32 %v8847_v62, %v12785_v29 }
 0x60a   : > { %v3040_v6 = vadd.f32 %v3039_v36, %v3038_v17  ;;  %v2935_v41 = vmul.f32 %v2871_v35, %v2871_v35  ;;  %v2877_v35 = vsub.f32 %v8540_v23, %v12785_v29 }
 0x60b   : > { %3884 = vrot.lane.b32.xlu0 %v3882_v38, %s5511_s7  ;;  %v3041_v20 = vsel %vm2260_vm14, %v2930_v26, 0.0  ;;  %v2936_v26 = vmul.f32 %v2872_v46, %v2872_v46  ;;  %v2878_v46 = vsub.f32 %v8551_v2, %v12785_v29  ;;  %v3616_v29 = vpop.permute.xlu1 %3615 }
 0x60c   : > { %v3042_v38 = vadd.f32 %v3041_v20, %v3040_v6  ;;  %v3051_v36 = vsel %vm2260_vm14, %v2935_v41, 0.0  ;;  %v2941_v41 = vmul.f32 %v2877_v35, %v2877_v35 }
 0x60d   : > { %v3053_v20 = vsel %vm2260_vm14, %v2936_v26, 0.0  ;;  %v2942_v26 = vmul.f32 %v2878_v46, %v2878_v46 }
 0x60e   : > { %v3044_v44 = vadd.f32 %v3043_v49, %v3042_v38  ;;  %v3055_v49 = vsel %vm2260_vm14, %v2937_v48, 0.0  ;;  %v2943_v48 = vmul.f32 %v2879_v13, %v2879_v13 }
 0x610   : > { %v3046_v34 = vadd.f32 %v3045_v28, %v3044_v44  ;;  %v3057_v28 = vsel %vm2260_vm14, %v2938_v50, 0.0  ;;  %v2944_v50 = vmul.f32 %v2880_v12, %v2880_v12 }
 0x612   : > { %v3048_v16 = vadd.f32 %v3047_v39, %v3046_v34  ;;  %v3059_v39 = vsel %vm2260_vm14, %v2939_v33, 0.0  ;;  %v3069_v33 = vsel %vm2260_vm14, %v2944_v50, 0.0  ;;  %v3893_v50 = vld [vmem:[%s12464_s3] sm:$0x1] }
 0x614   : > { %v3050_v17 = vadd.f32 %v3049_v18, %v3048_v16  ;;  %v3061_v18 = vsel %vm2260_vm14, %v2940_v5, 0.0 }
 0x616   : > { %v3052_v6 = vadd.f32 %v3051_v36, %v3050_v17  ;;  %v3063_v36 = vsel %vm2260_vm14, %v2941_v41, 0.0 }
 0x618   : > { %v3054_v38 = vadd.f32 %v3053_v20, %v3052_v6  ;;  %v3065_v20 = vsel %vm2260_vm14, %v2942_v26, 0.0 }
 0x61a   : > { %v3056_v44 = vadd.f32 %v3055_v49, %v3054_v38  ;;  %v3067_v49 = vsel %vm2260_vm14, %v2943_v48, 0.0 }
 0x61c   : > { %v3058_v34 = vadd.f32 %v3057_v28, %v3056_v44 }
 0x61e   : > { %v3060_v16 = vadd.f32 %v3059_v39, %v3058_v34  ;;  %v3071_v34 = vsel %vm2260_vm14, %v2945_v10, 0.0  ;;  %v12814_v10 = vld [vmem:[#allocation8_spill] sm:$0xff] }
 0x620   : > { %v3062_v17 = vadd.f32 %v3061_v18, %v3060_v16 }
 0x622   : > { %v3064_v6 = vadd.f32 %v3063_v36, %v3062_v17 }
 0x624   : > { %v3066_v38 = vadd.f32 %v3065_v20, %v3064_v6  ;;  %v3891_v20 = vld [vmem:[%s12463_s2] sm:$0x1] }
 0x626   : > { %v3068_v44 = vadd.f32 %v3067_v49, %v3066_v38  ;;  %v12813_v49 = vld [vmem:[#allocation7_spill] sm:$0xff] }
 0x628   : > { %v3070_v28 = vadd.f32 %v3069_v33, %v3068_v44 }
 0x62a   : > { %v3072_v35 = vadd.f32 %v3071_v34, %v3070_v28  ;;  %v8995_v34 = vld [vmem:[%s12465_s4] sm:$0xff] }
 0x62b   : > { %12815 = vst [vmem:[#allocation51_spill] sm:$0xff] %v8995_v34 }
 0x62c   : > { %v3073_v5 = vrot.slane %v3072_v35, 4 }
 0x62e   : > { %v3074_v39 = vadd.f32 %v3073_v5, %v3072_v35  ;;  %v9004_v5 = vld [vmem:[%s12465_s4 + $0x8] sm:$0xff] }
 0x62f   : > { %12816 = vst [vmem:[#allocation52_spill] sm:$0xff] %v9004_v5 }
 0x630   : > { %v3075_v16 = vrot.slane %v3074_v39, 2 }
 0x632   : > { %v3076_v46 = vadd.f32 %v3075_v16, %v3074_v39  ;;  %v9013_v16 = vld [vmem:[%s12465_s4 + $0x10] sm:$0xff] }
 0x633   : > { %12817 = vst [vmem:[#allocation54_spill] sm:$0xff] %v9013_v16 }
 0x634   : > { %v3077_v41 = vrot.slane %v3076_v46, 1 }
 0x636   : > { %v3078_v17 = vadd.f32 %v3077_v41, %v3076_v46  ;;  %v9022_v41 = vld [vmem:[%s12465_s4 + $0x18] sm:$0xff] }
 0x637   : > { %12818 = vst [vmem:[#allocation56_spill] sm:$0xff] %v9022_v41 }
 0x63d   : > { %v3347_v18 = vpop.permute.xlu0 %3346 }
 0x63e   : > { %v3349_v13 = vadd.f32 %v3347_v18, %v3078_v17  ;;  %v9031_v17 = vld [vmem:[%s12465_s4 + $0x20] sm:$0xff] }
 0x63f   : > { %12819 = vst [vmem:[#allocation58_spill] sm:$0xff] %v9031_v17 }
 0x640   : > { %v3618_v26 = vadd.f32 %v3616_v29, %v3349_v13  ;;  %v9040_v29 = vld [vmem:[%s12465_s4 + $0x28] sm:$0xff] }
 0x641   : > { %12820 = vst [vmem:[#allocation60_spill] sm:$0xff] %v9040_v29 }
 0x67d   : > { %v3885_v36 = vpop.permute.xlu0 %3884 }
 0x67e   : > { %v3887_v6 = vadd.f32 %v3885_v36, %v3618_v26 }
 0x680   : > { %v3888_v12 = vmul.f32 0.00048828125, %v3887_v6  ;;  %v9052_v6 = vld [vmem:[%s12465_s4 + $0x30] sm:$0xff] }
 0x681   : > { %12821 = vst [vmem:[#allocation23_spill] sm:$0xff] %v9052_v6 }
 0x682   : > { %v3889_v48 = vadd.f32 1e-05, %v3888_v12 }
 0x684   : > { %5368 = vrsqrt.f32 %v3889_v48  ;;  %v9061_v48 = vld [vmem:[%s12465_s4 + $0x38] sm:$0xff] }
 0x685   : > { %12822 = vst [vmem:[#allocation25_spill] sm:$0xff] %v9061_v48 }
 0x68e   : > { %v5369_v38 = vpop.eup %5368 }
 0x68f   : > { %v3892_v0 = vmul.f32 %v5369_v38, %v3891_v20  ;;  %v9070_v38 = vld [vmem:[%s12465_s4 + $0x40] sm:$0xff] }
 0x690   : > { %12823 = vst [vmem:[#allocation9_spill] sm:$0xff] %v9070_v38 }
 0x691   : > { %v8985_v44 = vrot.slane %v3892_v0, %v12813_v49  ;;  %v3894_v33 = vmul.f32 %v3892_v0, %v12814_v10  ;;  %v9088_v10 = vld [vmem:[%s12465_s4 + $0x50] sm:$0xff] }
 0x692   : > { %12825 = vst [vmem:[#allocation24_spill] sm:$0xff] %v9088_v10 }
 0x693   : > { %4425 = vrot.lane.b32.xlu0 %v8985_v44, %s5512_s8  ;;  %4163 = vrot.lane.b32.xlu1 %v8985_v44, %s5513_s9  ;;  %v3895_v28 = vsub.f32 %v3893_v50, %v3894_v33  ;;  %v8999_v35 = vmul.f32 %v8995_v34, %v8985_v44  ;;  %v9008_v39 = vmul.f32 %v9004_v5, %v8985_v44  ;;  %v9079_v50 = vld [vmem:[%s12465_s4 + $0x48] sm:$0xff] }
 0x694   : > { %v9017_v46 = vmul.f32 %v9013_v16, %v8985_v44  ;;  %v9026_v18 = vmul.f32 %v9022_v41, %v8985_v44  ;;  %v9035_v13 = vmul.f32 %v9031_v17, %v8985_v44  ;;  %v9044_v26 = vmul.f32 %v9040_v29, %v8985_v44  ;;  %12824 = vst [vmem:[#allocation22_spill] sm:$0xff] %v9079_v50  ;;  %v9136_v29 = vld [vmem:[%s12465_s4 + $0x80] sm:$0xff] }
 0x695   : > { %v9047_v36 = vrot.slane %v3895_v28, %v12813_v49  ;;  %v9056_v12 = vmul.f32 %v9052_v6, %v8985_v44  ;;  %v9065_v20 = vmul.f32 %v9061_v48, %v8985_v44  ;;  %v9074_v0 = vmul.f32 %v9070_v38, %v8985_v44  ;;  %v9097_v28 = vld [vmem:[%s12465_s4 + $0x58] sm:$0xff]  ;;  %12829 = vst [vmem:[#allocation62_spill] sm:$0xff] %v9136_v29 }
 0x696   : > { %v9083_v49 = vmul.f32 %v9079_v50, %v8985_v44  ;;  %v9092_v33 = vmul.f32 %v9088_v10, %v8985_v44  ;;  %12826 = vst [vmem:[#allocation7_spill] sm:$0xff] %v9097_v28  ;;  %v9101_v38 = vmul.f32 %v9097_v28, %v8985_v44  ;;  %v9106_v50 = vld [vmem:[%s12465_s4 + $0x60] sm:$0xff]  ;;  %v9119_v28 = vld [vmem:[%s12465_s4 + $0x68] sm:$0xff]  ;;  %v9127_v6 = vmul.f32 %v8435_v22, %v8985_v44 }
 0x697   : > { %12827 = vst [vmem:[#allocation8_spill] sm:$0xff] %v9106_v50  ;;  %v9110_v48 = vmul.f32 %v9106_v50, %v8985_v44  ;;  %4687 = vrot.lane.b32.xlu0 %v8985_v44, %s5514_s16  ;;  %4230 = vrot.lane.b32.xlu1 %v9047_v36, %s5513_s9  ;;  %12828 = vst [vmem:[#allocation61_spill] sm:$0xff] %v9119_v28  ;;  %v9123_v10 = vmul.f32 %v9119_v28, %v8985_v44  ;;  %v9145_v28 = vld [vmem:[%s12465_s4 + $0x88] sm:$0xff] }
 0x698   : > { %v9131_v50 = vmul.f32 %v8449_v9, %v8985_v44  ;;  %v9140_v17 = vmul.f32 %v9136_v29, %v8985_v44  ;;  %12830 = vst [vmem:[#allocation63_spill] sm:$0xff] %v9145_v28  ;;  %v9149_v22 = vmul.f32 %v9145_v28, %v8985_v44  ;;  %v9154_v9 = vld [vmem:[%s12465_s4 + $0x90] sm:$0xff]  ;;  %v9163_v29 = vld [vmem:[%s12465_s4 + $0x98] sm:$0xff]  ;;  %v9172_v28 = vld [vmem:[%s12465_s4 + $0xa0] sm:$0xff] }
 0x699   : > { %12831 = vst [vmem:[#allocation64_spill] sm:$0xff] %v9154_v9  ;;  %v9158_v41 = vmul.f32 %v9154_v9, %v8985_v44  ;;  %12832 = vst [vmem:[#allocation65_spill] sm:$0xff] %v9163_v29  ;;  %v9167_v16 = vmul.f32 %v9163_v29, %v8985_v44  ;;  %v9176_v5 = vmul.f32 %v9172_v28, %v8985_v44  ;;  %v9181_v9 = vld [vmem:[%s12465_s4 + $0xa8] sm:$0xff]  ;;  %v9190_v29 = vld [vmem:[%s12465_s4 + $0xb0] sm:$0xff] }
 0x69a   : > { %12834 = vst [vmem:[#allocation67_spill] sm:$0xff] %v9172_v28  ;;  %12836 = vst [vmem:[#allocation69_spill] sm:$0xff] %v9181_v9  ;;  %v9185_v34 = vmul.f32 %v9181_v9, %v8985_v44  ;;  %v9199_v28 = vld [vmem:[%s12465_s4 + $0xb8] sm:$0xff]  ;;  %v9208_v9 = vld [vmem:[%s12465_s4 + $0xc0] sm:$0xff] }
 0x69b   : > { %12833 = vst [vmem:[#allocation66_spill] sm:$0xff] %v9167_v16  ;;  %12835 = vst [vmem:[#allocation68_spill] sm:$0xff] %v9176_v5  ;;  %v9194_v16 = vmul.f32 %v9190_v29, %v8985_v44  ;;  %v9203_v5 = vmul.f32 %v9199_v28, %v8985_v44  ;;  %4754 = vrot.lane.b32.xlu0 %v9047_v36, %s5514_s16  ;;  %4492 = vrot.lane.b32.xlu1 %v9047_v36, %s5512_s8 }
 0x69c   : > { %12837 = vst [vmem:[#allocation70_spill] sm:$0xff] %v9185_v34  ;;  %12838 = vst [vmem:[#allocation71_spill] sm:$0xff] %v9190_v29  ;;  %v9212_v34 = vmul.f32 %v9208_v9, %v8985_v44  ;;  %v9216_v29 = vmul.f32 %v8631_v32, %v8985_v44  ;;  %v9236_v32 = vmul.f32 %v8570_v15, %v8985_v44 }
 0x69d   : > { %12839 = vst [vmem:[#allocation72_spill] sm:$0xff] %v9194_v16  ;;  %12840 = vst [vmem:[#allocation73_spill] sm:$0xff] %v9199_v28  ;;  %v9220_v16 = vmul.f32 %v8668_v8, %v8985_v44  ;;  %v9224_v28 = vmul.f32 %v8692_v58, %v8985_v44  ;;  %v9240_v8 = vmul.f32 %v8586_v54, %v8985_v44 }
 0x69e   : > { %12841 = vst [vmem:[#allocation74_spill] sm:$0xff] %v9208_v9  ;;  %v9232_v9 = vmul.f32 %v8716_v63, %v8985_v44  ;;  %12843 = vst [vmem:[#allocation76_spill] sm:$0xff] %v9236_v32  ;;  %v9244_v58 = vmul.f32 %v8602_v47, %v8985_v44  ;;  %v9252_v63 = vmul.f32 %v8623_v55, %v8985_v44  ;;  %v12845_v32 = vld [vmem:[#allocation33_spill] sm:$0xff] }
 0x69f   : > { %12842 = vst [vmem:[#allocation75_spill] sm:$0xff] %v9224_v28  ;;  %v9248_v28 = vmul.f32 %v8613_v14, %v8985_v44  ;;  %v9256_v15 = vmul.f32 %v8641_v43, %v8985_v44  ;;  %v9260_v54 = vmul.f32 %v12845_v32, %v8985_v44  ;;  %v9264_v47 = vmul.f32 %v8660_v42, %v8985_v44 }
 0x6a0   : > { %12844 = vst [vmem:[#allocation77_spill] sm:$0xff] %v9252_v63  ;;  %v9268_v14 = vmul.f32 %v8676_v30, %v8985_v44  ;;  %v9272_v55 = vmul.f32 %v8684_v1, %v8985_v44  ;;  %v12846_v63 = vld [vmem:[#allocation39_spill] sm:$0xff]  ;;  %v9280_v32 = vmul.f32 %v8708_v19, %v8985_v44  ;;  %v9284_v42 = vmul.f32 %v8724_v21, %v8985_v44 }
 0x6a1   : > { %v9276_v43 = vmul.f32 %v12846_v63, %v8985_v44  ;;  %v9288_v30 = vmul.f32 %v8732_v59, %v8985_v44  ;;  %v9292_v1 = vmul.f32 %v8744_v56, %v8985_v44  ;;  %v9296_v63 = vmul.f32 %v8752_v27, %v8985_v44 }
 0x6a2   : > { %v9300_v19 = vmul.f32 %v8763_v7, %v8985_v44  ;;  %v9304_v21 = vmul.f32 %v8771_v40, %v8985_v44  ;;  %v9308_v59 = vmul.f32 %v8782_v4, %v8985_v44  ;;  %v9312_v56 = vmul.f32 %v8790_v45, %v8985_v44 }
 0x6a3   : > { %v9316_v27 = vmul.f32 %v8801_v61, %v8985_v44  ;;  %v9320_v7 = vmul.f32 %v8809_v60, %v8985_v44  ;;  %v9324_v40 = vmul.f32 %v8820_v25, %v8985_v44  ;;  %v9328_v4 = vmul.f32 %v8828_v51, %v8985_v44 }
 0x6a4   : > { %v9332_v45 = vmul.f32 %v8839_v37, %v8985_v44  ;;  %v9336_v61 = vmul.f32 %v8847_v62, %v8985_v44  ;;  %v9340_v60 = vmul.f32 %v8858_v3, %v8985_v44  ;;  %v9344_v25 = vmul.f32 %v8507_v57, %v8985_v44 }
 0x6a5   : > { %v9348_v51 = vmul.f32 %v8518_v52, %v8985_v44  ;;  %v9352_v37 = vmul.f32 %v8529_v11, %v8985_v44  ;;  %v9356_v62 = vmul.f32 %v8540_v23, %v8985_v44  ;;  %v9360_v3 = vmul.f32 %v8551_v2, %v8985_v44 }
 0x6a6   : > { %v9364_v57 = vmul.f32 %v8562_v31, %v8985_v44  ;;  %v9368_v52 = vmul.f32 %v8578_v24, %v8985_v44  ;;  %v9372_v11 = vmul.f32 %v8594_v53, %v8985_v44  ;;  %v9376_v23 = vadd.f32 %v9047_v36, %v8999_v35  ;;  %v12850_v53 = vld [vmem:[#allocation66_spill] sm:$0xff] }
 0x6a7   : > { %v9380_v2 = vadd.f32 %v9047_v36, %v9008_v39  ;;  %v9384_v31 = vadd.f32 %v9047_v36, %v9017_v46  ;;  %v9388_v24 = vadd.f32 %v9047_v36, %v9026_v18  ;;  %v9392_v44 = vadd.f32 %v9047_v36, %v9035_v13 }
 0x6a8   : > { %v9396_v35 = vadd.f32 %v9047_v36, %v9044_v26  ;;  %v9400_v39 = vadd.f32 %v9047_v36, %v9056_v12  ;;  %v9404_v46 = vadd.f32 %v9047_v36, %v9065_v20  ;;  %v9408_v18 = vadd.f32 %v9047_v36, %v9074_v0 }
 0x6a9   : > { %v9412_v13 = vadd.f32 %v9047_v36, %v9083_v49  ;;  %v9416_v26 = vadd.f32 %v9047_v36, %v9092_v33  ;;  %v9420_v12 = vadd.f32 %v9047_v36, %v9101_v38  ;;  %v9424_v20 = vadd.f32 %v9047_v36, %v9110_v48 }
 0x6aa   : > { %v9428_v0 = vadd.f32 %v9047_v36, %v9123_v10  ;;  %v9432_v49 = vadd.f32 %v9047_v36, %v9127_v6  ;;  %v9436_v33 = vadd.f32 %v9047_v36, %v9131_v50  ;;  %v9440_v38 = vadd.f32 %v9047_v36, %v9140_v17 }
 0x6ab   : > { %v9444_v48 = vadd.f32 %v9047_v36, %v9149_v22  ;;  %v9448_v10 = vadd.f32 %v9047_v36, %v9158_v41  ;;  %v9452_v6 = vadd.f32 %v9047_v36, %v12850_v53  ;;  %v9468_v41 = vadd.f32 %v9047_v36, %v9203_v5 }
 0x6ac   : > { %12847 = vst [vmem:[#allocation78_spill] sm:$0xff] %v9432_v49  ;;  %12848 = vst [vmem:[#allocation79_spill] sm:$0xff] %v9436_v33  ;;  %v12851_v49 = vld [vmem:[#allocation68_spill] sm:$0xff]  ;;  %v12852_v33 = vld [vmem:[#allocation70_spill] sm:$0xff]  ;;  %v9472_v53 = vadd.f32 %v9047_v36, %v9212_v34  ;;  %v9488_v5 = vadd.f32 %v9047_v36, %v9232_v9 }
 0x6ad   : > { %12849 = vst [vmem:[#allocation80_spill] sm:$0xff] %v9440_v38  ;;  %v9456_v50 = vadd.f32 %v9047_v36, %v12851_v49  ;;  %v9460_v17 = vadd.f32 %v9047_v36, %v12852_v33  ;;  %v12854_v38 = vld [vmem:[#allocation72_spill] sm:$0xff]  ;;  %12855 = vst [vmem:[#allocation68_spill] sm:$0xff] %v9468_v41  ;;  %v9476_v49 = vadd.f32 %v9047_v36, %v9216_v29 }
 0x6ae   : > { %v9464_v22 = vadd.f32 %v9047_v36, %v12854_v38  ;;  %v9480_v33 = vadd.f32 %v9047_v36, %v9220_v16  ;;  %v12858_v41 = vld [vmem:[#allocation76_spill] sm:$0xff]  ;;  %v9496_v29 = vadd.f32 %v9047_v36, %v9240_v8  ;;  %v9500_v16 = vadd.f32 %v9047_v36, %v9244_v58 }
 0x6af   : > { %12853 = vst [vmem:[#allocation66_spill] sm:$0xff] %v9460_v17  ;;  %v12856_v17 = vld [vmem:[#allocation75_spill] sm:$0xff]  ;;  %v9492_v34 = vadd.f32 %v9047_v36, %v12858_v41  ;;  %v9512_v41 = vadd.f32 %v9047_v36, %v9256_v15  ;;  %v9516_v8 = vadd.f32 %v9047_v36, %v9260_v54  ;;  %v9520_v58 = vadd.f32 %v9047_v36, %v9264_v47 }
 0x6b0   : > { %v9484_v38 = vadd.f32 %v9047_v36, %v12856_v17  ;;  %v9504_v17 = vadd.f32 %v9047_v36, %v9248_v28  ;;  %v9524_v28 = vadd.f32 %v9047_v36, %v9268_v14  ;;  %v9532_v15 = vadd.f32 %v9047_v36, %v9276_v43 }
 0x6b1   : > { %v9536_v54 = vadd.f32 %v9047_v36, %v9280_v32  ;;  %v9540_v47 = vadd.f32 %v9047_v36, %v9284_v42  ;;  %v9544_v14 = vadd.f32 %v9047_v36, %v9288_v30  ;;  %v9552_v43 = vadd.f32 %v9047_v36, %v9296_v63 }
 0x6b2   : > { %12857 = vst [vmem:[#allocation70_spill] sm:$0xff] %v9484_v38  ;;  %v12859_v38 = vld [vmem:[#allocation77_spill] sm:$0xff]  ;;  %v9556_v32 = vadd.f32 %v9047_v36, %v9300_v19  ;;  %v9560_v42 = vadd.f32 %v9047_v36, %v9304_v21  ;;  %v9564_v30 = vadd.f32 %v9047_v36, %v9308_v59  ;;  %v9572_v63 = vadd.f32 %v9047_v36, %v9316_v27 }
 0x6b3   : > { %v9508_v9 = vadd.f32 %v9047_v36, %v12859_v38  ;;  %v9528_v38 = vadd.f32 %v9047_v36, %v9272_v55  ;;  %v9548_v55 = vadd.f32 %v9047_v36, %v9292_v1  ;;  %v9568_v1 = vadd.f32 %v9047_v36, %v9312_v56 }
 0x6b4   : > { %v9576_v19 = vadd.f32 %v9047_v36, %v9320_v7  ;;  %v9580_v21 = vadd.f32 %v9047_v36, %v9324_v40  ;;  %v9584_v59 = vadd.f32 %v9047_v36, %v9328_v4  ;;  %v9588_v56 = vadd.f32 %v9047_v36, %v9332_v45 }
 0x6b5   : > { %v9592_v27 = vadd.f32 %v9047_v36, %v9336_v61  ;;  %v9596_v7 = vadd.f32 %v9047_v36, %v9340_v60  ;;  %v9600_v40 = vadd.f32 %v9047_v36, %v9344_v25  ;;  %v9604_v4 = vadd.f32 %v9047_v36, %v9348_v51 }
 0x6b6   : > { %v9608_v45 = vadd.f32 %v9047_v36, %v9352_v37  ;;  %v9612_v61 = vadd.f32 %v9047_v36, %v9356_v62  ;;  %v9616_v60 = vadd.f32 %v9047_v36, %v9360_v3  ;;  %v9620_v25 = vadd.f32 %v9047_v36, %v9364_v57 }
 0x6b7   : > { %v9624_v51 = vadd.f32 %v9047_v36, %v9368_v52  ;;  %v9628_v37 = vadd.f32 %v9047_v36, %v9372_v11  ;;  %v4035_v62 = vmax.f32 %v9380_v2, 0.0  ;;  %v4037_v3 = vmax.f32 %v9388_v24, 0.0  ;;  %v12865_v36 = vld [vmem:[#allocation78_spill] sm:$0xff] }
 0x6b8   : > { %12860 = vst [vmem:[#allocation72_spill] sm:$0xff] %v9608_v45  ;;  %12861 = vst [vmem:[#allocation75_spill] sm:$0xff] %v9612_v61  ;;  %v4034_v45 = vmax.f32 %v9376_v23, 0.0  ;;  %v4036_v61 = vmax.f32 %v9384_v31, 0.0  ;;  %v4039_v57 = vmax.f32 %v9396_v35, 0.0  ;;  %v4041_v52 = vmax.f32 %v9404_v46, 0.0 }
 0x6b9   : > { %12862 = vst [vmem:[#allocation76_spill] sm:$0xff] %v9616_v60  ;;  %12863 = vst [vmem:[#allocation77_spill] sm:$0xff] %v9620_v25  ;;  %v4038_v60 = vmax.f32 %v9392_v44, 0.0  ;;  %v4040_v25 = vmax.f32 %v9400_v39, 0.0  ;;  %v4043_v11 = vmax.f32 %v9412_v13, 0.0  ;;  %v4044_v23 = vmax.f32 %v9416_v26, 0.0 }
 0x6ba   : > { %12864 = vst [vmem:[#allocation81_spill] sm:$0xff] %v9624_v51  ;;  %v4042_v51 = vmax.f32 %v9408_v18, 0.0  ;;  %4098 = vst.msk [vmem:[%s12465_s4] sm:$0xff] %vm2260_vm14, %v4034_v45  ;;  %v4045_v2 = vmax.f32 %v9420_v12, 0.0  ;;  %v4046_v31 = vmax.f32 %v9424_v20, 0.0  ;;  %v4047_v24 = vmax.f32 %v9428_v0, 0.0 }
 0x6bb   : > { %4099 = vst.msk [vmem:[%s12465_s4 + $0x8] sm:$0xff] %vm2260_vm14, %v4035_v62  ;;  %4100 = vst.msk [vmem:[%s12465_s4 + $0x10] sm:$0xff] %vm2260_vm14, %v4036_v61  ;;  %v4048_v44 = vmax.f32 %v12865_v36, 0.0  ;;  %v12866_v35 = vld [vmem:[#allocation79_spill] sm:$0xff]  ;;  %v12867_v46 = vld [vmem:[#allocation80_spill] sm:$0xff]  ;;  %v4051_v13 = vmax.f32 %v9444_v48, 0.0 }
 0x6bc   : > { %4101 = vst.msk [vmem:[%s12465_s4 + $0x18] sm:$0xff] %vm2260_vm14, %v4037_v3  ;;  %4102 = vst.msk [vmem:[%s12465_s4 + $0x20] sm:$0xff] %vm2260_vm14, %v4038_v60  ;;  %v4049_v39 = vmax.f32 %v12866_v35, 0.0  ;;  %v4050_v18 = vmax.f32 %v12867_v46, 0.0  ;;  %v4052_v26 = vmax.f32 %v9448_v10, 0.0  ;;  %v4053_v12 = vmax.f32 %v9452_v6, 0.0 }
 0x6bd   : > { %4103 = vst.msk [vmem:[%s12465_s4 + $0x28] sm:$0xff] %vm2260_vm14, %v4039_v57  ;;  %4104 = vst.msk [vmem:[%s12465_s4 + $0x30] sm:$0xff] %vm2260_vm14, %v4040_v25  ;;  %v4054_v20 = vmax.f32 %v9456_v50, 0.0  ;;  %v12868_v0 = vld [vmem:[#allocation66_spill] sm:$0xff]  ;;  %v4056_v10 = vmax.f32 %v9464_v22, 0.0  ;;  %v12869_v6 = vld [vmem:[#allocation68_spill] sm:$0xff] }
 0x6be   : > { %4105 = vst.msk [vmem:[%s12465_s4 + $0x38] sm:$0xff] %vm2260_vm14, %v4041_v52  ;;  %4106 = vst.msk [vmem:[%s12465_s4 + $0x40] sm:$0xff] %vm2260_vm14, %v4042_v51  ;;  %v4055_v48 = vmax.f32 %v12868_v0, 0.0  ;;  %v4057_v50 = vmax.f32 %v12869_v6, 0.0  ;;  %v4058_v22 = vmax.f32 %v9472_v53, 0.0  ;;  %v4059_v45 = vmax.f32 %v9476_v49, 0.0 }
 0x6bf   : > { %4107 = vst.msk [vmem:[%s12465_s4 + $0x48] sm:$0xff] %vm2260_vm14, %v4043_v11  ;;  %4108 = vst.msk [vmem:[%s12465_s4 + $0x50] sm:$0xff] %vm2260_vm14, %v4044_v23  ;;  %v4060_v61 = vmax.f32 %v9480_v33, 0.0  ;;  %v12870_v53 = vld [vmem:[#allocation70_spill] sm:$0xff]  ;;  %v4062_v33 = vmax.f32 %v9488_v5, 0.0  ;;  %v4063_v60 = vmax.f32 %v9492_v34, 0.0 }
 0x6c0   : > { %4109 = vst.msk [vmem:[%s12465_s4 + $0x58] sm:$0xff] %vm2260_vm14, %v4045_v2  ;;  %4110 = vst.msk [vmem:[%s12465_s4 + $0x60] sm:$0xff] %vm2260_vm14, %v4046_v31  ;;  %v4061_v49 = vmax.f32 %v12870_v53, 0.0  ;;  %v4064_v25 = vmax.f32 %v9496_v29, 0.0  ;;  %v4065_v5 = vmax.f32 %v9500_v16, 0.0  ;;  %v4066_v34 = vmax.f32 %v9504_v17, 0.0 }
 0x6c1   : > { %4111 = vst.msk [vmem:[%s12465_s4 + $0x68] sm:$0xff] %vm2260_vm14, %v4047_v24  ;;  %4112 = vst.msk [vmem:[%s12465_s4 + $0x70] sm:$0xff] %vm2260_vm14, %v4048_v44  ;;  %v4067_v29 = vmax.f32 %v9508_v9, 0.0  ;;  %v4068_v51 = vmax.f32 %v9512_v41, 0.0  ;;  %v4069_v16 = vmax.f32 %v9516_v8, 0.0  ;;  %v4070_v17 = vmax.f32 %v9520_v58, 0.0 }
 0x6c2   : > { %4113 = vst.msk [vmem:[%s12465_s4 + $0x78] sm:$0xff] %vm2260_vm14, %v4049_v39  ;;  %4114 = vst.msk [vmem:[%s12465_s4 + $0x80] sm:$0xff] %vm2260_vm14, %v4050_v18  ;;  %v4071_v9 = vmax.f32 %v9524_v28, 0.0  ;;  %v4072_v41 = vmax.f32 %v9528_v38, 0.0  ;;  %v4073_v8 = vmax.f32 %v9532_v15, 0.0  ;;  %v4074_v58 = vmax.f32 %v9536_v54, 0.0 }
 0x6c3   : > { %4115 = vst.msk [vmem:[%s12465_s4 + $0x88] sm:$0xff] %vm2260_vm14, %v4051_v13  ;;  %4116 = vst.msk [vmem:[%s12465_s4 + $0x90] sm:$0xff] %vm2260_vm14, %v4052_v26  ;;  %v4075_v28 = vmax.f32 %v9540_v47, 0.0  ;;  %v4076_v38 = vmax.f32 %v9544_v14, 0.0  ;;  %v4077_v15 = vmax.f32 %v9548_v55, 0.0  ;;  %v4078_v54 = vmax.f32 %v9552_v43, 0.0 }
 0x6c4   : > { %4117 = vst.msk [vmem:[%s12465_s4 + $0x98] sm:$0xff] %vm2260_vm14, %v4053_v12  ;;  %4118 = vst.msk [vmem:[%s12465_s4 + $0xa0] sm:$0xff] %vm2260_vm14, %v4054_v20  ;;  %v4079_v47 = vmax.f32 %v9556_v32, 0.0  ;;  %v4080_v14 = vmax.f32 %v9560_v42, 0.0  ;;  %v4081_v55 = vmax.f32 %v9564_v30, 0.0  ;;  %v4082_v43 = vmax.f32 %v9568_v1, 0.0 }
 0x6c5   : > { %4119 = vst.msk [vmem:[%s12465_s4 + $0xa8] sm:$0xff] %vm2260_vm14, %v4055_v48  ;;  %4120 = vst.msk [vmem:[%s12465_s4 + $0xb0] sm:$0xff] %vm2260_vm14, %v4056_v10  ;;  %v4083_v32 = vmax.f32 %v9572_v63, 0.0  ;;  %v4084_v42 = vmax.f32 %v9576_v19, 0.0  ;;  %v4085_v30 = vmax.f32 %v9580_v21, 0.0  ;;  %v4086_v1 = vmax.f32 %v9584_v59, 0.0 }
 0x6c6   : > { %4121 = vst.msk [vmem:[%s12465_s4 + $0xb8] sm:$0xff] %vm2260_vm14, %v4057_v50  ;;  %4122 = vst.msk [vmem:[%s12465_s4 + $0xc0] sm:$0xff] %vm2260_vm14, %v4058_v22  ;;  %v4087_v63 = vmax.f32 %v9588_v56, 0.0  ;;  %v4088_v19 = vmax.f32 %v9592_v27, 0.0  ;;  %v4089_v21 = vmax.f32 %v9596_v7, 0.0  ;;  %v4090_v59 = vmax.f32 %v9600_v40, 0.0 }
 0x6c7   : > { %4123 = vst.msk [vmem:[%s12465_s4 + $0xc8] sm:$0xff] %vm2260_vm14, %v4059_v45  ;;  %4124 = vst.msk [vmem:[%s12465_s4 + $0xd0] sm:$0xff] %vm2260_vm14, %v4060_v61  ;;  %v4091_v56 = vmax.f32 %v9604_v4, 0.0  ;;  %v12871_v27 = vld [vmem:[#allocation72_spill] sm:$0xff]  ;;  %v12872_v7 = vld [vmem:[#allocation75_spill] sm:$0xff]  ;;  %v4097_v2 = vmax.f32 %v9628_v37, 0.0 }
 0x6c8   : > { %4125 = vst.msk [vmem:[%s12465_s4 + $0xd8] sm:$0xff] %vm2260_vm14, %v4061_v49  ;;  %4126 = vst.msk [vmem:[%s12465_s4 + $0xe0] sm:$0xff] %vm2260_vm14, %v4062_v33  ;;  %v4092_v62 = vmax.f32 %v12871_v27, 0.0  ;;  %v4093_v40 = vmax.f32 %v12872_v7, 0.0  ;;  %v12873_v4 = vld [vmem:[#allocation76_spill] sm:$0xff]  ;;  %v12874_v57 = vld [vmem:[#allocation77_spill] sm:$0xff] }
 0x6c9   : > { %4127 = vst.msk [vmem:[%s12465_s4 + $0xe8] sm:$0xff] %vm2260_vm14, %v4063_v60  ;;  %4128 = vst.msk [vmem:[%s12465_s4 + $0xf0] sm:$0xff] %vm2260_vm14, %v4064_v25  ;;  %v4094_v3 = vmax.f32 %v12873_v4, 0.0  ;;  %v4095_v52 = vmax.f32 %v12874_v57, 0.0  ;;  %v12875_v11 = vld [vmem:[#allocation81_spill] sm:$0xff]  ;;  %v12876_v31 = vld [vmem:[#allocation51_spill] sm:$0xff] }
 0x6ca   : > { %4129 = vst.msk [vmem:[%s12465_s4 + $0xf8] sm:$0xff] %vm2260_vm14, %v4065_v5  ;;  %4130 = vst.msk [vmem:[%s12465_s4 + $0x100] sm:$0xff] %vm2260_vm14, %v4066_v34  ;;  %v4096_v23 = vmax.f32 %v12875_v11, 0.0  ;;  %v12877_v36 = vld [vmem:[#allocation52_spill] sm:$0xff]  ;;  %v12878_v35 = vld [vmem:[#allocation54_spill] sm:$0xff] }
 0x6cb   : > { %4131 = vst.msk [vmem:[%s12465_s4 + $0x108] sm:$0xff] %vm2260_vm14, %v4067_v29  ;;  %4132 = vst.msk [vmem:[%s12465_s4 + $0x110] sm:$0xff] %vm2260_vm14, %v4068_v51  ;;  %v12879_v46 = vld [vmem:[#allocation56_spill] sm:$0xff]  ;;  %v12880_v13 = vld [vmem:[#allocation58_spill] sm:$0xff] }
 0x6cc   : > { %4133 = vst.msk [vmem:[%s12465_s4 + $0x118] sm:$0xff] %vm2260_vm14, %v4069_v16  ;;  %4134 = vst.msk [vmem:[%s12465_s4 + $0x120] sm:$0xff] %vm2260_vm14, %v4070_v17  ;;  %v12881_v12 = vld [vmem:[#allocation60_spill] sm:$0xff]  ;;  %v12882_v0 = vld [vmem:[#allocation23_spill] sm:$0xff] }
 0x6cd   : > { %4135 = vst.msk [vmem:[%s12465_s4 + $0x128] sm:$0xff] %vm2260_vm14, %v4071_v9  ;;  %4136 = vst.msk [vmem:[%s12465_s4 + $0x130] sm:$0xff] %vm2260_vm14, %v4072_v41  ;;  %v12883_v10 = vld [vmem:[#allocation25_spill] sm:$0xff]  ;;  %v12885_v45 = vld [vmem:[#allocation22_spill] sm:$0xff] }
 0x6ce   : > { %4137 = vst.msk [vmem:[%s12465_s4 + $0x138] sm:$0xff] %vm2260_vm14, %v4073_v8  ;;  %4138 = vst.msk [vmem:[%s12465_s4 + $0x140] sm:$0xff] %vm2260_vm14, %v4074_v58  ;;  %v12884_v50 = vld [vmem:[#allocation9_spill] sm:$0xff]  ;;  %v12886_v53 = vld [vmem:[#allocation24_spill] sm:$0xff] }
 0x6cf   : > { %4139 = vst.msk [vmem:[%s12465_s4 + $0x148] sm:$0xff] %vm2260_vm14, %v4075_v28  ;;  %4140 = vst.msk [vmem:[%s12465_s4 + $0x150] sm:$0xff] %vm2260_vm14, %v4076_v38  ;;  %v12887_v33 = vld [vmem:[#allocation7_spill] sm:$0xff]  ;;  %v12888_v25 = vld [vmem:[#allocation8_spill] sm:$0xff] }
 0x6d0   : > { %4141 = vst.msk [vmem:[%s12465_s4 + $0x158] sm:$0xff] %vm2260_vm14, %v4077_v15  ;;  %4142 = vst.msk [vmem:[%s12465_s4 + $0x160] sm:$0xff] %vm2260_vm14, %v4078_v54  ;;  %v12889_v34 = vld [vmem:[#allocation61_spill] sm:$0xff]  ;;  %v12891_v17 = vld [vmem:[#allocation16_spill] sm:$0xff] }
 0x6d1   : > { %4143 = vst.msk [vmem:[%s12465_s4 + $0x168] sm:$0xff] %vm2260_vm14, %v4079_v47  ;;  %4144 = vst.msk [vmem:[%s12465_s4 + $0x170] sm:$0xff] %vm2260_vm14, %v4080_v14  ;;  %v12890_v51 = vld [vmem:[#allocation53_spill] sm:$0xff]  ;;  %v12892_v41 = vld [vmem:[#allocation62_spill] sm:$0xff] }
 0x6d2   : > { %4145 = vst.msk [vmem:[%s12465_s4 + $0x178] sm:$0xff] %vm2260_vm14, %v4081_v55  ;;  %4146 = vst.msk [vmem:[%s12465_s4 + $0x180] sm:$0xff] %vm2260_vm14, %v4082_v43  ;;  %v12893_v58 = vld [vmem:[#allocation63_spill] sm:$0xff]  ;;  %v12894_v38 = vld [vmem:[#allocation64_spill] sm:$0xff] }
 0x6d3   : > { %4147 = vst.msk [vmem:[%s12465_s4 + $0x188] sm:$0xff] %vm2260_vm14, %v4083_v32  ;;  %4148 = vst.msk [vmem:[%s12465_s4 + $0x190] sm:$0xff] %vm2260_vm14, %v4084_v42  ;;  %v12895_v54 = vld [vmem:[#allocation65_spill] sm:$0xff]  ;;  %v12896_v14 = vld [vmem:[#allocation67_spill] sm:$0xff] }
 0x6d4   : > { %4149 = vst.msk [vmem:[%s12465_s4 + $0x198] sm:$0xff] %vm2260_vm14, %v4085_v30  ;;  %4150 = vst.msk [vmem:[%s12465_s4 + $0x1a0] sm:$0xff] %vm2260_vm14, %v4086_v1  ;;  %v12897_v43 = vld [vmem:[#allocation69_spill] sm:$0xff]  ;;  %v12898_v42 = vld [vmem:[#allocation71_spill] sm:$0xff] }
 0x6d5   : > { %4151 = vst.msk [vmem:[%s12465_s4 + $0x1a8] sm:$0xff] %vm2260_vm14, %v4087_v63  ;;  %4152 = vst.msk [vmem:[%s12465_s4 + $0x1b0] sm:$0xff] %vm2260_vm14, %v4088_v19  ;;  %v12899_v1 = vld [vmem:[#allocation73_spill] sm:$0xff]  ;;  %v12900_v19 = vld [vmem:[#allocation74_spill] sm:$0xff] }
 0x6d6   : > { %4153 = vst.msk [vmem:[%s12465_s4 + $0x1b8] sm:$0xff] %vm2260_vm14, %v4089_v21  ;;  %4154 = vst.msk [vmem:[%s12465_s4 + $0x1c0] sm:$0xff] %vm2260_vm14, %v4090_v59  ;;  %v12901_v59 = vld [vmem:[#allocation31_spill] sm:$0xff]  ;;  %v12903_v7 = vld [vmem:[#allocation38_spill] sm:$0xff] }
 0x6d7   : > { %4155 = vst.msk [vmem:[%s12465_s4 + $0x1c8] sm:$0xff] %vm2260_vm14, %v4091_v56  ;;  %4156 = vst.msk [vmem:[%s12465_s4 + $0x1d0] sm:$0xff] %vm2260_vm14, %v4092_v62  ;;  %v12902_v27 = vld [vmem:[#allocation35_spill] sm:$0xff]  ;;  %v12904_v4 = vld [vmem:[#allocation41_spill] sm:$0xff] }
 0x6d8   : > { %4157 = vst.msk [vmem:[%s12465_s4 + $0x1d8] sm:$0xff] %vm2260_vm14, %v4093_v40  ;;  %4158 = vst.msk [vmem:[%s12465_s4 + $0x1e0] sm:$0xff] %vm2260_vm14, %v4094_v3  ;;  %v12905_v57 = vld [vmem:[#allocation20_spill] sm:$0xff]  ;;  %v12906_v11 = vld [vmem:[#allocation26_spill] sm:$0xff] }
 0x6d9   : > { %4159 = vst.msk [vmem:[%s12465_s4 + $0x1e8] sm:$0xff] %vm2260_vm14, %v4095_v52  ;;  %4160 = vst.msk [vmem:[%s12465_s4 + $0x1f0] sm:$0xff] %vm2260_vm14, %v4096_v23 }
 0x6da   : > { %4161 = vst.msk [vmem:[%s12465_s4 + $0x1f8] sm:$0xff] %vm2260_vm14, %v4097_v2  ;;  %v12907_v2 = vld [vmem:[#allocation28_spill] sm:$0xff] }
 0x705   : > { %v9950_v37 = vpop.permute.xlu1 %4163 }
 0x706   : > { %v9954_v24 = vmul.f32 %v12876_v31, %v9950_v37  ;;  %v9958_v44 = vmul.f32 %v12877_v36, %v9950_v37  ;;  %v9962_v39 = vmul.f32 %v12878_v35, %v9950_v37  ;;  %v9966_v18 = vmul.f32 %v12879_v46, %v9950_v37 }
 0x707   : > { %v9970_v26 = vmul.f32 %v12880_v13, %v9950_v37  ;;  %v9974_v20 = vmul.f32 %v12881_v12, %v9950_v37  ;;  %v9978_v48 = vmul.f32 %v12882_v0, %v9950_v37  ;;  %v9982_v6 = vmul.f32 %v12883_v10, %v9950_v37  ;;  %v12926_v10 = vld [vmem:[#allocation47_spill] sm:$0xff]  ;;  %v12927_v0 = vld [vmem:[#allocation14_spill] sm:$0xff] }
 0x708   : > { %v9986_v22 = vmul.f32 %v12884_v50, %v9950_v37  ;;  %v9990_v61 = vmul.f32 %v12885_v45, %v9950_v37  ;;  %v9994_v49 = vmul.f32 %v12886_v53, %v9950_v37  ;;  %v9998_v60 = vmul.f32 %v12887_v33, %v9950_v37  ;;  %v12922_v33 = vld [vmem:[#allocation12_spill] sm:$0xff]  ;;  %v12923_v53 = vld [vmem:[#allocation45_spill] sm:$0xff]  ;;  %v12925_v50 = vld [vmem:[#allocation46_spill] sm:$0xff] }
 0x709   : > { %v10002_v5 = vmul.f32 %v12888_v25, %v9950_v37  ;;  %v10006_v29 = vmul.f32 %v12889_v34, %v9950_v37  ;;  %v10010_v16 = vmul.f32 %v12890_v51, %v9950_v37  ;;  %v10014_v9 = vmul.f32 %v12891_v17, %v9950_v37  ;;  %v12918_v17 = vld [vmem:[#allocation11_spill] sm:$0xff]  ;;  %v12919_v51 = vld [vmem:[#allocation42_spill] sm:$0xff]  ;;  %v12921_v25 = vld [vmem:[#allocation44_spill] sm:$0xff]  ;;  %v10160_v12 = vpop.permute.xlu1 %4230 }
 0x70a   : > { %v10018_v8 = vmul.f32 %v12892_v41, %v9950_v37  ;;  %v10022_v28 = vmul.f32 %v12893_v58, %v9950_v37  ;;  %v10026_v15 = vmul.f32 %v12894_v38, %v9950_v37  ;;  %v10030_v47 = vmul.f32 %v12895_v54, %v9950_v37  ;;  %v12914_v54 = vld [vmem:[#allocation37_spill] sm:$0xff]  ;;  %v12915_v38 = vld [vmem:[#allocation39_spill] sm:$0xff]  ;;  %v12916_v58 = vld [vmem:[#allocation40_spill] sm:$0xff] }
 0x70b   : > { %v10034_v55 = vmul.f32 %v12896_v14, %v9950_v37  ;;  %v10038_v32 = vmul.f32 %v12897_v43, %v9950_v37  ;;  %v10042_v30 = vmul.f32 %v12898_v42, %v9950_v37  ;;  %v10046_v63 = vmul.f32 %v12899_v1, %v9950_v37  ;;  %v12910_v1 = vld [vmem:[#allocation32_spill] sm:$0xff]  ;;  %v12911_v42 = vld [vmem:[#allocation33_spill] sm:$0xff]  ;;  %v12912_v43 = vld [vmem:[#allocation34_spill] sm:$0xff] }
 0x70c   : > { %v10050_v21 = vmul.f32 %v12900_v19, %v9950_v37  ;;  %v10054_v56 = vmul.f32 %v12901_v59, %v9950_v37  ;;  %v10058_v62 = vmul.f32 %v12902_v27, %v9950_v37  ;;  %v10062_v40 = vmul.f32 %v12903_v7, %v9950_v37  ;;  %v12908_v59 = vld [vmem:[#allocation29_spill] sm:$0xff]  ;;  %v12909_v19 = vld [vmem:[#allocation30_spill] sm:$0xff]  ;;  %v12913_v14 = vld [vmem:[#allocation36_spill] sm:$0xff] }
 0x70d   : > { %v10066_v3 = vmul.f32 %v12904_v4, %v9950_v37  ;;  %v10070_v52 = vmul.f32 %v12905_v57, %v9950_v37  ;;  %v10074_v23 = vmul.f32 %v12906_v11, %v9950_v37  ;;  %v10078_v27 = vmul.f32 %v12907_v2, %v9950_v37  ;;  %v12917_v41 = vld [vmem:[#allocation10_spill] sm:$0xff]  ;;  %v12920_v34 = vld [vmem:[#allocation43_spill] sm:$0xff]  ;;  %v12924_v45 = vld [vmem:[#allocation13_spill] sm:$0xff] }
 0x70e   : > { %v10082_v7 = vmul.f32 %v12908_v59, %v9950_v37  ;;  %v10086_v4 = vmul.f32 %v12909_v19, %v9950_v37  ;;  %v10090_v57 = vmul.f32 %v12910_v1, %v9950_v37  ;;  %v10094_v11 = vmul.f32 %v12911_v42, %v9950_v37 }
 0x70f   : > { %v10098_v2 = vmul.f32 %v12912_v43, %v9950_v37  ;;  %v10102_v59 = vmul.f32 %v12913_v14, %v9950_v37  ;;  %v10106_v19 = vmul.f32 %v12914_v54, %v9950_v37  ;;  %v10110_v1 = vmul.f32 %v12915_v38, %v9950_v37 }
 0x710   : > { %v10114_v42 = vmul.f32 %v12916_v58, %v9950_v37  ;;  %v10118_v43 = vmul.f32 %v12917_v41, %v9950_v37  ;;  %v10122_v14 = vmul.f32 %v12918_v17, %v9950_v37  ;;  %v10126_v54 = vmul.f32 %v12919_v51, %v9950_v37 }
 0x711   : > { %v10130_v38 = vmul.f32 %v12920_v34, %v9950_v37  ;;  %v10134_v58 = vmul.f32 %v12921_v25, %v9950_v37  ;;  %v10138_v41 = vmul.f32 %v12922_v33, %v9950_v37  ;;  %v10142_v17 = vmul.f32 %v12923_v53, %v9950_v37  ;;  %v12929_v53 = vld [vmem:[#allocation15_spill] sm:$0xff] }
 0x712   : > { %v10146_v51 = vmul.f32 %v12924_v45, %v9950_v37  ;;  %v10150_v34 = vmul.f32 %v12925_v50, %v9950_v37  ;;  %v10154_v25 = vmul.f32 %v12926_v10, %v9950_v37  ;;  %v10158_v33 = vmul.f32 %v12927_v0, %v9950_v37  ;;  %v12931_v45 = vld [vmem:[#allocation48_spill] sm:$0xff]  ;;  %v12933_v50 = vld [vmem:[#allocation49_spill] sm:$0xff]  ;;  %v12935_v10 = vld [vmem:[#allocation50_spill] sm:$0xff] }
 0x713   : > { %v10164_v13 = vmul.f32 %v12929_v53, %v9950_v37  ;;  %v10168_v46 = vmul.f32 %v12931_v45, %v9950_v37  ;;  %v10172_v35 = vmul.f32 %v12933_v50, %v9950_v37  ;;  %v10176_v36 = vmul.f32 %v12935_v10, %v9950_v37  ;;  %v12937_v0 = vld [vmem:[#allocation55_spill] sm:$0xff] }
 0x714   : > { %12928 = vst [vmem:[#allocation78_spill] sm:$0xff] %v10158_v33  ;;  %v10180_v31 = vmul.f32 %v12937_v0, %v9950_v37  ;;  %v12939_v33 = vld [vmem:[#allocation57_spill] sm:$0xff] }
 0x715   : > { %12930 = vst [vmem:[#allocation79_spill] sm:$0xff] %v10164_v13  ;;  %12932 = vst [vmem:[#allocation80_spill] sm:$0xff] %v10168_v46  ;;  %v10184_v53 = vmul.f32 %v12939_v33, %v9950_v37  ;;  %v12941_v13 = vld [vmem:[#allocation17_spill] sm:$0xff]  ;;  %v12942_v46 = vld [vmem:[#allocation59_spill] sm:$0xff] }
 0x716   : > { %12934 = vst [vmem:[#allocation66_spill] sm:$0xff] %v10172_v35  ;;  %12936 = vst [vmem:[#allocation68_spill] sm:$0xff] %v10176_v36  ;;  %v10188_v45 = vmul.f32 %v12941_v13, %v9950_v37  ;;  %v10192_v50 = vmul.f32 %v12942_v46, %v9950_v37  ;;  %v12943_v35 = vld [vmem:[#allocation18_spill] sm:$0xff]  ;;  %v12944_v36 = vld [vmem:[#allocation19_spill] sm:$0xff]  ;;  %v10212_v46 = vadd.f32 %v10160_v12, %v9954_v24 }
 0x717   : > { %12938 = vst [vmem:[#allocation70_spill] sm:$0xff] %v10180_v31  ;;  %12940 = vst [vmem:[#allocation72_spill] sm:$0xff] %v10184_v53  ;;  %v10196_v10 = vmul.f32 %v12943_v35, %v9950_v37  ;;  %v10200_v0 = vmul.f32 %v12944_v36, %v9950_v37  ;;  %v12945_v31 = vld [vmem:[#allocation21_spill] sm:$0xff]  ;;  %v12946_v53 = vld [vmem:[#allocation27_spill] sm:$0xff]  ;;  %v10216_v35 = vadd.f32 %v10160_v12, %v9958_v44 }
 0x718   : > { %v10204_v33 = vmul.f32 %v12945_v31, %v9950_v37  ;;  %v10208_v13 = vmul.f32 %v12946_v53, %v9950_v37  ;;  %v10220_v36 = vadd.f32 %v10160_v12, %v9962_v39  ;;  %v10224_v31 = vadd.f32 %v10160_v12, %v9966_v18 }
 0x719   : > { %v10228_v37 = vadd.f32 %v10160_v12, %v9970_v26  ;;  %v10232_v24 = vadd.f32 %v10160_v12, %v9974_v20  ;;  %v10236_v44 = vadd.f32 %v10160_v12, %v9978_v48  ;;  %v10240_v39 = vadd.f32 %v10160_v12, %v9982_v6 }
 0x71a   : > { %v10244_v18 = vadd.f32 %v10160_v12, %v9986_v22  ;;  %v10248_v26 = vadd.f32 %v10160_v12, %v9990_v61  ;;  %v10252_v20 = vadd.f32 %v10160_v12, %v9994_v49  ;;  %v10256_v48 = vadd.f32 %v10160_v12, %v9998_v60 }
 0x71b   : > { %v10260_v6 = vadd.f32 %v10160_v12, %v10002_v5  ;;  %v10264_v22 = vadd.f32 %v10160_v12, %v10006_v29  ;;  %v10268_v61 = vadd.f32 %v10160_v12, %v10010_v16  ;;  %v10272_v49 = vadd.f32 %v10160_v12, %v10014_v9  ;;  %v12952_v53 = vld [vmem:[#allocation78_spill] sm:$0xff] }
 0x71c   : > { %v10276_v60 = vadd.f32 %v10160_v12, %v10018_v8  ;;  %v10280_v5 = vadd.f32 %v10160_v12, %v10022_v28  ;;  %v10284_v29 = vadd.f32 %v10160_v12, %v10026_v15  ;;  %v10288_v16 = vadd.f32 %v10160_v12, %v10030_v47 }
 0x71d   : > { %v10292_v9 = vadd.f32 %v10160_v12, %v10034_v55  ;;  %v10296_v8 = vadd.f32 %v10160_v12, %v10038_v32  ;;  %v10300_v28 = vadd.f32 %v10160_v12, %v10042_v30  ;;  %v10304_v15 = vadd.f32 %v10160_v12, %v10046_v63 }
 0x71e   : > { %v10308_v47 = vadd.f32 %v10160_v12, %v10050_v21  ;;  %v10312_v55 = vadd.f32 %v10160_v12, %v10054_v56  ;;  %v10316_v32 = vadd.f32 %v10160_v12, %v10058_v62  ;;  %v10320_v30 = vadd.f32 %v10160_v12, %v10062_v40 }
 0x71f   : > { %v10324_v63 = vadd.f32 %v10160_v12, %v10066_v3  ;;  %v10328_v21 = vadd.f32 %v10160_v12, %v10070_v52  ;;  %v10332_v56 = vadd.f32 %v10160_v12, %v10074_v23  ;;  %v10336_v62 = vadd.f32 %v10160_v12, %v10078_v27 }
 0x720   : > { %v10340_v40 = vadd.f32 %v10160_v12, %v10082_v7  ;;  %v10344_v3 = vadd.f32 %v10160_v12, %v10086_v4  ;;  %v10348_v52 = vadd.f32 %v10160_v12, %v10090_v57  ;;  %v10352_v23 = vadd.f32 %v10160_v12, %v10094_v11 }
 0x721   : > { %v10356_v27 = vadd.f32 %v10160_v12, %v10098_v2  ;;  %v10360_v7 = vadd.f32 %v10160_v12, %v10102_v59  ;;  %v10364_v4 = vadd.f32 %v10160_v12, %v10106_v19  ;;  %v10368_v57 = vadd.f32 %v10160_v12, %v10110_v1 }
 0x722   : > { %v10372_v11 = vadd.f32 %v10160_v12, %v10114_v42  ;;  %v10376_v2 = vadd.f32 %v10160_v12, %v10118_v43  ;;  %v10380_v59 = vadd.f32 %v10160_v12, %v10122_v14  ;;  %v10384_v19 = vadd.f32 %v10160_v12, %v10126_v54 }
 0x723   : > { %v10388_v1 = vadd.f32 %v10160_v12, %v10130_v38  ;;  %v10392_v42 = vadd.f32 %v10160_v12, %v10134_v58  ;;  %v10396_v43 = vadd.f32 %v10160_v12, %v10138_v41  ;;  %v10400_v14 = vadd.f32 %v10160_v12, %v10142_v17 }
 0x724   : > { %v10404_v54 = vadd.f32 %v10160_v12, %v10146_v51  ;;  %v10408_v38 = vadd.f32 %v10160_v12, %v10150_v34  ;;  %v10412_v58 = vadd.f32 %v10160_v12, %v10154_v25  ;;  %v10416_v41 = vadd.f32 %v10160_v12, %v12952_v53 }
 0x725   : > { %12947 = vst [vmem:[#allocation75_spill] sm:$0xff] %v10396_v43  ;;  %12948 = vst [vmem:[#allocation76_spill] sm:$0xff] %v10400_v14  ;;  %v12954_v43 = vld [vmem:[#allocation79_spill] sm:$0xff]  ;;  %v12955_v14 = vld [vmem:[#allocation80_spill] sm:$0xff] }
 0x726   : > { %12949 = vst [vmem:[#allocation77_spill] sm:$0xff] %v10404_v54  ;;  %12950 = vst [vmem:[#allocation81_spill] sm:$0xff] %v10408_v38  ;;  %v10420_v17 = vadd.f32 %v10160_v12, %v12954_v43  ;;  %v10424_v51 = vadd.f32 %v10160_v12, %v12955_v14  ;;  %v12956_v54 = vld [vmem:[#allocation66_spill] sm:$0xff]  ;;  %v12957_v38 = vld [vmem:[#allocation68_spill] sm:$0xff]  ;;  %v10444_v14 = vadd.f32 %v10160_v12, %v10188_v45 }
 0x727   : > { %12951 = vst [vmem:[#allocation82_spill] sm:$0xff] %v10412_v58  ;;  %12953 = vst [vmem:[#allocation78_spill] sm:$0xff] %v10416_v41  ;;  %v10428_v34 = vadd.f32 %v10160_v12, %v12956_v54  ;;  %v10432_v25 = vadd.f32 %v10160_v12, %v12957_v38  ;;  %v12958_v58 = vld [vmem:[#allocation70_spill] sm:$0xff]  ;;  %v12959_v41 = vld [vmem:[#allocation72_spill] sm:$0xff]  ;;  %v10448_v54 = vadd.f32 %v10160_v12, %v10192_v50  ;;  %v4298_v50 = vmax.f32 %v10216_v35, 0.0 }
 0x728   : > { %v10436_v53 = vadd.f32 %v10160_v12, %v12958_v58  ;;  %v10440_v43 = vadd.f32 %v10160_v12, %v12959_v41  ;;  %12960 = vst [vmem:[#allocation79_spill] sm:$0xff] %v10444_v14  ;;  %v10452_v38 = vadd.f32 %v10160_v12, %v10196_v10  ;;  %v10456_v58 = vadd.f32 %v10160_v12, %v10200_v0 }
 0x729   : > { %12961 = vst [vmem:[#allocation80_spill] sm:$0xff] %v10448_v54  ;;  %v10460_v41 = vadd.f32 %v10160_v12, %v10204_v33  ;;  %v10464_v45 = vadd.f32 %v10160_v12, %v10208_v13  ;;  %v4297_v14 = vmax.f32 %v10212_v46, 0.0  ;;  %v4299_v54 = vmax.f32 %v10220_v36, 0.0  ;;  %4362 = vst.msk [vmem:[%s12465_s4 + $0x8] sm:$0xff] %vm2395_vm11, %v4298_v50 }
 0x72a   : > { %12962 = vst [vmem:[#allocation66_spill] sm:$0xff] %v10452_v38  ;;  %12963 = vst [vmem:[#allocation68_spill] sm:$0xff] %v10456_v58  ;;  %v4300_v10 = vmax.f32 %v10224_v31, 0.0  ;;  %v4301_v38 = vmax.f32 %v10228_v37, 0.0  ;;  %v4302_v0 = vmax.f32 %v10232_v24, 0.0  ;;  %v4303_v58 = vmax.f32 %v10236_v44, 0.0 }
 0x72b   : > { %12964 = vst [vmem:[#allocation70_spill] sm:$0xff] %v10460_v41  ;;  %v4304_v33 = vmax.f32 %v10240_v39, 0.0  ;;  %v4305_v41 = vmax.f32 %v10244_v18, 0.0  ;;  %v4306_v13 = vmax.f32 %v10248_v26, 0.0  ;;  %v4307_v46 = vmax.f32 %v10252_v20, 0.0  ;;  %4361 = vst.msk [vmem:[%s12465_s4] sm:$0xff] %vm2395_vm11, %v4297_v14 }
 0x72c   : > { %v4308_v35 = vmax.f32 %v10256_v48, 0.0  ;;  %4363 = vst.msk [vmem:[%s12465_s4 + $0x10] sm:$0xff] %vm2395_vm11, %v4299_v54  ;;  %4364 = vst.msk [vmem:[%s12465_s4 + $0x18] sm:$0xff] %vm2395_vm11, %v4300_v10  ;;  %v4309_v31 = vmax.f32 %v10260_v6, 0.0  ;;  %v4310_v36 = vmax.f32 %v10264_v22, 0.0  ;;  %v4311_v12 = vmax.f32 %v10268_v61, 0.0  ;;  %v10694_v54 = vpop.permute.xlu0 %4425 }
 0x72d   : > { %v4312_v37 = vmax.f32 %v10272_v49, 0.0  ;;  %4365 = vst.msk [vmem:[%s12465_s4 + $0x20] sm:$0xff] %vm2395_vm11, %v4301_v38  ;;  %4366 = vst.msk [vmem:[%s12465_s4 + $0x28] sm:$0xff] %vm2395_vm11, %v4302_v0  ;;  %v4313_v24 = vmax.f32 %v10276_v60, 0.0  ;;  %v4314_v44 = vmax.f32 %v10280_v5, 0.0  ;;  %v4315_v39 = vmax.f32 %v10284_v29, 0.0 }
 0x72e   : > { %4367 = vst.msk [vmem:[%s12465_s4 + $0x30] sm:$0xff] %vm2395_vm11, %v4303_v58  ;;  %4368 = vst.msk [vmem:[%s12465_s4 + $0x38] sm:$0xff] %vm2395_vm11, %v4304_v33  ;;  %v4316_v18 = vmax.f32 %v10288_v16, 0.0  ;;  %v4317_v26 = vmax.f32 %v10292_v9, 0.0  ;;  %v4318_v20 = vmax.f32 %v10296_v8, 0.0  ;;  %v4319_v48 = vmax.f32 %v10300_v28, 0.0 }
 0x72f   : > { %4369 = vst.msk [vmem:[%s12465_s4 + $0x40] sm:$0xff] %vm2395_vm11, %v4305_v41  ;;  %4370 = vst.msk [vmem:[%s12465_s4 + $0x48] sm:$0xff] %vm2395_vm11, %v4306_v13  ;;  %v4320_v6 = vmax.f32 %v10304_v15, 0.0  ;;  %v4321_v22 = vmax.f32 %v10308_v47, 0.0  ;;  %v4322_v61 = vmax.f32 %v10312_v55, 0.0  ;;  %v4323_v49 = vmax.f32 %v10316_v32, 0.0 }
 0x730   : > { %4371 = vst.msk [vmem:[%s12465_s4 + $0x50] sm:$0xff] %vm2395_vm11, %v4307_v46  ;;  %4372 = vst.msk [vmem:[%s12465_s4 + $0x58] sm:$0xff] %vm2395_vm11, %v4308_v35  ;;  %v4324_v60 = vmax.f32 %v10320_v30, 0.0  ;;  %v4325_v5 = vmax.f32 %v10324_v63, 0.0  ;;  %v4326_v29 = vmax.f32 %v10328_v21, 0.0  ;;  %v4327_v16 = vmax.f32 %v10332_v56, 0.0 }
 0x731   : > { %4373 = vst.msk [vmem:[%s12465_s4 + $0x60] sm:$0xff] %vm2395_vm11, %v4309_v31  ;;  %4374 = vst.msk [vmem:[%s12465_s4 + $0x68] sm:$0xff] %vm2395_vm11, %v4310_v36  ;;  %v4328_v9 = vmax.f32 %v10336_v62, 0.0  ;;  %v4329_v8 = vmax.f32 %v10340_v40, 0.0  ;;  %v4330_v28 = vmax.f32 %v10344_v3, 0.0  ;;  %v4331_v15 = vmax.f32 %v10348_v52, 0.0 }
 0x732   : > { %4375 = vst.msk [vmem:[%s12465_s4 + $0x70] sm:$0xff] %vm2395_vm11, %v4311_v12  ;;  %4376 = vst.msk [vmem:[%s12465_s4 + $0x78] sm:$0xff] %vm2395_vm11, %v4312_v37  ;;  %v4332_v47 = vmax.f32 %v10352_v23, 0.0  ;;  %v4333_v55 = vmax.f32 %v10356_v27, 0.0  ;;  %v4334_v32 = vmax.f32 %v10360_v7, 0.0  ;;  %v4335_v30 = vmax.f32 %v10364_v4, 0.0 }
 0x733   : > { %4377 = vst.msk [vmem:[%s12465_s4 + $0x80] sm:$0xff] %vm2395_vm11, %v4313_v24  ;;  %4378 = vst.msk [vmem:[%s12465_s4 + $0x88] sm:$0xff] %vm2395_vm11, %v4314_v44  ;;  %v4336_v63 = vmax.f32 %v10368_v57, 0.0  ;;  %v4337_v21 = vmax.f32 %v10372_v11, 0.0  ;;  %v4338_v56 = vmax.f32 %v10376_v2, 0.0  ;;  %v4339_v62 = vmax.f32 %v10380_v59, 0.0 }
 0x734   : > { %4379 = vst.msk [vmem:[%s12465_s4 + $0x90] sm:$0xff] %vm2395_vm11, %v4315_v39  ;;  %4380 = vst.msk [vmem:[%s12465_s4 + $0x98] sm:$0xff] %vm2395_vm11, %v4316_v18  ;;  %v4340_v40 = vmax.f32 %v10384_v19, 0.0  ;;  %v4341_v3 = vmax.f32 %v10388_v1, 0.0  ;;  %v4342_v52 = vmax.f32 %v10392_v42, 0.0  ;;  %v12965_v23 = vld [vmem:[#allocation75_spill] sm:$0xff] }
 0x735   : > { %4381 = vst.msk [vmem:[%s12465_s4 + $0xa0] sm:$0xff] %vm2395_vm11, %v4317_v26  ;;  %4382 = vst.msk [vmem:[%s12465_s4 + $0xa8] sm:$0xff] %vm2395_vm11, %v4318_v20  ;;  %v4343_v27 = vmax.f32 %v12965_v23, 0.0  ;;  %v12966_v7 = vld [vmem:[#allocation76_spill] sm:$0xff]  ;;  %v12967_v57 = vld [vmem:[#allocation77_spill] sm:$0xff]  ;;  %v4349_v38 = vmax.f32 %v10420_v17, 0.0 }
 0x736   : > { %4383 = vst.msk [vmem:[%s12465_s4 + $0xb0] sm:$0xff] %vm2395_vm11, %v4319_v48  ;;  %4384 = vst.msk [vmem:[%s12465_s4 + $0xb8] sm:$0xff] %vm2395_vm11, %v4320_v6  ;;  %v4344_v4 = vmax.f32 %v12966_v7, 0.0  ;;  %v4345_v11 = vmax.f32 %v12967_v57, 0.0  ;;  %v12968_v2 = vld [vmem:[#allocation81_spill] sm:$0xff]  ;;  %v12969_v19 = vld [vmem:[#allocation82_spill] sm:$0xff] }
 0x737   : > { %4385 = vst.msk [vmem:[%s12465_s4 + $0xc0] sm:$0xff] %vm2395_vm11, %v4321_v22  ;;  %4386 = vst.msk [vmem:[%s12465_s4 + $0xc8] sm:$0xff] %vm2395_vm11, %v4322_v61  ;;  %v4346_v59 = vmax.f32 %v12968_v2, 0.0  ;;  %v4347_v1 = vmax.f32 %v12969_v19, 0.0  ;;  %v12970_v42 = vld [vmem:[#allocation78_spill] sm:$0xff]  ;;  %v4350_v58 = vmax.f32 %v10424_v51, 0.0 }
 0x738   : > { %4387 = vst.msk [vmem:[%s12465_s4 + $0xd0] sm:$0xff] %vm2395_vm11, %v4323_v49  ;;  %4388 = vst.msk [vmem:[%s12465_s4 + $0xd8] sm:$0xff] %vm2395_vm11, %v4324_v60  ;;  %v4348_v14 = vmax.f32 %v12970_v42, 0.0  ;;  %v4351_v41 = vmax.f32 %v10428_v34, 0.0  ;;  %v4352_v50 = vmax.f32 %v10432_v25, 0.0  ;;  %v4353_v17 = vmax.f32 %v10436_v53, 0.0 }
 0x739   : > { %4389 = vst.msk [vmem:[%s12465_s4 + $0xe0] sm:$0xff] %vm2395_vm11, %v4325_v5  ;;  %4390 = vst.msk [vmem:[%s12465_s4 + $0xe8] sm:$0xff] %vm2395_vm11, %v4326_v29  ;;  %v4354_v51 = vmax.f32 %v10440_v43, 0.0  ;;  %v12971_v34 = vld [vmem:[#allocation79_spill] sm:$0xff]  ;;  %v12972_v10 = vld [vmem:[#allocation80_spill] sm:$0xff]  ;;  %v4360_v31 = vmax.f32 %v10464_v45, 0.0 }
 0x73a   : > { %4391 = vst.msk [vmem:[%s12465_s4 + $0xf0] sm:$0xff] %vm2395_vm11, %v4327_v16  ;;  %4392 = vst.msk [vmem:[%s12465_s4 + $0xf8] sm:$0xff] %vm2395_vm11, %v4328_v9  ;;  %v4355_v25 = vmax.f32 %v12971_v34, 0.0  ;;  %v4356_v0 = vmax.f32 %v12972_v10, 0.0  ;;  %v12973_v53 = vld [vmem:[#allocation66_spill] sm:$0xff]  ;;  %v12974_v33 = vld [vmem:[#allocation68_spill] sm:$0xff] }
 0x73b   : > { %4393 = vst.msk [vmem:[%s12465_s4 + $0x100] sm:$0xff] %vm2395_vm11, %v4329_v8  ;;  %4394 = vst.msk [vmem:[%s12465_s4 + $0x108] sm:$0xff] %vm2395_vm11, %v4330_v28  ;;  %v4357_v43 = vmax.f32 %v12973_v53, 0.0  ;;  %v4358_v13 = vmax.f32 %v12974_v33, 0.0  ;;  %v12975_v46 = vld [vmem:[#allocation70_spill] sm:$0xff]  ;;  %v12976_v45 = vld [vmem:[#allocation51_spill] sm:$0xff] }
 0x73c   : > { %4395 = vst.msk [vmem:[%s12465_s4 + $0x110] sm:$0xff] %vm2395_vm11, %v4331_v15  ;;  %4396 = vst.msk [vmem:[%s12465_s4 + $0x118] sm:$0xff] %vm2395_vm11, %v4332_v47  ;;  %v4359_v35 = vmax.f32 %v12975_v46, 0.0  ;;  %v10774_v36 = vmul.f32 %v12976_v45, %v10694_v54  ;;  %v12977_v12 = vld [vmem:[#allocation52_spill] sm:$0xff]  ;;  %v12978_v24 = vld [vmem:[#allocation54_spill] sm:$0xff] }
 0x73d   : > { %4397 = vst.msk [vmem:[%s12465_s4 + $0x120] sm:$0xff] %vm2395_vm11, %v4333_v55  ;;  %4398 = vst.msk [vmem:[%s12465_s4 + $0x128] sm:$0xff] %vm2395_vm11, %v4334_v32  ;;  %v10778_v37 = vmul.f32 %v12977_v12, %v10694_v54  ;;  %v10782_v44 = vmul.f32 %v12978_v24, %v10694_v54  ;;  %v12979_v39 = vld [vmem:[#allocation56_spill] sm:$0xff]  ;;  %v12980_v26 = vld [vmem:[#allocation58_spill] sm:$0xff] }
 0x73e   : > { %4399 = vst.msk [vmem:[%s12465_s4 + $0x130] sm:$0xff] %vm2395_vm11, %v4335_v30  ;;  %4400 = vst.msk [vmem:[%s12465_s4 + $0x138] sm:$0xff] %vm2395_vm11, %v4336_v63  ;;  %v10786_v18 = vmul.f32 %v12979_v39, %v10694_v54  ;;  %v10806_v20 = vmul.f32 %v12980_v26, %v10694_v54  ;;  %v12981_v48 = vld [vmem:[#allocation60_spill] sm:$0xff]  ;;  %v12982_v22 = vld [vmem:[#allocation23_spill] sm:$0xff] }
 0x73f   : > { %4401 = vst.msk [vmem:[%s12465_s4 + $0x140] sm:$0xff] %vm2395_vm11, %v4337_v21  ;;  %4402 = vst.msk [vmem:[%s12465_s4 + $0x148] sm:$0xff] %vm2395_vm11, %v4338_v56  ;;  %v10810_v6 = vmul.f32 %v12981_v48, %v10694_v54  ;;  %v10814_v61 = vmul.f32 %v12982_v22, %v10694_v54  ;;  %v12983_v49 = vld [vmem:[#allocation25_spill] sm:$0xff]  ;;  %v12985_v16 = vld [vmem:[#allocation22_spill] sm:$0xff]  ;;  %v10996_v48 = vpop.permute.xlu1 %4492 }
 0x740   : > { %4403 = vst.msk [vmem:[%s12465_s4 + $0x150] sm:$0xff] %vm2395_vm11, %v4339_v62  ;;  %4404 = vst.msk [vmem:[%s12465_s4 + $0x158] sm:$0xff] %vm2395_vm11, %v4340_v40  ;;  %v10818_v60 = vmul.f32 %v12983_v49, %v10694_v54  ;;  %v12984_v5 = vld [vmem:[#allocation9_spill] sm:$0xff]  ;;  %v10826_v9 = vmul.f32 %v12985_v16, %v10694_v54  ;;  %v12986_v8 = vld [vmem:[#allocation24_spill] sm:$0xff] }
 0x741   : > { %4405 = vst.msk [vmem:[%s12465_s4 + $0x160] sm:$0xff] %vm2395_vm11, %v4341_v3  ;;  %4406 = vst.msk [vmem:[%s12465_s4 + $0x168] sm:$0xff] %vm2395_vm11, %v4342_v52  ;;  %v10822_v29 = vmul.f32 %v12984_v5, %v10694_v54  ;;  %v10830_v28 = vmul.f32 %v12986_v8, %v10694_v54  ;;  %v12987_v15 = vld [vmem:[#allocation7_spill] sm:$0xff]  ;;  %v12988_v55 = vld [vmem:[#allocation8_spill] sm:$0xff] }
 0x742   : > { %4407 = vst.msk [vmem:[%s12465_s4 + $0x170] sm:$0xff] %vm2395_vm11, %v4343_v27  ;;  %4408 = vst.msk [vmem:[%s12465_s4 + $0x178] sm:$0xff] %vm2395_vm11, %v4344_v4  ;;  %v10834_v47 = vmul.f32 %v12987_v15, %v10694_v54  ;;  %v10838_v32 = vmul.f32 %v12988_v55, %v10694_v54  ;;  %v12989_v30 = vld [vmem:[#allocation61_spill] sm:$0xff]  ;;  %v12991_v62 = vld [vmem:[#allocation16_spill] sm:$0xff] }
 0x743   : > { %4409 = vst.msk [vmem:[%s12465_s4 + $0x180] sm:$0xff] %vm2395_vm11, %v4345_v11  ;;  %4410 = vst.msk [vmem:[%s12465_s4 + $0x188] sm:$0xff] %vm2395_vm11, %v4346_v59  ;;  %v10842_v63 = vmul.f32 %v12989_v30, %v10694_v54  ;;  %v12990_v21 = vld [vmem:[#allocation53_spill] sm:$0xff]  ;;  %v10850_v40 = vmul.f32 %v12991_v62, %v10694_v54  ;;  %v12992_v3 = vld [vmem:[#allocation62_spill] sm:$0xff] }
 0x744   : > { %4411 = vst.msk [vmem:[%s12465_s4 + $0x190] sm:$0xff] %vm2395_vm11, %v4347_v1  ;;  %4412 = vst.msk [vmem:[%s12465_s4 + $0x198] sm:$0xff] %vm2395_vm11, %v4348_v14  ;;  %v10846_v56 = vmul.f32 %v12990_v21, %v10694_v54  ;;  %v10854_v52 = vmul.f32 %v12992_v3, %v10694_v54  ;;  %v12993_v23 = vld [vmem:[#allocation63_spill] sm:$0xff]  ;;  %v12994_v7 = vld [vmem:[#allocation64_spill] sm:$0xff] }
 0x745   : > { %4413 = vst.msk [vmem:[%s12465_s4 + $0x1a0] sm:$0xff] %vm2395_vm11, %v4349_v38  ;;  %4414 = vst.msk [vmem:[%s12465_s4 + $0x1a8] sm:$0xff] %vm2395_vm11, %v4350_v58  ;;  %v10858_v27 = vmul.f32 %v12993_v23, %v10694_v54  ;;  %v10862_v4 = vmul.f32 %v12994_v7, %v10694_v54  ;;  %v12995_v57 = vld [vmem:[#allocation65_spill] sm:$0xff]  ;;  %v12996_v2 = vld [vmem:[#allocation67_spill] sm:$0xff] }
 0x746   : > { %4415 = vst.msk [vmem:[%s12465_s4 + $0x1b0] sm:$0xff] %vm2395_vm11, %v4351_v41  ;;  %4416 = vst.msk [vmem:[%s12465_s4 + $0x1b8] sm:$0xff] %vm2395_vm11, %v4352_v50  ;;  %v10866_v11 = vmul.f32 %v12995_v57, %v10694_v54  ;;  %v10870_v59 = vmul.f32 %v12996_v2, %v10694_v54  ;;  %v12997_v19 = vld [vmem:[#allocation69_spill] sm:$0xff]  ;;  %v12998_v42 = vld [vmem:[#allocation71_spill] sm:$0xff] }
 0x747   : > { %4417 = vst.msk [vmem:[%s12465_s4 + $0x1c0] sm:$0xff] %vm2395_vm11, %v4353_v17  ;;  %4418 = vst.msk [vmem:[%s12465_s4 + $0x1c8] sm:$0xff] %vm2395_vm11, %v4354_v51  ;;  %v10874_v1 = vmul.f32 %v12997_v19, %v10694_v54  ;;  %v10878_v14 = vmul.f32 %v12998_v42, %v10694_v54  ;;  %v12999_v38 = vld [vmem:[#allocation73_spill] sm:$0xff]  ;;  %v13000_v41 = vld [vmem:[#allocation74_spill] sm:$0xff] }
 0x748   : > { %4419 = vst.msk [vmem:[%s12465_s4 + $0x1d0] sm:$0xff] %vm2395_vm11, %v4355_v25  ;;  %4420 = vst.msk [vmem:[%s12465_s4 + $0x1d8] sm:$0xff] %vm2395_vm11, %v4356_v0  ;;  %v10882_v58 = vmul.f32 %v12999_v38, %v10694_v54  ;;  %v10886_v50 = vmul.f32 %v13000_v41, %v10694_v54  ;;  %v13001_v17 = vld [vmem:[#allocation31_spill] sm:$0xff]  ;;  %v13003_v10 = vld [vmem:[#allocation38_spill] sm:$0xff] }
 0x749   : > { %4421 = vst.msk [vmem:[%s12465_s4 + $0x1e0] sm:$0xff] %vm2395_vm11, %v4357_v43  ;;  %4422 = vst.msk [vmem:[%s12465_s4 + $0x1e8] sm:$0xff] %vm2395_vm11, %v4358_v13  ;;  %v10890_v51 = vmul.f32 %v13001_v17, %v10694_v54  ;;  %v13002_v34 = vld [vmem:[#allocation35_spill] sm:$0xff]  ;;  %v10898_v0 = vmul.f32 %v13003_v10, %v10694_v54  ;;  %v13004_v53 = vld [vmem:[#allocation41_spill] sm:$0xff] }
 0x74a   : > { %4423 = vst.msk [vmem:[%s12465_s4 + $0x1f0] sm:$0xff] %vm2395_vm11, %v4359_v35  ;;  %4424 = vst.msk [vmem:[%s12465_s4 + $0x1f8] sm:$0xff] %vm2395_vm11, %v4360_v31  ;;  %v10894_v25 = vmul.f32 %v13002_v34, %v10694_v54  ;;  %v10902_v43 = vmul.f32 %v13004_v53, %v10694_v54  ;;  %v13005_v33 = vld [vmem:[#allocation20_spill] sm:$0xff]  ;;  %v13006_v46 = vld [vmem:[#allocation26_spill] sm:$0xff] }
 0x74b   : > { %v10906_v13 = vmul.f32 %v13005_v33, %v10694_v54  ;;  %v10910_v35 = vmul.f32 %v13006_v46, %v10694_v54  ;;  %v13007_v31 = vld [vmem:[#allocation28_spill] sm:$0xff]  ;;  %v13008_v17 = vld [vmem:[#allocation29_spill] sm:$0xff]  ;;  %v13009_v41 = vld [vmem:[#allocation30_spill] sm:$0xff] }
 0x74c   : > { %v10914_v34 = vmul.f32 %v13007_v31, %v10694_v54  ;;  %v10918_v10 = vmul.f32 %v13008_v17, %v10694_v54  ;;  %v10922_v53 = vmul.f32 %v13009_v41, %v10694_v54  ;;  %v13010_v38 = vld [vmem:[#allocation32_spill] sm:$0xff]  ;;  %v13011_v42 = vld [vmem:[#allocation33_spill] sm:$0xff]  ;;  %v13012_v19 = vld [vmem:[#allocation34_spill] sm:$0xff] }
 0x74d   : > { %v10926_v33 = vmul.f32 %v13010_v38, %v10694_v54  ;;  %v10930_v46 = vmul.f32 %v13011_v42, %v10694_v54  ;;  %v10934_v31 = vmul.f32 %v13012_v19, %v10694_v54  ;;  %v13013_v2 = vld [vmem:[#allocation36_spill] sm:$0xff]  ;;  %v13014_v57 = vld [vmem:[#allocation37_spill] sm:$0xff]  ;;  %v13015_v7 = vld [vmem:[#allocation39_spill] sm:$0xff] }
 0x74e   : > { %v10938_v17 = vmul.f32 %v13013_v2, %v10694_v54  ;;  %v10942_v41 = vmul.f32 %v13014_v57, %v10694_v54  ;;  %v10946_v38 = vmul.f32 %v13015_v7, %v10694_v54  ;;  %v13016_v23 = vld [vmem:[#allocation40_spill] sm:$0xff]  ;;  %v13017_v3 = vld [vmem:[#allocation10_spill] sm:$0xff]  ;;  %v13018_v62 = vld [vmem:[#allocation11_spill] sm:$0xff] }
 0x74f   : > { %v10950_v42 = vmul.f32 %v13016_v23, %v10694_v54  ;;  %v10954_v19 = vmul.f32 %v13017_v3, %v10694_v54  ;;  %v10958_v2 = vmul.f32 %v13018_v62, %v10694_v54  ;;  %v13019_v21 = vld [vmem:[#allocation42_spill] sm:$0xff]  ;;  %v13020_v30 = vld [vmem:[#allocation43_spill] sm:$0xff]  ;;  %v13021_v55 = vld [vmem:[#allocation44_spill] sm:$0xff] }
 0x750   : > { %v10962_v57 = vmul.f32 %v13019_v21, %v10694_v54  ;;  %v10966_v7 = vmul.f32 %v13020_v30, %v10694_v54  ;;  %v10970_v23 = vmul.f32 %v13021_v55, %v10694_v54  ;;  %v13022_v15 = vld [vmem:[#allocation12_spill] sm:$0xff]  ;;  %v13023_v8 = vld [vmem:[#allocation45_spill] sm:$0xff]  ;;  %v13025_v5 = vld [vmem:[#allocation46_spill] sm:$0xff] }
 0x751   : > { %v10974_v3 = vmul.f32 %v13022_v15, %v10694_v54  ;;  %v10978_v62 = vmul.f32 %v13023_v8, %v10694_v54  ;;  %v13024_v16 = vld [vmem:[#allocation13_spill] sm:$0xff]  ;;  %v10986_v30 = vmul.f32 %v13025_v5, %v10694_v54  ;;  %v13026_v49 = vld [vmem:[#allocation47_spill] sm:$0xff]  ;;  %v13027_v22 = vld [vmem:[#allocation14_spill] sm:$0xff] }
 0x752   : > { %v10982_v21 = vmul.f32 %v13024_v16, %v10694_v54  ;;  %v10990_v55 = vmul.f32 %v13026_v49, %v10694_v54  ;;  %v10994_v15 = vmul.f32 %v13027_v22, %v10694_v54  ;;  %v13029_v8 = vld [vmem:[#allocation15_spill] sm:$0xff]  ;;  %v13031_v16 = vld [vmem:[#allocation48_spill] sm:$0xff]  ;;  %v13033_v5 = vld [vmem:[#allocation49_spill] sm:$0xff] }
 0x753   : > { %v11000_v26 = vmul.f32 %v13029_v8, %v10694_v54  ;;  %v11004_v39 = vmul.f32 %v13031_v16, %v10694_v54  ;;  %v11008_v24 = vmul.f32 %v13033_v5, %v10694_v54  ;;  %v13035_v49 = vld [vmem:[#allocation50_spill] sm:$0xff]  ;;  %v13037_v22 = vld [vmem:[#allocation55_spill] sm:$0xff] }
 0x754   : > { %13028 = vst [vmem:[#allocation72_spill] sm:$0xff] %v10994_v15  ;;  %v11012_v12 = vmul.f32 %v13035_v49, %v10694_v54  ;;  %v11016_v45 = vmul.f32 %v13037_v22, %v10694_v54  ;;  %v13039_v15 = vld [vmem:[#allocation57_spill] sm:$0xff] }
 0x755   : > { %13030 = vst [vmem:[#allocation75_spill] sm:$0xff] %v11000_v26  ;;  %13032 = vst [vmem:[#allocation76_spill] sm:$0xff] %v11004_v39  ;;  %v11020_v8 = vmul.f32 %v13039_v15, %v10694_v54  ;;  %v13041_v26 = vld [vmem:[#allocation17_spill] sm:$0xff]  ;;  %v13042_v39 = vld [vmem:[#allocation59_spill] sm:$0xff] }
 0x756   : > { %13034 = vst [vmem:[#allocation77_spill] sm:$0xff] %v11008_v24  ;;  %13036 = vst [vmem:[#allocation81_spill] sm:$0xff] %v11012_v12  ;;  %v11024_v16 = vmul.f32 %v13041_v26, %v10694_v54  ;;  %v11028_v5 = vmul.f32 %v13042_v39, %v10694_v54  ;;  %v13043_v24 = vld [vmem:[#allocation18_spill] sm:$0xff]  ;;  %v13044_v12 = vld [vmem:[#allocation19_spill] sm:$0xff]  ;;  %v11048_v39 = vadd.f32 %v10996_v48, %v10774_v36 }
 0x757   : > { %13038 = vst [vmem:[#allocation82_spill] sm:$0xff] %v11016_v45  ;;  %13040 = vst [vmem:[#allocation78_spill] sm:$0xff] %v11020_v8  ;;  %v11032_v49 = vmul.f32 %v13043_v24, %v10694_v54  ;;  %v11036_v22 = vmul.f32 %v13044_v12, %v10694_v54  ;;  %v13045_v45 = vld [vmem:[#allocation21_spill] sm:$0xff]  ;;  %v13046_v8 = vld [vmem:[#allocation27_spill] sm:$0xff]  ;;  %v11052_v24 = vadd.f32 %v10996_v48, %v10778_v37 }
 0x758   : > { %v11040_v15 = vmul.f32 %v13045_v45, %v10694_v54  ;;  %v11044_v26 = vmul.f32 %v13046_v8, %v10694_v54  ;;  %v11056_v12 = vadd.f32 %v10996_v48, %v10782_v44  ;;  %v11060_v45 = vadd.f32 %v10996_v48, %v10786_v18 }
 0x759   : > { %v11064_v54 = vadd.f32 %v10996_v48, %v10806_v20  ;;  %v11068_v36 = vadd.f32 %v10996_v48, %v10810_v6  ;;  %v11072_v37 = vadd.f32 %v10996_v48, %v10814_v61  ;;  %v11076_v44 = vadd.f32 %v10996_v48, %v10818_v60 }
 0x75a   : > { %v11080_v18 = vadd.f32 %v10996_v48, %v10822_v29  ;;  %v11084_v20 = vadd.f32 %v10996_v48, %v10826_v9  ;;  %v11088_v6 = vadd.f32 %v10996_v48, %v10830_v28  ;;  %v11092_v61 = vadd.f32 %v10996_v48, %v10834_v47 }
 0x75b   : > { %v11096_v60 = vadd.f32 %v10996_v48, %v10838_v32  ;;  %v11100_v29 = vadd.f32 %v10996_v48, %v10842_v63  ;;  %v11104_v9 = vadd.f32 %v10996_v48, %v10846_v56  ;;  %v11108_v28 = vadd.f32 %v10996_v48, %v10850_v40  ;;  %v13052_v8 = vld [vmem:[#allocation72_spill] sm:$0xff] }
 0x75c   : > { %v11112_v47 = vadd.f32 %v10996_v48, %v10854_v52  ;;  %v11116_v32 = vadd.f32 %v10996_v48, %v10858_v27  ;;  %v11120_v63 = vadd.f32 %v10996_v48, %v10862_v4  ;;  %v11124_v56 = vadd.f32 %v10996_v48, %v10866_v11 }
 0x75d   : > { %v11128_v40 = vadd.f32 %v10996_v48, %v10870_v59  ;;  %v11132_v52 = vadd.f32 %v10996_v48, %v10874_v1  ;;  %v11136_v27 = vadd.f32 %v10996_v48, %v10878_v14  ;;  %v11140_v4 = vadd.f32 %v10996_v48, %v10882_v58 }
 0x75e   : > { %v11144_v11 = vadd.f32 %v10996_v48, %v10886_v50  ;;  %v11148_v59 = vadd.f32 %v10996_v48, %v10890_v51  ;;  %v11152_v1 = vadd.f32 %v10996_v48, %v10894_v25  ;;  %v11156_v14 = vadd.f32 %v10996_v48, %v10898_v0 }
 0x75f   : > { %v11160_v58 = vadd.f32 %v10996_v48, %v10902_v43  ;;  %v11164_v50 = vadd.f32 %v10996_v48, %v10906_v13  ;;  %v11168_v51 = vadd.f32 %v10996_v48, %v10910_v35  ;;  %v11172_v25 = vadd.f32 %v10996_v48, %v10914_v34 }
 0x760   : > { %v11176_v0 = vadd.f32 %v10996_v48, %v10918_v10  ;;  %v11180_v43 = vadd.f32 %v10996_v48, %v10922_v53  ;;  %v11184_v13 = vadd.f32 %v10996_v48, %v10926_v33  ;;  %v11188_v35 = vadd.f32 %v10996_v48, %v10930_v46 }
 0x761   : > { %v11192_v34 = vadd.f32 %v10996_v48, %v10934_v31  ;;  %v11196_v10 = vadd.f32 %v10996_v48, %v10938_v17  ;;  %v11200_v53 = vadd.f32 %v10996_v48, %v10942_v41  ;;  %v11204_v33 = vadd.f32 %v10996_v48, %v10946_v38 }
 0x762   : > { %v11208_v46 = vadd.f32 %v10996_v48, %v10950_v42  ;;  %v11212_v31 = vadd.f32 %v10996_v48, %v10954_v19  ;;  %v11216_v17 = vadd.f32 %v10996_v48, %v10958_v2  ;;  %v11220_v41 = vadd.f32 %v10996_v48, %v10962_v57 }
 0x763   : > { %v11224_v38 = vadd.f32 %v10996_v48, %v10966_v7  ;;  %v11228_v42 = vadd.f32 %v10996_v48, %v10970_v23  ;;  %v11232_v19 = vadd.f32 %v10996_v48, %v10974_v3  ;;  %v11236_v2 = vadd.f32 %v10996_v48, %v10978_v62 }
 0x764   : > { %v11240_v57 = vadd.f32 %v10996_v48, %v10982_v21  ;;  %v11244_v7 = vadd.f32 %v10996_v48, %v10986_v30  ;;  %v11248_v23 = vadd.f32 %v10996_v48, %v10990_v55  ;;  %v11252_v3 = vadd.f32 %v10996_v48, %v13052_v8 }
 0x765   : > { %13047 = vst [vmem:[#allocation79_spill] sm:$0xff] %v11232_v19  ;;  %13048 = vst [vmem:[#allocation80_spill] sm:$0xff] %v11236_v2  ;;  %v13054_v19 = vld [vmem:[#allocation75_spill] sm:$0xff]  ;;  %v13055_v2 = vld [vmem:[#allocation76_spill] sm:$0xff] }
 0x766   : > { %13049 = vst [vmem:[#allocation66_spill] sm:$0xff] %v11240_v57  ;;  %13050 = vst [vmem:[#allocation68_spill] sm:$0xff] %v11244_v7  ;;  %v11256_v62 = vadd.f32 %v10996_v48, %v13054_v19  ;;  %v11260_v21 = vadd.f32 %v10996_v48, %v13055_v2  ;;  %v13056_v57 = vld [vmem:[#allocation77_spill] sm:$0xff]  ;;  %v11280_v2 = vadd.f32 %v10996_v48, %v11024_v16 }
 0x767   : > { %13051 = vst [vmem:[#allocation70_spill] sm:$0xff] %v11248_v23  ;;  %13053 = vst [vmem:[#allocation72_spill] sm:$0xff] %v11252_v3  ;;  %v11264_v30 = vadd.f32 %v10996_v48, %v13056_v57  ;;  %v13057_v7 = vld [vmem:[#allocation81_spill] sm:$0xff]  ;;  %v13058_v23 = vld [vmem:[#allocation82_spill] sm:$0xff]  ;;  %v11284_v57 = vadd.f32 %v10996_v48, %v11028_v5  ;;  %v11300_v16 = vadd.f32 %v10996_v48, %v11044_v26  ;;  %v4560_v5 = vmax.f32 %v11052_v24, 0.0 }
 0x768   : > { %v11268_v55 = vadd.f32 %v10996_v48, %v13057_v7  ;;  %v11272_v8 = vadd.f32 %v10996_v48, %v13058_v23  ;;  %v13059_v3 = vld [vmem:[#allocation78_spill] sm:$0xff]  ;;  %13060 = vst [vmem:[#allocation75_spill] sm:$0xff] %v11280_v2  ;;  %v11288_v7 = vadd.f32 %v10996_v48, %v11032_v49  ;;  %v11292_v23 = vadd.f32 %v10996_v48, %v11036_v22 }
 0x769   : > { %v11276_v19 = vadd.f32 %v10996_v48, %v13059_v3  ;;  %13061 = vst [vmem:[#allocation76_spill] sm:$0xff] %v11284_v57  ;;  %v11296_v3 = vadd.f32 %v10996_v48, %v11040_v15  ;;  %v4559_v2 = vmax.f32 %v11048_v39, 0.0  ;;  %v4561_v57 = vmax.f32 %v11056_v12, 0.0  ;;  %4624 = vst.msk [vmem:[%s12465_s4 + $0x8] sm:$0xff] %vm2534_vm12, %v4560_v5 }
 0x76a   : > { %13062 = vst [vmem:[#allocation77_spill] sm:$0xff] %v11288_v7  ;;  %13063 = vst [vmem:[#allocation81_spill] sm:$0xff] %v11292_v23  ;;  %v4562_v49 = vmax.f32 %v11060_v45, 0.0  ;;  %v4563_v7 = vmax.f32 %v11064_v54, 0.0  ;;  %v4564_v22 = vmax.f32 %v11068_v36, 0.0  ;;  %v4565_v23 = vmax.f32 %v11072_v37, 0.0 }
 0x76b   : > { %13064 = vst [vmem:[#allocation82_spill] sm:$0xff] %v11296_v3  ;;  %v4566_v15 = vmax.f32 %v11076_v44, 0.0  ;;  %v4567_v3 = vmax.f32 %v11080_v18, 0.0  ;;  %v4568_v26 = vmax.f32 %v11084_v20, 0.0  ;;  %v4569_v39 = vmax.f32 %v11088_v6, 0.0  ;;  %4623 = vst.msk [vmem:[%s12465_s4] sm:$0xff] %vm2534_vm12, %v4559_v2 }
 0x76c   : > { %v4570_v24 = vmax.f32 %v11092_v61, 0.0  ;;  %4625 = vst.msk [vmem:[%s12465_s4 + $0x10] sm:$0xff] %vm2534_vm12, %v4561_v57  ;;  %4626 = vst.msk [vmem:[%s12465_s4 + $0x18] sm:$0xff] %vm2534_vm12, %v4562_v49  ;;  %v4571_v45 = vmax.f32 %v11096_v60, 0.0  ;;  %v4572_v12 = vmax.f32 %v11100_v29, 0.0  ;;  %v4573_v48 = vmax.f32 %v11104_v9, 0.0  ;;  %v11530_v57 = vpop.permute.xlu0 %4687 }
 0x76d   : > { %v4574_v54 = vmax.f32 %v11108_v28, 0.0  ;;  %4627 = vst.msk [vmem:[%s12465_s4 + $0x20] sm:$0xff] %vm2534_vm12, %v4563_v7  ;;  %4628 = vst.msk [vmem:[%s12465_s4 + $0x28] sm:$0xff] %vm2534_vm12, %v4564_v22  ;;  %v4575_v36 = vmax.f32 %v11112_v47, 0.0  ;;  %v4576_v37 = vmax.f32 %v11116_v32, 0.0  ;;  %v4577_v44 = vmax.f32 %v11120_v63, 0.0 }
 0x76e   : > { %4629 = vst.msk [vmem:[%s12465_s4 + $0x30] sm:$0xff] %vm2534_vm12, %v4565_v23  ;;  %4630 = vst.msk [vmem:[%s12465_s4 + $0x38] sm:$0xff] %vm2534_vm12, %v4566_v15  ;;  %v4578_v18 = vmax.f32 %v11124_v56, 0.0  ;;  %v4579_v20 = vmax.f32 %v11128_v40, 0.0  ;;  %v4580_v6 = vmax.f32 %v11132_v52, 0.0  ;;  %v4581_v61 = vmax.f32 %v11136_v27, 0.0 }
 0x76f   : > { %4631 = vst.msk [vmem:[%s12465_s4 + $0x40] sm:$0xff] %vm2534_vm12, %v4567_v3  ;;  %4632 = vst.msk [vmem:[%s12465_s4 + $0x48] sm:$0xff] %vm2534_vm12, %v4568_v26  ;;  %v4582_v60 = vmax.f32 %v11140_v4, 0.0  ;;  %v4583_v29 = vmax.f32 %v11144_v11, 0.0  ;;  %v4584_v9 = vmax.f32 %v11148_v59, 0.0  ;;  %v4585_v28 = vmax.f32 %v11152_v1, 0.0 }
 0x770   : > { %4633 = vst.msk [vmem:[%s12465_s4 + $0x50] sm:$0xff] %vm2534_vm12, %v4569_v39  ;;  %4634 = vst.msk [vmem:[%s12465_s4 + $0x58] sm:$0xff] %vm2534_vm12, %v4570_v24  ;;  %v4586_v47 = vmax.f32 %v11156_v14, 0.0  ;;  %v4587_v32 = vmax.f32 %v11160_v58, 0.0  ;;  %v4588_v63 = vmax.f32 %v11164_v50, 0.0  ;;  %v4589_v56 = vmax.f32 %v11168_v51, 0.0 }
 0x771   : > { %4635 = vst.msk [vmem:[%s12465_s4 + $0x60] sm:$0xff] %vm2534_vm12, %v4571_v45  ;;  %4636 = vst.msk [vmem:[%s12465_s4 + $0x68] sm:$0xff] %vm2534_vm12, %v4572_v12  ;;  %v4590_v40 = vmax.f32 %v11172_v25, 0.0  ;;  %v4591_v52 = vmax.f32 %v11176_v0, 0.0  ;;  %v4592_v27 = vmax.f32 %v11180_v43, 0.0  ;;  %v4593_v4 = vmax.f32 %v11184_v13, 0.0 }
 0x772   : > { %4637 = vst.msk [vmem:[%s12465_s4 + $0x70] sm:$0xff] %vm2534_vm12, %v4573_v48  ;;  %4638 = vst.msk [vmem:[%s12465_s4 + $0x78] sm:$0xff] %vm2534_vm12, %v4574_v54  ;;  %v4594_v11 = vmax.f32 %v11188_v35, 0.0  ;;  %v4595_v59 = vmax.f32 %v11192_v34, 0.0  ;;  %v4596_v1 = vmax.f32 %v11196_v10, 0.0  ;;  %v4597_v14 = vmax.f32 %v11200_v53, 0.0 }
 0x773   : > { %4639 = vst.msk [vmem:[%s12465_s4 + $0x80] sm:$0xff] %vm2534_vm12, %v4575_v36  ;;  %4640 = vst.msk [vmem:[%s12465_s4 + $0x88] sm:$0xff] %vm2534_vm12, %v4576_v37  ;;  %v4598_v58 = vmax.f32 %v11204_v33, 0.0  ;;  %v4599_v50 = vmax.f32 %v11208_v46, 0.0  ;;  %v4600_v51 = vmax.f32 %v11212_v31, 0.0  ;;  %v4601_v25 = vmax.f32 %v11216_v17, 0.0 }
 0x774   : > { %4641 = vst.msk [vmem:[%s12465_s4 + $0x90] sm:$0xff] %vm2534_vm12, %v4577_v44  ;;  %4642 = vst.msk [vmem:[%s12465_s4 + $0x98] sm:$0xff] %vm2534_vm12, %v4578_v18  ;;  %v4602_v0 = vmax.f32 %v11220_v41, 0.0  ;;  %v4603_v43 = vmax.f32 %v11224_v38, 0.0  ;;  %v4604_v13 = vmax.f32 %v11228_v42, 0.0  ;;  %v13065_v35 = vld [vmem:[#allocation79_spill] sm:$0xff] }
 0x775   : > { %4643 = vst.msk [vmem:[%s12465_s4 + $0xa0] sm:$0xff] %vm2534_vm12, %v4579_v20  ;;  %4644 = vst.msk [vmem:[%s12465_s4 + $0xa8] sm:$0xff] %vm2534_vm12, %v4580_v6  ;;  %v4605_v34 = vmax.f32 %v13065_v35, 0.0  ;;  %v13066_v10 = vld [vmem:[#allocation80_spill] sm:$0xff]  ;;  %v13067_v33 = vld [vmem:[#allocation66_spill] sm:$0xff]  ;;  %v4611_v7 = vmax.f32 %v11256_v62, 0.0 }
 0x776   : > { %4645 = vst.msk [vmem:[%s12465_s4 + $0xb0] sm:$0xff] %vm2534_vm12, %v4581_v61  ;;  %4646 = vst.msk [vmem:[%s12465_s4 + $0xb8] sm:$0xff] %vm2534_vm12, %v4582_v60  ;;  %v4606_v53 = vmax.f32 %v13066_v10, 0.0  ;;  %v4607_v46 = vmax.f32 %v13067_v33, 0.0  ;;  %v13068_v31 = vld [vmem:[#allocation68_spill] sm:$0xff]  ;;  %v13069_v41 = vld [vmem:[#allocation70_spill] sm:$0xff] }
 0x777   : > { %4647 = vst.msk [vmem:[%s12465_s4 + $0xc0] sm:$0xff] %vm2534_vm12, %v4583_v29  ;;  %4648 = vst.msk [vmem:[%s12465_s4 + $0xc8] sm:$0xff] %vm2534_vm12, %v4584_v9  ;;  %v4608_v17 = vmax.f32 %v13068_v31, 0.0  ;;  %v4609_v38 = vmax.f32 %v13069_v41, 0.0  ;;  %v13070_v42 = vld [vmem:[#allocation72_spill] sm:$0xff]  ;;  %v4612_v23 = vmax.f32 %v11260_v21, 0.0 }
 0x778   : > { %4649 = vst.msk [vmem:[%s12465_s4 + $0xd0] sm:$0xff] %vm2534_vm12, %v4585_v28  ;;  %4650 = vst.msk [vmem:[%s12465_s4 + $0xd8] sm:$0xff] %vm2534_vm12, %v4586_v47  ;;  %v4610_v2 = vmax.f32 %v13070_v42, 0.0  ;;  %v4613_v3 = vmax.f32 %v11264_v30, 0.0  ;;  %v4614_v5 = vmax.f32 %v11268_v55, 0.0  ;;  %v4615_v62 = vmax.f32 %v11272_v8, 0.0 }
 0x779   : > { %4651 = vst.msk [vmem:[%s12465_s4 + $0xe0] sm:$0xff] %vm2534_vm12, %v4587_v32  ;;  %4652 = vst.msk [vmem:[%s12465_s4 + $0xe8] sm:$0xff] %vm2534_vm12, %v4588_v63  ;;  %v4616_v21 = vmax.f32 %v11276_v19, 0.0  ;;  %v13071_v30 = vld [vmem:[#allocation75_spill] sm:$0xff]  ;;  %v13072_v49 = vld [vmem:[#allocation76_spill] sm:$0xff]  ;;  %v4622_v45 = vmax.f32 %v11300_v16, 0.0 }
 0x77a   : > { %4653 = vst.msk [vmem:[%s12465_s4 + $0xf0] sm:$0xff] %vm2534_vm12, %v4589_v56  ;;  %4654 = vst.msk [vmem:[%s12465_s4 + $0xf8] sm:$0xff] %vm2534_vm12, %v4590_v40  ;;  %v4617_v55 = vmax.f32 %v13071_v30, 0.0  ;;  %v4618_v22 = vmax.f32 %v13072_v49, 0.0  ;;  %v13073_v8 = vld [vmem:[#allocation77_spill] sm:$0xff]  ;;  %v13075_v39 = vld [vmem:[#allocation82_spill] sm:$0xff] }
 0x77b   : > { %4655 = vst.msk [vmem:[%s12465_s4 + $0x100] sm:$0xff] %vm2534_vm12, %v4591_v52  ;;  %4656 = vst.msk [vmem:[%s12465_s4 + $0x108] sm:$0xff] %vm2534_vm12, %v4592_v27  ;;  %v4619_v19 = vmax.f32 %v13073_v8, 0.0  ;;  %v13074_v15 = vld [vmem:[#allocation81_spill] sm:$0xff]  ;;  %v4621_v24 = vmax.f32 %v13075_v39, 0.0  ;;  %v13076_v16 = vld [vmem:[#allocation51_spill] sm:$0xff] }
 0x77c   : > { %4657 = vst.msk [vmem:[%s12465_s4 + $0x110] sm:$0xff] %vm2534_vm12, %v4593_v4  ;;  %4658 = vst.msk [vmem:[%s12465_s4 + $0x118] sm:$0xff] %vm2534_vm12, %v4594_v11  ;;  %v4620_v26 = vmax.f32 %v13074_v15, 0.0  ;;  %v11610_v12 = vmul.f32 %v13076_v16, %v11530_v57  ;;  %v13077_v48 = vld [vmem:[#allocation52_spill] sm:$0xff]  ;;  %v13078_v36 = vld [vmem:[#allocation54_spill] sm:$0xff] }
 0x77d   : > { %4659 = vst.msk [vmem:[%s12465_s4 + $0x120] sm:$0xff] %vm2534_vm12, %v4595_v59  ;;  %4660 = vst.msk [vmem:[%s12465_s4 + $0x128] sm:$0xff] %vm2534_vm12, %v4596_v1  ;;  %v11614_v54 = vmul.f32 %v13077_v48, %v11530_v57  ;;  %v11618_v37 = vmul.f32 %v13078_v36, %v11530_v57  ;;  %v13079_v44 = vld [vmem:[#allocation56_spill] sm:$0xff]  ;;  %v13080_v20 = vld [vmem:[#allocation58_spill] sm:$0xff] }
 0x77e   : > { %4661 = vst.msk [vmem:[%s12465_s4 + $0x130] sm:$0xff] %vm2534_vm12, %v4597_v14  ;;  %4662 = vst.msk [vmem:[%s12465_s4 + $0x138] sm:$0xff] %vm2534_vm12, %v4598_v58  ;;  %v11622_v18 = vmul.f32 %v13079_v44, %v11530_v57  ;;  %v11642_v6 = vmul.f32 %v13080_v20, %v11530_v57  ;;  %v13081_v61 = vld [vmem:[#allocation60_spill] sm:$0xff]  ;;  %v13082_v29 = vld [vmem:[#allocation23_spill] sm:$0xff] }
 0x77f   : > { %4663 = vst.msk [vmem:[%s12465_s4 + $0x140] sm:$0xff] %vm2534_vm12, %v4599_v50  ;;  %4664 = vst.msk [vmem:[%s12465_s4 + $0x148] sm:$0xff] %vm2534_vm12, %v4600_v51  ;;  %v11646_v60 = vmul.f32 %v13081_v61, %v11530_v57  ;;  %v11650_v9 = vmul.f32 %v13082_v29, %v11530_v57  ;;  %v13083_v28 = vld [vmem:[#allocation25_spill] sm:$0xff]  ;;  %v13085_v56 = vld [vmem:[#allocation22_spill] sm:$0xff] }
 0x780   : > { %4665 = vst.msk [vmem:[%s12465_s4 + $0x150] sm:$0xff] %vm2534_vm12, %v4601_v25  ;;  %4666 = vst.msk [vmem:[%s12465_s4 + $0x158] sm:$0xff] %vm2534_vm12, %v4602_v0  ;;  %v11654_v47 = vmul.f32 %v13083_v28, %v11530_v57  ;;  %v13084_v32 = vld [vmem:[#allocation9_spill] sm:$0xff]  ;;  %v11662_v40 = vmul.f32 %v13085_v56, %v11530_v57  ;;  %v13086_v52 = vld [vmem:[#allocation24_spill] sm:$0xff] }
 0x781   : > { %4667 = vst.msk [vmem:[%s12465_s4 + $0x160] sm:$0xff] %vm2534_vm12, %v4603_v43  ;;  %4668 = vst.msk [vmem:[%s12465_s4 + $0x168] sm:$0xff] %vm2534_vm12, %v4604_v13  ;;  %v11658_v63 = vmul.f32 %v13084_v32, %v11530_v57  ;;  %v11666_v27 = vmul.f32 %v13086_v52, %v11530_v57  ;;  %v13087_v4 = vld [vmem:[#allocation7_spill] sm:$0xff]  ;;  %v13088_v59 = vld [vmem:[#allocation8_spill] sm:$0xff] }
 0x782   : > { %4669 = vst.msk [vmem:[%s12465_s4 + $0x170] sm:$0xff] %vm2534_vm12, %v4605_v34  ;;  %4670 = vst.msk [vmem:[%s12465_s4 + $0x178] sm:$0xff] %vm2534_vm12, %v4606_v53  ;;  %v11670_v11 = vmul.f32 %v13087_v4, %v11530_v57  ;;  %v11674_v1 = vmul.f32 %v13088_v59, %v11530_v57  ;;  %v13089_v14 = vld [vmem:[#allocation61_spill] sm:$0xff]  ;;  %v13091_v25 = vld [vmem:[#allocation16_spill] sm:$0xff] }
 0x783   : > { %4671 = vst.msk [vmem:[%s12465_s4 + $0x180] sm:$0xff] %vm2534_vm12, %v4607_v46  ;;  %4672 = vst.msk [vmem:[%s12465_s4 + $0x188] sm:$0xff] %vm2534_vm12, %v4608_v17  ;;  %v11678_v58 = vmul.f32 %v13089_v14, %v11530_v57  ;;  %v13090_v50 = vld [vmem:[#allocation53_spill] sm:$0xff]  ;;  %v11686_v0 = vmul.f32 %v13091_v25, %v11530_v57  ;;  %v13092_v43 = vld [vmem:[#allocation62_spill] sm:$0xff] }
 0x784   : > { %4673 = vst.msk [vmem:[%s12465_s4 + $0x190] sm:$0xff] %vm2534_vm12, %v4609_v38  ;;  %4674 = vst.msk [vmem:[%s12465_s4 + $0x198] sm:$0xff] %vm2534_vm12, %v4610_v2  ;;  %v11682_v51 = vmul.f32 %v13090_v50, %v11530_v57  ;;  %v11690_v13 = vmul.f32 %v13092_v43, %v11530_v57  ;;  %v13093_v35 = vld [vmem:[#allocation63_spill] sm:$0xff]  ;;  %v13094_v10 = vld [vmem:[#allocation64_spill] sm:$0xff] }
 0x785   : > { %4675 = vst.msk [vmem:[%s12465_s4 + $0x1a0] sm:$0xff] %vm2534_vm12, %v4611_v7  ;;  %4676 = vst.msk [vmem:[%s12465_s4 + $0x1a8] sm:$0xff] %vm2534_vm12, %v4612_v23  ;;  %v11694_v34 = vmul.f32 %v13093_v35, %v11530_v57  ;;  %v11698_v53 = vmul.f32 %v13094_v10, %v11530_v57  ;;  %v13095_v33 = vld [vmem:[#allocation65_spill] sm:$0xff]  ;;  %v13096_v31 = vld [vmem:[#allocation67_spill] sm:$0xff] }
 0x786   : > { %4677 = vst.msk [vmem:[%s12465_s4 + $0x1b0] sm:$0xff] %vm2534_vm12, %v4613_v3  ;;  %4678 = vst.msk [vmem:[%s12465_s4 + $0x1b8] sm:$0xff] %vm2534_vm12, %v4614_v5  ;;  %v11702_v46 = vmul.f32 %v13095_v33, %v11530_v57  ;;  %v11706_v17 = vmul.f32 %v13096_v31, %v11530_v57  ;;  %v13097_v41 = vld [vmem:[#allocation69_spill] sm:$0xff]  ;;  %v13098_v42 = vld [vmem:[#allocation71_spill] sm:$0xff] }
 0x787   : > { %4679 = vst.msk [vmem:[%s12465_s4 + $0x1c0] sm:$0xff] %vm2534_vm12, %v4615_v62  ;;  %4680 = vst.msk [vmem:[%s12465_s4 + $0x1c8] sm:$0xff] %vm2534_vm12, %v4616_v21  ;;  %v11710_v38 = vmul.f32 %v13097_v41, %v11530_v57  ;;  %v11714_v2 = vmul.f32 %v13098_v42, %v11530_v57  ;;  %v13099_v7 = vld [vmem:[#allocation73_spill] sm:$0xff]  ;;  %v13100_v3 = vld [vmem:[#allocation74_spill] sm:$0xff] }
 0x788   : > { %4681 = vst.msk [vmem:[%s12465_s4 + $0x1d0] sm:$0xff] %vm2534_vm12, %v4617_v55  ;;  %4682 = vst.msk [vmem:[%s12465_s4 + $0x1d8] sm:$0xff] %vm2534_vm12, %v4618_v22  ;;  %v11718_v23 = vmul.f32 %v13099_v7, %v11530_v57  ;;  %v11722_v5 = vmul.f32 %v13100_v3, %v11530_v57  ;;  %v13101_v62 = vld [vmem:[#allocation31_spill] sm:$0xff]  ;;  %v13103_v49 = vld [vmem:[#allocation38_spill] sm:$0xff] }
 0x789   : > { %4683 = vst.msk [vmem:[%s12465_s4 + $0x1e0] sm:$0xff] %vm2534_vm12, %v4619_v19  ;;  %4684 = vst.msk [vmem:[%s12465_s4 + $0x1e8] sm:$0xff] %vm2534_vm12, %v4620_v26  ;;  %v11726_v21 = vmul.f32 %v13101_v62, %v11530_v57  ;;  %v13102_v30 = vld [vmem:[#allocation35_spill] sm:$0xff]  ;;  %v11734_v22 = vmul.f32 %v13103_v49, %v11530_v57  ;;  %v13104_v8 = vld [vmem:[#allocation41_spill] sm:$0xff] }
 0x78a   : > { %4685 = vst.msk [vmem:[%s12465_s4 + $0x1f0] sm:$0xff] %vm2534_vm12, %v4621_v24  ;;  %4686 = vst.msk [vmem:[%s12465_s4 + $0x1f8] sm:$0xff] %vm2534_vm12, %v4622_v45  ;;  %v11730_v55 = vmul.f32 %v13102_v30, %v11530_v57  ;;  %v11738_v19 = vmul.f32 %v13104_v8, %v11530_v57  ;;  %v13105_v15 = vld [vmem:[#allocation20_spill] sm:$0xff]  ;;  %v13106_v39 = vld [vmem:[#allocation26_spill] sm:$0xff] }
 0x78b   : > { %v11742_v26 = vmul.f32 %v13105_v15, %v11530_v57  ;;  %v11746_v24 = vmul.f32 %v13106_v39, %v11530_v57  ;;  %v13107_v45 = vld [vmem:[#allocation28_spill] sm:$0xff]  ;;  %v13108_v48 = vld [vmem:[#allocation29_spill] sm:$0xff]  ;;  %v13109_v44 = vld [vmem:[#allocation30_spill] sm:$0xff] }
 0x78c   : > { %v11750_v16 = vmul.f32 %v13107_v45, %v11530_v57  ;;  %v11754_v36 = vmul.f32 %v13108_v48, %v11530_v57  ;;  %v11758_v20 = vmul.f32 %v13109_v44, %v11530_v57  ;;  %v13110_v61 = vld [vmem:[#allocation32_spill] sm:$0xff]  ;;  %v13111_v28 = vld [vmem:[#allocation33_spill] sm:$0xff]  ;;  %v13112_v56 = vld [vmem:[#allocation34_spill] sm:$0xff] }
 0x78d   : > { %v11762_v29 = vmul.f32 %v13110_v61, %v11530_v57  ;;  %v11766_v32 = vmul.f32 %v13111_v28, %v11530_v57  ;;  %v11770_v52 = vmul.f32 %v13112_v56, %v11530_v57  ;;  %v13113_v4 = vld [vmem:[#allocation36_spill] sm:$0xff]  ;;  %v13114_v14 = vld [vmem:[#allocation37_spill] sm:$0xff]  ;;  %v13115_v25 = vld [vmem:[#allocation39_spill] sm:$0xff] }
 0x78e   : > { %v11774_v59 = vmul.f32 %v13113_v4, %v11530_v57  ;;  %v11778_v50 = vmul.f32 %v13114_v14, %v11530_v57  ;;  %v11782_v43 = vmul.f32 %v13115_v25, %v11530_v57  ;;  %v13116_v35 = vld [vmem:[#allocation40_spill] sm:$0xff]  ;;  %v13117_v33 = vld [vmem:[#allocation10_spill] sm:$0xff]  ;;  %v13118_v41 = vld [vmem:[#allocation11_spill] sm:$0xff] }
 0x78f   : > { %v11786_v10 = vmul.f32 %v13116_v35, %v11530_v57  ;;  %v11790_v31 = vmul.f32 %v13117_v33, %v11530_v57  ;;  %v11794_v42 = vmul.f32 %v13118_v41, %v11530_v57  ;;  %v13119_v7 = vld [vmem:[#allocation42_spill] sm:$0xff]  ;;  %v13120_v62 = vld [vmem:[#allocation43_spill] sm:$0xff]  ;;  %v13121_v49 = vld [vmem:[#allocation44_spill] sm:$0xff]  ;;  %v11832_v33 = vpop.permute.xlu0 %4754 }
 0x790   : > { %v11798_v3 = vmul.f32 %v13119_v7, %v11530_v57  ;;  %v11802_v30 = vmul.f32 %v13120_v62, %v11530_v57  ;;  %v11806_v8 = vmul.f32 %v13121_v49, %v11530_v57  ;;  %v13122_v15 = vld [vmem:[#allocation12_spill] sm:$0xff]  ;;  %v13123_v45 = vld [vmem:[#allocation45_spill] sm:$0xff]  ;;  %v13125_v28 = vld [vmem:[#allocation46_spill] sm:$0xff] }
 0x791   : > { %v11810_v39 = vmul.f32 %v13122_v15, %v11530_v57  ;;  %v11814_v48 = vmul.f32 %v13123_v45, %v11530_v57  ;;  %v13124_v44 = vld [vmem:[#allocation13_spill] sm:$0xff]  ;;  %v11822_v56 = vmul.f32 %v13125_v28, %v11530_v57  ;;  %v13126_v4 = vld [vmem:[#allocation47_spill] sm:$0xff]  ;;  %v13127_v25 = vld [vmem:[#allocation14_spill] sm:$0xff] }
 0x792   : > { %v11818_v61 = vmul.f32 %v13124_v44, %v11530_v57  ;;  %v11826_v14 = vmul.f32 %v13126_v4, %v11530_v57  ;;  %v11830_v35 = vmul.f32 %v13127_v25, %v11530_v57  ;;  %v13129_v41 = vld [vmem:[#allocation15_spill] sm:$0xff]  ;;  %v13131_v62 = vld [vmem:[#allocation48_spill] sm:$0xff]  ;;  %v13133_v15 = vld [vmem:[#allocation49_spill] sm:$0xff] }
 0x793   : > { %v11836_v7 = vmul.f32 %v13129_v41, %v11530_v57  ;;  %v11840_v49 = vmul.f32 %v13131_v62, %v11530_v57  ;;  %v11844_v45 = vmul.f32 %v13133_v15, %v11530_v57  ;;  %v13135_v44 = vld [vmem:[#allocation50_spill] sm:$0xff]  ;;  %v13137_v4 = vld [vmem:[#allocation55_spill] sm:$0xff] }
 0x794   : > { %13128 = vst [vmem:[#allocation78_spill] sm:$0xff] %v11830_v35  ;;  %v11848_v28 = vmul.f32 %v13135_v44, %v11530_v57  ;;  %v11852_v25 = vmul.f32 %v13137_v4, %v11530_v57  ;;  %v13139_v35 = vld [vmem:[#allocation57_spill] sm:$0xff] }
 0x795   : > { %13130 = vst [vmem:[#allocation79_spill] sm:$0xff] %v11836_v7  ;;  %13132 = vst [vmem:[#allocation80_spill] sm:$0xff] %v11840_v49  ;;  %v11856_v41 = vmul.f32 %v13139_v35, %v11530_v57  ;;  %v13141_v7 = vld [vmem:[#allocation17_spill] sm:$0xff]  ;;  %v13142_v49 = vld [vmem:[#allocation59_spill] sm:$0xff] }
 0x796   : > { %13134 = vst [vmem:[#allocation66_spill] sm:$0xff] %v11844_v45  ;;  %13136 = vst [vmem:[#allocation68_spill] sm:$0xff] %v11848_v28  ;;  %v11860_v62 = vmul.f32 %v13141_v7, %v11530_v57  ;;  %v11864_v15 = vmul.f32 %v13142_v49, %v11530_v57  ;;  %v13143_v45 = vld [vmem:[#allocation18_spill] sm:$0xff]  ;;  %v13144_v28 = vld [vmem:[#allocation19_spill] sm:$0xff]  ;;  %v11884_v49 = vadd.f32 %v11832_v33, %v11610_v12 }
 0x797   : > { %13138 = vst [vmem:[#allocation70_spill] sm:$0xff] %v11852_v25  ;;  %13140 = vst [vmem:[#allocation72_spill] sm:$0xff] %v11856_v41  ;;  %v11868_v44 = vmul.f32 %v13143_v45, %v11530_v57  ;;  %v11872_v4 = vmul.f32 %v13144_v28, %v11530_v57  ;;  %v13145_v25 = vld [vmem:[#allocation21_spill] sm:$0xff]  ;;  %v13146_v41 = vld [vmem:[#allocation27_spill] sm:$0xff]  ;;  %v11888_v45 = vadd.f32 %v11832_v33, %v11614_v54 }
 0x798   : > { %v11876_v35 = vmul.f32 %v13145_v25, %v11530_v57  ;;  %v11880_v7 = vmul.f32 %v13146_v41, %v11530_v57  ;;  %v11892_v28 = vadd.f32 %v11832_v33, %v11618_v37  ;;  %v11896_v25 = vadd.f32 %v11832_v33, %v11622_v18 }
 0x799   : > { %v11900_v57 = vadd.f32 %v11832_v33, %v11642_v6  ;;  %v11904_v12 = vadd.f32 %v11832_v33, %v11646_v60  ;;  %v11908_v54 = vadd.f32 %v11832_v33, %v11650_v9  ;;  %v11912_v37 = vadd.f32 %v11832_v33, %v11654_v47 }
 0x79a   : > { %v11916_v18 = vadd.f32 %v11832_v33, %v11658_v63  ;;  %v11920_v6 = vadd.f32 %v11832_v33, %v11662_v40  ;;  %v11924_v60 = vadd.f32 %v11832_v33, %v11666_v27  ;;  %v11928_v9 = vadd.f32 %v11832_v33, %v11670_v11 }
 0x79b   : > { %v11932_v47 = vadd.f32 %v11832_v33, %v11674_v1  ;;  %v11936_v63 = vadd.f32 %v11832_v33, %v11678_v58  ;;  %v11940_v40 = vadd.f32 %v11832_v33, %v11682_v51  ;;  %v11944_v27 = vadd.f32 %v11832_v33, %v11686_v0  ;;  %v13152_v41 = vld [vmem:[#allocation78_spill] sm:$0xff] }
 0x79c   : > { %v11948_v11 = vadd.f32 %v11832_v33, %v11690_v13  ;;  %v11952_v1 = vadd.f32 %v11832_v33, %v11694_v34  ;;  %v11956_v58 = vadd.f32 %v11832_v33, %v11698_v53  ;;  %v11960_v51 = vadd.f32 %v11832_v33, %v11702_v46 }
 0x79d   : > { %v11964_v0 = vadd.f32 %v11832_v33, %v11706_v17  ;;  %v11968_v13 = vadd.f32 %v11832_v33, %v11710_v38  ;;  %v11972_v34 = vadd.f32 %v11832_v33, %v11714_v2  ;;  %v11976_v53 = vadd.f32 %v11832_v33, %v11718_v23 }
 0x79e   : > { %v11980_v46 = vadd.f32 %v11832_v33, %v11722_v5  ;;  %v11984_v17 = vadd.f32 %v11832_v33, %v11726_v21  ;;  %v11988_v38 = vadd.f32 %v11832_v33, %v11730_v55  ;;  %v11992_v2 = vadd.f32 %v11832_v33, %v11734_v22 }
 0x79f   : > { %v11996_v23 = vadd.f32 %v11832_v33, %v11738_v19  ;;  %v12000_v5 = vadd.f32 %v11832_v33, %v11742_v26  ;;  %v12004_v21 = vadd.f32 %v11832_v33, %v11746_v24  ;;  %v12008_v55 = vadd.f32 %v11832_v33, %v11750_v16 }
 0x7a0   : > { %v12012_v22 = vadd.f32 %v11832_v33, %v11754_v36  ;;  %v12016_v19 = vadd.f32 %v11832_v33, %v11758_v20  ;;  %v12020_v26 = vadd.f32 %v11832_v33, %v11762_v29  ;;  %v12024_v24 = vadd.f32 %v11832_v33, %v11766_v32 }
 0x7a1   : > { %v12028_v16 = vadd.f32 %v11832_v33, %v11770_v52  ;;  %v12032_v36 = vadd.f32 %v11832_v33, %v11774_v59  ;;  %v12036_v20 = vadd.f32 %v11832_v33, %v11778_v50  ;;  %v12040_v29 = vadd.f32 %v11832_v33, %v11782_v43 }
 0x7a2   : > { %v12044_v32 = vadd.f32 %v11832_v33, %v11786_v10  ;;  %v12048_v52 = vadd.f32 %v11832_v33, %v11790_v31  ;;  %v12052_v59 = vadd.f32 %v11832_v33, %v11794_v42  ;;  %v12056_v50 = vadd.f32 %v11832_v33, %v11798_v3 }
 0x7a3   : > { %v12060_v43 = vadd.f32 %v11832_v33, %v11802_v30  ;;  %v12064_v10 = vadd.f32 %v11832_v33, %v11806_v8  ;;  %v12068_v31 = vadd.f32 %v11832_v33, %v11810_v39  ;;  %v12072_v42 = vadd.f32 %v11832_v33, %v11814_v48 }
 0x7a4   : > { %v12076_v3 = vadd.f32 %v11832_v33, %v11818_v61  ;;  %v12080_v30 = vadd.f32 %v11832_v33, %v11822_v56  ;;  %v12084_v8 = vadd.f32 %v11832_v33, %v11826_v14  ;;  %v12088_v39 = vadd.f32 %v11832_v33, %v13152_v41 }
 0x7a5   : > { %13147 = vst [vmem:[#allocation75_spill] sm:$0xff] %v12068_v31  ;;  %13148 = vst [vmem:[#allocation76_spill] sm:$0xff] %v12072_v42  ;;  %v13154_v31 = vld [vmem:[#allocation79_spill] sm:$0xff]  ;;  %v13155_v42 = vld [vmem:[#allocation80_spill] sm:$0xff] }
 0x7a6   : > { %13149 = vst [vmem:[#allocation77_spill] sm:$0xff] %v12076_v3  ;;  %13150 = vst [vmem:[#allocation81_spill] sm:$0xff] %v12080_v30  ;;  %v12092_v48 = vadd.f32 %v11832_v33, %v13154_v31  ;;  %v12096_v61 = vadd.f32 %v11832_v33, %v13155_v42  ;;  %v13156_v3 = vld [vmem:[#allocation66_spill] sm:$0xff]  ;;  %v13157_v30 = vld [vmem:[#allocation68_spill] sm:$0xff]  ;;  %v12116_v42 = vadd.f32 %v11832_v33, %v11860_v62 }
 0x7a7   : > { %13151 = vst [vmem:[#allocation82_spill] sm:$0xff] %v12084_v8  ;;  %13153 = vst [vmem:[#allocation51_spill] sm:$0xff] %v12088_v39  ;;  %v12100_v56 = vadd.f32 %v11832_v33, %v13156_v3  ;;  %v12104_v14 = vadd.f32 %v11832_v33, %v13157_v30  ;;  %v13158_v8 = vld [vmem:[#allocation70_spill] sm:$0xff]  ;;  %v13159_v39 = vld [vmem:[#allocation72_spill] sm:$0xff]  ;;  %v12120_v3 = vadd.f32 %v11832_v33, %v11864_v15  ;;  %v4822_v15 = vmax.f32 %v11888_v45, 0.0 }
 0x7a8   : > { %v12108_v41 = vadd.f32 %v11832_v33, %v13158_v8  ;;  %v12112_v31 = vadd.f32 %v11832_v33, %v13159_v39  ;;  %13160 = vst [vmem:[#allocation52_spill] sm:$0xff] %v12116_v42  ;;  %v12124_v30 = vadd.f32 %v11832_v33, %v11868_v44  ;;  %v12128_v8 = vadd.f32 %v11832_v33, %v11872_v4 }
 0x7a9   : > { %13161 = vst [vmem:[#allocation54_spill] sm:$0xff] %v12120_v3  ;;  %v12132_v39 = vadd.f32 %v11832_v33, %v11876_v35  ;;  %v12136_v62 = vadd.f32 %v11832_v33, %v11880_v7  ;;  %v4821_v42 = vmax.f32 %v11884_v49, 0.0  ;;  %v4823_v3 = vmax.f32 %v11892_v28, 0.0  ;;  %4886 = vst.msk [vmem:[%s12465_s4 + $0x8] sm:$0xff] %vm2673_vm13, %v4822_v15 }
 0x7aa   : > { %13162 = vst [vmem:[#allocation56_spill] sm:$0xff] %v12124_v30  ;;  %13163 = vst [vmem:[#allocation58_spill] sm:$0xff] %v12128_v8  ;;  %v4824_v44 = vmax.f32 %v11896_v25, 0.0  ;;  %v4825_v30 = vmax.f32 %v11900_v57, 0.0  ;;  %v4826_v4 = vmax.f32 %v11904_v12, 0.0  ;;  %v4827_v8 = vmax.f32 %v11908_v54, 0.0 }
 0x7ab   : > { %13164 = vst [vmem:[#allocation60_spill] sm:$0xff] %v12132_v39  ;;  %v4828_v35 = vmax.f32 %v11912_v37, 0.0  ;;  %v4829_v39 = vmax.f32 %v11916_v18, 0.0  ;;  %v4830_v33 = vmax.f32 %v11920_v6, 0.0  ;;  %v4831_v7 = vmax.f32 %v11924_v60, 0.0  ;;  %4885 = vst.msk [vmem:[%s12465_s4] sm:$0xff] %vm2673_vm13, %v4821_v42 }
 0x7ac   : > { %v4832_v49 = vmax.f32 %v11928_v9, 0.0  ;;  %4887 = vst.msk [vmem:[%s12465_s4 + $0x10] sm:$0xff] %vm2673_vm13, %v4823_v3  ;;  %4888 = vst.msk [vmem:[%s12465_s4 + $0x18] sm:$0xff] %vm2673_vm13, %v4824_v44  ;;  %v4833_v45 = vmax.f32 %v11932_v47, 0.0  ;;  %v4834_v28 = vmax.f32 %v11936_v63, 0.0  ;;  %v4835_v25 = vmax.f32 %v11940_v40, 0.0 }
 0x7ad   : > { %v4836_v57 = vmax.f32 %v11944_v27, 0.0  ;;  %4889 = vst.msk [vmem:[%s12465_s4 + $0x20] sm:$0xff] %vm2673_vm13, %v4825_v30  ;;  %4890 = vst.msk [vmem:[%s12465_s4 + $0x28] sm:$0xff] %vm2673_vm13, %v4826_v4  ;;  %v4837_v12 = vmax.f32 %v11948_v11, 0.0  ;;  %v4838_v54 = vmax.f32 %v11952_v1, 0.0  ;;  %v4839_v37 = vmax.f32 %v11956_v58, 0.0 }
 0x7ae   : > { %4891 = vst.msk [vmem:[%s12465_s4 + $0x30] sm:$0xff] %vm2673_vm13, %v4827_v8  ;;  %4892 = vst.msk [vmem:[%s12465_s4 + $0x38] sm:$0xff] %vm2673_vm13, %v4828_v35  ;;  %v4840_v18 = vmax.f32 %v11960_v51, 0.0  ;;  %v4841_v6 = vmax.f32 %v11964_v0, 0.0  ;;  %v4842_v60 = vmax.f32 %v11968_v13, 0.0  ;;  %v4843_v9 = vmax.f32 %v11972_v34, 0.0 }
 0x7af   : > { %4893 = vst.msk [vmem:[%s12465_s4 + $0x40] sm:$0xff] %vm2673_vm13, %v4829_v39  ;;  %4894 = vst.msk [vmem:[%s12465_s4 + $0x48] sm:$0xff] %vm2673_vm13, %v4830_v33  ;;  %v4844_v47 = vmax.f32 %v11976_v53, 0.0  ;;  %v4845_v63 = vmax.f32 %v11980_v46, 0.0  ;;  %v4846_v40 = vmax.f32 %v11984_v17, 0.0  ;;  %v4847_v27 = vmax.f32 %v11988_v38, 0.0 }
 0x7b0   : > { %4895 = vst.msk [vmem:[%s12465_s4 + $0x50] sm:$0xff] %vm2673_vm13, %v4831_v7  ;;  %4896 = vst.msk [vmem:[%s12465_s4 + $0x58] sm:$0xff] %vm2673_vm13, %v4832_v49  ;;  %v4848_v11 = vmax.f32 %v11992_v2, 0.0  ;;  %v4849_v1 = vmax.f32 %v11996_v23, 0.0  ;;  %v4850_v58 = vmax.f32 %v12000_v5, 0.0  ;;  %v4851_v51 = vmax.f32 %v12004_v21, 0.0 }
 0x7b1   : > { %4897 = vst.msk [vmem:[%s12465_s4 + $0x60] sm:$0xff] %vm2673_vm13, %v4833_v45  ;;  %4898 = vst.msk [vmem:[%s12465_s4 + $0x68] sm:$0xff] %vm2673_vm13, %v4834_v28  ;;  %v4852_v0 = vmax.f32 %v12008_v55, 0.0  ;;  %v4853_v13 = vmax.f32 %v12012_v22, 0.0  ;;  %v4854_v34 = vmax.f32 %v12016_v19, 0.0  ;;  %v4855_v53 = vmax.f32 %v12020_v26, 0.0 }
 0x7b2   : > { %4899 = vst.msk [vmem:[%s12465_s4 + $0x70] sm:$0xff] %vm2673_vm13, %v4835_v25  ;;  %4900 = vst.msk [vmem:[%s12465_s4 + $0x78] sm:$0xff] %vm2673_vm13, %v4836_v57  ;;  %v4856_v46 = vmax.f32 %v12024_v24, 0.0  ;;  %v4857_v17 = vmax.f32 %v12028_v16, 0.0  ;;  %v4858_v38 = vmax.f32 %v12032_v36, 0.0  ;;  %v4859_v2 = vmax.f32 %v12036_v20, 0.0 }
 0x7b3   : > { %4901 = vst.msk [vmem:[%s12465_s4 + $0x80] sm:$0xff] %vm2673_vm13, %v4837_v12  ;;  %4902 = vst.msk [vmem:[%s12465_s4 + $0x88] sm:$0xff] %vm2673_vm13, %v4838_v54  ;;  %v4860_v23 = vmax.f32 %v12040_v29, 0.0  ;;  %v4861_v5 = vmax.f32 %v12044_v32, 0.0  ;;  %v4862_v21 = vmax.f32 %v12048_v52, 0.0  ;;  %v4863_v55 = vmax.f32 %v12052_v59, 0.0 }
 0x7b4   : > { %4903 = vst.msk [vmem:[%s12465_s4 + $0x90] sm:$0xff] %vm2673_vm13, %v4839_v37  ;;  %4904 = vst.msk [vmem:[%s12465_s4 + $0x98] sm:$0xff] %vm2673_vm13, %v4840_v18  ;;  %v4864_v22 = vmax.f32 %v12056_v50, 0.0  ;;  %v4865_v19 = vmax.f32 %v12060_v43, 0.0  ;;  %v4866_v26 = vmax.f32 %v12064_v10, 0.0  ;;  %v13165_v24 = vld [vmem:[#allocation75_spill] sm:$0xff] }
 0x7b5   : > { %4905 = vst.msk [vmem:[%s12465_s4 + $0xa0] sm:$0xff] %vm2673_vm13, %v4841_v6  ;;  %4906 = vst.msk [vmem:[%s12465_s4 + $0xa8] sm:$0xff] %vm2673_vm13, %v4842_v60  ;;  %v4867_v16 = vmax.f32 %v13165_v24, 0.0  ;;  %v13166_v36 = vld [vmem:[#allocation76_spill] sm:$0xff]  ;;  %v13167_v29 = vld [vmem:[#allocation77_spill] sm:$0xff]  ;;  %v4873_v3 = vmax.f32 %v12092_v48, 0.0 }
 0x7b6   : > { %4907 = vst.msk [vmem:[%s12465_s4 + $0xb0] sm:$0xff] %vm2673_vm13, %v4843_v9  ;;  %4908 = vst.msk [vmem:[%s12465_s4 + $0xb8] sm:$0xff] %vm2673_vm13, %v4844_v47  ;;  %v4868_v20 = vmax.f32 %v13166_v36, 0.0  ;;  %v4869_v32 = vmax.f32 %v13167_v29, 0.0  ;;  %v13168_v52 = vld [vmem:[#allocation81_spill] sm:$0xff]  ;;  %v13169_v50 = vld [vmem:[#allocation82_spill] sm:$0xff] }
 0x7b7   : > { %4909 = vst.msk [vmem:[%s12465_s4 + $0xc0] sm:$0xff] %vm2673_vm13, %v4845_v63  ;;  %4910 = vst.msk [vmem:[%s12465_s4 + $0xc8] sm:$0xff] %vm2673_vm13, %v4846_v40  ;;  %v4870_v59 = vmax.f32 %v13168_v52, 0.0  ;;  %v4871_v43 = vmax.f32 %v13169_v50, 0.0  ;;  %v13170_v10 = vld [vmem:[#allocation51_spill] sm:$0xff]  ;;  %v4874_v30 = vmax.f32 %v12096_v61, 0.0 }
 0x7b8   : > { %4911 = vst.msk [vmem:[%s12465_s4 + $0xd0] sm:$0xff] %vm2673_vm13, %v4847_v27  ;;  %4912 = vst.msk [vmem:[%s12465_s4 + $0xd8] sm:$0xff] %vm2673_vm13, %v4848_v11  ;;  %v4872_v42 = vmax.f32 %v13170_v10, 0.0  ;;  %v4875_v8 = vmax.f32 %v12100_v56, 0.0  ;;  %v4876_v39 = vmax.f32 %v12104_v14, 0.0  ;;  %v4877_v48 = vmax.f32 %v12108_v41, 0.0 }
 0x7b9   : > { %4913 = vst.msk [vmem:[%s12465_s4 + $0xe0] sm:$0xff] %vm2673_vm13, %v4849_v1  ;;  %4914 = vst.msk [vmem:[%s12465_s4 + $0xe8] sm:$0xff] %vm2673_vm13, %v4850_v58  ;;  %v4878_v61 = vmax.f32 %v12112_v31, 0.0  ;;  %v13171_v56 = vld [vmem:[#allocation52_spill] sm:$0xff]  ;;  %v13172_v15 = vld [vmem:[#allocation54_spill] sm:$0xff]  ;;  %v4884_v49 = vmax.f32 %v12136_v62, 0.0 }
 0x7ba   : > { %4915 = vst.msk [vmem:[%s12465_s4 + $0xf0] sm:$0xff] %vm2673_vm13, %v4851_v51  ;;  %4916 = vst.msk [vmem:[%s12465_s4 + $0xf8] sm:$0xff] %vm2673_vm13, %v4852_v0  ;;  %v4879_v14 = vmax.f32 %v13171_v56, 0.0  ;;  %v4880_v44 = vmax.f32 %v13172_v15, 0.0  ;;  %v13173_v41 = vld [vmem:[#allocation56_spill] sm:$0xff]  ;;  %v13174_v4 = vld [vmem:[#allocation58_spill] sm:$0xff] }
 0x7bb   : > { %4917 = vst.msk [vmem:[%s12465_s4 + $0x100] sm:$0xff] %vm2673_vm13, %v4853_v13  ;;  %4918 = vst.msk [vmem:[%s12465_s4 + $0x108] sm:$0xff] %vm2673_vm13, %v4854_v34  ;;  %v4881_v31 = vmax.f32 %v13173_v41, 0.0  ;;  %v4882_v35 = vmax.f32 %v13174_v4, 0.0  ;;  %v13175_v33 = vld [vmem:[#allocation60_spill] sm:$0xff] }
 0x7bc   : > { %4919 = vst.msk [vmem:[%s12465_s4 + $0x110] sm:$0xff] %vm2673_vm13, %v4855_v53  ;;  %4920 = vst.msk [vmem:[%s12465_s4 + $0x118] sm:$0xff] %vm2673_vm13, %v4856_v46  ;;  %v4883_v7 = vmax.f32 %v13175_v33, 0.0 }
 0x7bd   : > { %4921 = vst.msk [vmem:[%s12465_s4 + $0x120] sm:$0xff] %vm2673_vm13, %v4857_v17  ;;  %4922 = vst.msk [vmem:[%s12465_s4 + $0x128] sm:$0xff] %vm2673_vm13, %v4858_v38 }
 0x7be   : > { %4923 = vst.msk [vmem:[%s12465_s4 + $0x130] sm:$0xff] %vm2673_vm13, %v4859_v2  ;;  %4924 = vst.msk [vmem:[%s12465_s4 + $0x138] sm:$0xff] %vm2673_vm13, %v4860_v23 }
 0x7bf   : > { %4925 = vst.msk [vmem:[%s12465_s4 + $0x140] sm:$0xff] %vm2673_vm13, %v4861_v5  ;;  %4926 = vst.msk [vmem:[%s12465_s4 + $0x148] sm:$0xff] %vm2673_vm13, %v4862_v21 }
 0x7c0   : > { %4927 = vst.msk [vmem:[%s12465_s4 + $0x150] sm:$0xff] %vm2673_vm13, %v4863_v55  ;;  %4928 = vst.msk [vmem:[%s12465_s4 + $0x158] sm:$0xff] %vm2673_vm13, %v4864_v22 }
 0x7c1   : > { %4929 = vst.msk [vmem:[%s12465_s4 + $0x160] sm:$0xff] %vm2673_vm13, %v4865_v19  ;;  %4930 = vst.msk [vmem:[%s12465_s4 + $0x168] sm:$0xff] %vm2673_vm13, %v4866_v26 }
 0x7c2   : > { %4931 = vst.msk [vmem:[%s12465_s4 + $0x170] sm:$0xff] %vm2673_vm13, %v4867_v16  ;;  %4932 = vst.msk [vmem:[%s12465_s4 + $0x178] sm:$0xff] %vm2673_vm13, %v4868_v20 }
 0x7c3   : > { %4933 = vst.msk [vmem:[%s12465_s4 + $0x180] sm:$0xff] %vm2673_vm13, %v4869_v32  ;;  %4934 = vst.msk [vmem:[%s12465_s4 + $0x188] sm:$0xff] %vm2673_vm13, %v4870_v59 }
 0x7c4   : > { %4935 = vst.msk [vmem:[%s12465_s4 + $0x190] sm:$0xff] %vm2673_vm13, %v4871_v43  ;;  %4936 = vst.msk [vmem:[%s12465_s4 + $0x198] sm:$0xff] %vm2673_vm13, %v4872_v42 }
 0x7c5   : > { %4937 = vst.msk [vmem:[%s12465_s4 + $0x1a0] sm:$0xff] %vm2673_vm13, %v4873_v3  ;;  %4938 = vst.msk [vmem:[%s12465_s4 + $0x1a8] sm:$0xff] %vm2673_vm13, %v4874_v30 }
 0x7c6   : > { %4939 = vst.msk [vmem:[%s12465_s4 + $0x1b0] sm:$0xff] %vm2673_vm13, %v4875_v8  ;;  %4940 = vst.msk [vmem:[%s12465_s4 + $0x1b8] sm:$0xff] %vm2673_vm13, %v4876_v39 }
 0x7c7   : > { %4941 = vst.msk [vmem:[%s12465_s4 + $0x1c0] sm:$0xff] %vm2673_vm13, %v4877_v48  ;;  %4942 = vst.msk [vmem:[%s12465_s4 + $0x1c8] sm:$0xff] %vm2673_vm13, %v4878_v61 }
 0x7c8   : > { %4943 = vst.msk [vmem:[%s12465_s4 + $0x1d0] sm:$0xff] %vm2673_vm13, %v4879_v14  ;;  %4944 = vst.msk [vmem:[%s12465_s4 + $0x1d8] sm:$0xff] %vm2673_vm13, %v4880_v44 }
 0x7c9   : > { %4945 = vst.msk [vmem:[%s12465_s4 + $0x1e0] sm:$0xff] %vm2673_vm13, %v4881_v31  ;;  %4946 = vst.msk [vmem:[%s12465_s4 + $0x1e8] sm:$0xff] %vm2673_vm13, %v4882_v35 }
 0x7ca   : > { %4947 = vst.msk [vmem:[%s12465_s4 + $0x1f0] sm:$0xff] %vm2673_vm13, %v4883_v7  ;;  %4948 = vst.msk [vmem:[%s12465_s4 + $0x1f8] sm:$0xff] %vm2673_vm13, %v4884_v49 }
 0x7cb PF: > { %s14_s15 = sadd.s32 1, %s5499_s15  }
 0x7cc   : > { %p11_p5 = scmp.ge.s32.totalorder %s14_s15, 4  }
 0x7ce   :  { %13 = sbr.rel (!%p11_p5) target bundleno = 1 (0x1), region = 69 }

</bundles_post_ra>
